<compile_context>
chip_gen: v7x
topology: tpu7x:2x2x1
jax: 0.10.0
libtpu: 0.0.40
codegen_flags: <defaults>
</compile_context>

<pallas_src>
import math
import functools

import jax
import jax.numpy as jnp
from jax import lax
from jax.experimental import pallas as pl
from jax.experimental.pallas import tpu as pltpu

_EPS = 1e-6          # Norm eps (torch Norm: std-based, unbiased, eps added to std)
_NEG_INF = -1e9      # masked_fill value used by the reference attention


# ----------------------------- in-kernel helpers ----------------------------

def _norm(x, alpha, bias, eps):
    """Norm module: alpha * (x - mean) / (std + eps) + bias, unbiased std, per row."""
    d = x.shape[-1]
    mean = jnp.mean(x, axis=-1, keepdims=True)
    diff = x - mean
    var = jnp.sum(diff * diff, axis=-1, keepdims=True) * (1.0 / (d - 1))
    return alpha * diff / (jnp.sqrt(var) + eps) + bias


def _mha(x_q, kv_src, mbias, wqkv, bqkv, wo, bo, heads, scale, self_attn):
    """MultiHeadAttention with fused QKV projection and additive (pre-built) mask bias."""
    D = x_q.shape[-1]
    dk = D // heads
    if self_attn:
        qkv = jnp.dot(x_q, wqkv, preferred_element_type=jnp.float32) + bqkv       # (Sq, 3D)
        q, kc, vc = qkv[:, :D], qkv[:, D:2 * D], qkv[:, 2 * D:]
    else:
        q = jnp.dot(x_q, wqkv[:, :D], preferred_element_type=jnp.float32) + bqkv[:, :D]
        kvc = jnp.dot(kv_src, wqkv[:, D:], preferred_element_type=jnp.float32) + bqkv[:, D:]
        kc, vc = kvc[:, :D], kvc[:, D:]
    out = jnp.zeros((x_q.shape[0], D), jnp.float32)
    for h in range(heads):                                   # static unroll over heads
        sl = slice(h * dk, (h + 1) * dk)
        s = lax.dot_general(q[:, sl], kc[:, sl], (((1,), (1,)), ((), ())),
                            preferred_element_type=jnp.float32) * scale           # (Sq, Sk)
        s = s + mbias                                        # additive mask bias (hoisted)
        s = s - jnp.max(s, axis=-1, keepdims=True)           # stable softmax (== F.softmax)
        p = jnp.exp(s)
        p = p / jnp.sum(p, axis=-1, keepdims=True)
        oh = jnp.dot(p, vc[:, sl], preferred_element_type=jnp.float32)            # (Sq, dk)
        # concat(heads) @ Wo  ==  sum_h oh @ Wo[h*dk:(h+1)*dk, :]
        out = out + jnp.dot(oh, wo[sl, :], preferred_element_type=jnp.float32)
    return out + bo


def _ffn(x, w1, b1, w2, b2):
    h = jnp.maximum(jnp.dot(x, w1, preferred_element_type=jnp.float32) + b1, 0.0)
    return jnp.dot(h, w2, preferred_element_type=jnp.float32) + b2


# ----------------------------- single fused forward kernel -------------------

def _tfm_fused_kernel(xe_ref, xd_ref, mb_ref, pool_ref,
                      e_n1a, e_n1b, e_wqkv, e_bqkv, e_wo, e_bo,
                      e_n2a, e_n2b, e_w1, e_b1, e_w2, e_b2, e_fa, e_fb,
                      d_n1a, d_n1b, d_wqkv, d_bqkv, d_wo, d_bo,
                      d_n2a, d_n2b, d_w1, d_b1, d_w2, d_b2, d_fa, d_fb,
                      cls_w, cls_b, o_ref,
                      *, heads, enc_layers, dec_layers, eps):
    Se, D = xe_ref.shape
    dk = D // heads
    scale = 1.0 / math.sqrt(dk)

    # ---------------- Encoder: self-attn + FF_enc + pyramid halving ----------------
    x = xe_ref[...]                                          # (Se, D)
    S = Se
    for l in range(enc_layers):                              # static unroll over layers
        mb = mb_ref[l][:, :S]                                # (1, S) additive bias
        x2 = _norm(x, e_n1a[l], e_n1b[l], eps)               # norm_1
        x = x + _mha(x2, x2, mb, e_wqkv[l], e_bqkv[l], e_wo[l], e_bo[l],
                     heads, scale, self_attn=True)           # residual (dropout = identity)
        x2 = _norm(x, e_n2a[l], e_n2b[l], eps)               # norm_2
        z = x + _ffn(x2, e_w1[l], e_b1[l], e_w2[l], e_b2[l])
        # TODO(synk): FeedForward_enc source is absent from the reference; assumed = standard
        # FeedForward followed by (even,odd)/2 token pooling, so pool(x) + pool(ff) == pool(x+ff).
        x = jnp.dot(pool_ref[l][: S // 2, :S], z, preferred_element_type=jnp.float32)
        S //= 2
    e_out = _norm(x, e_fa[...], e_fb[...], eps)              # encoder final norm, (Se>>L, D)
    mb_dec = mb_ref[enc_layers][:, :S]                       # halved mask for cross-attn

    # ---------------- Decoder: cross-attn + FF ----------------
    xd = xd_ref[...]                                         # (St, D)
    for l in range(dec_layers):
        x2 = _norm(xd, d_n1a[l], d_n1b[l], eps)              # norm_1
        xd = xd + _mha(x2, e_out, mb_dec, d_wqkv[l], d_bqkv[l], d_wo[l], d_bo[l],
                       heads, scale, self_attn=False)
        x2 = _norm(xd, d_n2a[l], d_n2b[l], eps)              # norm_2
        xd = xd + _ffn(x2, d_w1[l], d_b1[l], d_w2[l], d_b2[l])
    xd = _norm(xd, d_fa[...], d_fb[...], eps)                # decoder final norm

    # ---------------- Classifier (only 128-lane-padded store reaches HBM) ----------------
    o_ref[...] = jnp.dot(xd, cls_w[...], preferred_element_type=jnp.float32) + cls_b[...]


# ----------------------------- host wrapper (one jit, one pallas_call) -------

@functools.partial(jax.jit, static_argnames=("heads", "num_classes"))
def tfm_classifier_forward(params, src, tgt, src_mask, *, heads, num_classes):
    enc, dec = params["enc"], params["dec"]
    B, Se = src.shape
    St = tgt.shape[1]
    D = enc["embed"].shape[1]
    L_e = enc["wqkv"].shape[0]
    L_d = dec["wqkv"].shape[0]
    d_ff = enc["w1"].shape[-1]
    n_pad = params["out_w_pad"].shape[1]
    assert Se % (1 << L_e) == 0 and Se >= (1 << L_e)

    # Embedder + PositionalEncoder (decoder path has no PE in the reference Decoder.forward).
    xe = enc["embed"][src] * math.sqrt(D) + enc["pe"][:Se][None, :, :]
    xd = dec["embed"][tgt]

    # Additive mask biases for every encoder stage plus the decoder cross-attention,
    # lane-padded to Se and stacked -> (B, L_e + 1, 1, Se).  Pyramid mask halving = odd | even.
    mb_list, cur = [], src_mask
    for l in range(L_e + 1):
        bias = jnp.where(cur == 0, jnp.float32(_NEG_INF), jnp.float32(0.0))        # (B,1,S_l)
        mb_list.append(jnp.pad(bias, ((0, 0), (0, 0), (0, Se - bias.shape[-1]))))
        if l < L_e:
            cur = cur[:, :, 0::2] | cur[:, :, 1::2]
    mb_all = jnp.stack(mb_list, axis=1).astype(jnp.float32)                        # (B,L_e+1,1,Se)

    # (even + odd) / 2 pooling matrices per encoder layer, zero-padded to (Se//2, Se).
    pools = []
    for l in range(L_e):
        S = Se >> l
        r = jnp.arange(S // 2)
        p = jnp.zeros((Se // 2, Se), jnp.float32)
        p = p.at[r, 2 * r].set(0.5).at[r, 2 * r + 1].set(0.5)
        pools.append(p)
    pool_all = jnp.stack(pools, axis=0)                                            # (L_e,Se//2,Se)

    c2 = lambda b: (0, 0)
    c3 = lambda b: (0, 0, 0)

    def layer_specs(L):
        return [pl.BlockSpec((L, 1, D), c3), pl.BlockSpec((L, 1, D), c3),          # n1_a, n1_b
                pl.BlockSpec((L, D, 3 * D), c3), pl.BlockSpec((L, 1, 3 * D), c3),  # wqkv, bqkv
                pl.BlockSpec((L, D, D), c3), pl.BlockSpec((L, 1, D), c3),          # wo, bo
                pl.BlockSpec((L, 1, D), c3), pl.BlockSpec((L, 1, D), c3),          # n2_a, n2_b
                pl.BlockSpec((L, D, d_ff), c3), pl.BlockSpec((L, 1, d_ff), c3),    # w1, b1
                pl.BlockSpec((L, d_ff, D), c3), pl.BlockSpec((L, 1, D), c3)]       # w2, b2

    def layer_args(p):
        return [p["n1_a"], p["n1_b"], p["wqkv"], p["bqkv"], p["wo"], p["bo"],
                p["n2_a"], p["n2_b"], p["w1"], p["b1"], p["w2"], p["b2"]]

    in_specs = ([pl.BlockSpec((None, Se, D), lambda b: (b, 0, 0)),                 # x_enc
                 pl.BlockSpec((None, St, D), lambda b: (b, 0, 0)),                 # x_dec
                 pl.BlockSpec((None, L_e + 1, 1, Se), lambda b: (b, 0, 0, 0)),     # mask biases
                 pl.BlockSpec((L_e, Se // 2, Se), c3)]                             # pool matrices
                + layer_specs(L_e)
                + [pl.BlockSpec((1, D), c2), pl.BlockSpec((1, D), c2)]             # enc final norm
                + layer_specs(L_d)
                + [pl.BlockSpec((1, D), c2), pl.BlockSpec((1, D), c2),             # dec final norm
                   pl.BlockSpec((D, n_pad), c2), pl.BlockSpec((1, n_pad), c2)])    # classifier

    args = ([xe, xd, mb_all, pool_all]
            + layer_args(enc) + [enc["norm_a"], enc["norm_b"]]
            + layer_args(dec) + [dec["norm_a"], dec["norm_b"],
                                 params["out_w_pad"], params["out_b_pad"]])

    kern = functools.partial(_tfm_fused_kernel, heads=heads,
                             enc_layers=L_e, dec_layers=L_d, eps=_EPS)
    logits_pad = pl.pallas_call(
        kern,
        out_shape=jax.ShapeDtypeStruct((B, St, n_pad), jnp.float32),
        grid=(B,),
        in_specs=in_specs,
        out_specs=pl.BlockSpec((None, St, n_pad), lambda b: (b, 0, 0)),
        compiler_params=pltpu.CompilerParams(
            dimension_semantics=("parallel",),
            vmem_limit_bytes=32 * 1024 * 1024),
    )(*args)
    return logits_pad[:, :, :num_classes]


# ----------------------------- deterministic init ----------------------------

class KeyGen:
    def __init__(self, key):
        self.key = key

    def __call__(self):
        self.key, sub = jax.random.split(self.key)
        return sub


def _init_linear(kg, din, dout):
    bound = 1.0 / math.sqrt(din)
    w = jax.random.uniform(kg(), (din, dout), jnp.float32, -bound, bound)
    b = jax.random.uniform(kg(), (1, dout), jnp.float32, -bound, bound)
    return w, b


def _init_layer(kg, d_model, d_ff):
    wq, bq = _init_linear(kg, d_model, d_model)
    wk, bk = _init_linear(kg, d_model, d_model)
    wv, bv = _init_linear(kg, d_model, d_model)
    wo, bo = _init_linear(kg, d_model, d_model)
    w1, b1 = _init_linear(kg, d_model, d_ff)
    w2, b2 = _init_linear(kg, d_ff, d_model)
    ones = jnp.ones((1, d_model), jnp.float32)
    zeros = jnp.zeros((1, d_model), jnp.float32)
    return {"n1_a": ones, "n1_b": zeros, "n2_a": ones, "n2_b": zeros,
            "wqkv": jnp.concatenate([wq, wk, wv], axis=1),   # fused (D, 3D) QKV projection
            "bqkv": jnp.concatenate([bq, bk, bv], axis=1),
            "wo": wo, "bo": bo, "w1": w1, "b1": b1, "w2": w2, "b2": b2}


def _stack_layers(layers):
    return {k: jnp.stack([lp[k] for lp in layers], axis=0) for k in layers[0]}


def positional_encoding(max_len, d_model):
    pos = jnp.arange(max_len, dtype=jnp.float32)[:, None]
    i = jnp.arange(0, d_model, 2, dtype=jnp.float32)
    div = jnp.power(10000.0, i / d_model)
    pe = jnp.zeros((max_len, d_model), jnp.float32)
    pe = pe.at[:, 0::2].set(jnp.sin(pos / div))
    pe = pe.at[:, 1::2].set(jnp.cos(pos / div))
    return pe


def init_params(key, vocab_size, d_model, heads, enc_layers, dec_layers,
                max_enc_len, num_classes, d_ff=2048):
    kg = KeyGen(key)
    enc = {"embed": jax.random.normal(kg(), (vocab_size, d_model), jnp.float32),
           "pe": positional_encoding(max_enc_len, d_model)}
    enc.update(_stack_layers([_init_layer(kg, d_model, d_ff) for _ in range(enc_layers)]))
    enc["norm_a"] = jnp.ones((1, d_model), jnp.float32)
    enc["norm_b"] = jnp.zeros((1, d_model), jnp.float32)

    dec = {"embed": jax.random.normal(kg(), (vocab_size, d_model), jnp.float32)}
    dec.update(_stack_layers([_init_layer(kg, d_model, d_ff) for _ in range(dec_layers)]))
    dec["norm_a"] = jnp.ones((1, d_model), jnp.float32)
    dec["norm_b"] = jnp.zeros((1, d_model), jnp.float32)

    out_w, out_b = _init_linear(kg, d_model, num_classes)
    n_pad = max(128, -(-num_classes // 128) * 128)            # lane-dense classifier output
    out_w_pad = jnp.zeros((d_model, n_pad), jnp.float32).at[:, :num_classes].set(out_w)
    out_b_pad = jnp.zeros((1, n_pad), jnp.float32).at[:, :num_classes].set(out_b)
    return {"enc": enc, "dec": dec, "out_w_pad": out_w_pad, "out_b_pad": out_b_pad}


# ----------------------------- main -------------------------------------------

if __name__ == "__main__":
    vocab_size = 50
    d_model = 32
    heads = 4
    enc_layers = 2
    dec_layers = 2
    num_classes = 5
    B, src_len, tgt_len = 2, 16, 8
    max_enc_len = 16

    key = jax.random.PRNGKey(0)
    kp, ks, kt = jax.random.split(key, 3)
    params = init_params(kp, vocab_size, d_model, heads, enc_layers, dec_layers,
                         max_enc_len, num_classes)

    src = jax.random.randint(ks, (B, src_len), 0, vocab_size, dtype=jnp.int32)
    tgt = jax.random.randint(kt, (B, tgt_len), 0, vocab_size, dtype=jnp.int32)
    src_mask = jnp.ones((B, 1, src_len), jnp.int32)
    src_mask = src_mask.at[1, 0, -3:].set(0)      # pad out last 3 positions of batch 1

    out = tfm_classifier_forward(params, src, tgt, src_mask,
                                 heads=heads, num_classes=num_classes)
    out = jax.block_until_ready(out)
    assert out.shape == (B, tgt_len, num_classes), out.shape
    assert bool(jnp.all(jnp.isfinite(out)))
    print("KERNEL_OK")
</pallas_src>

<mosaic_0001>
module attributes {stable_mosaic.version = 11 : i64} {
  func.func @_tfm_fused_kernel(%arg0: i32, %arg1: memref<1x16x32xf32, #tpu.memory_space<vmem>>, %arg2: memref<1x8x32xf32, #tpu.memory_space<vmem>>, %arg3: memref<1x3x1x16xf32, #tpu.memory_space<vmem>>, %arg4: memref<2x8x16xf32, #tpu.memory_space<vmem>>, %arg5: memref<2x1x32xf32, #tpu.memory_space<vmem>>, %arg6: memref<2x1x32xf32, #tpu.memory_space<vmem>>, %arg7: memref<2x32x96xf32, #tpu.memory_space<vmem>>, %arg8: memref<2x1x96xf32, #tpu.memory_space<vmem>>, %arg9: memref<2x32x32xf32, #tpu.memory_space<vmem>>, %arg10: memref<2x1x32xf32, #tpu.memory_space<vmem>>, %arg11: memref<2x1x32xf32, #tpu.memory_space<vmem>>, %arg12: memref<2x1x32xf32, #tpu.memory_space<vmem>>, %arg13: memref<2x32x2048xf32, #tpu.memory_space<vmem>>, %arg14: memref<2x1x2048xf32, #tpu.memory_space<vmem>>, %arg15: memref<2x2048x32xf32, #tpu.memory_space<vmem>>, %arg16: memref<2x1x32xf32, #tpu.memory_space<vmem>>, %arg17: memref<1x32xf32, #tpu.memory_space<vmem>>, %arg18: memref<1x32xf32, #tpu.memory_space<vmem>>, %arg19: memref<2x1x32xf32, #tpu.memory_space<vmem>>, %arg20: memref<2x1x32xf32, #tpu.memory_space<vmem>>, %arg21: memref<2x32x96xf32, #tpu.memory_space<vmem>>, %arg22: memref<2x1x96xf32, #tpu.memory_space<vmem>>, %arg23: memref<2x32x32xf32, #tpu.memory_space<vmem>>, %arg24: memref<2x1x32xf32, #tpu.memory_space<vmem>>, %arg25: memref<2x1x32xf32, #tpu.memory_space<vmem>>, %arg26: memref<2x1x32xf32, #tpu.memory_space<vmem>>, %arg27: memref<2x32x2048xf32, #tpu.memory_space<vmem>>, %arg28: memref<2x1x2048xf32, #tpu.memory_space<vmem>>, %arg29: memref<2x2048x32xf32, #tpu.memory_space<vmem>>, %arg30: memref<2x1x32xf32, #tpu.memory_space<vmem>>, %arg31: memref<1x32xf32, #tpu.memory_space<vmem>>, %arg32: memref<1x32xf32, #tpu.memory_space<vmem>>, %arg33: memref<32x128xf32, #tpu.memory_space<vmem>>, %arg34: memref<1x128xf32, #tpu.memory_space<vmem>>, %arg35: memref<1x8x128xf32, #tpu.memory_space<vmem>>) attributes {dimension_semantics = [#tpu.dimension_semantics<parallel>], iteration_bounds = array<i64: 2>, scalar_prefetch = 0 : i64, scratch_operands = 0 : i64, tpu.core_type = #tpu.core_type<tc>, window_params = [{transform_indices = @transform_0, window_bounds = array<i64: 1, 16, 32>}, {transform_indices = @transform_1, window_bounds = array<i64: 1, 8, 32>}, {transform_indices = @transform_2, window_bounds = array<i64: 1, 3, 1, 16>}, {pipeline_mode = #tpu.pipeline_mode<synchronous>, transform_indices = @transform_3, window_bounds = array<i64: 2, 8, 16>}, {pipeline_mode = #tpu.pipeline_mode<synchronous>, transform_indices = @transform_4, window_bounds = array<i64: 2, 1, 32>}, {pipeline_mode = #tpu.pipeline_mode<synchronous>, transform_indices = @transform_5, window_bounds = array<i64: 2, 1, 32>}, {pipeline_mode = #tpu.pipeline_mode<synchronous>, transform_indices = @transform_6, window_bounds = array<i64: 2, 32, 96>}, {pipeline_mode = #tpu.pipeline_mode<synchronous>, transform_indices = @transform_7, window_bounds = array<i64: 2, 1, 96>}, {pipeline_mode = #tpu.pipeline_mode<synchronous>, transform_indices = @transform_8, window_bounds = array<i64: 2, 32, 32>}, {pipeline_mode = #tpu.pipeline_mode<synchronous>, transform_indices = @transform_9, window_bounds = array<i64: 2, 1, 32>}, {pipeline_mode = #tpu.pipeline_mode<synchronous>, transform_indices = @transform_10, window_bounds = array<i64: 2, 1, 32>}, {pipeline_mode = #tpu.pipeline_mode<synchronous>, transform_indices = @transform_11, window_bounds = array<i64: 2, 1, 32>}, {pipeline_mode = #tpu.pipeline_mode<synchronous>, transform_indices = @transform_12, window_bounds = array<i64: 2, 32, 2048>}, {pipeline_mode = #tpu.pipeline_mode<synchronous>, transform_indices = @transform_13, window_bounds = array<i64: 2, 1, 2048>}, {pipeline_mode = #tpu.pipeline_mode<synchronous>, transform_indices = @transform_14, window_bounds = array<i64: 2, 2048, 32>}, {pipeline_mode = #tpu.pipeline_mode<synchronous>, transform_indices = @transform_15, window_bounds = array<i64: 2, 1, 32>}, {pipeline_mode = #tpu.pipeline_mode<synchronous>, transform_indices = @transform_16, window_bounds = array<i64: 1, 32>}, {pipeline_mode = #tpu.pipeline_mode<synchronous>, transform_indices = @transform_17, window_bounds = array<i64: 1, 32>}, {pipeline_mode = #tpu.pipeline_mode<synchronous>, transform_indices = @transform_18, window_bounds = array<i64: 2, 1, 32>}, {pipeline_mode = #tpu.pipeline_mode<synchronous>, transform_indices = @transform_19, window_bounds = array<i64: 2, 1, 32>}, {pipeline_mode = #tpu.pipeline_mode<synchronous>, transform_indices = @transform_20, window_bounds = array<i64: 2, 32, 96>}, {pipeline_mode = #tpu.pipeline_mode<synchronous>, transform_indices = @transform_21, window_bounds = array<i64: 2, 1, 96>}, {pipeline_mode = #tpu.pipeline_mode<synchronous>, transform_indices = @transform_22, window_bounds = array<i64: 2, 32, 32>}, {pipeline_mode = #tpu.pipeline_mode<synchronous>, transform_indices = @transform_23, window_bounds = array<i64: 2, 1, 32>}, {pipeline_mode = #tpu.pipeline_mode<synchronous>, transform_indices = @transform_24, window_bounds = array<i64: 2, 1, 32>}, {pipeline_mode = #tpu.pipeline_mode<synchronous>, transform_indices = @transform_25, window_bounds = array<i64: 2, 1, 32>}, {pipeline_mode = #tpu.pipeline_mode<synchronous>, transform_indices = @transform_26, window_bounds = array<i64: 2, 32, 2048>}, {pipeline_mode = #tpu.pipeline_mode<synchronous>, transform_indices = @transform_27, window_bounds = array<i64: 2, 1, 2048>}, {pipeline_mode = #tpu.pipeline_mode<synchronous>, transform_indices = @transform_28, window_bounds = array<i64: 2, 2048, 32>}, {pipeline_mode = #tpu.pipeline_mode<synchronous>, transform_indices = @transform_29, window_bounds = array<i64: 2, 1, 32>}, {pipeline_mode = #tpu.pipeline_mode<synchronous>, transform_indices = @transform_30, window_bounds = array<i64: 1, 32>}, {pipeline_mode = #tpu.pipeline_mode<synchronous>, transform_indices = @transform_31, window_bounds = array<i64: 1, 32>}, {pipeline_mode = #tpu.pipeline_mode<synchronous>, transform_indices = @transform_32, window_bounds = array<i64: 32, 128>}, {pipeline_mode = #tpu.pipeline_mode<synchronous>, transform_indices = @transform_33, window_bounds = array<i64: 1, 128>}, {transform_indices = @transform_34, window_bounds = array<i64: 1, 8, 128>}]} {
    %c0 = arith.constant 0 : index
    %c0_0 = arith.constant 0 : index
    %c0_1 = arith.constant 0 : index
    %0 = vector.load %arg1[%c0, %c0_0, %c0_1] : memref<1x16x32xf32, #tpu.memory_space<vmem>>, vector<1x16x32xf32>
    %1 = vector.shape_cast %0 : vector<1x16x32xf32> to vector<16x32xf32>
    %c0_2 = arith.constant 0 : index
    %c0_3 = arith.constant 0 : index
    %c0_4 = arith.constant 0 : index
    %c0_5 = arith.constant 0 : index
    %2 = vector.load %arg3[%c0_2, %c0_3, %c0_4, %c0_5] : memref<1x3x1x16xf32, #tpu.memory_space<vmem>>, vector<1x1x1x16xf32>
    %3 = vector.shape_cast %2 : vector<1x1x1x16xf32> to vector<1x16xf32>
    %c0_6 = arith.constant 0 : index
    %c0_7 = arith.constant 0 : index
    %c0_8 = arith.constant 0 : index
    %4 = vector.load %arg5[%c0_6, %c0_7, %c0_8] : memref<2x1x32xf32, #tpu.memory_space<vmem>>, vector<1x1x32xf32>
    %5 = vector.shape_cast %4 : vector<1x1x32xf32> to vector<1x32xf32>
    %c0_9 = arith.constant 0 : index
    %c0_10 = arith.constant 0 : index
    %c0_11 = arith.constant 0 : index
    %6 = vector.load %arg6[%c0_9, %c0_10, %c0_11] : memref<2x1x32xf32, #tpu.memory_space<vmem>>, vector<1x1x32xf32>
    %7 = vector.shape_cast %6 : vector<1x1x32xf32> to vector<1x32xf32>
    %cst = arith.constant dense<0.000000e+00> : vector<16xf32>
    %8 = vector.multi_reduction <add>, %1, %cst [1] : vector<16x32xf32> to vector<16xf32>
    %9 = vector.shape_cast %8 : vector<16xf32> to vector<16x1xf32>
    %cst_12 = arith.constant 3.200000e+01 : f32
    %10 = vector.broadcast %cst_12 : f32 to vector<16x1xf32>
    %11 = arith.divf %9, %10 : vector<16x1xf32>
    %12 = vector.broadcast %11 : vector<16x1xf32> to vector<16x32xf32>
    %13 = arith.subf %1, %12 : vector<16x32xf32>
    %14 = arith.mulf %13, %13 : vector<16x32xf32>
    %cst_13 = arith.constant dense<0.000000e+00> : vector<16xf32>
    %15 = vector.multi_reduction <add>, %14, %cst_13 [1] : vector<16x32xf32> to vector<16xf32>
    %16 = vector.shape_cast %15 : vector<16xf32> to vector<16x1xf32>
    %cst_14 = arith.constant 0.0322580636 : f32
    %17 = vector.broadcast %cst_14 : f32 to vector<16x1xf32>
    %18 = arith.mulf %16, %17 : vector<16x1xf32>
    %19 = vector.broadcast %5 : vector<1x32xf32> to vector<16x32xf32>
    %20 = arith.mulf %19, %13 : vector<16x32xf32>
    %21 = math.sqrt %18 : vector<16x1xf32>
    %cst_15 = arith.constant 9.99999997E-7 : f32
    %22 = vector.broadcast %cst_15 : f32 to vector<16x1xf32>
    %23 = arith.addf %21, %22 : vector<16x1xf32>
    %24 = vector.broadcast %23 : vector<16x1xf32> to vector<16x32xf32>
    %25 = arith.divf %20, %24 : vector<16x32xf32>
    %26 = vector.broadcast %7 : vector<1x32xf32> to vector<16x32xf32>
    %27 = arith.addf %25, %26 : vector<16x32xf32>
    %c0_16 = arith.constant 0 : index
    %c0_17 = arith.constant 0 : index
    %c0_18 = arith.constant 0 : index
    %28 = vector.load %arg7[%c0_16, %c0_17, %c0_18] : memref<2x32x96xf32, #tpu.memory_space<vmem>>, vector<1x32x96xf32>
    %29 = vector.shape_cast %28 : vector<1x32x96xf32> to vector<32x96xf32>
    %c0_19 = arith.constant 0 : index
    %c0_20 = arith.constant 0 : index
    %c0_21 = arith.constant 0 : index
    %30 = vector.load %arg8[%c0_19, %c0_20, %c0_21] : memref<2x1x96xf32, #tpu.memory_space<vmem>>, vector<1x1x96xf32>
    %31 = vector.shape_cast %30 : vector<1x1x96xf32> to vector<1x96xf32>
    %c0_22 = arith.constant 0 : index
    %c0_23 = arith.constant 0 : index
    %c0_24 = arith.constant 0 : index
    %32 = vector.load %arg9[%c0_22, %c0_23, %c0_24] : memref<2x32x32xf32, #tpu.memory_space<vmem>>, vector<1x32x32xf32>
    %33 = vector.shape_cast %32 : vector<1x32x32xf32> to vector<32x32xf32>
    %c0_25 = arith.constant 0 : index
    %c0_26 = arith.constant 0 : index
    %c0_27 = arith.constant 0 : index
    %34 = vector.load %arg10[%c0_25, %c0_26, %c0_27] : memref<2x1x32xf32, #tpu.memory_space<vmem>>, vector<1x1x32xf32>
    %35 = vector.shape_cast %34 : vector<1x1x32xf32> to vector<1x32xf32>
    %cst_28 = arith.constant dense<0.000000e+00> : vector<16x96xf32>
    %36 = tpu.matmul %27, %29, %cst_28 {dimension_numbers = #tpu.dot_dimension_numbers<[1], [0], [0], [1], [0, 0, 1, 1], [], []>} : vector<16x32xf32>, vector<32x96xf32>, vector<16x96xf32> -> vector<16x96xf32>
    %37 = vector.broadcast %31 : vector<1x96xf32> to vector<16x96xf32>
    %38 = arith.addf %36, %37 : vector<16x96xf32>
    %39 = vector.extract_strided_slice %38 {offsets = [0, 0], sizes = [16, 32], strides = [1, 1]} : vector<16x96xf32> to vector<16x32xf32>
    %40 = vector.extract_strided_slice %38 {offsets = [0, 32], sizes = [16, 32], strides = [1, 1]} : vector<16x96xf32> to vector<16x32xf32>
    %41 = vector.extract_strided_slice %38 {offsets = [0, 64], sizes = [16, 32], strides = [1, 1]} : vector<16x96xf32> to vector<16x32xf32>
    %cst_29 = arith.constant 0.000000e+00 : f32
    %42 = vector.broadcast %cst_29 : f32 to vector<16x32xf32>
    %43 = vector.extract_strided_slice %39 {offsets = [0, 0], sizes = [16, 8], strides = [1, 1]} : vector<16x32xf32> to vector<16x8xf32>
    %44 = vector.extract_strided_slice %40 {offsets = [0, 0], sizes = [16, 8], strides = [1, 1]} : vector<16x32xf32> to vector<16x8xf32>
    %cst_30 = arith.constant dense<0.000000e+00> : vector<16x16xf32>
    %45 = tpu.matmul %43, %44, %cst_30 {dimension_numbers = #tpu.dot_dimension_numbers<[1], [1], [0], [0], [0, 0, 1, 0], [], []>} : vector<16x8xf32>, vector<16x8xf32>, vector<16x16xf32> -> vector<16x16xf32>
    %cst_31 = arith.constant 0.353553385 : f32
    %46 = vector.broadcast %cst_31 : f32 to vector<16x16xf32>
    %47 = arith.mulf %45, %46 : vector<16x16xf32>
    %48 = vector.broadcast %3 : vector<1x16xf32> to vector<16x16xf32>
    %49 = arith.addf %47, %48 : vector<16x16xf32>
    %cst_32 = arith.constant dense<0xFF800000> : vector<16xf32>
    %50 = vector.multi_reduction <maximumf>, %49, %cst_32 [1] : vector<16x16xf32> to vector<16xf32>
    %51 = vector.shape_cast %50 : vector<16xf32> to vector<16x1xf32>
    %52 = vector.broadcast %51 : vector<16x1xf32> to vector<16x16xf32>
    %53 = arith.subf %49, %52 : vector<16x16xf32>
    %54 = math.exp %53 : vector<16x16xf32>
    %cst_33 = arith.constant dense<0.000000e+00> : vector<16xf32>
    %55 = vector.multi_reduction <add>, %54, %cst_33 [1] : vector<16x16xf32> to vector<16xf32>
    %56 = vector.shape_cast %55 : vector<16xf32> to vector<16x1xf32>
    %57 = vector.broadcast %56 : vector<16x1xf32> to vector<16x16xf32>
    %58 = arith.divf %54, %57 : vector<16x16xf32>
    %59 = vector.extract_strided_slice %41 {offsets = [0, 0], sizes = [16, 8], strides = [1, 1]} : vector<16x32xf32> to vector<16x8xf32>
    %cst_34 = arith.constant dense<0.000000e+00> : vector<16x8xf32>
    %60 = tpu.matmul %58, %59, %cst_34 {dimension_numbers = #tpu.dot_dimension_numbers<[1], [0], [0], [1], [0, 0, 1, 1], [], []>} : vector<16x16xf32>, vector<16x8xf32>, vector<16x8xf32> -> vector<16x8xf32>
    %61 = vector.extract_strided_slice %33 {offsets = [0, 0], sizes = [8, 32], strides = [1, 1]} : vector<32x32xf32> to vector<8x32xf32>
    %cst_35 = arith.constant dense<0.000000e+00> : vector<16x32xf32>
    %62 = tpu.matmul %60, %61, %cst_35 {dimension_numbers = #tpu.dot_dimension_numbers<[1], [0], [0], [1], [0, 0, 1, 1], [], []>} : vector<16x8xf32>, vector<8x32xf32>, vector<16x32xf32> -> vector<16x32xf32>
    %63 = arith.addf %42, %62 : vector<16x32xf32>
    %64 = vector.extract_strided_slice %39 {offsets = [0, 8], sizes = [16, 8], strides = [1, 1]} : vector<16x32xf32> to vector<16x8xf32>
    %65 = vector.extract_strided_slice %40 {offsets = [0, 8], sizes = [16, 8], strides = [1, 1]} : vector<16x32xf32> to vector<16x8xf32>
    %cst_36 = arith.constant dense<0.000000e+00> : vector<16x16xf32>
    %66 = tpu.matmul %64, %65, %cst_36 {dimension_numbers = #tpu.dot_dimension_numbers<[1], [1], [0], [0], [0, 0, 1, 0], [], []>} : vector<16x8xf32>, vector<16x8xf32>, vector<16x16xf32> -> vector<16x16xf32>
    %cst_37 = arith.constant 0.353553385 : f32
    %67 = vector.broadcast %cst_37 : f32 to vector<16x16xf32>
    %68 = arith.mulf %66, %67 : vector<16x16xf32>
    %69 = vector.broadcast %3 : vector<1x16xf32> to vector<16x16xf32>
    %70 = arith.addf %68, %69 : vector<16x16xf32>
    %cst_38 = arith.constant dense<0xFF800000> : vector<16xf32>
    %71 = vector.multi_reduction <maximumf>, %70, %cst_38 [1] : vector<16x16xf32> to vector<16xf32>
    %72 = vector.shape_cast %71 : vector<16xf32> to vector<16x1xf32>
    %73 = vector.broadcast %72 : vector<16x1xf32> to vector<16x16xf32>
    %74 = arith.subf %70, %73 : vector<16x16xf32>
    %75 = math.exp %74 : vector<16x16xf32>
    %cst_39 = arith.constant dense<0.000000e+00> : vector<16xf32>
    %76 = vector.multi_reduction <add>, %75, %cst_39 [1] : vector<16x16xf32> to vector<16xf32>
    %77 = vector.shape_cast %76 : vector<16xf32> to vector<16x1xf32>
    %78 = vector.broadcast %77 : vector<16x1xf32> to vector<16x16xf32>
    %79 = arith.divf %75, %78 : vector<16x16xf32>
    %80 = vector.extract_strided_slice %41 {offsets = [0, 8], sizes = [16, 8], strides = [1, 1]} : vector<16x32xf32> to vector<16x8xf32>
    %cst_40 = arith.constant dense<0.000000e+00> : vector<16x8xf32>
    %81 = tpu.matmul %79, %80, %cst_40 {dimension_numbers = #tpu.dot_dimension_numbers<[1], [0], [0], [1], [0, 0, 1, 1], [], []>} : vector<16x16xf32>, vector<16x8xf32>, vector<16x8xf32> -> vector<16x8xf32>
    %82 = vector.extract_strided_slice %33 {offsets = [8, 0], sizes = [8, 32], strides = [1, 1]} : vector<32x32xf32> to vector<8x32xf32>
    %cst_41 = arith.constant dense<0.000000e+00> : vector<16x32xf32>
    %83 = tpu.matmul %81, %82, %cst_41 {dimension_numbers = #tpu.dot_dimension_numbers<[1], [0], [0], [1], [0, 0, 1, 1], [], []>} : vector<16x8xf32>, vector<8x32xf32>, vector<16x32xf32> -> vector<16x32xf32>
    %84 = arith.addf %63, %83 : vector<16x32xf32>
    %85 = vector.extract_strided_slice %39 {offsets = [0, 16], sizes = [16, 8], strides = [1, 1]} : vector<16x32xf32> to vector<16x8xf32>
    %86 = vector.extract_strided_slice %40 {offsets = [0, 16], sizes = [16, 8], strides = [1, 1]} : vector<16x32xf32> to vector<16x8xf32>
    %cst_42 = arith.constant dense<0.000000e+00> : vector<16x16xf32>
    %87 = tpu.matmul %85, %86, %cst_42 {dimension_numbers = #tpu.dot_dimension_numbers<[1], [1], [0], [0], [0, 0, 1, 0], [], []>} : vector<16x8xf32>, vector<16x8xf32>, vector<16x16xf32> -> vector<16x16xf32>
    %cst_43 = arith.constant 0.353553385 : f32
    %88 = vector.broadcast %cst_43 : f32 to vector<16x16xf32>
    %89 = arith.mulf %87, %88 : vector<16x16xf32>
    %90 = vector.broadcast %3 : vector<1x16xf32> to vector<16x16xf32>
    %91 = arith.addf %89, %90 : vector<16x16xf32>
    %cst_44 = arith.constant dense<0xFF800000> : vector<16xf32>
    %92 = vector.multi_reduction <maximumf>, %91, %cst_44 [1] : vector<16x16xf32> to vector<16xf32>
    %93 = vector.shape_cast %92 : vector<16xf32> to vector<16x1xf32>
    %94 = vector.broadcast %93 : vector<16x1xf32> to vector<16x16xf32>
    %95 = arith.subf %91, %94 : vector<16x16xf32>
    %96 = math.exp %95 : vector<16x16xf32>
    %cst_45 = arith.constant dense<0.000000e+00> : vector<16xf32>
    %97 = vector.multi_reduction <add>, %96, %cst_45 [1] : vector<16x16xf32> to vector<16xf32>
    %98 = vector.shape_cast %97 : vector<16xf32> to vector<16x1xf32>
    %99 = vector.broadcast %98 : vector<16x1xf32> to vector<16x16xf32>
    %100 = arith.divf %96, %99 : vector<16x16xf32>
    %101 = vector.extract_strided_slice %41 {offsets = [0, 16], sizes = [16, 8], strides = [1, 1]} : vector<16x32xf32> to vector<16x8xf32>
    %cst_46 = arith.constant dense<0.000000e+00> : vector<16x8xf32>
    %102 = tpu.matmul %100, %101, %cst_46 {dimension_numbers = #tpu.dot_dimension_numbers<[1], [0], [0], [1], [0, 0, 1, 1], [], []>} : vector<16x16xf32>, vector<16x8xf32>, vector<16x8xf32> -> vector<16x8xf32>
    %103 = vector.extract_strided_slice %33 {offsets = [16, 0], sizes = [8, 32], strides = [1, 1]} : vector<32x32xf32> to vector<8x32xf32>
    %cst_47 = arith.constant dense<0.000000e+00> : vector<16x32xf32>
    %104 = tpu.matmul %102, %103, %cst_47 {dimension_numbers = #tpu.dot_dimension_numbers<[1], [0], [0], [1], [0, 0, 1, 1], [], []>} : vector<16x8xf32>, vector<8x32xf32>, vector<16x32xf32> -> vector<16x32xf32>
    %105 = arith.addf %84, %104 : vector<16x32xf32>
    %106 = vector.extract_strided_slice %39 {offsets = [0, 24], sizes = [16, 8], strides = [1, 1]} : vector<16x32xf32> to vector<16x8xf32>
    %107 = vector.extract_strided_slice %40 {offsets = [0, 24], sizes = [16, 8], strides = [1, 1]} : vector<16x32xf32> to vector<16x8xf32>
    %cst_48 = arith.constant dense<0.000000e+00> : vector<16x16xf32>
    %108 = tpu.matmul %106, %107, %cst_48 {dimension_numbers = #tpu.dot_dimension_numbers<[1], [1], [0], [0], [0, 0, 1, 0], [], []>} : vector<16x8xf32>, vector<16x8xf32>, vector<16x16xf32> -> vector<16x16xf32>
    %cst_49 = arith.constant 0.353553385 : f32
    %109 = vector.broadcast %cst_49 : f32 to vector<16x16xf32>
    %110 = arith.mulf %108, %109 : vector<16x16xf32>
    %111 = vector.broadcast %3 : vector<1x16xf32> to vector<16x16xf32>
    %112 = arith.addf %110, %111 : vector<16x16xf32>
    %cst_50 = arith.constant dense<0xFF800000> : vector<16xf32>
    %113 = vector.multi_reduction <maximumf>, %112, %cst_50 [1] : vector<16x16xf32> to vector<16xf32>
    %114 = vector.shape_cast %113 : vector<16xf32> to vector<16x1xf32>
    %115 = vector.broadcast %114 : vector<16x1xf32> to vector<16x16xf32>
    %116 = arith.subf %112, %115 : vector<16x16xf32>
    %117 = math.exp %116 : vector<16x16xf32>
    %cst_51 = arith.constant dense<0.000000e+00> : vector<16xf32>
    %118 = vector.multi_reduction <add>, %117, %cst_51 [1] : vector<16x16xf32> to vector<16xf32>
    %119 = vector.shape_cast %118 : vector<16xf32> to vector<16x1xf32>
    %120 = vector.broadcast %119 : vector<16x1xf32> to vector<16x16xf32>
    %121 = arith.divf %117, %120 : vector<16x16xf32>
    %122 = vector.extract_strided_slice %41 {offsets = [0, 24], sizes = [16, 8], strides = [1, 1]} : vector<16x32xf32> to vector<16x8xf32>
    %cst_52 = arith.constant dense<0.000000e+00> : vector<16x8xf32>
    %123 = tpu.matmul %121, %122, %cst_52 {dimension_numbers = #tpu.dot_dimension_numbers<[1], [0], [0], [1], [0, 0, 1, 1], [], []>} : vector<16x16xf32>, vector<16x8xf32>, vector<16x8xf32> -> vector<16x8xf32>
    %124 = vector.extract_strided_slice %33 {offsets = [24, 0], sizes = [8, 32], strides = [1, 1]} : vector<32x32xf32> to vector<8x32xf32>
    %cst_53 = arith.constant dense<0.000000e+00> : vector<16x32xf32>
    %125 = tpu.matmul %123, %124, %cst_53 {dimension_numbers = #tpu.dot_dimension_numbers<[1], [0], [0], [1], [0, 0, 1, 1], [], []>} : vector<16x8xf32>, vector<8x32xf32>, vector<16x32xf32> -> vector<16x32xf32>
    %126 = arith.addf %105, %125 : vector<16x32xf32>
    %127 = vector.broadcast %35 : vector<1x32xf32> to vector<16x32xf32>
    %128 = arith.addf %126, %127 : vector<16x32xf32>
    %129 = arith.addf %1, %128 : vector<16x32xf32>
    %c0_54 = arith.constant 0 : index
    %c0_55 = arith.constant 0 : index
    %c0_56 = arith.constant 0 : index
    %130 = vector.load %arg11[%c0_54, %c0_55, %c0_56] : memref<2x1x32xf32, #tpu.memory_space<vmem>>, vector<1x1x32xf32>
    %131 = vector.shape_cast %130 : vector<1x1x32xf32> to vector<1x32xf32>
    %c0_57 = arith.constant 0 : index
    %c0_58 = arith.constant 0 : index
    %c0_59 = arith.constant 0 : index
    %132 = vector.load %arg12[%c0_57, %c0_58, %c0_59] : memref<2x1x32xf32, #tpu.memory_space<vmem>>, vector<1x1x32xf32>
    %133 = vector.shape_cast %132 : vector<1x1x32xf32> to vector<1x32xf32>
    %cst_60 = arith.constant dense<0.000000e+00> : vector<16xf32>
    %134 = vector.multi_reduction <add>, %129, %cst_60 [1] : vector<16x32xf32> to vector<16xf32>
    %135 = vector.shape_cast %134 : vector<16xf32> to vector<16x1xf32>
    %cst_61 = arith.constant 3.200000e+01 : f32
    %136 = vector.broadcast %cst_61 : f32 to vector<16x1xf32>
    %137 = arith.divf %135, %136 : vector<16x1xf32>
    %138 = vector.broadcast %137 : vector<16x1xf32> to vector<16x32xf32>
    %139 = arith.subf %129, %138 : vector<16x32xf32>
    %140 = arith.mulf %139, %139 : vector<16x32xf32>
    %cst_62 = arith.constant dense<0.000000e+00> : vector<16xf32>
    %141 = vector.multi_reduction <add>, %140, %cst_62 [1] : vector<16x32xf32> to vector<16xf32>
    %142 = vector.shape_cast %141 : vector<16xf32> to vector<16x1xf32>
    %cst_63 = arith.constant 0.0322580636 : f32
    %143 = vector.broadcast %cst_63 : f32 to vector<16x1xf32>
    %144 = arith.mulf %142, %143 : vector<16x1xf32>
    %145 = vector.broadcast %131 : vector<1x32xf32> to vector<16x32xf32>
    %146 = arith.mulf %145, %139 : vector<16x32xf32>
    %147 = math.sqrt %144 : vector<16x1xf32>
    %cst_64 = arith.constant 9.99999997E-7 : f32
    %148 = vector.broadcast %cst_64 : f32 to vector<16x1xf32>
    %149 = arith.addf %147, %148 : vector<16x1xf32>
    %150 = vector.broadcast %149 : vector<16x1xf32> to vector<16x32xf32>
    %151 = arith.divf %146, %150 : vector<16x32xf32>
    %152 = vector.broadcast %133 : vector<1x32xf32> to vector<16x32xf32>
    %153 = arith.addf %151, %152 : vector<16x32xf32>
    %c0_65 = arith.constant 0 : index
    %c0_66 = arith.constant 0 : index
    %c0_67 = arith.constant 0 : index
    %154 = vector.load %arg13[%c0_65, %c0_66, %c0_67] : memref<2x32x2048xf32, #tpu.memory_space<vmem>>, vector<1x32x2048xf32>
    %155 = vector.shape_cast %154 : vector<1x32x2048xf32> to vector<32x2048xf32>
    %c0_68 = arith.constant 0 : index
    %c0_69 = arith.constant 0 : index
    %c0_70 = arith.constant 0 : index
    %156 = vector.load %arg14[%c0_68, %c0_69, %c0_70] : memref<2x1x2048xf32, #tpu.memory_space<vmem>>, vector<1x1x2048xf32>
    %157 = vector.shape_cast %156 : vector<1x1x2048xf32> to vector<1x2048xf32>
    %c0_71 = arith.constant 0 : index
    %c0_72 = arith.constant 0 : index
    %c0_73 = arith.constant 0 : index
    %158 = vector.load %arg15[%c0_71, %c0_72, %c0_73] : memref<2x2048x32xf32, #tpu.memory_space<vmem>>, vector<1x2048x32xf32>
    %159 = vector.shape_cast %158 : vector<1x2048x32xf32> to vector<2048x32xf32>
    %c0_74 = arith.constant 0 : index
    %c0_75 = arith.constant 0 : index
    %c0_76 = arith.constant 0 : index
    %160 = vector.load %arg16[%c0_74, %c0_75, %c0_76] : memref<2x1x32xf32, #tpu.memory_space<vmem>>, vector<1x1x32xf32>
    %161 = vector.shape_cast %160 : vector<1x1x32xf32> to vector<1x32xf32>
    %cst_77 = arith.constant dense<0.000000e+00> : vector<16x2048xf32>
    %162 = tpu.matmul %153, %155, %cst_77 {dimension_numbers = #tpu.dot_dimension_numbers<[1], [0], [0], [1], [0, 0, 1, 1], [], []>} : vector<16x32xf32>, vector<32x2048xf32>, vector<16x2048xf32> -> vector<16x2048xf32>
    %163 = vector.broadcast %157 : vector<1x2048xf32> to vector<16x2048xf32>
    %164 = arith.addf %162, %163 : vector<16x2048xf32>
    %cst_78 = arith.constant 0.000000e+00 : f32
    %165 = vector.broadcast %cst_78 : f32 to vector<16x2048xf32>
    %166 = arith.maximumf %164, %165 : vector<16x2048xf32>
    %cst_79 = arith.constant dense<0.000000e+00> : vector<16x32xf32>
    %167 = tpu.matmul %166, %159, %cst_79 {dimension_numbers = #tpu.dot_dimension_numbers<[1], [0], [0], [1], [0, 0, 1, 1], [], []>} : vector<16x2048xf32>, vector<2048x32xf32>, vector<16x32xf32> -> vector<16x32xf32>
    %168 = vector.broadcast %161 : vector<1x32xf32> to vector<16x32xf32>
    %169 = arith.addf %167, %168 : vector<16x32xf32>
    %170 = arith.addf %129, %169 : vector<16x32xf32>
    %c0_80 = arith.constant 0 : index
    %c0_81 = arith.constant 0 : index
    %c0_82 = arith.constant 0 : index
    %171 = vector.load %arg4[%c0_80, %c0_81, %c0_82] : memref<2x8x16xf32, #tpu.memory_space<vmem>>, vector<1x8x16xf32>
    %172 = vector.shape_cast %171 : vector<1x8x16xf32> to vector<8x16xf32>
    %cst_83 = arith.constant dense<0.000000e+00> : vector<8x32xf32>
    %173 = tpu.matmul %172, %170, %cst_83 {dimension_numbers = #tpu.dot_dimension_numbers<[1], [0], [0], [1], [0, 0, 1, 1], [], []>} : vector<8x16xf32>, vector<16x32xf32>, vector<8x32xf32> -> vector<8x32xf32>
    %c0_84 = arith.constant 0 : index
    %c1 = arith.constant 1 : index
    %c0_85 = arith.constant 0 : index
    %c0_86 = arith.constant 0 : index
    %174 = vector.load %arg3[%c0_84, %c1, %c0_85, %c0_86] : memref<1x3x1x16xf32, #tpu.memory_space<vmem>>, vector<1x1x1x16xf32>
    %175 = vector.shape_cast %174 : vector<1x1x1x16xf32> to vector<1x16xf32>
    %176 = vector.extract_strided_slice %175 {offsets = [0, 0], sizes = [1, 8], strides = [1, 1]} : vector<1x16xf32> to vector<1x8xf32>
    %c1_87 = arith.constant 1 : index
    %c0_88 = arith.constant 0 : index
    %c0_89 = arith.constant 0 : index
    %177 = vector.load %arg5[%c1_87, %c0_88, %c0_89] : memref<2x1x32xf32, #tpu.memory_space<vmem>>, vector<1x1x32xf32>
    %178 = vector.shape_cast %177 : vector<1x1x32xf32> to vector<1x32xf32>
    %c1_90 = arith.constant 1 : index
    %c0_91 = arith.constant 0 : index
    %c0_92 = arith.constant 0 : index
    %179 = vector.load %arg6[%c1_90, %c0_91, %c0_92] : memref<2x1x32xf32, #tpu.memory_space<vmem>>, vector<1x1x32xf32>
    %180 = vector.shape_cast %179 : vector<1x1x32xf32> to vector<1x32xf32>
    %cst_93 = arith.constant dense<0.000000e+00> : vector<8xf32>
    %181 = vector.multi_reduction <add>, %173, %cst_93 [1] : vector<8x32xf32> to vector<8xf32>
    %182 = vector.shape_cast %181 : vector<8xf32> to vector<8x1xf32>
    %cst_94 = arith.constant 3.200000e+01 : f32
    %183 = vector.broadcast %cst_94 : f32 to vector<8x1xf32>
    %184 = arith.divf %182, %183 : vector<8x1xf32>
    %185 = vector.broadcast %184 : vector<8x1xf32> to vector<8x32xf32>
    %186 = arith.subf %173, %185 : vector<8x32xf32>
    %187 = arith.mulf %186, %186 : vector<8x32xf32>
    %cst_95 = arith.constant dense<0.000000e+00> : vector<8xf32>
    %188 = vector.multi_reduction <add>, %187, %cst_95 [1] : vector<8x32xf32> to vector<8xf32>
    %189 = vector.shape_cast %188 : vector<8xf32> to vector<8x1xf32>
    %cst_96 = arith.constant 0.0322580636 : f32
    %190 = vector.broadcast %cst_96 : f32 to vector<8x1xf32>
    %191 = arith.mulf %189, %190 : vector<8x1xf32>
    %192 = vector.broadcast %178 : vector<1x32xf32> to vector<8x32xf32>
    %193 = arith.mulf %192, %186 : vector<8x32xf32>
    %194 = math.sqrt %191 : vector<8x1xf32>
    %cst_97 = arith.constant 9.99999997E-7 : f32
    %195 = vector.broadcast %cst_97 : f32 to vector<8x1xf32>
    %196 = arith.addf %194, %195 : vector<8x1xf32>
    %197 = vector.broadcast %196 : vector<8x1xf32> to vector<8x32xf32>
    %198 = arith.divf %193, %197 : vector<8x32xf32>
    %199 = vector.broadcast %180 : vector<1x32xf32> to vector<8x32xf32>
    %200 = arith.addf %198, %199 : vector<8x32xf32>
    %c1_98 = arith.constant 1 : index
    %c0_99 = arith.constant 0 : index
    %c0_100 = arith.constant 0 : index
    %201 = vector.load %arg7[%c1_98, %c0_99, %c0_100] : memref<2x32x96xf32, #tpu.memory_space<vmem>>, vector<1x32x96xf32>
    %202 = vector.shape_cast %201 : vector<1x32x96xf32> to vector<32x96xf32>
    %c1_101 = arith.constant 1 : index
    %c0_102 = arith.constant 0 : index
    %c0_103 = arith.constant 0 : index
    %203 = vector.load %arg8[%c1_101, %c0_102, %c0_103] : memref<2x1x96xf32, #tpu.memory_space<vmem>>, vector<1x1x96xf32>
    %204 = vector.shape_cast %203 : vector<1x1x96xf32> to vector<1x96xf32>
    %c1_104 = arith.constant 1 : index
    %c0_105 = arith.constant 0 : index
    %c0_106 = arith.constant 0 : index
    %205 = vector.load %arg9[%c1_104, %c0_105, %c0_106] : memref<2x32x32xf32, #tpu.memory_space<vmem>>, vector<1x32x32xf32>
    %206 = vector.shape_cast %205 : vector<1x32x32xf32> to vector<32x32xf32>
    %c1_107 = arith.constant 1 : index
    %c0_108 = arith.constant 0 : index
    %c0_109 = arith.constant 0 : index
    %207 = vector.load %arg10[%c1_107, %c0_108, %c0_109] : memref<2x1x32xf32, #tpu.memory_space<vmem>>, vector<1x1x32xf32>
    %208 = vector.shape_cast %207 : vector<1x1x32xf32> to vector<1x32xf32>
    %cst_110 = arith.constant dense<0.000000e+00> : vector<8x96xf32>
    %209 = tpu.matmul %200, %202, %cst_110 {dimension_numbers = #tpu.dot_dimension_numbers<[1], [0], [0], [1], [0, 0, 1, 1], [], []>} : vector<8x32xf32>, vector<32x96xf32>, vector<8x96xf32> -> vector<8x96xf32>
    %210 = vector.broadcast %204 : vector<1x96xf32> to vector<8x96xf32>
    %211 = arith.addf %209, %210 : vector<8x96xf32>
    %212 = vector.extract_strided_slice %211 {offsets = [0, 0], sizes = [8, 32], strides = [1, 1]} : vector<8x96xf32> to vector<8x32xf32>
    %213 = vector.extract_strided_slice %211 {offsets = [0, 32], sizes = [8, 32], strides = [1, 1]} : vector<8x96xf32> to vector<8x32xf32>
    %214 = vector.extract_strided_slice %211 {offsets = [0, 64], sizes = [8, 32], strides = [1, 1]} : vector<8x96xf32> to vector<8x32xf32>
    %cst_111 = arith.constant 0.000000e+00 : f32
    %215 = vector.broadcast %cst_111 : f32 to vector<8x32xf32>
    %216 = vector.extract_strided_slice %212 {offsets = [0, 0], sizes = [8, 8], strides = [1, 1]} : vector<8x32xf32> to vector<8x8xf32>
    %217 = vector.extract_strided_slice %213 {offsets = [0, 0], sizes = [8, 8], strides = [1, 1]} : vector<8x32xf32> to vector<8x8xf32>
    %cst_112 = arith.constant dense<0.000000e+00> : vector<8x8xf32>
    %218 = tpu.matmul %216, %217, %cst_112 {dimension_numbers = #tpu.dot_dimension_numbers<[1], [1], [0], [0], [0, 0, 1, 0], [], []>} : vector<8x8xf32>, vector<8x8xf32>, vector<8x8xf32> -> vector<8x8xf32>
    %cst_113 = arith.constant 0.353553385 : f32
    %219 = vector.broadcast %cst_113 : f32 to vector<8x8xf32>
    %220 = arith.mulf %218, %219 : vector<8x8xf32>
    %221 = vector.broadcast %176 : vector<1x8xf32> to vector<8x8xf32>
    %222 = arith.addf %220, %221 : vector<8x8xf32>
    %cst_114 = arith.constant dense<0xFF800000> : vector<8xf32>
    %223 = vector.multi_reduction <maximumf>, %222, %cst_114 [1] : vector<8x8xf32> to vector<8xf32>
    %224 = vector.shape_cast %223 : vector<8xf32> to vector<8x1xf32>
    %225 = vector.broadcast %224 : vector<8x1xf32> to vector<8x8xf32>
    %226 = arith.subf %222, %225 : vector<8x8xf32>
    %227 = math.exp %226 : vector<8x8xf32>
    %cst_115 = arith.constant dense<0.000000e+00> : vector<8xf32>
    %228 = vector.multi_reduction <add>, %227, %cst_115 [1] : vector<8x8xf32> to vector<8xf32>
    %229 = vector.shape_cast %228 : vector<8xf32> to vector<8x1xf32>
    %230 = vector.broadcast %229 : vector<8x1xf32> to vector<8x8xf32>
    %231 = arith.divf %227, %230 : vector<8x8xf32>
    %232 = vector.extract_strided_slice %214 {offsets = [0, 0], sizes = [8, 8], strides = [1, 1]} : vector<8x32xf32> to vector<8x8xf32>
    %cst_116 = arith.constant dense<0.000000e+00> : vector<8x8xf32>
    %233 = tpu.matmul %231, %232, %cst_116 {dimension_numbers = #tpu.dot_dimension_numbers<[1], [0], [0], [1], [0, 0, 1, 1], [], []>} : vector<8x8xf32>, vector<8x8xf32>, vector<8x8xf32> -> vector<8x8xf32>
    %234 = vector.extract_strided_slice %206 {offsets = [0, 0], sizes = [8, 32], strides = [1, 1]} : vector<32x32xf32> to vector<8x32xf32>
    %cst_117 = arith.constant dense<0.000000e+00> : vector<8x32xf32>
    %235 = tpu.matmul %233, %234, %cst_117 {dimension_numbers = #tpu.dot_dimension_numbers<[1], [0], [0], [1], [0, 0, 1, 1], [], []>} : vector<8x8xf32>, vector<8x32xf32>, vector<8x32xf32> -> vector<8x32xf32>
    %236 = arith.addf %215, %235 : vector<8x32xf32>
    %237 = vector.extract_strided_slice %212 {offsets = [0, 8], sizes = [8, 8], strides = [1, 1]} : vector<8x32xf32> to vector<8x8xf32>
    %238 = vector.extract_strided_slice %213 {offsets = [0, 8], sizes = [8, 8], strides = [1, 1]} : vector<8x32xf32> to vector<8x8xf32>
    %cst_118 = arith.constant dense<0.000000e+00> : vector<8x8xf32>
    %239 = tpu.matmul %237, %238, %cst_118 {dimension_numbers = #tpu.dot_dimension_numbers<[1], [1], [0], [0], [0, 0, 1, 0], [], []>} : vector<8x8xf32>, vector<8x8xf32>, vector<8x8xf32> -> vector<8x8xf32>
    %cst_119 = arith.constant 0.353553385 : f32
    %240 = vector.broadcast %cst_119 : f32 to vector<8x8xf32>
    %241 = arith.mulf %239, %240 : vector<8x8xf32>
    %242 = vector.broadcast %176 : vector<1x8xf32> to vector<8x8xf32>
    %243 = arith.addf %241, %242 : vector<8x8xf32>
    %cst_120 = arith.constant dense<0xFF800000> : vector<8xf32>
    %244 = vector.multi_reduction <maximumf>, %243, %cst_120 [1] : vector<8x8xf32> to vector<8xf32>
    %245 = vector.shape_cast %244 : vector<8xf32> to vector<8x1xf32>
    %246 = vector.broadcast %245 : vector<8x1xf32> to vector<8x8xf32>
    %247 = arith.subf %243, %246 : vector<8x8xf32>
    %248 = math.exp %247 : vector<8x8xf32>
    %cst_121 = arith.constant dense<0.000000e+00> : vector<8xf32>
    %249 = vector.multi_reduction <add>, %248, %cst_121 [1] : vector<8x8xf32> to vector<8xf32>
    %250 = vector.shape_cast %249 : vector<8xf32> to vector<8x1xf32>
    %251 = vector.broadcast %250 : vector<8x1xf32> to vector<8x8xf32>
    %252 = arith.divf %248, %251 : vector<8x8xf32>
    %253 = vector.extract_strided_slice %214 {offsets = [0, 8], sizes = [8, 8], strides = [1, 1]} : vector<8x32xf32> to vector<8x8xf32>
    %cst_122 = arith.constant dense<0.000000e+00> : vector<8x8xf32>
    %254 = tpu.matmul %252, %253, %cst_122 {dimension_numbers = #tpu.dot_dimension_numbers<[1], [0], [0], [1], [0, 0, 1, 1], [], []>} : vector<8x8xf32>, vector<8x8xf32>, vector<8x8xf32> -> vector<8x8xf32>
    %255 = vector.extract_strided_slice %206 {offsets = [8, 0], sizes = [8, 32], strides = [1, 1]} : vector<32x32xf32> to vector<8x32xf32>
    %cst_123 = arith.constant dense<0.000000e+00> : vector<8x32xf32>
    %256 = tpu.matmul %254, %255, %cst_123 {dimension_numbers = #tpu.dot_dimension_numbers<[1], [0], [0], [1], [0, 0, 1, 1], [], []>} : vector<8x8xf32>, vector<8x32xf32>, vector<8x32xf32> -> vector<8x32xf32>
    %257 = arith.addf %236, %256 : vector<8x32xf32>
    %258 = vector.extract_strided_slice %212 {offsets = [0, 16], sizes = [8, 8], strides = [1, 1]} : vector<8x32xf32> to vector<8x8xf32>
    %259 = vector.extract_strided_slice %213 {offsets = [0, 16], sizes = [8, 8], strides = [1, 1]} : vector<8x32xf32> to vector<8x8xf32>
    %cst_124 = arith.constant dense<0.000000e+00> : vector<8x8xf32>
    %260 = tpu.matmul %258, %259, %cst_124 {dimension_numbers = #tpu.dot_dimension_numbers<[1], [1], [0], [0], [0, 0, 1, 0], [], []>} : vector<8x8xf32>, vector<8x8xf32>, vector<8x8xf32> -> vector<8x8xf32>
    %cst_125 = arith.constant 0.353553385 : f32
    %261 = vector.broadcast %cst_125 : f32 to vector<8x8xf32>
    %262 = arith.mulf %260, %261 : vector<8x8xf32>
    %263 = vector.broadcast %176 : vector<1x8xf32> to vector<8x8xf32>
    %264 = arith.addf %262, %263 : vector<8x8xf32>
    %cst_126 = arith.constant dense<0xFF800000> : vector<8xf32>
    %265 = vector.multi_reduction <maximumf>, %264, %cst_126 [1] : vector<8x8xf32> to vector<8xf32>
    %266 = vector.shape_cast %265 : vector<8xf32> to vector<8x1xf32>
    %267 = vector.broadcast %266 : vector<8x1xf32> to vector<8x8xf32>
    %268 = arith.subf %264, %267 : vector<8x8xf32>
    %269 = math.exp %268 : vector<8x8xf32>
    %cst_127 = arith.constant dense<0.000000e+00> : vector<8xf32>
    %270 = vector.multi_reduction <add>, %269, %cst_127 [1] : vector<8x8xf32> to vector<8xf32>
    %271 = vector.shape_cast %270 : vector<8xf32> to vector<8x1xf32>
    %272 = vector.broadcast %271 : vector<8x1xf32> to vector<8x8xf32>
    %273 = arith.divf %269, %272 : vector<8x8xf32>
    %274 = vector.extract_strided_slice %214 {offsets = [0, 16], sizes = [8, 8], strides = [1, 1]} : vector<8x32xf32> to vector<8x8xf32>
    %cst_128 = arith.constant dense<0.000000e+00> : vector<8x8xf32>
    %275 = tpu.matmul %273, %274, %cst_128 {dimension_numbers = #tpu.dot_dimension_numbers<[1], [0], [0], [1], [0, 0, 1, 1], [], []>} : vector<8x8xf32>, vector<8x8xf32>, vector<8x8xf32> -> vector<8x8xf32>
    %276 = vector.extract_strided_slice %206 {offsets = [16, 0], sizes = [8, 32], strides = [1, 1]} : vector<32x32xf32> to vector<8x32xf32>
    %cst_129 = arith.constant dense<0.000000e+00> : vector<8x32xf32>
    %277 = tpu.matmul %275, %276, %cst_129 {dimension_numbers = #tpu.dot_dimension_numbers<[1], [0], [0], [1], [0, 0, 1, 1], [], []>} : vector<8x8xf32>, vector<8x32xf32>, vector<8x32xf32> -> vector<8x32xf32>
    %278 = arith.addf %257, %277 : vector<8x32xf32>
    %279 = vector.extract_strided_slice %212 {offsets = [0, 24], sizes = [8, 8], strides = [1, 1]} : vector<8x32xf32> to vector<8x8xf32>
    %280 = vector.extract_strided_slice %213 {offsets = [0, 24], sizes = [8, 8], strides = [1, 1]} : vector<8x32xf32> to vector<8x8xf32>
    %cst_130 = arith.constant dense<0.000000e+00> : vector<8x8xf32>
    %281 = tpu.matmul %279, %280, %cst_130 {dimension_numbers = #tpu.dot_dimension_numbers<[1], [1], [0], [0], [0, 0, 1, 0], [], []>} : vector<8x8xf32>, vector<8x8xf32>, vector<8x8xf32> -> vector<8x8xf32>
    %cst_131 = arith.constant 0.353553385 : f32
    %282 = vector.broadcast %cst_131 : f32 to vector<8x8xf32>
    %283 = arith.mulf %281, %282 : vector<8x8xf32>
    %284 = vector.broadcast %176 : vector<1x8xf32> to vector<8x8xf32>
    %285 = arith.addf %283, %284 : vector<8x8xf32>
    %cst_132 = arith.constant dense<0xFF800000> : vector<8xf32>
    %286 = vector.multi_reduction <maximumf>, %285, %cst_132 [1] : vector<8x8xf32> to vector<8xf32>
    %287 = vector.shape_cast %286 : vector<8xf32> to vector<8x1xf32>
    %288 = vector.broadcast %287 : vector<8x1xf32> to vector<8x8xf32>
    %289 = arith.subf %285, %288 : vector<8x8xf32>
    %290 = math.exp %289 : vector<8x8xf32>
    %cst_133 = arith.constant dense<0.000000e+00> : vector<8xf32>
    %291 = vector.multi_reduction <add>, %290, %cst_133 [1] : vector<8x8xf32> to vector<8xf32>
    %292 = vector.shape_cast %291 : vector<8xf32> to vector<8x1xf32>
    %293 = vector.broadcast %292 : vector<8x1xf32> to vector<8x8xf32>
    %294 = arith.divf %290, %293 : vector<8x8xf32>
    %295 = vector.extract_strided_slice %214 {offsets = [0, 24], sizes = [8, 8], strides = [1, 1]} : vector<8x32xf32> to vector<8x8xf32>
    %cst_134 = arith.constant dense<0.000000e+00> : vector<8x8xf32>
    %296 = tpu.matmul %294, %295, %cst_134 {dimension_numbers = #tpu.dot_dimension_numbers<[1], [0], [0], [1], [0, 0, 1, 1], [], []>} : vector<8x8xf32>, vector<8x8xf32>, vector<8x8xf32> -> vector<8x8xf32>
    %297 = vector.extract_strided_slice %206 {offsets = [24, 0], sizes = [8, 32], strides = [1, 1]} : vector<32x32xf32> to vector<8x32xf32>
    %cst_135 = arith.constant dense<0.000000e+00> : vector<8x32xf32>
    %298 = tpu.matmul %296, %297, %cst_135 {dimension_numbers = #tpu.dot_dimension_numbers<[1], [0], [0], [1], [0, 0, 1, 1], [], []>} : vector<8x8xf32>, vector<8x32xf32>, vector<8x32xf32> -> vector<8x32xf32>
    %299 = arith.addf %278, %298 : vector<8x32xf32>
    %300 = vector.broadcast %208 : vector<1x32xf32> to vector<8x32xf32>
    %301 = arith.addf %299, %300 : vector<8x32xf32>
    %302 = arith.addf %173, %301 : vector<8x32xf32>
    %c1_136 = arith.constant 1 : index
    %c0_137 = arith.constant 0 : index
    %c0_138 = arith.constant 0 : index
    %303 = vector.load %arg11[%c1_136, %c0_137, %c0_138] : memref<2x1x32xf32, #tpu.memory_space<vmem>>, vector<1x1x32xf32>
    %304 = vector.shape_cast %303 : vector<1x1x32xf32> to vector<1x32xf32>
    %c1_139 = arith.constant 1 : index
    %c0_140 = arith.constant 0 : index
    %c0_141 = arith.constant 0 : index
    %305 = vector.load %arg12[%c1_139, %c0_140, %c0_141] : memref<2x1x32xf32, #tpu.memory_space<vmem>>, vector<1x1x32xf32>
    %306 = vector.shape_cast %305 : vector<1x1x32xf32> to vector<1x32xf32>
    %cst_142 = arith.constant dense<0.000000e+00> : vector<8xf32>
    %307 = vector.multi_reduction <add>, %302, %cst_142 [1] : vector<8x32xf32> to vector<8xf32>
    %308 = vector.shape_cast %307 : vector<8xf32> to vector<8x1xf32>
    %cst_143 = arith.constant 3.200000e+01 : f32
    %309 = vector.broadcast %cst_143 : f32 to vector<8x1xf32>
    %310 = arith.divf %308, %309 : vector<8x1xf32>
    %311 = vector.broadcast %310 : vector<8x1xf32> to vector<8x32xf32>
    %312 = arith.subf %302, %311 : vector<8x32xf32>
    %313 = arith.mulf %312, %312 : vector<8x32xf32>
    %cst_144 = arith.constant dense<0.000000e+00> : vector<8xf32>
    %314 = vector.multi_reduction <add>, %313, %cst_144 [1] : vector<8x32xf32> to vector<8xf32>
    %315 = vector.shape_cast %314 : vector<8xf32> to vector<8x1xf32>
    %cst_145 = arith.constant 0.0322580636 : f32
    %316 = vector.broadcast %cst_145 : f32 to vector<8x1xf32>
    %317 = arith.mulf %315, %316 : vector<8x1xf32>
    %318 = vector.broadcast %304 : vector<1x32xf32> to vector<8x32xf32>
    %319 = arith.mulf %318, %312 : vector<8x32xf32>
    %320 = math.sqrt %317 : vector<8x1xf32>
    %cst_146 = arith.constant 9.99999997E-7 : f32
    %321 = vector.broadcast %cst_146 : f32 to vector<8x1xf32>
    %322 = arith.addf %320, %321 : vector<8x1xf32>
    %323 = vector.broadcast %322 : vector<8x1xf32> to vector<8x32xf32>
    %324 = arith.divf %319, %323 : vector<8x32xf32>
    %325 = vector.broadcast %306 : vector<1x32xf32> to vector<8x32xf32>
    %326 = arith.addf %324, %325 : vector<8x32xf32>
    %c1_147 = arith.constant 1 : index
    %c0_148 = arith.constant 0 : index
    %c0_149 = arith.constant 0 : index
    %327 = vector.load %arg13[%c1_147, %c0_148, %c0_149] : memref<2x32x2048xf32, #tpu.memory_space<vmem>>, vector<1x32x2048xf32>
    %328 = vector.shape_cast %327 : vector<1x32x2048xf32> to vector<32x2048xf32>
    %c1_150 = arith.constant 1 : index
    %c0_151 = arith.constant 0 : index
    %c0_152 = arith.constant 0 : index
    %329 = vector.load %arg14[%c1_150, %c0_151, %c0_152] : memref<2x1x2048xf32, #tpu.memory_space<vmem>>, vector<1x1x2048xf32>
    %330 = vector.shape_cast %329 : vector<1x1x2048xf32> to vector<1x2048xf32>
    %c1_153 = arith.constant 1 : index
    %c0_154 = arith.constant 0 : index
    %c0_155 = arith.constant 0 : index
    %331 = vector.load %arg15[%c1_153, %c0_154, %c0_155] : memref<2x2048x32xf32, #tpu.memory_space<vmem>>, vector<1x2048x32xf32>
    %332 = vector.shape_cast %331 : vector<1x2048x32xf32> to vector<2048x32xf32>
    %c1_156 = arith.constant 1 : index
    %c0_157 = arith.constant 0 : index
    %c0_158 = arith.constant 0 : index
    %333 = vector.load %arg16[%c1_156, %c0_157, %c0_158] : memref<2x1x32xf32, #tpu.memory_space<vmem>>, vector<1x1x32xf32>
    %334 = vector.shape_cast %333 : vector<1x1x32xf32> to vector<1x32xf32>
    %cst_159 = arith.constant dense<0.000000e+00> : vector<8x2048xf32>
    %335 = tpu.matmul %326, %328, %cst_159 {dimension_numbers = #tpu.dot_dimension_numbers<[1], [0], [0], [1], [0, 0, 1, 1], [], []>} : vector<8x32xf32>, vector<32x2048xf32>, vector<8x2048xf32> -> vector<8x2048xf32>
    %336 = vector.broadcast %330 : vector<1x2048xf32> to vector<8x2048xf32>
    %337 = arith.addf %335, %336 : vector<8x2048xf32>
    %cst_160 = arith.constant 0.000000e+00 : f32
    %338 = vector.broadcast %cst_160 : f32 to vector<8x2048xf32>
    %339 = arith.maximumf %337, %338 : vector<8x2048xf32>
    %cst_161 = arith.constant dense<0.000000e+00> : vector<8x32xf32>
    %340 = tpu.matmul %339, %332, %cst_161 {dimension_numbers = #tpu.dot_dimension_numbers<[1], [0], [0], [1], [0, 0, 1, 1], [], []>} : vector<8x2048xf32>, vector<2048x32xf32>, vector<8x32xf32> -> vector<8x32xf32>
    %341 = vector.broadcast %334 : vector<1x32xf32> to vector<8x32xf32>
    %342 = arith.addf %340, %341 : vector<8x32xf32>
    %343 = arith.addf %302, %342 : vector<8x32xf32>
    %c1_162 = arith.constant 1 : index
    %c0_163 = arith.constant 0 : index
    %c0_164 = arith.constant 0 : index
    %344 = vector.load %arg4[%c1_162, %c0_163, %c0_164] : memref<2x8x16xf32, #tpu.memory_space<vmem>>, vector<1x8x16xf32>
    %345 = vector.shape_cast %344 : vector<1x8x16xf32> to vector<8x16xf32>
    %346 = vector.extract_strided_slice %345 {offsets = [0, 0], sizes = [4, 8], strides = [1, 1]} : vector<8x16xf32> to vector<4x8xf32>
    %cst_165 = arith.constant dense<0.000000e+00> : vector<4x32xf32>
    %347 = tpu.matmul %346, %343, %cst_165 {dimension_numbers = #tpu.dot_dimension_numbers<[1], [0], [0], [1], [0, 0, 1, 1], [], []>} : vector<4x8xf32>, vector<8x32xf32>, vector<4x32xf32> -> vector<4x32xf32>
    %c0_166 = arith.constant 0 : index
    %c0_167 = arith.constant 0 : index
    %348 = vector.load %arg17[%c0_166, %c0_167] : memref<1x32xf32, #tpu.memory_space<vmem>>, vector<1x32xf32>
    %c0_168 = arith.constant 0 : index
    %c0_169 = arith.constant 0 : index
    %349 = vector.load %arg18[%c0_168, %c0_169] : memref<1x32xf32, #tpu.memory_space<vmem>>, vector<1x32xf32>
    %cst_170 = arith.constant dense<0.000000e+00> : vector<4xf32>
    %350 = vector.multi_reduction <add>, %347, %cst_170 [1] : vector<4x32xf32> to vector<4xf32>
    %351 = vector.shape_cast %350 : vector<4xf32> to vector<4x1xf32>
    %cst_171 = arith.constant 3.200000e+01 : f32
    %352 = vector.broadcast %cst_171 : f32 to vector<4x1xf32>
    %353 = arith.divf %351, %352 : vector<4x1xf32>
    %354 = vector.broadcast %353 : vector<4x1xf32> to vector<4x32xf32>
    %355 = arith.subf %347, %354 : vector<4x32xf32>
    %356 = arith.mulf %355, %355 : vector<4x32xf32>
    %cst_172 = arith.constant dense<0.000000e+00> : vector<4xf32>
    %357 = vector.multi_reduction <add>, %356, %cst_172 [1] : vector<4x32xf32> to vector<4xf32>
    %358 = vector.shape_cast %357 : vector<4xf32> to vector<4x1xf32>
    %cst_173 = arith.constant 0.0322580636 : f32
    %359 = vector.broadcast %cst_173 : f32 to vector<4x1xf32>
    %360 = arith.mulf %358, %359 : vector<4x1xf32>
    %361 = vector.broadcast %348 : vector<1x32xf32> to vector<4x32xf32>
    %362 = arith.mulf %361, %355 : vector<4x32xf32>
    %363 = math.sqrt %360 : vector<4x1xf32>
    %cst_174 = arith.constant 9.99999997E-7 : f32
    %364 = vector.broadcast %cst_174 : f32 to vector<4x1xf32>
    %365 = arith.addf %363, %364 : vector<4x1xf32>
    %366 = vector.broadcast %365 : vector<4x1xf32> to vector<4x32xf32>
    %367 = arith.divf %362, %366 : vector<4x32xf32>
    %368 = vector.broadcast %349 : vector<1x32xf32> to vector<4x32xf32>
    %369 = arith.addf %367, %368 : vector<4x32xf32>
    %c0_175 = arith.constant 0 : index
    %c2 = arith.constant 2 : index
    %c0_176 = arith.constant 0 : index
    %c0_177 = arith.constant 0 : index
    %370 = vector.load %arg3[%c0_175, %c2, %c0_176, %c0_177] : memref<1x3x1x16xf32, #tpu.memory_space<vmem>>, vector<1x1x1x16xf32>
    %371 = vector.shape_cast %370 : vector<1x1x1x16xf32> to vector<1x16xf32>
    %372 = vector.extract_strided_slice %371 {offsets = [0, 0], sizes = [1, 4], strides = [1, 1]} : vector<1x16xf32> to vector<1x4xf32>
    %c0_178 = arith.constant 0 : index
    %c0_179 = arith.constant 0 : index
    %c0_180 = arith.constant 0 : index
    %373 = vector.load %arg2[%c0_178, %c0_179, %c0_180] : memref<1x8x32xf32, #tpu.memory_space<vmem>>, vector<1x8x32xf32>
    %374 = vector.shape_cast %373 : vector<1x8x32xf32> to vector<8x32xf32>
    %c0_181 = arith.constant 0 : index
    %c0_182 = arith.constant 0 : index
    %c0_183 = arith.constant 0 : index
    %375 = vector.load %arg19[%c0_181, %c0_182, %c0_183] : memref<2x1x32xf32, #tpu.memory_space<vmem>>, vector<1x1x32xf32>
    %376 = vector.shape_cast %375 : vector<1x1x32xf32> to vector<1x32xf32>
    %c0_184 = arith.constant 0 : index
    %c0_185 = arith.constant 0 : index
    %c0_186 = arith.constant 0 : index
    %377 = vector.load %arg20[%c0_184, %c0_185, %c0_186] : memref<2x1x32xf32, #tpu.memory_space<vmem>>, vector<1x1x32xf32>
    %378 = vector.shape_cast %377 : vector<1x1x32xf32> to vector<1x32xf32>
    %cst_187 = arith.constant dense<0.000000e+00> : vector<8xf32>
    %379 = vector.multi_reduction <add>, %374, %cst_187 [1] : vector<8x32xf32> to vector<8xf32>
    %380 = vector.shape_cast %379 : vector<8xf32> to vector<8x1xf32>
    %cst_188 = arith.constant 3.200000e+01 : f32
    %381 = vector.broadcast %cst_188 : f32 to vector<8x1xf32>
    %382 = arith.divf %380, %381 : vector<8x1xf32>
    %383 = vector.broadcast %382 : vector<8x1xf32> to vector<8x32xf32>
    %384 = arith.subf %374, %383 : vector<8x32xf32>
    %385 = arith.mulf %384, %384 : vector<8x32xf32>
    %cst_189 = arith.constant dense<0.000000e+00> : vector<8xf32>
    %386 = vector.multi_reduction <add>, %385, %cst_189 [1] : vector<8x32xf32> to vector<8xf32>
    %387 = vector.shape_cast %386 : vector<8xf32> to vector<8x1xf32>
    %cst_190 = arith.constant 0.0322580636 : f32
    %388 = vector.broadcast %cst_190 : f32 to vector<8x1xf32>
    %389 = arith.mulf %387, %388 : vector<8x1xf32>
    %390 = vector.broadcast %376 : vector<1x32xf32> to vector<8x32xf32>
    %391 = arith.mulf %390, %384 : vector<8x32xf32>
    %392 = math.sqrt %389 : vector<8x1xf32>
    %cst_191 = arith.constant 9.99999997E-7 : f32
    %393 = vector.broadcast %cst_191 : f32 to vector<8x1xf32>
    %394 = arith.addf %392, %393 : vector<8x1xf32>
    %395 = vector.broadcast %394 : vector<8x1xf32> to vector<8x32xf32>
    %396 = arith.divf %391, %395 : vector<8x32xf32>
    %397 = vector.broadcast %378 : vector<1x32xf32> to vector<8x32xf32>
    %398 = arith.addf %396, %397 : vector<8x32xf32>
    %c0_192 = arith.constant 0 : index
    %c0_193 = arith.constant 0 : index
    %c0_194 = arith.constant 0 : index
    %399 = vector.load %arg21[%c0_192, %c0_193, %c0_194] : memref<2x32x96xf32, #tpu.memory_space<vmem>>, vector<1x32x96xf32>
    %400 = vector.shape_cast %399 : vector<1x32x96xf32> to vector<32x96xf32>
    %c0_195 = arith.constant 0 : index
    %c0_196 = arith.constant 0 : index
    %c0_197 = arith.constant 0 : index
    %401 = vector.load %arg22[%c0_195, %c0_196, %c0_197] : memref<2x1x96xf32, #tpu.memory_space<vmem>>, vector<1x1x96xf32>
    %402 = vector.shape_cast %401 : vector<1x1x96xf32> to vector<1x96xf32>
    %c0_198 = arith.constant 0 : index
    %c0_199 = arith.constant 0 : index
    %c0_200 = arith.constant 0 : index
    %403 = vector.load %arg23[%c0_198, %c0_199, %c0_200] : memref<2x32x32xf32, #tpu.memory_space<vmem>>, vector<1x32x32xf32>
    %404 = vector.shape_cast %403 : vector<1x32x32xf32> to vector<32x32xf32>
    %c0_201 = arith.constant 0 : index
    %c0_202 = arith.constant 0 : index
    %c0_203 = arith.constant 0 : index
    %405 = vector.load %arg24[%c0_201, %c0_202, %c0_203] : memref<2x1x32xf32, #tpu.memory_space<vmem>>, vector<1x1x32xf32>
    %406 = vector.shape_cast %405 : vector<1x1x32xf32> to vector<1x32xf32>
    %407 = vector.extract_strided_slice %400 {offsets = [0, 0], sizes = [32, 32], strides = [1, 1]} : vector<32x96xf32> to vector<32x32xf32>
    %cst_204 = arith.constant dense<0.000000e+00> : vector<8x32xf32>
    %408 = tpu.matmul %398, %407, %cst_204 {dimension_numbers = #tpu.dot_dimension_numbers<[1], [0], [0], [1], [0, 0, 1, 1], [], []>} : vector<8x32xf32>, vector<32x32xf32>, vector<8x32xf32> -> vector<8x32xf32>
    %409 = vector.extract_strided_slice %402 {offsets = [0, 0], sizes = [1, 32], strides = [1, 1]} : vector<1x96xf32> to vector<1x32xf32>
    %410 = vector.broadcast %409 : vector<1x32xf32> to vector<8x32xf32>
    %411 = arith.addf %408, %410 : vector<8x32xf32>
    %412 = vector.extract_strided_slice %400 {offsets = [0, 32], sizes = [32, 64], strides = [1, 1]} : vector<32x96xf32> to vector<32x64xf32>
    %cst_205 = arith.constant dense<0.000000e+00> : vector<4x64xf32>
    %413 = tpu.matmul %369, %412, %cst_205 {dimension_numbers = #tpu.dot_dimension_numbers<[1], [0], [0], [1], [0, 0, 1, 1], [], []>} : vector<4x32xf32>, vector<32x64xf32>, vector<4x64xf32> -> vector<4x64xf32>
    %414 = vector.extract_strided_slice %402 {offsets = [0, 32], sizes = [1, 64], strides = [1, 1]} : vector<1x96xf32> to vector<1x64xf32>
    %415 = vector.broadcast %414 : vector<1x64xf32> to vector<4x64xf32>
    %416 = arith.addf %413, %415 : vector<4x64xf32>
    %417 = vector.extract_strided_slice %416 {offsets = [0, 0], sizes = [4, 32], strides = [1, 1]} : vector<4x64xf32> to vector<4x32xf32>
    %418 = vector.extract_strided_slice %416 {offsets = [0, 32], sizes = [4, 32], strides = [1, 1]} : vector<4x64xf32> to vector<4x32xf32>
    %cst_206 = arith.constant 0.000000e+00 : f32
    %419 = vector.broadcast %cst_206 : f32 to vector<8x32xf32>
    %420 = vector.extract_strided_slice %411 {offsets = [0, 0], sizes = [8, 8], strides = [1, 1]} : vector<8x32xf32> to vector<8x8xf32>
    %421 = vector.extract_strided_slice %417 {offsets = [0, 0], sizes = [4, 8], strides = [1, 1]} : vector<4x32xf32> to vector<4x8xf32>
    %cst_207 = arith.constant dense<0.000000e+00> : vector<8x4xf32>
    %422 = tpu.matmul %420, %421, %cst_207 {dimension_numbers = #tpu.dot_dimension_numbers<[1], [1], [0], [0], [0, 0, 1, 0], [], []>} : vector<8x8xf32>, vector<4x8xf32>, vector<8x4xf32> -> vector<8x4xf32>
    %cst_208 = arith.constant 0.353553385 : f32
    %423 = vector.broadcast %cst_208 : f32 to vector<8x4xf32>
    %424 = arith.mulf %422, %423 : vector<8x4xf32>
    %425 = vector.broadcast %372 : vector<1x4xf32> to vector<8x4xf32>
    %426 = arith.addf %424, %425 : vector<8x4xf32>
    %cst_209 = arith.constant dense<0xFF800000> : vector<8xf32>
    %427 = vector.multi_reduction <maximumf>, %426, %cst_209 [1] : vector<8x4xf32> to vector<8xf32>
    %428 = vector.shape_cast %427 : vector<8xf32> to vector<8x1xf32>
    %429 = vector.broadcast %428 : vector<8x1xf32> to vector<8x4xf32>
    %430 = arith.subf %426, %429 : vector<8x4xf32>
    %431 = math.exp %430 : vector<8x4xf32>
    %cst_210 = arith.constant dense<0.000000e+00> : vector<8xf32>
    %432 = vector.multi_reduction <add>, %431, %cst_210 [1] : vector<8x4xf32> to vector<8xf32>
    %433 = vector.shape_cast %432 : vector<8xf32> to vector<8x1xf32>
    %434 = vector.broadcast %433 : vector<8x1xf32> to vector<8x4xf32>
    %435 = arith.divf %431, %434 : vector<8x4xf32>
    %436 = vector.extract_strided_slice %418 {offsets = [0, 0], sizes = [4, 8], strides = [1, 1]} : vector<4x32xf32> to vector<4x8xf32>
    %cst_211 = arith.constant dense<0.000000e+00> : vector<8x8xf32>
    %437 = tpu.matmul %435, %436, %cst_211 {dimension_numbers = #tpu.dot_dimension_numbers<[1], [0], [0], [1], [0, 0, 1, 1], [], []>} : vector<8x4xf32>, vector<4x8xf32>, vector<8x8xf32> -> vector<8x8xf32>
    %438 = vector.extract_strided_slice %404 {offsets = [0, 0], sizes = [8, 32], strides = [1, 1]} : vector<32x32xf32> to vector<8x32xf32>
    %cst_212 = arith.constant dense<0.000000e+00> : vector<8x32xf32>
    %439 = tpu.matmul %437, %438, %cst_212 {dimension_numbers = #tpu.dot_dimension_numbers<[1], [0], [0], [1], [0, 0, 1, 1], [], []>} : vector<8x8xf32>, vector<8x32xf32>, vector<8x32xf32> -> vector<8x32xf32>
    %440 = arith.addf %419, %439 : vector<8x32xf32>
    %441 = vector.extract_strided_slice %411 {offsets = [0, 8], sizes = [8, 8], strides = [1, 1]} : vector<8x32xf32> to vector<8x8xf32>
    %442 = vector.extract_strided_slice %417 {offsets = [0, 8], sizes = [4, 8], strides = [1, 1]} : vector<4x32xf32> to vector<4x8xf32>
    %cst_213 = arith.constant dense<0.000000e+00> : vector<8x4xf32>
    %443 = tpu.matmul %441, %442, %cst_213 {dimension_numbers = #tpu.dot_dimension_numbers<[1], [1], [0], [0], [0, 0, 1, 0], [], []>} : vector<8x8xf32>, vector<4x8xf32>, vector<8x4xf32> -> vector<8x4xf32>
    %cst_214 = arith.constant 0.353553385 : f32
    %444 = vector.broadcast %cst_214 : f32 to vector<8x4xf32>
    %445 = arith.mulf %443, %444 : vector<8x4xf32>
    %446 = vector.broadcast %372 : vector<1x4xf32> to vector<8x4xf32>
    %447 = arith.addf %445, %446 : vector<8x4xf32>
    %cst_215 = arith.constant dense<0xFF800000> : vector<8xf32>
    %448 = vector.multi_reduction <maximumf>, %447, %cst_215 [1] : vector<8x4xf32> to vector<8xf32>
    %449 = vector.shape_cast %448 : vector<8xf32> to vector<8x1xf32>
    %450 = vector.broadcast %449 : vector<8x1xf32> to vector<8x4xf32>
    %451 = arith.subf %447, %450 : vector<8x4xf32>
    %452 = math.exp %451 : vector<8x4xf32>
    %cst_216 = arith.constant dense<0.000000e+00> : vector<8xf32>
    %453 = vector.multi_reduction <add>, %452, %cst_216 [1] : vector<8x4xf32> to vector<8xf32>
    %454 = vector.shape_cast %453 : vector<8xf32> to vector<8x1xf32>
    %455 = vector.broadcast %454 : vector<8x1xf32> to vector<8x4xf32>
    %456 = arith.divf %452, %455 : vector<8x4xf32>
    %457 = vector.extract_strided_slice %418 {offsets = [0, 8], sizes = [4, 8], strides = [1, 1]} : vector<4x32xf32> to vector<4x8xf32>
    %cst_217 = arith.constant dense<0.000000e+00> : vector<8x8xf32>
    %458 = tpu.matmul %456, %457, %cst_217 {dimension_numbers = #tpu.dot_dimension_numbers<[1], [0], [0], [1], [0, 0, 1, 1], [], []>} : vector<8x4xf32>, vector<4x8xf32>, vector<8x8xf32> -> vector<8x8xf32>
    %459 = vector.extract_strided_slice %404 {offsets = [8, 0], sizes = [8, 32], strides = [1, 1]} : vector<32x32xf32> to vector<8x32xf32>
    %cst_218 = arith.constant dense<0.000000e+00> : vector<8x32xf32>
    %460 = tpu.matmul %458, %459, %cst_218 {dimension_numbers = #tpu.dot_dimension_numbers<[1], [0], [0], [1], [0, 0, 1, 1], [], []>} : vector<8x8xf32>, vector<8x32xf32>, vector<8x32xf32> -> vector<8x32xf32>
    %461 = arith.addf %440, %460 : vector<8x32xf32>
    %462 = vector.extract_strided_slice %411 {offsets = [0, 16], sizes = [8, 8], strides = [1, 1]} : vector<8x32xf32> to vector<8x8xf32>
    %463 = vector.extract_strided_slice %417 {offsets = [0, 16], sizes = [4, 8], strides = [1, 1]} : vector<4x32xf32> to vector<4x8xf32>
    %cst_219 = arith.constant dense<0.000000e+00> : vector<8x4xf32>
    %464 = tpu.matmul %462, %463, %cst_219 {dimension_numbers = #tpu.dot_dimension_numbers<[1], [1], [0], [0], [0, 0, 1, 0], [], []>} : vector<8x8xf32>, vector<4x8xf32>, vector<8x4xf32> -> vector<8x4xf32>
    %cst_220 = arith.constant 0.353553385 : f32
    %465 = vector.broadcast %cst_220 : f32 to vector<8x4xf32>
    %466 = arith.mulf %464, %465 : vector<8x4xf32>
    %467 = vector.broadcast %372 : vector<1x4xf32> to vector<8x4xf32>
    %468 = arith.addf %466, %467 : vector<8x4xf32>
    %cst_221 = arith.constant dense<0xFF800000> : vector<8xf32>
    %469 = vector.multi_reduction <maximumf>, %468, %cst_221 [1] : vector<8x4xf32> to vector<8xf32>
    %470 = vector.shape_cast %469 : vector<8xf32> to vector<8x1xf32>
    %471 = vector.broadcast %470 : vector<8x1xf32> to vector<8x4xf32>
    %472 = arith.subf %468, %471 : vector<8x4xf32>
    %473 = math.exp %472 : vector<8x4xf32>
    %cst_222 = arith.constant dense<0.000000e+00> : vector<8xf32>
    %474 = vector.multi_reduction <add>, %473, %cst_222 [1] : vector<8x4xf32> to vector<8xf32>
    %475 = vector.shape_cast %474 : vector<8xf32> to vector<8x1xf32>
    %476 = vector.broadcast %475 : vector<8x1xf32> to vector<8x4xf32>
    %477 = arith.divf %473, %476 : vector<8x4xf32>
    %478 = vector.extract_strided_slice %418 {offsets = [0, 16], sizes = [4, 8], strides = [1, 1]} : vector<4x32xf32> to vector<4x8xf32>
    %cst_223 = arith.constant dense<0.000000e+00> : vector<8x8xf32>
    %479 = tpu.matmul %477, %478, %cst_223 {dimension_numbers = #tpu.dot_dimension_numbers<[1], [0], [0], [1], [0, 0, 1, 1], [], []>} : vector<8x4xf32>, vector<4x8xf32>, vector<8x8xf32> -> vector<8x8xf32>
    %480 = vector.extract_strided_slice %404 {offsets = [16, 0], sizes = [8, 32], strides = [1, 1]} : vector<32x32xf32> to vector<8x32xf32>
    %cst_224 = arith.constant dense<0.000000e+00> : vector<8x32xf32>
    %481 = tpu.matmul %479, %480, %cst_224 {dimension_numbers = #tpu.dot_dimension_numbers<[1], [0], [0], [1], [0, 0, 1, 1], [], []>} : vector<8x8xf32>, vector<8x32xf32>, vector<8x32xf32> -> vector<8x32xf32>
    %482 = arith.addf %461, %481 : vector<8x32xf32>
    %483 = vector.extract_strided_slice %411 {offsets = [0, 24], sizes = [8, 8], strides = [1, 1]} : vector<8x32xf32> to vector<8x8xf32>
    %484 = vector.extract_strided_slice %417 {offsets = [0, 24], sizes = [4, 8], strides = [1, 1]} : vector<4x32xf32> to vector<4x8xf32>
    %cst_225 = arith.constant dense<0.000000e+00> : vector<8x4xf32>
    %485 = tpu.matmul %483, %484, %cst_225 {dimension_numbers = #tpu.dot_dimension_numbers<[1], [1], [0], [0], [0, 0, 1, 0], [], []>} : vector<8x8xf32>, vector<4x8xf32>, vector<8x4xf32> -> vector<8x4xf32>
    %cst_226 = arith.constant 0.353553385 : f32
    %486 = vector.broadcast %cst_226 : f32 to vector<8x4xf32>
    %487 = arith.mulf %485, %486 : vector<8x4xf32>
    %488 = vector.broadcast %372 : vector<1x4xf32> to vector<8x4xf32>
    %489 = arith.addf %487, %488 : vector<8x4xf32>
    %cst_227 = arith.constant dense<0xFF800000> : vector<8xf32>
    %490 = vector.multi_reduction <maximumf>, %489, %cst_227 [1] : vector<8x4xf32> to vector<8xf32>
    %491 = vector.shape_cast %490 : vector<8xf32> to vector<8x1xf32>
    %492 = vector.broadcast %491 : vector<8x1xf32> to vector<8x4xf32>
    %493 = arith.subf %489, %492 : vector<8x4xf32>
    %494 = math.exp %493 : vector<8x4xf32>
    %cst_228 = arith.constant dense<0.000000e+00> : vector<8xf32>
    %495 = vector.multi_reduction <add>, %494, %cst_228 [1] : vector<8x4xf32> to vector<8xf32>
    %496 = vector.shape_cast %495 : vector<8xf32> to vector<8x1xf32>
    %497 = vector.broadcast %496 : vector<8x1xf32> to vector<8x4xf32>
    %498 = arith.divf %494, %497 : vector<8x4xf32>
    %499 = vector.extract_strided_slice %418 {offsets = [0, 24], sizes = [4, 8], strides = [1, 1]} : vector<4x32xf32> to vector<4x8xf32>
    %cst_229 = arith.constant dense<0.000000e+00> : vector<8x8xf32>
    %500 = tpu.matmul %498, %499, %cst_229 {dimension_numbers = #tpu.dot_dimension_numbers<[1], [0], [0], [1], [0, 0, 1, 1], [], []>} : vector<8x4xf32>, vector<4x8xf32>, vector<8x8xf32> -> vector<8x8xf32>
    %501 = vector.extract_strided_slice %404 {offsets = [24, 0], sizes = [8, 32], strides = [1, 1]} : vector<32x32xf32> to vector<8x32xf32>
    %cst_230 = arith.constant dense<0.000000e+00> : vector<8x32xf32>
    %502 = tpu.matmul %500, %501, %cst_230 {dimension_numbers = #tpu.dot_dimension_numbers<[1], [0], [0], [1], [0, 0, 1, 1], [], []>} : vector<8x8xf32>, vector<8x32xf32>, vector<8x32xf32> -> vector<8x32xf32>
    %503 = arith.addf %482, %502 : vector<8x32xf32>
    %504 = vector.broadcast %406 : vector<1x32xf32> to vector<8x32xf32>
    %505 = arith.addf %503, %504 : vector<8x32xf32>
    %506 = arith.addf %374, %505 : vector<8x32xf32>
    %c0_231 = arith.constant 0 : index
    %c0_232 = arith.constant 0 : index
    %c0_233 = arith.constant 0 : index
    %507 = vector.load %arg25[%c0_231, %c0_232, %c0_233] : memref<2x1x32xf32, #tpu.memory_space<vmem>>, vector<1x1x32xf32>
    %508 = vector.shape_cast %507 : vector<1x1x32xf32> to vector<1x32xf32>
    %c0_234 = arith.constant 0 : index
    %c0_235 = arith.constant 0 : index
    %c0_236 = arith.constant 0 : index
    %509 = vector.load %arg26[%c0_234, %c0_235, %c0_236] : memref<2x1x32xf32, #tpu.memory_space<vmem>>, vector<1x1x32xf32>
    %510 = vector.shape_cast %509 : vector<1x1x32xf32> to vector<1x32xf32>
    %cst_237 = arith.constant dense<0.000000e+00> : vector<8xf32>
    %511 = vector.multi_reduction <add>, %506, %cst_237 [1] : vector<8x32xf32> to vector<8xf32>
    %512 = vector.shape_cast %511 : vector<8xf32> to vector<8x1xf32>
    %cst_238 = arith.constant 3.200000e+01 : f32
    %513 = vector.broadcast %cst_238 : f32 to vector<8x1xf32>
    %514 = arith.divf %512, %513 : vector<8x1xf32>
    %515 = vector.broadcast %514 : vector<8x1xf32> to vector<8x32xf32>
    %516 = arith.subf %506, %515 : vector<8x32xf32>
    %517 = arith.mulf %516, %516 : vector<8x32xf32>
    %cst_239 = arith.constant dense<0.000000e+00> : vector<8xf32>
    %518 = vector.multi_reduction <add>, %517, %cst_239 [1] : vector<8x32xf32> to vector<8xf32>
    %519 = vector.shape_cast %518 : vector<8xf32> to vector<8x1xf32>
    %cst_240 = arith.constant 0.0322580636 : f32
    %520 = vector.broadcast %cst_240 : f32 to vector<8x1xf32>
    %521 = arith.mulf %519, %520 : vector<8x1xf32>
    %522 = vector.broadcast %508 : vector<1x32xf32> to vector<8x32xf32>
    %523 = arith.mulf %522, %516 : vector<8x32xf32>
    %524 = math.sqrt %521 : vector<8x1xf32>
    %cst_241 = arith.constant 9.99999997E-7 : f32
    %525 = vector.broadcast %cst_241 : f32 to vector<8x1xf32>
    %526 = arith.addf %524, %525 : vector<8x1xf32>
    %527 = vector.broadcast %526 : vector<8x1xf32> to vector<8x32xf32>
    %528 = arith.divf %523, %527 : vector<8x32xf32>
    %529 = vector.broadcast %510 : vector<1x32xf32> to vector<8x32xf32>
    %530 = arith.addf %528, %529 : vector<8x32xf32>
    %c0_242 = arith.constant 0 : index
    %c0_243 = arith.constant 0 : index
    %c0_244 = arith.constant 0 : index
    %531 = vector.load %arg27[%c0_242, %c0_243, %c0_244] : memref<2x32x2048xf32, #tpu.memory_space<vmem>>, vector<1x32x2048xf32>
    %532 = vector.shape_cast %531 : vector<1x32x2048xf32> to vector<32x2048xf32>
    %c0_245 = arith.constant 0 : index
    %c0_246 = arith.constant 0 : index
    %c0_247 = arith.constant 0 : index
    %533 = vector.load %arg28[%c0_245, %c0_246, %c0_247] : memref<2x1x2048xf32, #tpu.memory_space<vmem>>, vector<1x1x2048xf32>
    %534 = vector.shape_cast %533 : vector<1x1x2048xf32> to vector<1x2048xf32>
    %c0_248 = arith.constant 0 : index
    %c0_249 = arith.constant 0 : index
    %c0_250 = arith.constant 0 : index
    %535 = vector.load %arg29[%c0_248, %c0_249, %c0_250] : memref<2x2048x32xf32, #tpu.memory_space<vmem>>, vector<1x2048x32xf32>
    %536 = vector.shape_cast %535 : vector<1x2048x32xf32> to vector<2048x32xf32>
    %c0_251 = arith.constant 0 : index
    %c0_252 = arith.constant 0 : index
    %c0_253 = arith.constant 0 : index
    %537 = vector.load %arg30[%c0_251, %c0_252, %c0_253] : memref<2x1x32xf32, #tpu.memory_space<vmem>>, vector<1x1x32xf32>
    %538 = vector.shape_cast %537 : vector<1x1x32xf32> to vector<1x32xf32>
    %cst_254 = arith.constant dense<0.000000e+00> : vector<8x2048xf32>
    %539 = tpu.matmul %530, %532, %cst_254 {dimension_numbers = #tpu.dot_dimension_numbers<[1], [0], [0], [1], [0, 0, 1, 1], [], []>} : vector<8x32xf32>, vector<32x2048xf32>, vector<8x2048xf32> -> vector<8x2048xf32>
    %540 = vector.broadcast %534 : vector<1x2048xf32> to vector<8x2048xf32>
    %541 = arith.addf %539, %540 : vector<8x2048xf32>
    %cst_255 = arith.constant 0.000000e+00 : f32
    %542 = vector.broadcast %cst_255 : f32 to vector<8x2048xf32>
    %543 = arith.maximumf %541, %542 : vector<8x2048xf32>
    %cst_256 = arith.constant dense<0.000000e+00> : vector<8x32xf32>
    %544 = tpu.matmul %543, %536, %cst_256 {dimension_numbers = #tpu.dot_dimension_numbers<[1], [0], [0], [1], [0, 0, 1, 1], [], []>} : vector<8x2048xf32>, vector<2048x32xf32>, vector<8x32xf32> -> vector<8x32xf32>
    %545 = vector.broadcast %538 : vector<1x32xf32> to vector<8x32xf32>
    %546 = arith.addf %544, %545 : vector<8x32xf32>
    %547 = arith.addf %506, %546 : vector<8x32xf32>
    %c1_257 = arith.constant 1 : index
    %c0_258 = arith.constant 0 : index
    %c0_259 = arith.constant 0 : index
    %548 = vector.load %arg19[%c1_257, %c0_258, %c0_259] : memref<2x1x32xf32, #tpu.memory_space<vmem>>, vector<1x1x32xf32>
    %549 = vector.shape_cast %548 : vector<1x1x32xf32> to vector<1x32xf32>
    %c1_260 = arith.constant 1 : index
    %c0_261 = arith.constant 0 : index
    %c0_262 = arith.constant 0 : index
    %550 = vector.load %arg20[%c1_260, %c0_261, %c0_262] : memref<2x1x32xf32, #tpu.memory_space<vmem>>, vector<1x1x32xf32>
    %551 = vector.shape_cast %550 : vector<1x1x32xf32> to vector<1x32xf32>
    %cst_263 = arith.constant dense<0.000000e+00> : vector<8xf32>
    %552 = vector.multi_reduction <add>, %547, %cst_263 [1] : vector<8x32xf32> to vector<8xf32>
    %553 = vector.shape_cast %552 : vector<8xf32> to vector<8x1xf32>
    %cst_264 = arith.constant 3.200000e+01 : f32
    %554 = vector.broadcast %cst_264 : f32 to vector<8x1xf32>
    %555 = arith.divf %553, %554 : vector<8x1xf32>
    %556 = vector.broadcast %555 : vector<8x1xf32> to vector<8x32xf32>
    %557 = arith.subf %547, %556 : vector<8x32xf32>
    %558 = arith.mulf %557, %557 : vector<8x32xf32>
    %cst_265 = arith.constant dense<0.000000e+00> : vector<8xf32>
    %559 = vector.multi_reduction <add>, %558, %cst_265 [1] : vector<8x32xf32> to vector<8xf32>
    %560 = vector.shape_cast %559 : vector<8xf32> to vector<8x1xf32>
    %cst_266 = arith.constant 0.0322580636 : f32
    %561 = vector.broadcast %cst_266 : f32 to vector<8x1xf32>
    %562 = arith.mulf %560, %561 : vector<8x1xf32>
    %563 = vector.broadcast %549 : vector<1x32xf32> to vector<8x32xf32>
    %564 = arith.mulf %563, %557 : vector<8x32xf32>
    %565 = math.sqrt %562 : vector<8x1xf32>
    %cst_267 = arith.constant 9.99999997E-7 : f32
    %566 = vector.broadcast %cst_267 : f32 to vector<8x1xf32>
    %567 = arith.addf %565, %566 : vector<8x1xf32>
    %568 = vector.broadcast %567 : vector<8x1xf32> to vector<8x32xf32>
    %569 = arith.divf %564, %568 : vector<8x32xf32>
    %570 = vector.broadcast %551 : vector<1x32xf32> to vector<8x32xf32>
    %571 = arith.addf %569, %570 : vector<8x32xf32>
    %c1_268 = arith.constant 1 : index
    %c0_269 = arith.constant 0 : index
    %c0_270 = arith.constant 0 : index
    %572 = vector.load %arg21[%c1_268, %c0_269, %c0_270] : memref<2x32x96xf32, #tpu.memory_space<vmem>>, vector<1x32x96xf32>
    %573 = vector.shape_cast %572 : vector<1x32x96xf32> to vector<32x96xf32>
    %c1_271 = arith.constant 1 : index
    %c0_272 = arith.constant 0 : index
    %c0_273 = arith.constant 0 : index
    %574 = vector.load %arg22[%c1_271, %c0_272, %c0_273] : memref<2x1x96xf32, #tpu.memory_space<vmem>>, vector<1x1x96xf32>
    %575 = vector.shape_cast %574 : vector<1x1x96xf32> to vector<1x96xf32>
    %c1_274 = arith.constant 1 : index
    %c0_275 = arith.constant 0 : index
    %c0_276 = arith.constant 0 : index
    %576 = vector.load %arg23[%c1_274, %c0_275, %c0_276] : memref<2x32x32xf32, #tpu.memory_space<vmem>>, vector<1x32x32xf32>
    %577 = vector.shape_cast %576 : vector<1x32x32xf32> to vector<32x32xf32>
    %c1_277 = arith.constant 1 : index
    %c0_278 = arith.constant 0 : index
    %c0_279 = arith.constant 0 : index
    %578 = vector.load %arg24[%c1_277, %c0_278, %c0_279] : memref<2x1x32xf32, #tpu.memory_space<vmem>>, vector<1x1x32xf32>
    %579 = vector.shape_cast %578 : vector<1x1x32xf32> to vector<1x32xf32>
    %580 = vector.extract_strided_slice %573 {offsets = [0, 0], sizes = [32, 32], strides = [1, 1]} : vector<32x96xf32> to vector<32x32xf32>
    %cst_280 = arith.constant dense<0.000000e+00> : vector<8x32xf32>
    %581 = tpu.matmul %571, %580, %cst_280 {dimension_numbers = #tpu.dot_dimension_numbers<[1], [0], [0], [1], [0, 0, 1, 1], [], []>} : vector<8x32xf32>, vector<32x32xf32>, vector<8x32xf32> -> vector<8x32xf32>
    %582 = vector.extract_strided_slice %575 {offsets = [0, 0], sizes = [1, 32], strides = [1, 1]} : vector<1x96xf32> to vector<1x32xf32>
    %583 = vector.broadcast %582 : vector<1x32xf32> to vector<8x32xf32>
    %584 = arith.addf %581, %583 : vector<8x32xf32>
    %585 = vector.extract_strided_slice %573 {offsets = [0, 32], sizes = [32, 64], strides = [1, 1]} : vector<32x96xf32> to vector<32x64xf32>
    %cst_281 = arith.constant dense<0.000000e+00> : vector<4x64xf32>
    %586 = tpu.matmul %369, %585, %cst_281 {dimension_numbers = #tpu.dot_dimension_numbers<[1], [0], [0], [1], [0, 0, 1, 1], [], []>} : vector<4x32xf32>, vector<32x64xf32>, vector<4x64xf32> -> vector<4x64xf32>
    %587 = vector.extract_strided_slice %575 {offsets = [0, 32], sizes = [1, 64], strides = [1, 1]} : vector<1x96xf32> to vector<1x64xf32>
    %588 = vector.broadcast %587 : vector<1x64xf32> to vector<4x64xf32>
    %589 = arith.addf %586, %588 : vector<4x64xf32>
    %590 = vector.extract_strided_slice %589 {offsets = [0, 0], sizes = [4, 32], strides = [1, 1]} : vector<4x64xf32> to vector<4x32xf32>
    %591 = vector.extract_strided_slice %589 {offsets = [0, 32], sizes = [4, 32], strides = [1, 1]} : vector<4x64xf32> to vector<4x32xf32>
    %cst_282 = arith.constant 0.000000e+00 : f32
    %592 = vector.broadcast %cst_282 : f32 to vector<8x32xf32>
    %593 = vector.extract_strided_slice %584 {offsets = [0, 0], sizes = [8, 8], strides = [1, 1]} : vector<8x32xf32> to vector<8x8xf32>
    %594 = vector.extract_strided_slice %590 {offsets = [0, 0], sizes = [4, 8], strides = [1, 1]} : vector<4x32xf32> to vector<4x8xf32>
    %cst_283 = arith.constant dense<0.000000e+00> : vector<8x4xf32>
    %595 = tpu.matmul %593, %594, %cst_283 {dimension_numbers = #tpu.dot_dimension_numbers<[1], [1], [0], [0], [0, 0, 1, 0], [], []>} : vector<8x8xf32>, vector<4x8xf32>, vector<8x4xf32> -> vector<8x4xf32>
    %cst_284 = arith.constant 0.353553385 : f32
    %596 = vector.broadcast %cst_284 : f32 to vector<8x4xf32>
    %597 = arith.mulf %595, %596 : vector<8x4xf32>
    %598 = vector.broadcast %372 : vector<1x4xf32> to vector<8x4xf32>
    %599 = arith.addf %597, %598 : vector<8x4xf32>
    %cst_285 = arith.constant dense<0xFF800000> : vector<8xf32>
    %600 = vector.multi_reduction <maximumf>, %599, %cst_285 [1] : vector<8x4xf32> to vector<8xf32>
    %601 = vector.shape_cast %600 : vector<8xf32> to vector<8x1xf32>
    %602 = vector.broadcast %601 : vector<8x1xf32> to vector<8x4xf32>
    %603 = arith.subf %599, %602 : vector<8x4xf32>
    %604 = math.exp %603 : vector<8x4xf32>
    %cst_286 = arith.constant dense<0.000000e+00> : vector<8xf32>
    %605 = vector.multi_reduction <add>, %604, %cst_286 [1] : vector<8x4xf32> to vector<8xf32>
    %606 = vector.shape_cast %605 : vector<8xf32> to vector<8x1xf32>
    %607 = vector.broadcast %606 : vector<8x1xf32> to vector<8x4xf32>
    %608 = arith.divf %604, %607 : vector<8x4xf32>
    %609 = vector.extract_strided_slice %591 {offsets = [0, 0], sizes = [4, 8], strides = [1, 1]} : vector<4x32xf32> to vector<4x8xf32>
    %cst_287 = arith.constant dense<0.000000e+00> : vector<8x8xf32>
    %610 = tpu.matmul %608, %609, %cst_287 {dimension_numbers = #tpu.dot_dimension_numbers<[1], [0], [0], [1], [0, 0, 1, 1], [], []>} : vector<8x4xf32>, vector<4x8xf32>, vector<8x8xf32> -> vector<8x8xf32>
    %611 = vector.extract_strided_slice %577 {offsets = [0, 0], sizes = [8, 32], strides = [1, 1]} : vector<32x32xf32> to vector<8x32xf32>
    %cst_288 = arith.constant dense<0.000000e+00> : vector<8x32xf32>
    %612 = tpu.matmul %610, %611, %cst_288 {dimension_numbers = #tpu.dot_dimension_numbers<[1], [0], [0], [1], [0, 0, 1, 1], [], []>} : vector<8x8xf32>, vector<8x32xf32>, vector<8x32xf32> -> vector<8x32xf32>
    %613 = arith.addf %592, %612 : vector<8x32xf32>
    %614 = vector.extract_strided_slice %584 {offsets = [0, 8], sizes = [8, 8], strides = [1, 1]} : vector<8x32xf32> to vector<8x8xf32>
    %615 = vector.extract_strided_slice %590 {offsets = [0, 8], sizes = [4, 8], strides = [1, 1]} : vector<4x32xf32> to vector<4x8xf32>
    %cst_289 = arith.constant dense<0.000000e+00> : vector<8x4xf32>
    %616 = tpu.matmul %614, %615, %cst_289 {dimension_numbers = #tpu.dot_dimension_numbers<[1], [1], [0], [0], [0, 0, 1, 0], [], []>} : vector<8x8xf32>, vector<4x8xf32>, vector<8x4xf32> -> vector<8x4xf32>
    %cst_290 = arith.constant 0.353553385 : f32
    %617 = vector.broadcast %cst_290 : f32 to vector<8x4xf32>
    %618 = arith.mulf %616, %617 : vector<8x4xf32>
    %619 = vector.broadcast %372 : vector<1x4xf32> to vector<8x4xf32>
    %620 = arith.addf %618, %619 : vector<8x4xf32>
    %cst_291 = arith.constant dense<0xFF800000> : vector<8xf32>
    %621 = vector.multi_reduction <maximumf>, %620, %cst_291 [1] : vector<8x4xf32> to vector<8xf32>
    %622 = vector.shape_cast %621 : vector<8xf32> to vector<8x1xf32>
    %623 = vector.broadcast %622 : vector<8x1xf32> to vector<8x4xf32>
    %624 = arith.subf %620, %623 : vector<8x4xf32>
    %625 = math.exp %624 : vector<8x4xf32>
    %cst_292 = arith.constant dense<0.000000e+00> : vector<8xf32>
    %626 = vector.multi_reduction <add>, %625, %cst_292 [1] : vector<8x4xf32> to vector<8xf32>
    %627 = vector.shape_cast %626 : vector<8xf32> to vector<8x1xf32>
    %628 = vector.broadcast %627 : vector<8x1xf32> to vector<8x4xf32>
    %629 = arith.divf %625, %628 : vector<8x4xf32>
    %630 = vector.extract_strided_slice %591 {offsets = [0, 8], sizes = [4, 8], strides = [1, 1]} : vector<4x32xf32> to vector<4x8xf32>
    %cst_293 = arith.constant dense<0.000000e+00> : vector<8x8xf32>
    %631 = tpu.matmul %629, %630, %cst_293 {dimension_numbers = #tpu.dot_dimension_numbers<[1], [0], [0], [1], [0, 0, 1, 1], [], []>} : vector<8x4xf32>, vector<4x8xf32>, vector<8x8xf32> -> vector<8x8xf32>
    %632 = vector.extract_strided_slice %577 {offsets = [8, 0], sizes = [8, 32], strides = [1, 1]} : vector<32x32xf32> to vector<8x32xf32>
    %cst_294 = arith.constant dense<0.000000e+00> : vector<8x32xf32>
    %633 = tpu.matmul %631, %632, %cst_294 {dimension_numbers = #tpu.dot_dimension_numbers<[1], [0], [0], [1], [0, 0, 1, 1], [], []>} : vector<8x8xf32>, vector<8x32xf32>, vector<8x32xf32> -> vector<8x32xf32>
    %634 = arith.addf %613, %633 : vector<8x32xf32>
    %635 = vector.extract_strided_slice %584 {offsets = [0, 16], sizes = [8, 8], strides = [1, 1]} : vector<8x32xf32> to vector<8x8xf32>
    %636 = vector.extract_strided_slice %590 {offsets = [0, 16], sizes = [4, 8], strides = [1, 1]} : vector<4x32xf32> to vector<4x8xf32>
    %cst_295 = arith.constant dense<0.000000e+00> : vector<8x4xf32>
    %637 = tpu.matmul %635, %636, %cst_295 {dimension_numbers = #tpu.dot_dimension_numbers<[1], [1], [0], [0], [0, 0, 1, 0], [], []>} : vector<8x8xf32>, vector<4x8xf32>, vector<8x4xf32> -> vector<8x4xf32>
    %cst_296 = arith.constant 0.353553385 : f32
    %638 = vector.broadcast %cst_296 : f32 to vector<8x4xf32>
    %639 = arith.mulf %637, %638 : vector<8x4xf32>
    %640 = vector.broadcast %372 : vector<1x4xf32> to vector<8x4xf32>
    %641 = arith.addf %639, %640 : vector<8x4xf32>
    %cst_297 = arith.constant dense<0xFF800000> : vector<8xf32>
    %642 = vector.multi_reduction <maximumf>, %641, %cst_297 [1] : vector<8x4xf32> to vector<8xf32>
    %643 = vector.shape_cast %642 : vector<8xf32> to vector<8x1xf32>
    %644 = vector.broadcast %643 : vector<8x1xf32> to vector<8x4xf32>
    %645 = arith.subf %641, %644 : vector<8x4xf32>
    %646 = math.exp %645 : vector<8x4xf32>
    %cst_298 = arith.constant dense<0.000000e+00> : vector<8xf32>
    %647 = vector.multi_reduction <add>, %646, %cst_298 [1] : vector<8x4xf32> to vector<8xf32>
    %648 = vector.shape_cast %647 : vector<8xf32> to vector<8x1xf32>
    %649 = vector.broadcast %648 : vector<8x1xf32> to vector<8x4xf32>
    %650 = arith.divf %646, %649 : vector<8x4xf32>
    %651 = vector.extract_strided_slice %591 {offsets = [0, 16], sizes = [4, 8], strides = [1, 1]} : vector<4x32xf32> to vector<4x8xf32>
    %cst_299 = arith.constant dense<0.000000e+00> : vector<8x8xf32>
    %652 = tpu.matmul %650, %651, %cst_299 {dimension_numbers = #tpu.dot_dimension_numbers<[1], [0], [0], [1], [0, 0, 1, 1], [], []>} : vector<8x4xf32>, vector<4x8xf32>, vector<8x8xf32> -> vector<8x8xf32>
    %653 = vector.extract_strided_slice %577 {offsets = [16, 0], sizes = [8, 32], strides = [1, 1]} : vector<32x32xf32> to vector<8x32xf32>
    %cst_300 = arith.constant dense<0.000000e+00> : vector<8x32xf32>
    %654 = tpu.matmul %652, %653, %cst_300 {dimension_numbers = #tpu.dot_dimension_numbers<[1], [0], [0], [1], [0, 0, 1, 1], [], []>} : vector<8x8xf32>, vector<8x32xf32>, vector<8x32xf32> -> vector<8x32xf32>
    %655 = arith.addf %634, %654 : vector<8x32xf32>
    %656 = vector.extract_strided_slice %584 {offsets = [0, 24], sizes = [8, 8], strides = [1, 1]} : vector<8x32xf32> to vector<8x8xf32>
    %657 = vector.extract_strided_slice %590 {offsets = [0, 24], sizes = [4, 8], strides = [1, 1]} : vector<4x32xf32> to vector<4x8xf32>
    %cst_301 = arith.constant dense<0.000000e+00> : vector<8x4xf32>
    %658 = tpu.matmul %656, %657, %cst_301 {dimension_numbers = #tpu.dot_dimension_numbers<[1], [1], [0], [0], [0, 0, 1, 0], [], []>} : vector<8x8xf32>, vector<4x8xf32>, vector<8x4xf32> -> vector<8x4xf32>
    %cst_302 = arith.constant 0.353553385 : f32
    %659 = vector.broadcast %cst_302 : f32 to vector<8x4xf32>
    %660 = arith.mulf %658, %659 : vector<8x4xf32>
    %661 = vector.broadcast %372 : vector<1x4xf32> to vector<8x4xf32>
    %662 = arith.addf %660, %661 : vector<8x4xf32>
    %cst_303 = arith.constant dense<0xFF800000> : vector<8xf32>
    %663 = vector.multi_reduction <maximumf>, %662, %cst_303 [1] : vector<8x4xf32> to vector<8xf32>
    %664 = vector.shape_cast %663 : vector<8xf32> to vector<8x1xf32>
    %665 = vector.broadcast %664 : vector<8x1xf32> to vector<8x4xf32>
    %666 = arith.subf %662, %665 : vector<8x4xf32>
    %667 = math.exp %666 : vector<8x4xf32>
    %cst_304 = arith.constant dense<0.000000e+00> : vector<8xf32>
    %668 = vector.multi_reduction <add>, %667, %cst_304 [1] : vector<8x4xf32> to vector<8xf32>
    %669 = vector.shape_cast %668 : vector<8xf32> to vector<8x1xf32>
    %670 = vector.broadcast %669 : vector<8x1xf32> to vector<8x4xf32>
    %671 = arith.divf %667, %670 : vector<8x4xf32>
    %672 = vector.extract_strided_slice %591 {offsets = [0, 24], sizes = [4, 8], strides = [1, 1]} : vector<4x32xf32> to vector<4x8xf32>
    %cst_305 = arith.constant dense<0.000000e+00> : vector<8x8xf32>
    %673 = tpu.matmul %671, %672, %cst_305 {dimension_numbers = #tpu.dot_dimension_numbers<[1], [0], [0], [1], [0, 0, 1, 1], [], []>} : vector<8x4xf32>, vector<4x8xf32>, vector<8x8xf32> -> vector<8x8xf32>
    %674 = vector.extract_strided_slice %577 {offsets = [24, 0], sizes = [8, 32], strides = [1, 1]} : vector<32x32xf32> to vector<8x32xf32>
    %cst_306 = arith.constant dense<0.000000e+00> : vector<8x32xf32>
    %675 = tpu.matmul %673, %674, %cst_306 {dimension_numbers = #tpu.dot_dimension_numbers<[1], [0], [0], [1], [0, 0, 1, 1], [], []>} : vector<8x8xf32>, vector<8x32xf32>, vector<8x32xf32> -> vector<8x32xf32>
    %676 = arith.addf %655, %675 : vector<8x32xf32>
    %677 = vector.broadcast %579 : vector<1x32xf32> to vector<8x32xf32>
    %678 = arith.addf %676, %677 : vector<8x32xf32>
    %679 = arith.addf %547, %678 : vector<8x32xf32>
    %c1_307 = arith.constant 1 : index
    %c0_308 = arith.constant 0 : index
    %c0_309 = arith.constant 0 : index
    %680 = vector.load %arg25[%c1_307, %c0_308, %c0_309] : memref<2x1x32xf32, #tpu.memory_space<vmem>>, vector<1x1x32xf32>
    %681 = vector.shape_cast %680 : vector<1x1x32xf32> to vector<1x32xf32>
    %c1_310 = arith.constant 1 : index
    %c0_311 = arith.constant 0 : index
    %c0_312 = arith.constant 0 : index
    %682 = vector.load %arg26[%c1_310, %c0_311, %c0_312] : memref<2x1x32xf32, #tpu.memory_space<vmem>>, vector<1x1x32xf32>
    %683 = vector.shape_cast %682 : vector<1x1x32xf32> to vector<1x32xf32>
    %cst_313 = arith.constant dense<0.000000e+00> : vector<8xf32>
    %684 = vector.multi_reduction <add>, %679, %cst_313 [1] : vector<8x32xf32> to vector<8xf32>
    %685 = vector.shape_cast %684 : vector<8xf32> to vector<8x1xf32>
    %cst_314 = arith.constant 3.200000e+01 : f32
    %686 = vector.broadcast %cst_314 : f32 to vector<8x1xf32>
    %687 = arith.divf %685, %686 : vector<8x1xf32>
    %688 = vector.broadcast %687 : vector<8x1xf32> to vector<8x32xf32>
    %689 = arith.subf %679, %688 : vector<8x32xf32>
    %690 = arith.mulf %689, %689 : vector<8x32xf32>
    %cst_315 = arith.constant dense<0.000000e+00> : vector<8xf32>
    %691 = vector.multi_reduction <add>, %690, %cst_315 [1] : vector<8x32xf32> to vector<8xf32>
    %692 = vector.shape_cast %691 : vector<8xf32> to vector<8x1xf32>
    %cst_316 = arith.constant 0.0322580636 : f32
    %693 = vector.broadcast %cst_316 : f32 to vector<8x1xf32>
    %694 = arith.mulf %692, %693 : vector<8x1xf32>
    %695 = vector.broadcast %681 : vector<1x32xf32> to vector<8x32xf32>
    %696 = arith.mulf %695, %689 : vector<8x32xf32>
    %697 = math.sqrt %694 : vector<8x1xf32>
    %cst_317 = arith.constant 9.99999997E-7 : f32
    %698 = vector.broadcast %cst_317 : f32 to vector<8x1xf32>
    %699 = arith.addf %697, %698 : vector<8x1xf32>
    %700 = vector.broadcast %699 : vector<8x1xf32> to vector<8x32xf32>
    %701 = arith.divf %696, %700 : vector<8x32xf32>
    %702 = vector.broadcast %683 : vector<1x32xf32> to vector<8x32xf32>
    %703 = arith.addf %701, %702 : vector<8x32xf32>
    %c1_318 = arith.constant 1 : index
    %c0_319 = arith.constant 0 : index
    %c0_320 = arith.constant 0 : index
    %704 = vector.load %arg27[%c1_318, %c0_319, %c0_320] : memref<2x32x2048xf32, #tpu.memory_space<vmem>>, vector<1x32x2048xf32>
    %705 = vector.shape_cast %704 : vector<1x32x2048xf32> to vector<32x2048xf32>
    %c1_321 = arith.constant 1 : index
    %c0_322 = arith.constant 0 : index
    %c0_323 = arith.constant 0 : index
    %706 = vector.load %arg28[%c1_321, %c0_322, %c0_323] : memref<2x1x2048xf32, #tpu.memory_space<vmem>>, vector<1x1x2048xf32>
    %707 = vector.shape_cast %706 : vector<1x1x2048xf32> to vector<1x2048xf32>
    %c1_324 = arith.constant 1 : index
    %c0_325 = arith.constant 0 : index
    %c0_326 = arith.constant 0 : index
    %708 = vector.load %arg29[%c1_324, %c0_325, %c0_326] : memref<2x2048x32xf32, #tpu.memory_space<vmem>>, vector<1x2048x32xf32>
    %709 = vector.shape_cast %708 : vector<1x2048x32xf32> to vector<2048x32xf32>
    %c1_327 = arith.constant 1 : index
    %c0_328 = arith.constant 0 : index
    %c0_329 = arith.constant 0 : index
    %710 = vector.load %arg30[%c1_327, %c0_328, %c0_329] : memref<2x1x32xf32, #tpu.memory_space<vmem>>, vector<1x1x32xf32>
    %711 = vector.shape_cast %710 : vector<1x1x32xf32> to vector<1x32xf32>
    %cst_330 = arith.constant dense<0.000000e+00> : vector<8x2048xf32>
    %712 = tpu.matmul %703, %705, %cst_330 {dimension_numbers = #tpu.dot_dimension_numbers<[1], [0], [0], [1], [0, 0, 1, 1], [], []>} : vector<8x32xf32>, vector<32x2048xf32>, vector<8x2048xf32> -> vector<8x2048xf32>
    %713 = vector.broadcast %707 : vector<1x2048xf32> to vector<8x2048xf32>
    %714 = arith.addf %712, %713 : vector<8x2048xf32>
    %cst_331 = arith.constant 0.000000e+00 : f32
    %715 = vector.broadcast %cst_331 : f32 to vector<8x2048xf32>
    %716 = arith.maximumf %714, %715 : vector<8x2048xf32>
    %cst_332 = arith.constant dense<0.000000e+00> : vector<8x32xf32>
    %717 = tpu.matmul %716, %709, %cst_332 {dimension_numbers = #tpu.dot_dimension_numbers<[1], [0], [0], [1], [0, 0, 1, 1], [], []>} : vector<8x2048xf32>, vector<2048x32xf32>, vector<8x32xf32> -> vector<8x32xf32>
    %718 = vector.broadcast %711 : vector<1x32xf32> to vector<8x32xf32>
    %719 = arith.addf %717, %718 : vector<8x32xf32>
    %720 = arith.addf %679, %719 : vector<8x32xf32>
    %c0_333 = arith.constant 0 : index
    %c0_334 = arith.constant 0 : index
    %721 = vector.load %arg31[%c0_333, %c0_334] : memref<1x32xf32, #tpu.memory_space<vmem>>, vector<1x32xf32>
    %c0_335 = arith.constant 0 : index
    %c0_336 = arith.constant 0 : index
    %722 = vector.load %arg32[%c0_335, %c0_336] : memref<1x32xf32, #tpu.memory_space<vmem>>, vector<1x32xf32>
    %cst_337 = arith.constant dense<0.000000e+00> : vector<8xf32>
    %723 = vector.multi_reduction <add>, %720, %cst_337 [1] : vector<8x32xf32> to vector<8xf32>
    %724 = vector.shape_cast %723 : vector<8xf32> to vector<8x1xf32>
    %cst_338 = arith.constant 3.200000e+01 : f32
    %725 = vector.broadcast %cst_338 : f32 to vector<8x1xf32>
    %726 = arith.divf %724, %725 : vector<8x1xf32>
    %727 = vector.broadcast %726 : vector<8x1xf32> to vector<8x32xf32>
    %728 = arith.subf %720, %727 : vector<8x32xf32>
    %729 = arith.mulf %728, %728 : vector<8x32xf32>
    %cst_339 = arith.constant dense<0.000000e+00> : vector<8xf32>
    %730 = vector.multi_reduction <add>, %729, %cst_339 [1] : vector<8x32xf32> to vector<8xf32>
    %731 = vector.shape_cast %730 : vector<8xf32> to vector<8x1xf32>
    %cst_340 = arith.constant 0.0322580636 : f32
    %732 = vector.broadcast %cst_340 : f32 to vector<8x1xf32>
    %733 = arith.mulf %731, %732 : vector<8x1xf32>
    %734 = vector.broadcast %721 : vector<1x32xf32> to vector<8x32xf32>
    %735 = arith.mulf %734, %728 : vector<8x32xf32>
    %736 = math.sqrt %733 : vector<8x1xf32>
    %cst_341 = arith.constant 9.99999997E-7 : f32
    %737 = vector.broadcast %cst_341 : f32 to vector<8x1xf32>
    %738 = arith.addf %736, %737 : vector<8x1xf32>
    %739 = vector.broadcast %738 : vector<8x1xf32> to vector<8x32xf32>
    %740 = arith.divf %735, %739 : vector<8x32xf32>
    %741 = vector.broadcast %722 : vector<1x32xf32> to vector<8x32xf32>
    %742 = arith.addf %740, %741 : vector<8x32xf32>
    %c0_342 = arith.constant 0 : index
    %c0_343 = arith.constant 0 : index
    %743 = vector.load %arg33[%c0_342, %c0_343] : memref<32x128xf32, #tpu.memory_space<vmem>>, vector<32x128xf32>
    %cst_344 = arith.constant dense<0.000000e+00> : vector<8x128xf32>
    %744 = tpu.matmul %742, %743, %cst_344 {dimension_numbers = #tpu.dot_dimension_numbers<[1], [0], [0], [1], [0, 0, 1, 1], [], []>} : vector<8x32xf32>, vector<32x128xf32>, vector<8x128xf32> -> vector<8x128xf32>
    %c0_345 = arith.constant 0 : index
    %c0_346 = arith.constant 0 : index
    %745 = vector.load %arg34[%c0_345, %c0_346] : memref<1x128xf32, #tpu.memory_space<vmem>>, vector<1x128xf32>
    %746 = vector.broadcast %745 : vector<1x128xf32> to vector<8x128xf32>
    %747 = arith.addf %744, %746 : vector<8x128xf32>
    %c0_347 = arith.constant 0 : index
    %c0_348 = arith.constant 0 : index
    %c0_349 = arith.constant 0 : index
    %748 = vector.load %arg35[%c0_347, %c0_348, %c0_349] : memref<1x8x128xf32, #tpu.memory_space<vmem>>, vector<1x8x128xf32>
    %749 = vector.shape_cast %748 : vector<1x8x128xf32> to vector<8x128xf32>
    %750 = vector.shape_cast %747 : vector<8x128xf32> to vector<1x8x128xf32>
    tpu.vector_store %arg35[%c0_347, %c0_348, %c0_349], %750 {strides = array<i32>} : memref<1x8x128xf32, #tpu.memory_space<vmem>>, vector<1x8x128xf32>,
    return
  }
  func.func @transform_0(%arg0: i32) -> (i32, i32, i32) {
    %c0_i32 = arith.constant 0 : i32
    %c0_i32_0 = arith.constant 0 : i32
    %c0_i32_1 = arith.constant 0 : i32
    return %arg0, %c0_i32, %c0_i32_0 : i32, i32, i32
  }
  func.func @transform_1(%arg0: i32) -> (i32, i32, i32) {
    %c0_i32 = arith.constant 0 : i32
    %c0_i32_0 = arith.constant 0 : i32
    %c0_i32_1 = arith.constant 0 : i32
    return %arg0, %c0_i32, %c0_i32_0 : i32, i32, i32
  }
  func.func @transform_2(%arg0: i32) -> (i32, i32, i32, i32) {
    %c0_i32 = arith.constant 0 : i32
    %c0_i32_0 = arith.constant 0 : i32
    %c0_i32_1 = arith.constant 0 : i32
    %c0_i32_2 = arith.constant 0 : i32
    return %arg0, %c0_i32, %c0_i32_0, %c0_i32_1 : i32, i32, i32, i32
  }
  func.func @transform_3(%arg0: i32) -> (i32, i32, i32) {
    %c0_i32 = arith.constant 0 : i32
    %c0_i32_0 = arith.constant 0 : i32
    %c0_i32_1 = arith.constant 0 : i32
    %c0_i32_2 = arith.constant 0 : i32
    return %c0_i32, %c0_i32_0, %c0_i32_1 : i32, i32, i32
  }
  func.func @transform_4(%arg0: i32) -> (i32, i32, i32) {
    %c0_i32 = arith.constant 0 : i32
    %c0_i32_0 = arith.constant 0 : i32
    %c0_i32_1 = arith.constant 0 : i32
    %c0_i32_2 = arith.constant 0 : i32
    return %c0_i32, %c0_i32_0, %c0_i32_1 : i32, i32, i32
  }
  func.func @transform_5(%arg0: i32) -> (i32, i32, i32) {
    %c0_i32 = arith.constant 0 : i32
    %c0_i32_0 = arith.constant 0 : i32
    %c0_i32_1 = arith.constant 0 : i32
    %c0_i32_2 = arith.constant 0 : i32
    return %c0_i32, %c0_i32_0, %c0_i32_1 : i32, i32, i32
  }
  func.func @transform_6(%arg0: i32) -> (i32, i32, i32) {
    %c0_i32 = arith.constant 0 : i32
    %c0_i32_0 = arith.constant 0 : i32
    %c0_i32_1 = arith.constant 0 : i32
    %c0_i32_2 = arith.constant 0 : i32
    return %c0_i32, %c0_i32_0, %c0_i32_1 : i32, i32, i32
  }
  func.func @transform_7(%arg0: i32) -> (i32, i32, i32) {
    %c0_i32 = arith.constant 0 : i32
    %c0_i32_0 = arith.constant 0 : i32
    %c0_i32_1 = arith.constant 0 : i32
    %c0_i32_2 = arith.constant 0 : i32
    return %c0_i32, %c0_i32_0, %c0_i32_1 : i32, i32, i32
  }
  func.func @transform_8(%arg0: i32) -> (i32, i32, i32) {
    %c0_i32 = arith.constant 0 : i32
    %c0_i32_0 = arith.constant 0 : i32
    %c0_i32_1 = arith.constant 0 : i32
    %c0_i32_2 = arith.constant 0 : i32
    return %c0_i32, %c0_i32_0, %c0_i32_1 : i32, i32, i32
  }
  func.func @transform_9(%arg0: i32) -> (i32, i32, i32) {
    %c0_i32 = arith.constant 0 : i32
    %c0_i32_0 = arith.constant 0 : i32
    %c0_i32_1 = arith.constant 0 : i32
    %c0_i32_2 = arith.constant 0 : i32
    return %c0_i32, %c0_i32_0, %c0_i32_1 : i32, i32, i32
  }
  func.func @transform_10(%arg0: i32) -> (i32, i32, i32) {
    %c0_i32 = arith.constant 0 : i32
    %c0_i32_0 = arith.constant 0 : i32
    %c0_i32_1 = arith.constant 0 : i32
    %c0_i32_2 = arith.constant 0 : i32
    return %c0_i32, %c0_i32_0, %c0_i32_1 : i32, i32, i32
  }
  func.func @transform_11(%arg0: i32) -> (i32, i32, i32) {
    %c0_i32 = arith.constant 0 : i32
    %c0_i32_0 = arith.constant 0 : i32
    %c0_i32_1 = arith.constant 0 : i32
    %c0_i32_2 = arith.constant 0 : i32
    return %c0_i32, %c0_i32_0, %c0_i32_1 : i32, i32, i32
  }
  func.func @transform_12(%arg0: i32) -> (i32, i32, i32) {
    %c0_i32 = arith.constant 0 : i32
    %c0_i32_0 = arith.constant 0 : i32
    %c0_i32_1 = arith.constant 0 : i32
    %c0_i32_2 = arith.constant 0 : i32
    return %c0_i32, %c0_i32_0, %c0_i32_1 : i32, i32, i32
  }
  func.func @transform_13(%arg0: i32) -> (i32, i32, i32) {
    %c0_i32 = arith.constant 0 : i32
    %c0_i32_0 = arith.constant 0 : i32
    %c0_i32_1 = arith.constant 0 : i32
    %c0_i32_2 = arith.constant 0 : i32
    return %c0_i32, %c0_i32_0, %c0_i32_1 : i32, i32, i32
  }
  func.func @transform_14(%arg0: i32) -> (i32, i32, i32) {
    %c0_i32 = arith.constant 0 : i32
    %c0_i32_0 = arith.constant 0 : i32
    %c0_i32_1 = arith.constant 0 : i32
    %c0_i32_2 = arith.constant 0 : i32
    return %c0_i32, %c0_i32_0, %c0_i32_1 : i32, i32, i32
  }
  func.func @transform_15(%arg0: i32) -> (i32, i32, i32) {
    %c0_i32 = arith.constant 0 : i32
    %c0_i32_0 = arith.constant 0 : i32
    %c0_i32_1 = arith.constant 0 : i32
    %c0_i32_2 = arith.constant 0 : i32
    return %c0_i32, %c0_i32_0, %c0_i32_1 : i32, i32, i32
  }
  func.func @transform_16(%arg0: i32) -> (i32, i32) {
    %c0_i32 = arith.constant 0 : i32
    %c0_i32_0 = arith.constant 0 : i32
    %c0_i32_1 = arith.constant 0 : i32
    return %c0_i32, %c0_i32_0 : i32, i32
  }
  func.func @transform_17(%arg0: i32) -> (i32, i32) {
    %c0_i32 = arith.constant 0 : i32
    %c0_i32_0 = arith.constant 0 : i32
    %c0_i32_1 = arith.constant 0 : i32
    return %c0_i32, %c0_i32_0 : i32, i32
  }
  func.func @transform_18(%arg0: i32) -> (i32, i32, i32) {
    %c0_i32 = arith.constant 0 : i32
    %c0_i32_0 = arith.constant 0 : i32
    %c0_i32_1 = arith.constant 0 : i32
    %c0_i32_2 = arith.constant 0 : i32
    return %c0_i32, %c0_i32_0, %c0_i32_1 : i32, i32, i32
  }
  func.func @transform_19(%arg0: i32) -> (i32, i32, i32) {
    %c0_i32 = arith.constant 0 : i32
    %c0_i32_0 = arith.constant 0 : i32
    %c0_i32_1 = arith.constant 0 : i32
    %c0_i32_2 = arith.constant 0 : i32
    return %c0_i32, %c0_i32_0, %c0_i32_1 : i32, i32, i32
  }
  func.func @transform_20(%arg0: i32) -> (i32, i32, i32) {
    %c0_i32 = arith.constant 0 : i32
    %c0_i32_0 = arith.constant 0 : i32
    %c0_i32_1 = arith.constant 0 : i32
    %c0_i32_2 = arith.constant 0 : i32
    return %c0_i32, %c0_i32_0, %c0_i32_1 : i32, i32, i32
  }
  func.func @transform_21(%arg0: i32) -> (i32, i32, i32) {
    %c0_i32 = arith.constant 0 : i32
    %c0_i32_0 = arith.constant 0 : i32
    %c0_i32_1 = arith.constant 0 : i32
    %c0_i32_2 = arith.constant 0 : i32
    return %c0_i32, %c0_i32_0, %c0_i32_1 : i32, i32, i32
  }
  func.func @transform_22(%arg0: i32) -> (i32, i32, i32) {
    %c0_i32 = arith.constant 0 : i32
    %c0_i32_0 = arith.constant 0 : i32
    %c0_i32_1 = arith.constant 0 : i32
    %c0_i32_2 = arith.constant 0 : i32
    return %c0_i32, %c0_i32_0, %c0_i32_1 : i32, i32, i32
  }
  func.func @transform_23(%arg0: i32) -> (i32, i32, i32) {
    %c0_i32 = arith.constant 0 : i32
    %c0_i32_0 = arith.constant 0 : i32
    %c0_i32_1 = arith.constant 0 : i32
    %c0_i32_2 = arith.constant 0 : i32
    return %c0_i32, %c0_i32_0, %c0_i32_1 : i32, i32, i32
  }
  func.func @transform_24(%arg0: i32) -> (i32, i32, i32) {
    %c0_i32 = arith.constant 0 : i32
    %c0_i32_0 = arith.constant 0 : i32
    %c0_i32_1 = arith.constant 0 : i32
    %c0_i32_2 = arith.constant 0 : i32
    return %c0_i32, %c0_i32_0, %c0_i32_1 : i32, i32, i32
  }
  func.func @transform_25(%arg0: i32) -> (i32, i32, i32) {
    %c0_i32 = arith.constant 0 : i32
    %c0_i32_0 = arith.constant 0 : i32
    %c0_i32_1 = arith.constant 0 : i32
    %c0_i32_2 = arith.constant 0 : i32
    return %c0_i32, %c0_i32_0, %c0_i32_1 : i32, i32, i32
  }
  func.func @transform_26(%arg0: i32) -> (i32, i32, i32) {
    %c0_i32 = arith.constant 0 : i32
    %c0_i32_0 = arith.constant 0 : i32
    %c0_i32_1 = arith.constant 0 : i32
    %c0_i32_2 = arith.constant 0 : i32
    return %c0_i32, %c0_i32_0, %c0_i32_1 : i32, i32, i32
  }
  func.func @transform_27(%arg0: i32) -> (i32, i32, i32) {
    %c0_i32 = arith.constant 0 : i32
    %c0_i32_0 = arith.constant 0 : i32
    %c0_i32_1 = arith.constant 0 : i32
    %c0_i32_2 = arith.constant 0 : i32
    return %c0_i32, %c0_i32_0, %c0_i32_1 : i32, i32, i32
  }
  func.func @transform_28(%arg0: i32) -> (i32, i32, i32) {
    %c0_i32 = arith.constant 0 : i32
    %c0_i32_0 = arith.constant 0 : i32
    %c0_i32_1 = arith.constant 0 : i32
    %c0_i32_2 = arith.constant 0 : i32
    return %c0_i32, %c0_i32_0, %c0_i32_1 : i32, i32, i32
  }
  func.func @transform_29(%arg0: i32) -> (i32, i32, i32) {
    %c0_i32 = arith.constant 0 : i32
    %c0_i32_0 = arith.constant 0 : i32
    %c0_i32_1 = arith.constant 0 : i32
    %c0_i32_2 = arith.constant 0 : i32
    return %c0_i32, %c0_i32_0, %c0_i32_1 : i32, i32, i32
  }
  func.func @transform_30(%arg0: i32) -> (i32, i32) {
    %c0_i32 = arith.constant 0 : i32
    %c0_i32_0 = arith.constant 0 : i32
    %c0_i32_1 = arith.constant 0 : i32
    return %c0_i32, %c0_i32_0 : i32, i32
  }
  func.func @transform_31(%arg0: i32) -> (i32, i32) {
    %c0_i32 = arith.constant 0 : i32
    %c0_i32_0 = arith.constant 0 : i32
    %c0_i32_1 = arith.constant 0 : i32
    return %c0_i32, %c0_i32_0 : i32, i32
  }
  func.func @transform_32(%arg0: i32) -> (i32, i32) {
    %c0_i32 = arith.constant 0 : i32
    %c0_i32_0 = arith.constant 0 : i32
    %c0_i32_1 = arith.constant 0 : i32
    return %c0_i32, %c0_i32_0 : i32, i32
  }
  func.func @transform_33(%arg0: i32) -> (i32, i32) {
    %c0_i32 = arith.constant 0 : i32
    %c0_i32_0 = arith.constant 0 : i32
    %c0_i32_1 = arith.constant 0 : i32
    return %c0_i32, %c0_i32_0 : i32, i32
  }
  func.func @transform_34(%arg0: i32) -> (i32, i32, i32) {
    %c0_i32 = arith.constant 0 : i32
    %c0_i32_0 = arith.constant 0 : i32
    %c0_i32_1 = arith.constant 0 : i32
    return %arg0, %c0_i32, %c0_i32_0 : i32, i32, i32
  }
}

</mosaic_0001>

<bundles_post_ra>
// kernel: tfm_classifier_forward.1
= control target key start
LH: loop header
LB: loop body
LE: loop exit
PB: predicated region body
PF: predicated region fallthrough
CT: control target
= control target key end

     0   :  { %s16971_s6 = smov 1   ;;  %s16972_s10 = smov 2   ;;  %s19595_s0 = inlined_call_operand.smem [shape: u32[35], index: -1, kind: input, shape index: {}] }
   0x1   :  { %s17027_s5 = sld [smem:[%s19595_s0]]   ;;  %s16973_s14 = smov 3  }
   0x2   :  { %s17032_s9 = sld [smem:[%s19595_s0 + %s16971_s6]]   ;;  %s16974_s18 = smov 4  }
   0x3   :  { %s17037_s13 = sld [smem:[%s19595_s0 + %s16972_s10]]   ;;  %s16975_s22 = smov 5  }
   0x4   :  { %s17042_s17 = sld [smem:[%s19595_s0 + %s16973_s14]]   ;;  %s16976_s26 = smov 6  }
   0x5   :  { %s17047_s21 = sld [smem:[%s19595_s0 + %s16974_s18]]   ;;  %s16977_s30 = smov 7  }
   0x6   :  { %s17052_s25 = sld [smem:[%s19595_s0 + %s16975_s22]]   ;;  %s16978_s4 = smov 8  }
   0x7   :  { %19632 = sst [smem:[#allocation2_spill]] %s17027_s5  ;;  %s16979_s10 = smov 9  }
   0x8   :  { %19633 = sst [smem:[#allocation3_spill]] %s17032_s9  ;;  %s16980_s15 = smov 10  }
   0x9   :  { %19634 = sst [smem:[#allocation4_spill]] %s17037_s13  ;;  %s16981_s20 = smov 11  }
   0xa   :  { %19635 = sst [smem:[#allocation5_spill]] %s17042_s17  ;;  %s16983_s1 = smov 13  }
   0xb   :  { %s17057_s29 = sld [smem:[%s19595_s0 + %s16976_s26]]   ;;  %s16982_s26 = smov 12  }
   0xc   :  { %s17062_s3 = sld [smem:[%s19595_s0 + %s16977_s30]]   ;;  %s16984_s7 = smov 14  }
   0xd   :  { %s17067_s8 = sld [smem:[%s19595_s0 + %s16978_s4]]   ;;  %s16986_s22 = smov 16  }
   0xe   :  { %s17072_s14 = sld [smem:[%s19595_s0 + %s16979_s10]]   ;;  %s16987_s28 = smov 17  }
   0xf   :  { %s17077_s19 = sld [smem:[%s19595_s0 + %s16980_s15]]   ;;  %s16985_s15 = smov 15  }
  0x10   :  { %s17082_s24 = sld [smem:[%s19595_s0 + %s16981_s20]]  }
  0x11   :  { %s17087_s30 = sld [smem:[%s19595_s0 + %s16982_s26]]  }
  0x12   :  { %19636 = sst [smem:[#allocation6_spill]] %s17062_s3 }
  0x13   :  { %19637 = sst [smem:[#allocation7_spill]] %s17067_s8 }
  0x14   :  { %19638 = sst [smem:[#allocation8_spill]] %s17072_s14 }
  0x15   :  { %s17092_s6 = sld [smem:[%s19595_s0 + %s16983_s1]]  }
  0x16   :  { %s17097_s12 = sld [smem:[%s19595_s0 + %s16984_s7]]   ;;  %s16988_s7 = smov 18  }
  0x17   :  { %s17102_s20 = sld [smem:[%s19595_s0 + %s16985_s15]]   ;;  %s16989_s15 = smov 19  }
  0x18   :  { %s17107_s27 = sld [smem:[%s19595_s0 + %s16986_s22]]   ;;  %s16990_s22 = smov 20  }
  0x19   :  { %s17112_s4 = sld [smem:[%s19595_s0 + %s16987_s28]]   ;;  %s16991_s28 = smov 21  }
  0x1a   :  { %s17117_s9 = sld [smem:[%s19595_s0 + %s16988_s7]]   ;;  %s16992_s7 = smov 22  }
  0x1b   :  { %19639 = sst [smem:[#allocation9_spill]] %s17092_s6 }
  0x1c   :  { %19640 = sst [smem:[#allocation10_spill]] %s17097_s12 }
  0x1d   :  { %s17122_s17 = sld [smem:[%s19595_s0 + %s16989_s15]]   ;;  %s16993_s15 = smov 23  }
  0x1e   :  { %19641 = sst [smem:[#allocation11_spill]] %s17107_s27 }
  0x1f   :  { %19642 = sst [smem:[#allocation12_spill]] %s17112_s4 }
  0x20   :  { %19643 = sst [smem:[#allocation13_spill]] %s17117_s9 }
  0x21   :  { %s17127_s27 = sld [smem:[%s19595_s0 + %s16990_s22]]   ;;  %s16994_s22 = smov 24  }
  0x22   :  { %s17132_s4 = sld [smem:[%s19595_s0 + %s16991_s28]]   ;;  %s16995_s28 = smov 25  }
  0x23   :  { %19644 = sst [smem:[#allocation14_spill]] %s17122_s17 }
  0x24   :  { %s17137_s9 = sld [smem:[%s19595_s0 + %s16992_s7]]   ;;  %s16996_s7 = smov 26  }
  0x25   :  { %s17142_s17 = sld [smem:[%s19595_s0 + %s16993_s15]]   ;;  %s16997_s15 = smov 27  }
  0x27   :  { %19645 = sst [smem:[#allocation15_spill]] %s17127_s27 }
  0x28   :  { %19646 = sst [smem:[#allocation16_spill]] %s17132_s4 }
  0x29   :  { %s17147_s27 = sld [smem:[%s19595_s0 + %s16994_s22]]   ;;  %s16998_s22 = smov 28  }
  0x2a   :  { %19647 = sst [smem:[#allocation17_spill]] %s17137_s9 }
  0x2b   :  { %19648 = sst [smem:[#allocation18_spill]] %s17142_s17 }
  0x2c   :  { %s17152_s4 = sld [smem:[%s19595_s0 + %s16995_s28]]   ;;  %s16999_s28 = smov 29  }
  0x2d   :  { %s17157_s9 = sld [smem:[%s19595_s0 + %s16996_s7]]   ;;  %s17000_s7 = smov 30  }
  0x2e   :  { %s17162_s17 = sld [smem:[%s19595_s0 + %s16997_s15]]   ;;  %s17001_s15 = smov 31  }
  0x2f   :  { %19649 = sst [smem:[#allocation19_spill]] %s17147_s27 }
  0x30   :  { %s17167_s27 = sld [smem:[%s19595_s0 + %s16998_s22]]   ;;  %s17002_s22 = smov 32  }
  0x32   :  { %19650 = sst [smem:[#allocation20_spill]] %s17152_s4 }
  0x33   :  { %19651 = sst [smem:[#allocation21_spill]] %s17157_s9 }
  0x34   :  { %19652 = sst [smem:[#allocation22_spill]] %s17162_s17 }
  0x35   :  { %s17172_s4 = sld [smem:[%s19595_s0 + %s16999_s28]]   ;;  %s17003_s28 = smov 33  }
  0x36   :  { %19653 = sst [smem:[#allocation23_spill]] %s17167_s27 }
  0x37   :  { %s17177_s9 = sld [smem:[%s19595_s0 + %s17000_s7]]   ;;  %s17004_s7 = smov 34  }
  0x38   :  { %s17182_s17 = sld [smem:[%s19595_s0 + %s17001_s15]]   ;;  %s17199_s15 = smov 0  }
  0x39   :  { %s17187_s27 = sld [smem:[%s19595_s0 + %s17002_s22]]  }
  0x3b   :  { %19654 = sst [smem:[#allocation24_spill]] %s17172_s4 }
  0x3c   :  { %s17192_s4 = sld [smem:[%s19595_s0 + %s17003_s28]]  }
  0x3d   :  { %19655 = sst [smem:[#allocation25_spill]] %s17177_s9 }
  0x3e   :  { %s17197_s9 = sld [smem:[%s19595_s0 + %s17004_s7]]  }
  0x3f LB: > { %s19656_s14 = sld [smem:[#allocation8_spill]]  ;;  %s19657_s12 = sld [smem:[#allocation10_spill]]  ;;  %s16969_s15 = sphi %s17199_s15, %s79_s15  }
  0x40   : > { %s19658_s8 = sld [smem:[#allocation7_spill]]  ;;  %s19659_s6 = sld [smem:[#allocation9_spill]] }
  0x41   : > { %s19660_s3 = sld [smem:[#allocation6_spill]]  ;;  %s12835_s16 = sadd.s32 4294967295, %s16969_s15  }
  0x42   : > { %p12839_p0 = scmp.ge.s32.totalorder %s16969_s15, 1  ;;  %p965_p1 = scmp.lt.s32.totalorder %s16969_s15, 3 }
  0x44   : > { %p966_p2 = pnand %p12839_p0, %p965_p1 }
  0x45   : > { %p1058_p3 = scmp.lt.s32.totalorder (!%p966_p2), %s12835_s16, 1  ;;  %s19661_s5 = sld [smem:[#allocation2_spill]] (!%p966_p2)  ;;  %vm1080_vm0 = vcmask (!%p966_p2), 261120   ;;  %v1138_v14 = vld [vmem:[%s17057_s29] sm:$0xff] (!%p966_p2)  ;;  %v1139_v15 = vld [vmem:[%s17057_s29 + $0x8] sm:$0xff] (!%p966_p2)  ;;  %v1140_v16 = vld [vmem:[%s17057_s29 + $0x10] sm:$0xff] (!%p966_p2) }
  0x46   : > { %969 = sbr.rel (%p966_p2) target bundleno = 15391 (0x3c1f), region = 156  ;;  %v15344_v17 = vpack.c.bf16 (!%p966_p2), %v1139_v15, %v1138_v14  ;;  %v1141_v18 = vld [vmem:[%s17057_s29 + $0x18] sm:$0xff] (!%p966_p2)  ;;  %v12844_v36 = vld [vmem:[%s17047_s21] ss:$0 sm:$0xff] (!%p966_p2)  ;;  %vm1241_vm5 = vcmask (!%p966_p2), 64512   ;;  %s19620_s22 = smov (!%p966_p2), 88  }
  0x47   : > { %v15348_v19 = vpack.c.bf16 (!%p966_p2), %v1141_v18, %v1140_v16  ;;  %v12845_v39 = vld [vmem:[%s17052_s25] ss:$0 sm:$0xff] (!%p966_p2)  ;;  %s19623_s23 = smov (!%p966_p2), 96   ;;  %s19621_s26 = smov (!%p966_p2), 120   ;;  %vm17258_vm6 = vmpackc.low (!%p966_p2), %vm1241_vm5, %vm1241_vm5  ;;  %vm1335_vm7 = vcmask (!%p966_p2), 130048   ;;  %vm17018_vm12 = vmmov (!%p966_p2), 0  }
  0x48   : > { %15345 = vmatprep.subr.bf16.mxu0 (!%p966_p2), %v15344_v17  ;;  %v12846_v46 = vld [vmem:[%s19660_s3] ss:$0 sm:$0xff] (!%p966_p2)  ;;  %s19613_s28 = smov (!%p966_p2), 80   ;;  %s19618_s1 = smov (!%p966_p2), 112  }
  0x49   : > { %15347 = vmatpush3.bf16.msra.mxu0 (!%p966_p2), %v15344_v17  ;;  %s19664_s13 = sld [smem:[#allocation4_spill]] (!%p966_p2)  ;;  %s17010_s10 = smov (!%p966_p2), 64  }
  0x4a   : > { %15349 = vmatprep.subr.bf16.mxu0 (!%p966_p2), %v15348_v19  ;;  %s19611_s11 = smov (!%p966_p2), 72  }
  0x4d   : > { %s19693_s16 = smov (!%p1058_p3, %s12835_s16), 1  ;;  %15351 = vmatpush3.bf16.msra.mxu0 %v15348_v19 }
  0x4e   : > { %s13697_s0 = sshll.u32 %s19693_s16, 4  ;;  %s16717_s2 = smul.u32 3, %s19693_s16 }
  0x4f   : > { %s1062_s18 = scalar_lea.vmem %s19661_s5, %s13697_s0  ;;  %s19616_s0 = smov 104  }
  0x50   : > { %v17211_v0 = vld [vmem:[%s1062_s18] sm:$0xff]  ;;  %v17213_v1 = vld [vmem:[%s1062_s18 + $0x8] sm:$0xff]  ;;  %s17282_s7 = scalar_lea.vmem %s19664_s13, %s16717_s2  ;;  %s17013_s18 = smov 56  }
  0x51   : > { %v1081_v2 = vsel %vm1080_vm0, %v17211_v0, 0.0  ;;  %v1084_v3 = vsel %vm1080_vm0, %v17213_v1, 0.0  ;;  %s19609_s2 = smov 48   ;;  %s19682_s5 = sld [smem:[#allocation19_spill]] }
  0x52   : > { %1082 = vadd.xlane.f32.xlu0 %v1081_v2  ;;  %s19686_s13 = sld [smem:[#allocation24_spill]] }
  0x56   : > { %1085 = vadd.xlane.f32.xlu0 %v1084_v3 }
  0xdf   : > { %v1083_v4 = vpop.xlane.xlu0 %1082 }
  0xe0   : > { %v1088_v5 = vmul.f32 0.03125, %v1083_v4 }
  0xe2   : > { %v1090_v6 = vsub.f32 %v17211_v0, %v1088_v5 }
  0xe3   : > { %v1086_v7 = vpop.xlane.xlu0 %1085 }
  0xe4   : > { %v1089_v8 = vmul.f32 0.03125, %v1086_v7  ;;  %v1092_v9 = vmul.f32 %v1090_v6, %v1090_v6  ;;  %v1108_v37 = vmul.f32 %v12844_v36, %v1090_v6  ;;  %v17285_v7 = vld [vmem:[%s17282_s7] ss:$0 sm:$0xff] }
  0xe6   : > { %v1091_v10 = vsub.f32 %v17213_v1, %v1089_v8  ;;  %v1094_v11 = vsel %vm1080_vm0, %v1092_v9, 0.0 }
  0xe7   : > { %1095 = vadd.xlane.f32.xlu1 %v1094_v11 }
  0xe8   : > { %v1093_v12 = vmul.f32 %v1091_v10, %v1091_v10  ;;  %v1109_v41 = vmul.f32 %v12844_v36, %v1091_v10 }
  0xea   : > { %v1097_v13 = vsel %vm1080_vm0, %v1093_v12, 0.0 }
  0xeb   : > { %1098 = vadd.xlane.f32.xlu1 %v1097_v13 }
 0x174   : > { %v1096_v20 = vpop.xlane.xlu1 %1095 }
 0x175   : > { %v1100_v21 = vmul.f32 0.032258064, %v1096_v20 }
 0x177   : > { %16834 = vrsqrt.f32 %v1100_v21  ;;  %vm1112_vm1 = vcmp.eq.f32.partialorder %v1100_v21, inf  ;;  %v1115_v26 = vand.u32 2147483648, %v1100_v21  ;;  %vm1114_vm2 = vcmp.eq.f32.partialorder %v1100_v21, 0.0 }
 0x178   : > { %v1099_v22 = vpop.xlane.xlu1 %1098 }
 0x179   : > { %v1101_v23 = vmul.f32 0.032258064, %v1099_v22 }
 0x17b   : > { %16836 = vrsqrt.f32 %v1101_v23  ;;  %vm1119_vm3 = vcmp.eq.f32.partialorder %v1101_v23, inf  ;;  %v1122_v32 = vand.u32 2147483648, %v1101_v23  ;;  %vm1121_vm4 = vcmp.eq.f32.partialorder %v1101_v23, 0.0 }
 0x181   : > { %v16835_v24 = vpop.eup %16834 }
 0x182   : > { %v1111_v25 = vmul.f32 %v16835_v24, %v1100_v21 }
 0x184   : > { %v1113_v27 = vsel %vm1112_vm1, %v1100_v21, %v1111_v25 }
 0x185   : > { %v16837_v28 = vpop.eup %16836  ;;  %v1116_v29 = vsel %vm1114_vm2, %v1115_v26, %v1113_v27  ;;  %vm6980_vm2 = vcmask 257024  }
 0x186   : > { %v1118_v30 = vmul.f32 %v16837_v28, %v1101_v23  ;;  %v1124_v31 = vadd.f32 1e-06, %v1116_v29 }
 0x188   : > { %v1120_v33 = vsel %vm1119_vm3, %v1101_v23, %v1118_v30  ;;  %16838 = vrcp.f32 %v1124_v31 }
 0x189   : > { %v1123_v34 = vsel %vm1121_vm4, %v1122_v32, %v1120_v33 }
 0x18a   : > { %v1125_v35 = vadd.f32 1e-06, %v1123_v34 }
 0x18c   : > { %16840 = vrcp.f32 %v1125_v35 }
 0x192   : > { %v16839_v38 = vpop.eup %16838 }
 0x193   : > { %v1127_v40 = vmul.f32 %v16839_v38, %v1108_v37 }
 0x195   : > { %v1136_v42 = vadd.f32 %v12845_v39, %v1127_v40 }
 0x196   : > { %v16841_v43 = vpop.eup %16840 }
 0x197   : > { %v1129_v44 = vmul.f32 %v16841_v43, %v1109_v41  ;;  %15007 = vmatprep.mubr.msk.f32.mxu0 %vm1080_vm0, %v1136_v42 }
 0x199   : > { %v1137_v45 = vadd.f32 %v12845_v39, %v1129_v44 }
 0x19b   : > { %15008 = vmatmul.mubr.msk.f32.vlgmr.msra.gmra.mrb[0].mxu0 %vm1080_vm0, %v1137_v45 }
 0x26e   : > { %v15009_v47 = vpop.f32.mrb[0].mxu0 }
 0x26f   : > { %v17232_v48 = vadd.f32 %v15009_v47, %v12846_v46  ;;  %v1226_v49 = vpop.f32.mrb[1].mxu0 }
 0x270   : > { %v17234_v50 = vadd.f32 %v12846_v46, %v1226_v49 }
 0x272   : > { %15014 = vmatprep.mubr.msk.f32.mxu1 %vm1241_vm5, %v17234_v50  ;;  %v17240_v51 = vpack.i.bf16 %v17232_v48, %v17234_v50 }
 0x274   : > { %16780 = vrot.lane.b32.xlu1 %v17240_v51, %s19620_s22  ;;  %16775 = vrot.lane.b32.xlu0 %v17240_v51, %s19623_s23 }
 0x278   : > { %1445 = vrot.lane.b32.xlu1 %v17234_v50, %s19621_s26  ;;  %16785 = vrot.lane.b32.xlu0 %v17240_v51, %s19613_s28 }
 0x27c   : > { %1447 = vrot.lane.b32.xlu1 %v17232_v48, %s19621_s26  ;;  %1813 = vrot.lane.b32.xlu0 %v17232_v48, %s19618_s1 }
 0x280   : > { %1811 = vrot.lane.b32.xlu1 %v17234_v50, %s19618_s1 }
 0x2e6   : > { %v16781_v52 = vpop.permute.xlu1 %16780  ;;  %v16776_v53 = vpop.permute.xlu0 %16775 }
 0x2e7   : > { %v16783_v54 = vunpack.i.h.bf16 %v16781_v52  ;;  %v16782_v55 = vunpack.i.l.bf16 %v16781_v52  ;;  %v16778_v56 = vunpack.i.h.bf16 %v16776_v53  ;;  %v16777_v57 = vunpack.i.l.bf16 %v16776_v53 }
 0x2e9   : > { %v15352_v59 = vpack.c.bf16 %v16778_v56, %v16777_v57  ;;  %v15362_v60 = vpack.c.bf16 %v16783_v54, %v16782_v55 }
 0x2ea   : > { %v16786_v61 = vpop.permute.xlu0 %16785  ;;  %v1446_v62 = vpop.permute.xlu1 %1445 }
 0x2eb   : > { %15354 = vmatprep.subr.msk.bf16.mxu1 %vm17258_vm6, %v15352_v59  ;;  %v16788_v63 = vunpack.i.h.bf16 %v16786_v61  ;;  %v16787_v2 = vunpack.i.l.bf16 %v16786_v61 }
 0x2ec   : > { %15357 = vmatpush3.bf16.xpose.msk.msra.mxu1 %vm17258_vm6, %v15352_v59 }
 0x2ed   : > { %15364 = vmatprep.subr.msk.bf16.mxu1 %vm17258_vm6, %v15362_v60  ;;  %v15372_v3 = vpack.c.bf16 %v16788_v63, %v16787_v2 }
 0x2ee   : > { %v1448_v4 = vpop.permute.xlu1 %1447  ;;  %v1814_v6 = vpop.permute.xlu0 %1813 }
 0x2f2   : > { %v1812_v5 = vpop.permute.xlu1 %1811 }
 0x2f3   : > { %15015 = vmatmul.mubr.msk.f32.vlgmr.msra.gmra.mrb[0].mxu1 %vm1241_vm5, %v17232_v48 }
 0x2f4   : > { %15367 = vmatpush3.bf16.xpose.msk.msra.mxu1 %vm17258_vm6, %v15362_v60  ;;  %15028 = vmatprep.mubr.msk.f32.mxu1 %vm1241_vm5, %v1446_v62 }
 0x2f5   : > { %15374 = vmatprep.subr.msk.bf16.mxu1 %vm17258_vm6, %v15372_v3 }
 0x2fb   : > { %15029 = vmatmul.mubr.msk.f32.vlgmr.msra.gmra.mrb[2].mxu1 %vm1241_vm5, %v1448_v4 }
 0x2fc   : > { %15377 = vmatpush3.bf16.xpose.msk.msra.mxu1 %vm17258_vm6, %v15372_v3  ;;  %15052 = vmatprep.mubr.msk.f32.mxu1 %vm1241_vm5, %v1812_v5 }
 0x303   : > { %15053 = vmatmul.mubr.msk.f32.vlgmr.msra.gmra.mrb[4].mxu1 %vm1241_vm5, %v1814_v6 }
 0x3c6   : > { %v15016_v8 = vpop.f32.mrb[0].mxu1 }
 0x3c7   : > { %v1326_v9 = vmul.f32 0.35355338, %v15016_v8  ;;  %v1316_v10 = vpop.f32.mrb[1].mxu1 }
 0x3c8   : > { %v1325_v11 = vmul.f32 0.35355338, %v1316_v10 }
 0x3c9   : > { %v1334_v12 = vadd.f32 %v17285_v7, %v1326_v9 }
 0x3ca   : > { %v1333_v13 = vadd.f32 %v17285_v7, %v1325_v11 }
 0x3cb   : > { %v1339_v14 = vsel %vm1335_vm7, %v1334_v12, -inf }
 0x3cc   : > { %1340 = vmax.xlane.f32.xlu0 %v1339_v14  ;;  %v1336_v15 = vsel %vm1335_vm7, %v1333_v13, -inf }
 0x3cd   : > { %1337 = vmax.xlane.f32.xlu1 %v1336_v15 }
 0x3ce   : > { %v15030_v16 = vpop.f32.mrb[2].mxu1 }
 0x3cf   : > { %v1527_v17 = vpop.f32.mrb[3].mxu1  ;;  %v1537_v18 = vmul.f32 0.35355338, %v15030_v16 }
 0x3d0   : > { %v1536_v19 = vmul.f32 0.35355338, %v1527_v17 }
 0x3d1   : > { %v1539_v22 = vadd.f32 %v17285_v7, %v1537_v18 }
 0x3d2   : > { %v1538_v20 = vadd.f32 %v17285_v7, %v1536_v19 }
 0x3d3   : > { %v1543_v25 = vsel %vm1335_vm7, %v1539_v22, -inf }
 0x3d4   : > { %v1540_v21 = vsel %vm1335_vm7, %v1538_v20, -inf }
 0x3d5   : > { %1541 = vmax.xlane.f32.xlu0 %v1540_v21 }
 0x3d6   : > { %v15054_v23 = vpop.f32.mrb[4].mxu1 }
 0x3d7   : > { %v1893_v24 = vpop.f32.mrb[5].mxu1  ;;  %v1903_v49 = vmul.f32 0.35355338, %v15054_v23 }
 0x3d8   : > { %v1902_v46 = vmul.f32 0.35355338, %v1893_v24 }
 0x3d9   : > { %1544 = vmax.xlane.f32.xlu0 %v1543_v25  ;;  %v1905_v53 = vadd.f32 %v17285_v7, %v1903_v49 }
 0x3da   : > { %v1904_v47 = vadd.f32 %v17285_v7, %v1902_v46 }
 0x3db   : > { %v1909_v54 = vsel %vm1335_vm7, %v1905_v53, -inf }
 0x3dc   : > { %v1906_v52 = vsel %vm1335_vm7, %v1904_v47, -inf }
 0x459   : > { %v1341_v26 = vpop.xlane.xlu0 %1340 }
 0x45a   : > { %v1343_v27 = vsub.f32 %v1334_v12, %v1341_v26  ;;  %v1338_v28 = vpop.xlane.xlu1 %1337 }
 0x45b   : > { %v1342_v29 = vsub.f32 %v1333_v13, %v1338_v28  ;;  %v1144_v28 = vld [vmem:[%s19658_s8 + $0x8] sm:$0xff] }
 0x45c   : > { %v1346_v30 = vmul.f32 1.442695, %v1343_v27 }
 0x45d   : > { %v1344_v31 = vmul.f32 1.442695, %v1342_v29  ;;  %v1143_v29 = vld [vmem:[%s19658_s8] sm:$0xff] }
 0x45e   : > { %16842 = vpow2.f32 %v1346_v30 }
 0x45f   : > { %16844 = vpow2.f32 %v1344_v31 }
 0x462   : > { %v1542_v32 = vpop.xlane.xlu0 %1541 }
 0x463   : > { %v1546_v33 = vsub.f32 %v1538_v20, %v1542_v32 }
 0x465   : > { %v1548_v34 = vmul.f32 1.442695, %v1546_v33 }
 0x466   : > { %v1545_v35 = vpop.xlane.xlu0 %1544 }
 0x467   : > { %16846 = vpow2.f32 %v1548_v34  ;;  %v1547_v36 = vsub.f32 %v1539_v22, %v1545_v35 }
 0x468   : > { %v16843_v37 = vpop.eup %16842 }
 0x469   : > { %v16845_v38 = vpop.eup %16844  ;;  %v1550_v39 = vmul.f32 1.442695, %v1547_v36  ;;  %v1351_v40 = vsel %vm1335_vm7, %v16843_v37, 0.0 }
 0x46a   : > { %1352 = vadd.xlane.f32.xlu0 %v1351_v40  ;;  %v1348_v41 = vsel %vm1335_vm7, %v16845_v38, 0.0 }
 0x46b   : > { %16848 = vpow2.f32 %v1550_v39  ;;  %1349 = vadd.xlane.f32.xlu1 %v1348_v41 }
 0x471   : > { %v16847_v42 = vpop.eup %16846 }
 0x472   : > { %v1552_v43 = vsel %vm1335_vm7, %v16847_v42, 0.0 }
 0x473   : > { %1553 = vadd.xlane.f32.xlu1 %v1552_v43 }
 0x475   : > { %v16849_v44 = vpop.eup %16848 }
 0x476   : > { %v1555_v45 = vsel %vm1335_vm7, %v16849_v44, 0.0 }
 0x477   : > { %1556 = vadd.xlane.f32.xlu0 %v1555_v45 }
 0x484   : > { %16790 = vrot.lane.b32.xlu1 %v17240_v51, %s17010_s10 }
 0x488   : > { %16800 = vrot.lane.b32.xlu1 %v17240_v51, %s19611_s11 }
 0x48c   : > { %2098 = vrot.lane.b32.xlu1 %v17234_v50, %s19616_s0 }
 0x48d   : > { %16795 = vrot.lane.b32.xlu0 %v17240_v51, %s17013_s18 }
 0x490   : > { %2100 = vrot.lane.b32.xlu1 %v17232_v48, %s19616_s0 }
 0x4ac   : > { %1907 = vmax.xlane.f32.xlu0 %v1906_v52 }
 0x4b4   : > { %1910 = vmax.xlane.f32.xlu1 %v1909_v54 }
 0x4f7   : > { %v1353_v55 = vpop.xlane.xlu0 %1352 }
 0x4f8   : > { %v1350_v50 = vpop.xlane.xlu1 %1349 }
 0x4f9   : > { %16850 = vrcp.f32 %v1350_v50  ;;  %v1145_v50 = vld [vmem:[%s19658_s8 + $0x10] sm:$0xff] }
 0x4fa   : > { %16852 = vrcp.f32 %v1353_v55 }
 0x500   : > { %v1554_v56 = vpop.xlane.xlu1 %1553 }
 0x501   : > { %16854 = vrcp.f32 %v1554_v56 }
 0x503   : > { %v16851_v57 = vpop.eup %16850 }
 0x504   : > { %v1557_v48 = vpop.xlane.xlu0 %1556  ;;  %v16791_v59 = vpop.permute.xlu1 %16790  ;;  %v1355_v60 = vmul.f32 %v16851_v57, %v16845_v38 }
 0x505   : > { %16856 = vrcp.f32 %v1557_v48  ;;  %v16793_v61 = vunpack.i.h.bf16 %v16791_v59  ;;  %v16792_v62 = vunpack.i.l.bf16 %v16791_v59  ;;  %v16853_v2 = vpop.eup %16852 }
 0x506   : > { %15021 = vmatprep.mubr.msk.f32.mxu0 %vm1335_vm7, %v1355_v60  ;;  %v1357_v11 = vmul.f32 %v16853_v2, %v16843_v37 }
 0x507   : > { %v15358_v63 = vpack.c.bf16 %v16793_v61, %v16792_v62 }
 0x508   : > { %v16796_v3 = vpop.permute.xlu0 %16795  ;;  %v16801_v4 = vpop.permute.xlu1 %16800 }
 0x509   : > { %v16798_v5 = vunpack.i.h.bf16 %v16796_v3  ;;  %v16797_v6 = vunpack.i.l.bf16 %v16796_v3  ;;  %v16803_v8 = vunpack.i.h.bf16 %v16801_v4  ;;  %v16802_v9 = vunpack.i.l.bf16 %v16801_v4  ;;  %15359 = vmatprep.subr.bf16.mxu0 %v15358_v63 }
 0x50a   : > { %15361 = vmatpush3.bf16.msra.mxu0 %v15358_v63 }
 0x50b   : > { %v16855_v10 = vpop.eup %16854  ;;  %v15368_v12 = vpack.c.bf16 %v16798_v5, %v16797_v6  ;;  %v15382_v13 = vpack.c.bf16 %v16803_v8, %v16802_v9 }
 0x50c   : > { %v2099_v14 = vpop.permute.xlu1 %2098  ;;  %v1559_v15 = vmul.f32 %v16855_v10, %v16847_v42 }
 0x50d   : > { %15022 = vmatmul.mubr.msk.f32.vlgmr.msra.gmra.mrb[2].mxu0 %vm1335_vm7, %v1357_v11  ;;  %15369 = vmatprep.subr.bf16.mxu0 %v15368_v12 }
 0x50e   : > { %15384 = vmatprep.subr.msk.bf16.mxu1 %vm17258_vm6, %v15382_v13  ;;  %15071 = vmatprep.mubr.msk.f32.mxu1 %vm1241_vm5, %v2099_v14  ;;  %v1146_v14 = vld [vmem:[%s19658_s8 + $0x18] sm:$0xff] }
 0x50f   : > { %v16857_v16 = vpop.eup %16856  ;;  %15371 = vmatpush3.bf16.msra.mxu0 %v15368_v12  ;;  %15035 = vmatprep.mubr.msk.f32.mxu0 %vm1335_vm7, %v1559_v15 }
 0x510   : > { %v1561_v17 = vmul.f32 %v16857_v16, %v16849_v44  ;;  %15387 = vmatpush3.bf16.xpose.msk.msra.mxu1 %vm17258_vm6, %v15382_v13  ;;  %v2101_v18 = vpop.permute.xlu1 %2100  ;;  %15038 = vmatprep.subr.mxu0 %v1144_v28 }
 0x512   : > { %15036 = vmatmul.mubr.msk.f32.vlgmr.msra.gmra.mrb[4].mxu0 %vm1335_vm7, %v1561_v17  ;;  %v12882_v17 = vld [vmem:[%s19656_s14] ss:$0 sm:$0xff] }
 0x513   : > { %15039 = vmatpush3.msra.mxu0 %v1144_v28 }
 0x514   : > { %15043 = vmatprep.subr.mxu0 %v1143_v29 }
 0x517   : > { %15072 = vmatmul.mubr.msk.f32.vlgmr.msra.gmra.mrb[6].mxu1 %vm1241_vm5, %v2101_v18 }
 0x539   : > { %v1908_v19 = vpop.xlane.xlu0 %1907 }
 0x53a   : > { %v1912_v20 = vsub.f32 %v1904_v47, %v1908_v19 }
 0x53c   : > { %v1914_v23 = vmul.f32 1.442695, %v1912_v20 }
 0x541   : > { %v1911_v21 = vpop.xlane.xlu1 %1910 }
 0x542   : > { %v1913_v22 = vsub.f32 %v1905_v53, %v1911_v21 }
 0x544   : > { %v1916_v24 = vmul.f32 1.442695, %v1913_v22 }
 0x546   : > { %16858 = vpow2.f32 %v1916_v24 }
 0x547   : > { %16860 = vpow2.f32 %v1914_v23 }
 0x550   : > { %v16859_v25 = vpop.eup %16858 }
 0x551   : > { %v1921_v26 = vsel %vm1335_vm7, %v16859_v25, 0.0  ;;  %v16861_v58 = vpop.eup %16860 }
 0x552   : > { %1922 = vadd.xlane.f32.xlu0 %v1921_v26  ;;  %v1918_v27 = vsel %vm1335_vm7, %v16861_v58, 0.0 }
 0x556   : > { %1919 = vadd.xlane.f32.xlu0 %v1918_v27 }
 0x56c   : > { %16805 = vrot.lane.b32.xlu0 %v17240_v51, %s19609_s2  ;;  %s19610_s2 = smov 40  }
 0x5df   : > { %v1923_v30 = vpop.xlane.xlu0 %1922 }
 0x5e0   : > { %v15023_v31 = vpop.f32.mrb[2].mxu0 }
 0x5e1   : > { %v1436_v32 = vpop.f32.mrb[3].mxu0 }
 0x5e3   : > { %v1920_v33 = vpop.xlane.xlu0 %1919 }
 0x5e4   : > { %16862 = vrcp.f32 %v1920_v33  ;;  %v2454_v33 = vld [vmem:[%s17087_s30 + $0x8] sm:$0xff] }
 0x5e5   : > { %16864 = vrcp.f32 %v1923_v30  ;;  %v15037_v34 = vpop.f32.mrb[4].mxu0 }
 0x5e6   : > { %v1640_v35 = vpop.f32.mrb[5].mxu0 }
 0x5e7   : > { %v16806_v36 = vpop.permute.xlu0 %16805  ;;  %15040 = vmatprep.mubr.msk.f32.mxu0 %vm1241_vm5, %v1640_v35  ;;  %v2456_v35 = vld [vmem:[%s17087_s30 + $0x18] sm:$0xff] }
 0x5e8   : > { %v16808_v37 = vunpack.i.h.bf16 %v16806_v36  ;;  %v16807_v38 = vunpack.i.l.bf16 %v16806_v36  ;;  %15041 = vmatmul.mubr.msk.f32.vlgmr.msra.gmra.mrb[6].mxu0 %vm1241_vm5, %v15037_v34  ;;  %v2470_v34 = vld [vmem:[%s17087_s30 + $0x88] sm:$0xff] }
 0x5e9   : > { %15045 = vmatprep.mubr.msk.f32.mxu0 %vm1241_vm5, %v1436_v32  ;;  %15044 = vmatpush3.msra.mxu0 %v1143_v29  ;;  %v15392_v36 = vpack.c.bf16 %v2470_v34, %v2454_v33 }
 0x5ea   : > { %v15378_v39 = vpack.c.bf16 %v16808_v37, %v16807_v38  ;;  %v15073_v40 = vpop.f32.mrb[6].mxu1  ;;  %v2472_v37 = vld [vmem:[%s17087_s30 + $0x98] sm:$0xff]  ;;  %v2453_v38 = vld [vmem:[%s17087_s30] sm:$0xff] }
 0x5eb   : > { %v2180_v41 = vpop.f32.mrb[7].mxu1  ;;  %v2190_v42 = vmul.f32 0.35355338, %v15073_v40  ;;  %v15400_v40 = vpack.c.bf16 %v2472_v37, %v2456_v35  ;;  %15393 = vmatprep.subr.bf16.mxu1 %v15392_v36  ;;  %v2505_v37 = vld [vmem:[%s17087_s30 + $0x1a0] sm:$0xff] }
 0x5ec   : > { %v2189_v43 = vmul.f32 0.35355338, %v2180_v41  ;;  %15379 = vmatprep.subr.bf16.mxu0 %v15378_v39 }
 0x5ed   : > { %v2192_v52 = vadd.f32 %v17285_v7, %v2190_v42  ;;  %v2455_v42 = vld [vmem:[%s17087_s30 + $0x10] sm:$0xff] }
 0x5ee   : > { %v16863_v44 = vpop.eup %16862  ;;  %v2191_v45 = vadd.f32 %v17285_v7, %v2189_v43  ;;  %v2471_v43 = vld [vmem:[%s17087_s30 + $0x90] sm:$0xff] }
 0x5ef   : > { %v16865_v46 = vpop.eup %16864  ;;  %v1925_v47 = vmul.f32 %v16863_v44, %v16861_v58  ;;  %v2196_v54 = vsel %vm1335_vm7, %v2192_v52, -inf  ;;  %v15402_v44 = vpack.c.bf16 %v2471_v43, %v2455_v42  ;;  %v2462_v43 = vld [vmem:[%s17087_s30 + $0x48] sm:$0xff] }
 0x5f0   : > { %v2193_v49 = vsel %vm1335_vm7, %v2191_v45, -inf  ;;  %15046 = vmatmul.mubr.msk.f32.vlgmr.msra.gmra.mrb[6].mxu0 %vm1241_vm5, %v15023_v31  ;;  %v1927_v53 = vmul.f32 %v16865_v46, %v16859_v25  ;;  %v2502_v46 = vld [vmem:[%s17087_s30 + $0x188] sm:$0xff] }
 0x5f1   : > { %2194 = vmax.xlane.f32.xlu1 %v2193_v49  ;;  %15381 = vmatpush3.bf16.msra.mxu0 %v15378_v39  ;;  %v2469_v39 = vld [vmem:[%s17087_s30 + $0x80] sm:$0xff] }
 0x5f2   : > { %15059 = vmatprep.mubr.msk.f32.mxu0 %vm1335_vm7, %v1925_v47  ;;  %15062 = vmatprep.subr.mxu0 %v1145_v50  ;;  %v15394_v41 = vpack.c.bf16 %v2469_v39, %v2453_v38  ;;  %v2488_v47 = vld [vmem:[%s17087_s30 + $0x118] sm:$0xff]  ;;  %v2491_v38 = vld [vmem:[%s17087_s30 + $0x130] sm:$0xff] }
 0x5f3   : > { %v2507_v39 = vld [vmem:[%s17087_s30 + $0x1b0] sm:$0xff] }
 0x5f4   : > { %15060 = vmatmul.mubr.msk.f32.vlgmr.msra.gmra.mrb[8].mxu0 %vm1335_vm7, %v1927_v53  ;;  %15395 = vmatpush1.bf16.msra.mxu1 %v15394_v41  ;;  %v2485_v53 = vld [vmem:[%s17087_s30 + $0x100] sm:$0xff] }
 0x5f5   : > { %2197 = vmax.xlane.f32.xlu1 %v2196_v54  ;;  %15063 = vmatpush3.msra.mxu0 %v1145_v50  ;;  %v2501_v54 = vld [vmem:[%s17087_s30 + $0x180] sm:$0xff] }
 0x67e   : > { %v2195_v55 = vpop.xlane.xlu1 %2194 }
 0x67f   : > { %v2199_v56 = vsub.f32 %v2191_v45, %v2195_v55  ;;  %v2486_v45 = vld [vmem:[%s17087_s30 + $0x108] sm:$0xff]  ;;  %v15398_v55 = vpack.c.bf16 %v2501_v54, %v2485_v53  ;;  %v2477_v54 = vld [vmem:[%s17087_s30 + $0xc0] sm:$0xff] }
 0x680   : > { %v15396_v49 = vpack.c.bf16 %v2502_v46, %v2486_v45  ;;  %v2464_v45 = vld [vmem:[%s17087_s30 + $0x58] sm:$0xff] }
 0x681   : > { %v2201_v59 = vmul.f32 1.442695, %v2199_v56  ;;  %v2487_v56 = vld [vmem:[%s17087_s30 + $0x110] sm:$0xff]  ;;  %v2480_v46 = vld [vmem:[%s17087_s30 + $0xd8] sm:$0xff] }
 0x682   : > { %v2198_v57 = vpop.xlane.xlu1 %2197  ;;  %15397 = vmatprep.subr.bf16.mxu1 %v15396_v49  ;;  %v15422_v49 = vpack.c.bf16 %v2507_v39, %v2491_v38  ;;  %v2519_v39 = vld [vmem:[%s19657_s12] sm:$0xff] }
 0x683   : > { %v2200_v48 = vsub.f32 %v2192_v52, %v2198_v57  ;;  %v2504_v52 = vld [vmem:[%s17087_s30 + $0x198] sm:$0xff]  ;;  %v2503_v57 = vld [vmem:[%s17087_s30 + $0x190] sm:$0xff]  ;;  %15399 = vmatpush1.bf16.msra.mxu1 %v15398_v55 }
 0x684   : > { %v15404_v50 = vpack.c.bf16 %v2504_v52, %v2488_v47  ;;  %v2461_v52 = vld [vmem:[%s17087_s30 + $0x40] sm:$0xff]  ;;  %v2479_v55 = vld [vmem:[%s17087_s30 + $0xd0] sm:$0xff] }
 0x685   : > { %v2203_v60 = vmul.f32 1.442695, %v2200_v48  ;;  %v15406_v48 = vpack.c.bf16 %v2503_v57, %v2487_v56  ;;  %v15432_v57 = vpack.c.bf16 %v2480_v46, %v2464_v45  ;;  %v2538_v45 = vld [vmem:[%s19657_s12 + $0x98] sm:$0xff]  ;;  %v2569_v46 = vld [vmem:[%s19657_s12 + $0x190] sm:$0xff] }
 0x687   : > { %16866 = vpow2.f32 %v2203_v60  ;;  %v2474_v60 = vld [vmem:[%s17087_s30 + $0xa8] sm:$0xff] }
 0x688   : > { %16868 = vpow2.f32 %v2201_v59  ;;  %v2458_v59 = vld [vmem:[%s17087_s30 + $0x28] sm:$0xff] }
 0x691   : > { %v16867_v7 = vpop.eup %16866 }
 0x692   : > { %v2208_v61 = vsel %vm1335_vm7, %v16867_v7, 0.0  ;;  %v16869_v62 = vpop.eup %16868 }
 0x693   : > { %2209 = vadd.xlane.f32.xlu1 %v2208_v61  ;;  %v2205_v63 = vsel %vm1335_vm7, %v16869_v62, 0.0  ;;  %v2460_v61 = vld [vmem:[%s17087_s30 + $0x38] sm:$0xff] }
 0x697   : > { %2206 = vadd.xlane.f32.xlu1 %v2205_v63  ;;  %v17016_v63 = vmov 0.0  }
 0x698   : > { %2928 = vmatprep.mubr.f32.mxu1 %v17016_v63 }
 0x6a8   : > { %16810 = vrot.lane.b32.xlu1 %v17240_v51, %s19610_s2  ;;  %s19665_s2 = sld [smem:[#allocation5_spill]] }
 0x6c7   : > { %v15061_v2 = vpop.f32.mrb[8].mxu0 }
 0x6c8   : > { %v2006_v3 = vpop.f32.mrb[9].mxu0 }
 0x6c9   : > { %15064 = vmatprep.mubr.msk.f32.mxu0 %vm1241_vm5, %v2006_v3 }
 0x6ca   : > { %15065 = vmatmul.mubr.msk.f32.vlgmr.msra.gmra.mrb[6].mxu0 %vm1241_vm5, %v15061_v2 }
 0x720   : > { %v2210_v4 = vpop.xlane.xlu1 %2209 }
 0x721   : > { %16870 = vrcp.f32 %v2210_v4 }
 0x724   : > { %v2207_v5 = vpop.xlane.xlu1 %2206 }
 0x725   : > { %16872 = vrcp.f32 %v2207_v5 }
 0x728   : > { %v16811_v6 = vpop.permute.xlu1 %16810 }
 0x729   : > { %v16813_v8 = vunpack.i.h.bf16 %v16811_v6  ;;  %v16812_v9 = vunpack.i.l.bf16 %v16811_v6 }
 0x72b   : > { %v15388_v10 = vpack.c.bf16 %v16813_v8, %v16812_v9  ;;  %v16871_v11 = vpop.eup %16870 }
 0x72c   : > { %v2214_v13 = vmul.f32 %v16871_v11, %v16867_v7  ;;  %v15408_v7 = vpack.c.bf16 %v2474_v60, %v2458_v59  ;;  %v2510_v59 = vld [vmem:[%s17087_s30 + $0x1c8] sm:$0xff]  ;;  %v2496_v60 = vld [vmem:[%s17087_s30 + $0x158] sm:$0xff] }
 0x72d   : > { %15389 = vmatprep.subr.bf16.mxu0 %v15388_v10 }
 0x72e   : > { %15391 = vmatpush3.bf16.msra.mxu0 %v15388_v10  ;;  %15409 = vmatprep.subr.bf16.mxu1 %v15408_v7  ;;  %v2512_v7 = vld [vmem:[%s17087_s30 + $0x1d8] sm:$0xff] }
 0x72f   : > { %v16873_v51 = vpop.eup %16872  ;;  %15081 = vmatprep.subr.mxu0 %v1146_v14 }
 0x730   : > { %v2212_v12 = vmul.f32 %v16873_v51, %v16869_v62  ;;  %v2476_v62 = vld [vmem:[%s17087_s30 + $0xb8] sm:$0xff] }
 0x731   : > { %v15416_v2 = vpack.c.bf16 %v2476_v62, %v2460_v61  ;;  %v15426_v61 = vpack.c.bf16 %v2477_v54, %v2461_v52  ;;  %v2521_v54 = vld [vmem:[%s19657_s12 + $0x10] sm:$0xff] }
 0x732   : > { %15078 = vmatprep.mubr.msk.f32.mxu0 %vm1335_vm7, %v2212_v12 }
 0x733   : > { %15079 = vmatmul.mubr.msk.f32.vlgmr.msra.gmra.mrb[10].mxu0 %vm1335_vm7, %v2214_v13 }
 0x734   : > { %15082 = vmatpush3.msra.mxu0 %v1146_v14 }
 0x735   : > { %15401 = vmatprep.subr.bf16.mxu0 %v15400_v40 }
 0x806   : > { %v15080_v15 = vpop.f32.mrb[10].mxu0 }
 0x807   : > { %v2293_v16 = vpop.f32.mrb[11].mxu0 }
 0x808   : > { %15083 = vmatprep.mubr.msk.f32.mxu0 %vm1241_vm5, %v2293_v16 }
 0x809   : > { %15084 = vmatmul.mubr.msk.f32.vlgmr.msra.gmra.mrb[6].mxu0 %vm1241_vm5, %v15080_v15 }
 0x80a   : > { %15403 = vmatpush1.bf16.msra.mxu0 %v15402_v44  ;;  %3005 = vmatprep.mubr.f32.mxu0 %v17016_v63 }
 0x80b   : > { %15405 = vmatprep.subr.bf16.mxu0 %v15404_v50  ;;  %v2463_v50 = vld [vmem:[%s17087_s30 + $0x50] sm:$0xff] }
 0x80c   : > { %v15434_v62 = vpack.c.bf16 %v2479_v55, %v2463_v50  ;;  %v2522_v50 = vld [vmem:[%s19657_s12 + $0x18] sm:$0xff] }
 0x80e   : > { %15407 = vmatpush1.bf16.msra.mxu0 %v15406_v48  ;;  %v2494_v48 = vld [vmem:[%s17087_s30 + $0x148] sm:$0xff] }
 0x80f   : > { %15417 = vmatprep.subr.bf16.mxu0 %v15416_v2  ;;  %v2493_v2 = vld [vmem:[%s17087_s30 + $0x140] sm:$0xff] }
 0x8dc   : > { %v15085_v18 = vpop.f32.mrb[6].mxu0 }
 0x8dd   : > { %v2392_v19 = vadd.f32 %v15085_v18, %v12882_v17  ;;  %v2374_v20 = vpop.f32.mrb[7].mxu0 }
 0x8de   : > { %v2391_v21 = vadd.f32 %v12882_v17, %v2374_v20  ;;  %v2457_v20 = vld [vmem:[%s17087_s30 + $0x20] sm:$0xff] }
 0x8df   : > { %v17353_v22 = vadd.f32 %v2392_v19, %v17213_v1  ;;  %v12883_v19 = vld [vmem:[%s17077_s19] ss:$0 sm:$0xff] }
 0x8e0   : > { %v17356_v23 = vadd.f32 %v2391_v21, %v17211_v0 }
 0x8e1   : > { %v2400_v24 = vsel %vm1080_vm0, %v17353_v22, 0.0 }
 0x8e2   : > { %2401 = vadd.xlane.f32.xlu1 %v2400_v24  ;;  %v2397_v25 = vsel %vm1080_vm0, %v17356_v23, 0.0  ;;  %v2473_v24 = vld [vmem:[%s17087_s30 + $0xa0] sm:$0xff] }
 0x8e3   : > { %2398 = vadd.xlane.f32.xlu0 %v2397_v25  ;;  %v2459_v25 = vld [vmem:[%s17087_s30 + $0x30] sm:$0xff]  ;;  %v15410_v33 = vpack.c.bf16 %v2473_v24, %v2457_v20  ;;  %v2498_v20 = vld [vmem:[%s17087_s30 + $0x168] sm:$0xff]  ;;  %v2500_v24 = vld [vmem:[%s17087_s30 + $0x178] sm:$0xff] }
 0x96f   : > { %v2402_v26 = vpop.xlane.xlu1 %2401 }
 0x970   : > { %v2404_v58 = vmul.f32 0.03125, %v2402_v26  ;;  %v2399_v1 = vpop.xlane.xlu0 %2398  ;;  %v2475_v26 = vld [vmem:[%s17087_s30 + $0xb0] sm:$0xff] }
 0x971   : > { %v2403_v27 = vmul.f32 0.03125, %v2399_v1  ;;  %v12884_v1 = vld [vmem:[%s17082_s24] ss:$0 sm:$0xff]  ;;  %v15418_v34 = vpack.c.bf16 %v2475_v26, %v2459_v25  ;;  %v2516_v25 = vld [vmem:[%s17087_s30 + $0x1f8] sm:$0xff] }
 0x972   : > { %v17363_v0 = vsub.f32 %v17353_v22, %v2404_v58 }
 0x973   : > { %v17366_v28 = vsub.f32 %v17356_v23, %v2403_v27  ;;  %v2490_v27 = vld [vmem:[%s17087_s30 + $0x128] sm:$0xff] }
 0x974   : > { %v2408_v31 = vmul.f32 %v17363_v0, %v17363_v0  ;;  %v2424_v35 = vmul.f32 %v12883_v19, %v17363_v0  ;;  %v2478_v0 = vld [vmem:[%s17087_s30 + $0xc8] sm:$0xff] }
 0x975   : > { %v2407_v29 = vmul.f32 %v17366_v28, %v17366_v28  ;;  %v2423_v21 = vmul.f32 %v12883_v19, %v17366_v28  ;;  %v2489_v28 = vld [vmem:[%s17087_s30 + $0x120] sm:$0xff]  ;;  %v15424_v56 = vpack.c.bf16 %v2478_v0, %v2462_v43  ;;  %v2537_v0 = vld [vmem:[%s19657_s12 + $0x90] sm:$0xff] }
 0x976   : > { %v2412_v32 = vsel %vm1080_vm0, %v2408_v31, 0.0  ;;  %v2492_v31 = vld [vmem:[%s17087_s30 + $0x138] sm:$0xff]  ;;  %v15414_v47 = vpack.c.bf16 %v2505_v37, %v2489_v28  ;;  %v2567_v28 = vld [vmem:[%s19657_s12 + $0x180] sm:$0xff]  ;;  %v15460_v55 = vpack.c.bf16 %v2538_v45, %v2537_v0  ;;  %v2548_v0 = vld [vmem:[%s19657_s12 + $0xe8] sm:$0xff] }
 0x977   : > { %v2409_v30 = vsel %vm1080_vm0, %v2407_v29, 0.0  ;;  %v2551_v43 = vld [vmem:[%s19657_s12 + $0x100] sm:$0xff] }
 0x978   : > { %2410 = vadd.xlane.f32.xlu0 %v2409_v30  ;;  %v2506_v30 = vld [vmem:[%s17087_s30 + $0x1a8] sm:$0xff]  ;;  %v2579_v45 = vld [vmem:[%s19657_s12 + $0x1e0] sm:$0xff] }
 0x979   : > { %v15412_v41 = vpack.c.bf16 %v2506_v30, %v2490_v27  ;;  %v2513_v27 = vld [vmem:[%s17087_s30 + $0x1e0] sm:$0xff]  ;;  %v2515_v30 = vld [vmem:[%s17087_s30 + $0x1f0] sm:$0xff] }
 0x97c   : > { %2413 = vadd.xlane.f32.xlu0 %v2412_v32  ;;  %v2508_v32 = vld [vmem:[%s17087_s30 + $0x1b8] sm:$0xff] }
 0x97d   : > { %v15420_v42 = vpack.c.bf16 %v2508_v32, %v2492_v31  ;;  %v15452_v32 = vpack.c.bf16 %v2516_v25, %v2500_v24  ;;  %v2576_v24 = vld [vmem:[%s19657_s12 + $0x1c8] sm:$0xff] }
 0xa05   : > { %v2411_v3 = vpop.xlane.xlu0 %2410 }
 0xa06   : > { %v2415_v4 = vmul.f32 0.032258064, %v2411_v3  ;;  %v2509_v3 = vld [vmem:[%s17087_s30 + $0x1c0] sm:$0xff] }
 0xa08   : > { %16874 = vrsqrt.f32 %v2415_v4  ;;  %vm2427_vm8 = vcmp.eq.f32.partialorder %v2415_v4, inf  ;;  %v2430_v10 = vand.u32 2147483648, %v2415_v4  ;;  %vm2429_vm9 = vcmp.eq.f32.partialorder %v2415_v4, 0.0 }
 0xa09   : > { %v2414_v5 = vpop.xlane.xlu0 %2413 }
 0xa0a   : > { %v2416_v6 = vmul.f32 0.032258064, %v2414_v5  ;;  %v2511_v5 = vld [vmem:[%s17087_s30 + $0x1d0] sm:$0xff] }
 0xa0c   : > { %16876 = vrsqrt.f32 %v2416_v6  ;;  %vm2434_vm10 = vcmp.eq.f32.partialorder %v2416_v6, inf  ;;  %v2437_v15 = vand.u32 2147483648, %v2416_v6  ;;  %vm2436_vm11 = vcmp.eq.f32.partialorder %v2416_v6, 0.0 }
 0xa12   : > { %v16875_v8 = vpop.eup %16874 }
 0xa13   : > { %v2426_v9 = vmul.f32 %v16875_v8, %v2415_v4  ;;  %v15436_v8 = vpack.c.bf16 %v2512_v7, %v2496_v60  ;;  %v2540_v60 = vld [vmem:[%s19657_s12 + $0xa8] sm:$0xff]  ;;  %v2571_v7 = vld [vmem:[%s19657_s12 + $0x1a0] sm:$0xff] }
 0xa15   : > { %v2428_v11 = vsel %vm2427_vm8, %v2415_v4, %v2426_v9  ;;  %v2495_v4 = vld [vmem:[%s17087_s30 + $0x150] sm:$0xff]  ;;  %v2466_v9 = vld [vmem:[%s17087_s30 + $0x68] sm:$0xff]  ;;  %vm7319_vm8 = vcmask 31744  }
 0xa16   : > { %v16877_v51 = vpop.eup %16876  ;;  %v2431_v12 = vsel %vm2429_vm9, %v2430_v10, %v2428_v11  ;;  %v2482_v10 = vld [vmem:[%s17087_s30 + $0xe8] sm:$0xff]  ;;  %v2468_v11 = vld [vmem:[%s17087_s30 + $0x78] sm:$0xff]  ;;  %vm7336_vm9 = vcmask 1043456  }
 0xa17   : > { %v2439_v13 = vadd.f32 1e-06, %v2431_v12  ;;  %v2433_v14 = vmul.f32 %v16877_v51, %v2416_v6  ;;  %v2484_v51 = vld [vmem:[%s17087_s30 + $0xf8] sm:$0xff]  ;;  %v15430_v12 = vpack.c.bf16 %v2509_v3, %v2493_v2  ;;  %v2523_v3 = vld [vmem:[%s19657_s12 + $0x20] sm:$0xff] }
 0xa18   : > { %v15448_v19 = vpack.c.bf16 %v2484_v51, %v2468_v11  ;;  %v2573_v11 = vld [vmem:[%s19657_s12 + $0x1b0] sm:$0xff]  ;;  %v2574_v51 = vld [vmem:[%s19657_s12 + $0x1b8] sm:$0xff] }
 0xa19   : > { %16878 = vrcp.f32 %v2439_v13  ;;  %v2435_v16 = vsel %vm2434_vm10, %v2416_v6, %v2433_v14  ;;  %v15428_v6 = vpack.c.bf16 %v2510_v59, %v2494_v48  ;;  %v15438_v13 = vpack.c.bf16 %v2511_v5, %v2495_v4  ;;  %v2465_v14 = vld [vmem:[%s17087_s30 + $0x60] sm:$0xff]  ;;  %v2554_v48 = vld [vmem:[%s19657_s12 + $0x118] sm:$0xff]  ;;  %v2524_v4 = vld [vmem:[%s19657_s12 + $0x28] sm:$0xff] }
 0xa1a   : > { %v2438_v17 = vsel %vm2436_vm11, %v2437_v15, %v2435_v16  ;;  %v2481_v15 = vld [vmem:[%s17087_s30 + $0xe0] sm:$0xff]  ;;  %v2467_v16 = vld [vmem:[%s17087_s30 + $0x70] sm:$0xff] }
 0xa1b   : > { %v2440_v18 = vadd.f32 1e-06, %v2438_v17  ;;  %v2483_v17 = vld [vmem:[%s17087_s30 + $0xf0] sm:$0xff]  ;;  %v15442_v26 = vpack.c.bf16 %v2481_v15, %v2465_v14  ;;  %v2539_v59 = vld [vmem:[%s19657_s12 + $0xa0] sm:$0xff]  ;;  %v2526_v15 = vld [vmem:[%s19657_s12 + $0x38] sm:$0xff] }
 0xa1c   : > { %v2525_v14 = vld [vmem:[%s19657_s12 + $0x30] sm:$0xff] }
 0xa1d   : > { %16880 = vrcp.f32 %v2440_v18  ;;  %v15440_v18 = vpack.c.bf16 %v2482_v10, %v2466_v9  ;;  %v2541_v9 = vld [vmem:[%s19657_s12 + $0xb0] sm:$0xff]  ;;  %v2542_v10 = vld [vmem:[%s19657_s12 + $0xb8] sm:$0xff]  ;;  %v15470_v25 = vpack.c.bf16 %v2526_v15, %v2525_v14  ;;  %v2778_v15 = vlaneseq }
 0xa23   : > { %v16879_v58 = vpop.eup %16878 }
 0xa24   : > { %v2442_v29 = vmul.f32 %v16879_v58, %v2423_v21  ;;  %v2514_v21 = vld [vmem:[%s17087_s30 + $0x1e8] sm:$0xff]  ;;  %v15450_v58 = vpack.c.bf16 %v2483_v17, %v2467_v16  ;;  %v15468_v16 = vpack.c.bf16 %v2542_v10, %v2541_v9  ;;  %v15500_v17 = vpack.c.bf16 %v2574_v51, %v2573_v11  ;;  %v2599_v10 = vld [vmem:[%s19657_s12 + $0x280] sm:$0xff] }
 0xa25   : > { %v15444_v31 = vpack.c.bf16 %v2514_v21, %v2498_v20  ;;  %v2544_v20 = vld [vmem:[%s19657_s12 + $0xc8] sm:$0xff]  ;;  %v2575_v21 = vld [vmem:[%s19657_s12 + $0x1c0] sm:$0xff] }
 0xa26   : > { %v17409_v36 = vadd.f32 %v12884_v1, %v2442_v29  ;;  %v2499_v29 = vld [vmem:[%s17087_s30 + $0x170] sm:$0xff]  ;;  %v2600_v11 = vld [vmem:[%s19657_s12 + $0x288] sm:$0xff]  ;;  %v2631_v51 = vld [vmem:[%s19657_s12 + $0x380] sm:$0xff] }
 0xa27   : > { %v16881_v40 = vpop.eup %16880  ;;  %v15454_v38 = vpack.c.bf16 %v2515_v30, %v2499_v29  ;;  %v15504_v29 = vpack.c.bf16 %v2576_v24, %v2575_v21  ;;  %v2559_v30 = vld [vmem:[%s19657_s12 + $0x140] sm:$0xff] }
 0xa28   : > { %v2444_v44 = vmul.f32 %v16881_v40, %v2424_v35  ;;  %12885 = vmatmul.mubr.msk.f32.vlgmr.msra.gmra.mrb[8].mxu1 %vm1080_vm0, %v17409_v36  ;;  %12887 = vmatmul.mubr.msk.f32.vlgmr.msra.gmra.mrb[12].mxu0 %vm1080_vm0, %v17409_v36  ;;  %v2568_v35 = vld [vmem:[%s19657_s12 + $0x188] sm:$0xff] }
 0xa29   : > { %15411 = vmatpush1.bf16.msra.mxu1 %v15410_v33  ;;  %15419 = vmatpush1.bf16.msra.mxu0 %v15418_v34  ;;  %v2535_v33 = vld [vmem:[%s19657_s12 + $0x80] sm:$0xff]  ;;  %v2536_v34 = vld [vmem:[%s19657_s12 + $0x88] sm:$0xff] }
 0xa2a   : > { %2934 = vmatprep.mubr.f32.mxu1 %v17016_v63  ;;  %3011 = vmatprep.mubr.f32.mxu0 %v17016_v63  ;;  %v17425_v53 = vadd.f32 %v12884_v1, %v2444_v44  ;;  %v2497_v1 = vld [vmem:[%s17087_s30 + $0x160] sm:$0xff]  ;;  %v2520_v40 = vld [vmem:[%s19657_s12 + $0x8] sm:$0xff] }
 0xa2b   : > { %15413 = vmatprep.subr.bf16.mxu1 %v15412_v41  ;;  %15421 = vmatprep.subr.bf16.mxu0 %v15420_v42  ;;  %v15446_v37 = vpack.c.bf16 %v2513_v27, %v2497_v1  ;;  %v15456_v41 = vpack.c.bf16 %v2536_v34, %v2535_v33  ;;  %v15488_v42 = vpack.c.bf16 %v2568_v35, %v2567_v28  ;;  %v2552_v44 = vld [vmem:[%s19657_s12 + $0x108] sm:$0xff]  ;;  %v2546_v33 = vld [vmem:[%s19657_s12 + $0xd8] sm:$0xff]  ;;  %v2577_v34 = vld [vmem:[%s19657_s12 + $0x1d0] sm:$0xff] }
 0xa2c   : > { %12886 = vmatmul.mubr.msk.f32.gmra.mrb[10].mxu1 %vm1080_vm0, %v17425_v53  ;;  %12888 = vmatmul.mubr.msk.f32.gmra.mrb[14].mxu0 %vm1080_vm0, %v17425_v53  ;;  %v15490_v52 = vpack.c.bf16 %v2552_v44, %v2551_v43  ;;  %v2528_v1 = vld [vmem:[%s19657_s12 + $0x48] sm:$0xff]  ;;  %v2578_v28 = vld [vmem:[%s19657_s12 + $0x1d8] sm:$0xff]  ;;  %v2547_v44 = vld [vmem:[%s19657_s12 + $0xe0] sm:$0xff] }
 0xa2d   : > { %15415 = vmatpush1.bf16.msra.mxu1 %v15414_v47  ;;  %15423 = vmatpush1.bf16.msra.mxu0 %v15422_v49  ;;  %v2570_v47 = vld [vmem:[%s19657_s12 + $0x198] sm:$0xff]  ;;  %v15458_v49 = vpack.c.bf16 %v2520_v40, %v2519_v39 }
 0xa2e   : > { %3082 = vmatprep.mubr.f32.mxu1 %v17016_v63  ;;  %3159 = vmatprep.mubr.f32.mxu0 %v17016_v63  ;;  %v2530_v39 = vld [vmem:[%s19657_s12 + $0x58] sm:$0xff] }
 0xa2f   : > { %15425 = vmatprep.subr.bf16.mxu1 %v15424_v56  ;;  %15433 = vmatprep.subr.bf16.mxu0 %v15432_v57  ;;  %v15492_v56 = vpack.c.bf16 %v2570_v47, %v2569_v46  ;;  %v2553_v57 = vld [vmem:[%s19657_s12 + $0x110] sm:$0xff]  ;;  %v2562_v43 = vld [vmem:[%s19657_s12 + $0x158] sm:$0xff]  ;;  %v2580_v46 = vld [vmem:[%s19657_s12 + $0x1e8] sm:$0xff] }
 0xa30   : > { %12889 = vmatmul.mubr.msk.f32.vlgmr.msra.gmra.mrb[12].mxu1 %vm1080_vm0, %v17409_v36  ;;  %12891 = vmatmul.mubr.msk.f32.vlgmr.msra.gmra.mrb[16].mxu0 %vm1080_vm0, %v17409_v36  ;;  %v15494_v2 = vpack.c.bf16 %v2554_v48, %v2553_v57  ;;  %v2564_v57 = vld [vmem:[%s19657_s12 + $0x168] sm:$0xff] }
 0xa31   : > { %15427 = vmatpush1.bf16.msra.mxu1 %v15426_v61  ;;  %15435 = vmatpush1.bf16.msra.mxu0 %v15434_v62  ;;  %v2572_v61 = vld [vmem:[%s19657_s12 + $0x1a8] sm:$0xff]  ;;  %v15462_v62 = vpack.c.bf16 %v2522_v50, %v2521_v54  ;;  %v15480_v54 = vpack.c.bf16 %v2548_v0, %v2547_v44  ;;  %v15512_v50 = vpack.c.bf16 %v2580_v46, %v2579_v45  ;;  %v2585_v46 = vld [vmem:[%s19657_s12 + $0x210] sm:$0xff] }
 0xa32   : > { %3088 = vmatprep.mubr.f32.mxu1 %v17016_v63  ;;  %3165 = vmatprep.mubr.f32.mxu0 %v17016_v63  ;;  %v15496_v5 = vpack.c.bf16 %v2572_v61, %v2571_v7  ;;  %v2550_v7 = vld [vmem:[%s19657_s12 + $0xf8] sm:$0xff]  ;;  %v2581_v61 = vld [vmem:[%s19657_s12 + $0x1f0] sm:$0xff] }
 0xa33   : > { %15429 = vmatprep.subr.bf16.mxu1 %v15428_v6  ;;  %15437 = vmatprep.subr.bf16.mxu0 %v15436_v8  ;;  %v2555_v6 = vld [vmem:[%s19657_s12 + $0x120] sm:$0xff]  ;;  %v2556_v8 = vld [vmem:[%s19657_s12 + $0x128] sm:$0xff] }
 0xa34   : > { %12890 = vmatmul.mubr.msk.f32.gmra.mrb[14].mxu1 %vm1080_vm0, %v17425_v53  ;;  %12892 = vmatmul.mubr.msk.f32.gmra.mrb[18].mxu0 %vm1080_vm0, %v17425_v53 }
 0xa35   : > { %15431 = vmatpush1.bf16.msra.mxu1 %v15430_v12  ;;  %15439 = vmatpush1.bf16.msra.mxu0 %v15438_v13  ;;  %v15466_v12 = vpack.c.bf16 %v2524_v4, %v2523_v3  ;;  %v15498_v13 = vpack.c.bf16 %v2556_v8, %v2555_v6  ;;  %v2533_v3 = vld [vmem:[%s19657_s12 + $0x70] sm:$0xff]  ;;  %v2534_v4 = vld [vmem:[%s19657_s12 + $0x78] sm:$0xff] }
 0xa36   : > { %3236 = vmatprep.mubr.f32.mxu1 %v17016_v63  ;;  %3313 = vmatprep.mubr.f32.mxu0 %v17016_v63  ;;  %v2565_v6 = vld [vmem:[%s19657_s12 + $0x170] sm:$0xff]  ;;  %v2566_v8 = vld [vmem:[%s19657_s12 + $0x178] sm:$0xff] }
 0xa37   : > { %15441 = vmatprep.subr.bf16.mxu1 %v15440_v18  ;;  %15449 = vmatprep.subr.bf16.mxu0 %v15448_v19  ;;  %v2558_v18 = vld [vmem:[%s19657_s12 + $0x138] sm:$0xff]  ;;  %v2543_v19 = vld [vmem:[%s19657_s12 + $0xc0] sm:$0xff]  ;;  %v15518_v9 = vpack.c.bf16 %v2566_v8, %v2565_v6  ;;  %v2604_v6 = vld [vmem:[%s19657_s12 + $0x2a8] sm:$0xff] }
 0xa38   : > { %12893 = vmatmul.mubr.msk.f32.vlgmr.msra.gmra.mrb[16].mxu1 %vm1080_vm0, %v17409_v36  ;;  %12895 = vmatmul.mubr.msk.f32.vlgmr.msra.gmra.mrb[20].mxu0 %vm1080_vm0, %v17409_v36  ;;  %v15472_v27 = vpack.c.bf16 %v2544_v20, %v2543_v19  ;;  %v2635_v8 = vld [vmem:[%s19657_s12 + $0x3a0] sm:$0xff] }
 0xa39   : > { %15443 = vmatpush1.bf16.msra.mxu1 %v15442_v26  ;;  %15451 = vmatpush1.bf16.msra.mxu0 %v15450_v58  ;;  %v2527_v58 = vld [vmem:[%s19657_s12 + $0x40] sm:$0xff] }
 0xa3a   : > { %3242 = vmatprep.mubr.f32.mxu1 %v17016_v63  ;;  %3319 = vmatprep.mubr.f32.mxu0 %v17016_v63  ;;  %v15474_v35 = vpack.c.bf16 %v2528_v1, %v2527_v58  ;;  %v2583_v58 = vld [vmem:[%s19657_s12 + $0x200] sm:$0xff]  ;;  %v2584_v1 = vld [vmem:[%s19657_s12 + $0x208] sm:$0xff] }
 0xa3b   : > { %15445 = vmatprep.subr.bf16.mxu1 %v15444_v31  ;;  %15453 = vmatprep.subr.bf16.mxu0 %v15452_v32  ;;  %v2560_v31 = vld [vmem:[%s19657_s12 + $0x148] sm:$0xff]  ;;  %v2545_v32 = vld [vmem:[%s19657_s12 + $0xd0] sm:$0xff]  ;;  %v15522_v44 = vpack.c.bf16 %v2584_v1, %v2583_v58 }
 0xa3c   : > { %12894 = vmatmul.mubr.msk.f32.gmra.mrb[18].mxu1 %vm1080_vm0, %v17425_v53  ;;  %12896 = vmatmul.mubr.msk.f32.gmra.mrb[22].mxu0 %vm1080_vm0, %v17425_v53  ;;  %v15476_v40 = vpack.c.bf16 %v2546_v33, %v2545_v32  ;;  %v2616_v32 = vld [vmem:[%s19657_s12 + $0x308] sm:$0xff]  ;;  %v2601_v33 = vld [vmem:[%s19657_s12 + $0x290] sm:$0xff] }
 0xa3d   : > { %15447 = vmatpush1.bf16.msra.mxu1 %v15446_v37  ;;  %15455 = vmatpush1.bf16.msra.mxu0 %v15454_v38  ;;  %v15506_v37 = vpack.c.bf16 %v2560_v31, %v2559_v30  ;;  %v2529_v38 = vld [vmem:[%s19657_s12 + $0x50] sm:$0xff]  ;;  %v2615_v31 = vld [vmem:[%s19657_s12 + $0x300] sm:$0xff] }
 0xa3e   : > { %3390 = vmatprep.mubr.f32.mxu1 %v17016_v63  ;;  %3467 = vmatprep.mubr.f32.mxu0 %v17016_v63  ;;  %v15478_v47 = vpack.c.bf16 %v2530_v39, %v2529_v38  ;;  %v2602_v38 = vld [vmem:[%s19657_s12 + $0x298] sm:$0xff]  ;;  %v2633_v39 = vld [vmem:[%s19657_s12 + $0x390] sm:$0xff]  ;;  %v15554_v0 = vpack.c.bf16 %v2616_v32, %v2615_v31  ;;  %v2620_v31 = vld [vmem:[%s19657_s12 + $0x328] sm:$0xff] }
 0xa3f   : > { %15457 = vmatprep.subr.bf16.mxu1 %v15456_v41  ;;  %15489 = vmatprep.subr.bf16.mxu0 %v15488_v42  ;;  %v15508_v41 = vpack.c.bf16 %v2578_v28, %v2577_v34  ;;  %v2561_v42 = vld [vmem:[%s19657_s12 + $0x150] sm:$0xff] }
 0xa40   : > { %12897 = vmatmul.mubr.msk.f32.vlgmr.msra.gmra.mrb[20].mxu1 %vm1080_vm0, %v17409_v36  ;;  %12899 = vmatmul.mubr.msk.f32.vlgmr.msra.gmra.mrb[24].mxu0 %vm1080_vm0, %v17409_v36  ;;  %v15464_v36 = vpack.c.bf16 %v2540_v60, %v2539_v59  ;;  %v2549_v60 = vld [vmem:[%s19657_s12 + $0xf0] sm:$0xff] }
 0xa41   : > { %3396 = vmatprep.mubr.f32.mxu1 %v17016_v63  ;;  %3473 = vmatprep.mubr.f32.mxu0 %v17016_v63  ;;  %v2605_v32 = vld [vmem:[%s19657_s12 + $0x2b0] sm:$0xff] }
 0xa42   : > { %15459 = vmatpush3.bf16.msra.mxu1 %v15458_v49  ;;  %15491 = vmatpush3.bf16.msra.mxu0 %v15490_v52  ;;  %v15510_v49 = vpack.c.bf16 %v2562_v43, %v2561_v42  ;;  %v2531_v52 = vld [vmem:[%s19657_s12 + $0x60] sm:$0xff] }
 0xa43   : > { %15461 = vmatprep.subr.bf16.mxu1 %v15460_v55  ;;  %15493 = vmatprep.subr.bf16.mxu0 %v15492_v56  ;;  %v2532_v55 = vld [vmem:[%s19657_s12 + $0x68] sm:$0xff]  ;;  %v2563_v56 = vld [vmem:[%s19657_s12 + $0x160] sm:$0xff] }
 0xa44   : > { %12898 = vmatmul.mubr.msk.f32.gmra.mrb[22].mxu1 %vm1080_vm0, %v17425_v53  ;;  %12900 = vmatmul.mubr.msk.f32.gmra.mrb[26].mxu0 %vm1080_vm0, %v17425_v53  ;;  %v2557_v53 = vld [vmem:[%s19657_s12 + $0x130] sm:$0xff]  ;;  %v15482_v48 = vpack.c.bf16 %v2532_v55, %v2531_v52  ;;  %v15514_v59 = vpack.c.bf16 %v2564_v57, %v2563_v56  ;;  %v2586_v56 = vld [vmem:[%s19657_s12 + $0x218] sm:$0xff] }
 0xa45   : > { %v15502_v26 = vpack.c.bf16 %v2558_v18, %v2557_v53  ;;  %v17571_v18 = vld [vmem:[%s19659_s6] sm:$0xff]  ;;  %v2617_v57 = vld [vmem:[%s19657_s12 + $0x310] sm:$0xff] }
 0xa46   : > { %15463 = vmatpush3.bf16.msra.mxu1 %v15462_v62  ;;  %15495 = vmatpush3.bf16.msra.mxu0 %v15494_v2  ;;  %v15484_v62 = vpack.c.bf16 %v2550_v7, %v2549_v60  ;;  %v2582_v2 = vld [vmem:[%s19657_s12 + $0x1f8] sm:$0xff] }
 0xa47   : > { %15465 = vmatprep.subr.bf16.mxu1 %v15464_v36  ;;  %15497 = vmatprep.subr.bf16.mxu0 %v15496_v5  ;;  %v15516_v36 = vpack.c.bf16 %v2582_v2, %v2581_v61  ;;  %v15486_v5 = vpack.c.bf16 %v2534_v4, %v2533_v3  ;;  %v2618_v2 = vld [vmem:[%s19657_s12 + $0x318] sm:$0xff]  ;;  %v2603_v3 = vld [vmem:[%s19657_s12 + $0x2a0] sm:$0xff] }
 0xa4a   : > { %15467 = vmatpush3.bf16.msra.mxu1 %v15466_v12  ;;  %15499 = vmatpush3.bf16.msra.mxu0 %v15498_v13  ;;  %v15520_v12 = vpack.c.bf16 %v2600_v11, %v2599_v10  ;;  %v2632_v13 = vld [vmem:[%s19657_s12 + $0x388] sm:$0xff]  ;;  %v2587_v10 = vld [vmem:[%s19657_s12 + $0x220] sm:$0xff] }
 0xa4b   : > { %15469 = vmatprep.subr.bf16.mxu1 %v15468_v16  ;;  %15501 = vmatprep.subr.bf16.mxu0 %v15500_v17  ;;  %v15552_v14 = vpack.c.bf16 %v2632_v13, %v2631_v51  ;;  %v17562_v16 = vshrl.u32 %v2778_v15, 7  ;;  %v15558_v15 = vpack.c.bf16 %v2618_v2, %v2617_v57  ;;  %v2608_v57 = vld [vmem:[%s19657_s12 + $0x2c8] sm:$0xff]  ;;  %v2591_v2 = vld [vmem:[%s19657_s12 + $0x240] sm:$0xff] }
 0xa4d   : > { %v17565_v17 = vsub.s32 0, %v17562_v16  ;;  %v17568_v53 = vsub.s32 2, %v17562_v16  ;;  %v17574_v19 = vsub.s32 1, %v17562_v16  ;;  %v17577_v20 = vsub.s32 3, %v17562_v16 }
 0xa4e   : > { %15471 = vmatpush3.bf16.msra.mxu1 %v15470_v25  ;;  %15503 = vmatpush3.bf16.msra.mxu0 %v15502_v26  ;;  %v17599_v43 = vsub.s32 7, %v17562_v16 }
 0xa4f   : > { %15473 = vmatprep.subr.bf16.mxu1 %v15472_v27  ;;  %15505 = vmatprep.subr.bf16.mxu0 %v15504_v29  ;;  %v2781_v21 = vrot.slane %v17571_v18, %v17565_v17  ;;  %v2789_v24 = vrot.slane %v17571_v18, %v17568_v53  ;;  %v2785_v25 = vrot.slane %v17571_v18, %v17574_v19  ;;  %v17590_v27 = vsub.s32 5, %v17562_v16 }
 0xa50   : > { %v2793_v26 = vrot.slane %v17571_v18, %v17577_v20 }
 0xa51   : > { %v17603_v45 = vrot.slane %v17571_v18, %v17590_v27 }
 0xa52   : > { %15475 = vmatpush3.bf16.msra.mxu1 %v15474_v35  ;;  %15507 = vmatpush3.bf16.msra.mxu0 %v15506_v37 }
 0xa53   : > { %15477 = vmatprep.subr.bf16.mxu1 %v15476_v40  ;;  %15509 = vmatprep.subr.bf16.mxu0 %v15508_v41  ;;  %v2634_v40 = vld [vmem:[%s19657_s12 + $0x398] sm:$0xff] }
 0xa54   : > { %v15556_v55 = vpack.c.bf16 %v2634_v40, %v2633_v39 }
 0xa56   : > { %15479 = vmatpush3.bf16.msra.mxu1 %v15478_v47  ;;  %15511 = vmatpush3.bf16.msra.mxu0 %v15510_v49 }
 0xa57   : > { %15481 = vmatprep.subr.bf16.mxu1 %v15480_v54  ;;  %15513 = vmatprep.subr.bf16.mxu0 %v15512_v50  ;;  %v15524_v50 = vpack.c.bf16 %v2602_v38, %v2601_v33 }
 0xa5a   : > { %15483 = vmatpush3.bf16.msra.mxu1 %v15482_v48  ;;  %15515 = vmatpush3.bf16.msra.mxu0 %v15514_v59 }
 0xa5b   : > { %15485 = vmatprep.subr.bf16.mxu1 %v15484_v62  ;;  %15517 = vmatprep.subr.bf16.mxu0 %v15516_v36 }
 0xa5e   : > { %15487 = vmatpush3.bf16.msra.mxu1 %v15486_v5  ;;  %15519 = vmatpush3.bf16.msra.mxu0 %v15518_v9  ;;  %v17612_v5 = vrot.slane %v17571_v18, %v17599_v43  ;;  %v2636_v9 = vld [vmem:[%s19657_s12 + $0x3a8] sm:$0xff] }
 0xa5f   : > { %15521 = vmatprep.subr.bf16.mxu1 %v15520_v12  ;;  %15553 = vmatprep.subr.bf16.mxu0 %v15552_v14  ;;  %v15526_v14 = vpack.c.bf16 %v2586_v56, %v2585_v46  ;;  %v2590_v46 = vld [vmem:[%s19657_s12 + $0x238] sm:$0xff]  ;;  %v2607_v56 = vld [vmem:[%s19657_s12 + $0x2c0] sm:$0xff] }
 0xafb   : > { %v2930_v29 = vpop.f32.mrb[8].mxu1  ;;  %v3007_v30 = vpop.f32.mrb[12].mxu0 }
 0xafc   : > { %v2931_v34 = vadd.f32 %v2930_v29, %v2781_v21  ;;  %v3008_v28 = vadd.f32 %v3007_v30, %v2789_v24  ;;  %v2932_v35 = vpop.f32.mrb[9].mxu1  ;;  %v3009_v37 = vpop.f32.mrb[13].mxu0  ;;  %v15528_v29 = vpack.c.bf16 %v2604_v6, %v2603_v3  ;;  %v15560_v30 = vpack.c.bf16 %v2636_v9, %v2635_v8  ;;  %v2592_v3 = vld [vmem:[%s19657_s12 + $0x248] sm:$0xff]  ;;  %v2623_v9 = vld [vmem:[%s19657_s12 + $0x340] sm:$0xff] }
 0xafd   : > { %v2933_v41 = vadd.f32 %v2932_v35, %v2785_v25  ;;  %v3010_v42 = vadd.f32 %v3009_v37, %v2793_v26  ;;  %v2637_v35 = vld [vmem:[%s19657_s12 + $0x3b0] sm:$0xff]  ;;  %v2638_v37 = vld [vmem:[%s19657_s12 + $0x3b8] sm:$0xff]  ;;  %v15536_v6 = vpack.c.bf16 %v2608_v57, %v2607_v56 }
 0xafe   : > { %v3480_v48 = vmax.f32 %v2931_v34, 0.0  ;;  %v3482_v59 = vmax.f32 %v3008_v28, 0.0  ;;  %v2606_v28 = vld [vmem:[%s19657_s12 + $0x2b8] sm:$0xff] }
 0xaff   : > { %v3481_v47 = vmax.f32 %v2933_v41, 0.0  ;;  %v3483_v49 = vmax.f32 %v3010_v42, 0.0  ;;  %v2936_v52 = vpop.f32.mrb[10].mxu1  ;;  %v3013_v54 = vpop.f32.mrb[14].mxu0 }
 0xb00   : > { %v2937_v60 = vadd.f32 %v2936_v52, %v2781_v21  ;;  %v3014_v7 = vadd.f32 %v3013_v54, %v2789_v24  ;;  %v2938_v61 = vpop.f32.mrb[11].mxu1  ;;  %v3015_v62 = vpop.f32.mrb[15].mxu0  ;;  %v2588_v21 = vld [vmem:[%s19657_s12 + $0x228] sm:$0xff]  ;;  %v2619_v24 = vld [vmem:[%s19657_s12 + $0x320] sm:$0xff]  ;;  %v15532_v52 = vpack.c.bf16 %v2606_v28, %v2605_v32  ;;  %v15564_v54 = vpack.c.bf16 %v2638_v37, %v2637_v35 }
 0xb01   : > { %v2939_v4 = vadd.f32 %v2938_v61, %v2785_v25  ;;  %v3016_v36 = vadd.f32 %v3015_v62, %v2793_v26  ;;  %3582 = vmatprep.mubr.f32.mxu1 %v3481_v47  ;;  %3657 = vmatprep.mubr.f32.mxu0 %v3483_v49  ;;  %v15530_v42 = vpack.c.bf16 %v2588_v21, %v2587_v10  ;;  %v2624_v10 = vld [vmem:[%s19657_s12 + $0x348] sm:$0xff]  ;;  %v2611_v28 = vld [vmem:[%s19657_s12 + $0x2e0] sm:$0xff] }
 0xb02   : > { %3583 = vmatmul.mubr.f32.vlgmr.msra.gmra.mrb[24].mxu1 %v3480_v48  ;;  %3658 = vmatmul.mubr.f32.vlgmr.msra.gmra.mrb[28].mxu0 %v3482_v59  ;;  %v3496_v25 = vmax.f32 %v2937_v60, 0.0  ;;  %v3498_v26 = vmax.f32 %v3014_v7, 0.0  ;;  %v2639_v48 = vld [vmem:[%s19657_s12 + $0x3c0] sm:$0xff]  ;;  %v2640_v59 = vld [vmem:[%s19657_s12 + $0x3c8] sm:$0xff] }
 0xb03   : > { %v3497_v11 = vmax.f32 %v2939_v4, 0.0  ;;  %v3499_v51 = vmax.f32 %v3016_v36, 0.0  ;;  %15523 = vmatpush3.bf16.msra.mxu1 %v15522_v44  ;;  %15555 = vmatpush3.bf16.msra.mxu0 %v15554_v0  ;;  %v17618_v12 = vpop.f32.mrb[12].mxu1  ;;  %v17620_v13 = vpop.f32.mrb[16].mxu0  ;;  %v15562_v44 = vpack.c.bf16 %v2620_v31, %v2619_v24  ;;  %v2589_v0 = vld [vmem:[%s19657_s12 + $0x230] sm:$0xff]  ;;  %v15568_v8 = vpack.c.bf16 %v2640_v59, %v2639_v48  ;;  %v2612_v35 = vld [vmem:[%s19657_s12 + $0x2e8] sm:$0xff] }
 0xb04   : > { %v3086_v58 = vpop.f32.mrb[13].mxu1  ;;  %v3163_v1 = vpop.f32.mrb[17].mxu0  ;;  %15525 = vmatprep.subr.bf16.mxu1 %v15524_v50  ;;  %15557 = vmatprep.subr.bf16.mxu0 %v15556_v55  ;;  %v2621_v50 = vld [vmem:[%s19657_s12 + $0x330] sm:$0xff]  ;;  %v2622_v55 = vld [vmem:[%s19657_s12 + $0x338] sm:$0xff]  ;;  %v15534_v61 = vpack.c.bf16 %v2590_v46, %v2589_v0  ;;  %v2643_v37 = vld [vmem:[%s19657_s12 + $0x3e0] sm:$0xff]  ;;  %v15544_v57 = vpack.c.bf16 %v2612_v35, %v2611_v28 }
 0xb05   : > { %v3087_v33 = vadd.f32 %v3086_v58, %v17603_v45  ;;  %v3164_v34 = vadd.f32 %v3163_v1, %v17612_v5  ;;  %3587 = vmatprep.mubr.f32.mxu1 %v3497_v11  ;;  %3662 = vmatprep.mubr.f32.mxu0 %v3499_v51  ;;  %v15566_v62 = vpack.c.bf16 %v2622_v55, %v2621_v50  ;;  %v2609_v11 = vld [vmem:[%s19657_s12 + $0x2d0] sm:$0xff]  ;;  %v2610_v51 = vld [vmem:[%s19657_s12 + $0x2d8] sm:$0xff]  ;;  %v17689_v50 = vsub.s32 6, %v17562_v16  ;;  %v2627_v59 = vld [vmem:[%s19657_s12 + $0x360] sm:$0xff] }
 0xb06   : > { %3588 = vmatmul.mubr.f32.gmra.mrb[26].mxu1 %v3496_v25  ;;  %3663 = vmatmul.mubr.f32.gmra.mrb[30].mxu0 %v3498_v26  ;;  %v15538_v25 = vpack.c.bf16 %v2592_v3, %v2591_v2  ;;  %v15570_v26 = vpack.c.bf16 %v2624_v10, %v2623_v9  ;;  %v2593_v58 = vld [vmem:[%s19657_s12 + $0x250] sm:$0xff]  ;;  %v2594_v1 = vld [vmem:[%s19657_s12 + $0x258] sm:$0xff]  ;;  %v15540_v31 = vpack.c.bf16 %v2610_v51, %v2609_v11  ;;  %v2695_v28 = vld [vmem:[%s19657_s12 + $0x580] sm:$0xff] }
 0xb07   : > { %v3485_v38 = vmax.f32 %v3087_v33, 0.0  ;;  %v3487_v39 = vmax.f32 %v3164_v34, 0.0  ;;  %15527 = vmatpush3.bf16.msra.mxu1 %v15526_v14  ;;  %15559 = vmatpush3.bf16.msra.mxu0 %v15558_v15  ;;  %v17631_v40 = vpop.f32.mrb[14].mxu1  ;;  %v17633_v41 = vpop.f32.mrb[18].mxu0  ;;  %v2641_v14 = vld [vmem:[%s19657_s12 + $0x3d0] sm:$0xff]  ;;  %v2642_v15 = vld [vmem:[%s19657_s12 + $0x3d8] sm:$0xff]  ;;  %v15542_v0 = vpack.c.bf16 %v2594_v1, %v2593_v58 }
 0xb08   : > { %v17637_v47 = vpop.f32.mrb[15].mxu1  ;;  %v17639_v49 = vpop.f32.mrb[19].mxu0  ;;  %15529 = vmatprep.subr.bf16.mxu1 %v15528_v29  ;;  %15561 = vmatprep.subr.bf16.mxu0 %v15560_v30  ;;  %v15572_v32 = vpack.c.bf16 %v2642_v15, %v2641_v14  ;;  %v2625_v33 = vld [vmem:[%s19657_s12 + $0x350] sm:$0xff]  ;;  %v2626_v34 = vld [vmem:[%s19657_s12 + $0x358] sm:$0xff]  ;;  %v2696_v35 = vld [vmem:[%s19657_s12 + $0x588] sm:$0xff] }
 0xb09   : > { %3732 = vmatprep.mubr.f32.mxu1 %v3485_v38  ;;  %3807 = vmatprep.mubr.f32.mxu0 %v3487_v39  ;;  %v2644_v38 = vld [vmem:[%s19657_s12 + $0x3e8] sm:$0xff]  ;;  %v17680_v39 = vsub.s32 4, %v17562_v16  ;;  %v15574_v46 = vpack.c.bf16 %v2626_v34, %v2625_v33  ;;  %v2614_v2 = vld [vmem:[%s19657_s12 + $0x2f8] sm:$0xff]  ;;  %v2645_v3 = vld [vmem:[%s19657_s12 + $0x3f0] sm:$0xff] }
 0xb0a   : > { %v15576_v48 = vpack.c.bf16 %v2644_v38, %v2643_v37  ;;  %v2597_v51 = vld [vmem:[%s19657_s12 + $0x270] sm:$0xff]  ;;  %v2598_v14 = vld [vmem:[%s19657_s12 + $0x278] sm:$0xff]  ;;  %v2663_v33 = vld [vmem:[%s19657_s12 + $0x480] sm:$0xff] }
 0xb0b   : > { %15531 = vmatpush3.bf16.msra.mxu1 %v15530_v42  ;;  %15563 = vmatpush3.bf16.msra.mxu0 %v15562_v44  ;;  %v17647_v60 = vpop.f32.mrb[16].mxu1  ;;  %v17649_v7 = vpop.f32.mrb[20].mxu0  ;;  %v2797_v16 = vrot.slane %v17571_v18, %v17680_v39  ;;  %v2629_v15 = vld [vmem:[%s19657_s12 + $0x370] sm:$0xff]  ;;  %v2664_v34 = vld [vmem:[%s19657_s12 + $0x488] sm:$0xff] }
 0xb0c   : > { %v17653_v4 = vpop.f32.mrb[17].mxu1  ;;  %v17655_v36 = vpop.f32.mrb[21].mxu0  ;;  %15533 = vmatprep.subr.bf16.mxu1 %v15532_v52  ;;  %15565 = vmatprep.subr.bf16.mxu0 %v15564_v54  ;;  %v2595_v52 = vld [vmem:[%s19657_s12 + $0x260] sm:$0xff]  ;;  %v2596_v54 = vld [vmem:[%s19657_s12 + $0x268] sm:$0xff] }
 0xb0d   : > { %v15546_v10 = vpack.c.bf16 %v2596_v54, %v2595_v52  ;;  %v17722_v37 = vld [vmem:[%s19659_s6 + $0x8] sm:$0xff]  ;;  %v15584_v52 = vpack.c.bf16 %v2664_v34, %v2663_v33  ;;  %v2679_v54 = vld [vmem:[%s19657_s12 + $0x500] sm:$0xff] }
 0xb0e   : > { %v2648_v38 = vld [vmem:[%s19657_s12 + $0x408] sm:$0xff] }
 0xb0f   : > { %15535 = vmatpush3.bf16.msra.mxu1 %v15534_v61  ;;  %15567 = vmatpush3.bf16.msra.mxu0 %v15566_v62  ;;  %v17663_v21 = vpop.f32.mrb[18].mxu1  ;;  %v17665_v24 = vpop.f32.mrb[22].mxu0  ;;  %v2628_v61 = vld [vmem:[%s19657_s12 + $0x368] sm:$0xff]  ;;  %v2613_v62 = vld [vmem:[%s19657_s12 + $0x2f0] sm:$0xff] }
 0xb10   : > { %v17669_v29 = vpop.f32.mrb[19].mxu1  ;;  %v17671_v30 = vpop.f32.mrb[23].mxu0  ;;  %15537 = vmatprep.subr.bf16.mxu1 %v15536_v6  ;;  %15569 = vmatprep.subr.bf16.mxu0 %v15568_v8  ;;  %v2646_v6 = vld [vmem:[%s19657_s12 + $0x3f8] sm:$0xff]  ;;  %v15578_v11 = vpack.c.bf16 %v2628_v61, %v2627_v59  ;;  %v15548_v1 = vpack.c.bf16 %v2614_v2, %v2613_v62  ;;  %v3085_v59 = vadd.f32 %v17618_v12, %v2797_v16 }
 0xb11   : > { %v15616_v62 = vpack.c.bf16 %v2696_v35, %v2695_v28  ;;  %v2666_v2 = vld [vmem:[%s19657_s12 + $0x498] sm:$0xff]  ;;  %v17744_v12 = vrot.slane %v17722_v37, %v17577_v20 }
 0xb13   : > { %15539 = vmatpush3.bf16.msra.mxu1 %v15538_v25  ;;  %15571 = vmatpush3.bf16.msra.mxu0 %v15570_v26  ;;  %v17682_v42 = vpop.f32.mrb[20].mxu1  ;;  %v17684_v44 = vpop.f32.mrb[24].mxu0  ;;  %v2805_v25 = vrot.slane %v17571_v18, %v17689_v50  ;;  %v2647_v18 = vld [vmem:[%s19657_s12 + $0x400] sm:$0xff]  ;;  %v3318_v35 = vadd.f32 %v17655_v36, %v17744_v12 }
 0xb14   : > { %v17691_v55 = vpop.f32.mrb[21].mxu1  ;;  %v17693_v56 = vpop.f32.mrb[25].mxu0  ;;  %15541 = vmatprep.subr.bf16.mxu1 %v15540_v31  ;;  %15573 = vmatprep.subr.bf16.mxu0 %v15572_v32  ;;  %v15580_v31 = vpack.c.bf16 %v2646_v6, %v2645_v3  ;;  %v2630_v32 = vld [vmem:[%s19657_s12 + $0x378] sm:$0xff]  ;;  %v2697_v3 = vld [vmem:[%s19657_s12 + $0x590] sm:$0xff] }
 0xb15   : > { %v3162_v61 = vadd.f32 %v17620_v13, %v2805_v25  ;;  %v2698_v6 = vld [vmem:[%s19657_s12 + $0x598] sm:$0xff]  ;;  %v15586_v13 = vpack.c.bf16 %v2648_v38, %v2647_v18  ;;  %v2681_v18 = vld [vmem:[%s19657_s12 + $0x510] sm:$0xff] }
 0xb16   : > { %v2682_v38 = vld [vmem:[%s19657_s12 + $0x518] sm:$0xff] }
 0xb17   : > { %15543 = vmatpush3.bf16.msra.mxu1 %v15542_v0  ;;  %15575 = vmatpush3.bf16.msra.mxu0 %v15574_v46  ;;  %v17703_v8 = vpop.f32.mrb[22].mxu1  ;;  %v17705_v9 = vpop.f32.mrb[26].mxu0  ;;  %v15550_v0 = vpack.c.bf16 %v2598_v14, %v2597_v51  ;;  %v15582_v46 = vpack.c.bf16 %v2630_v32, %v2629_v15  ;;  %v17740_v51 = vrot.slane %v17722_v37, %v17574_v19  ;;  %v3484_v15 = vmax.f32 %v3085_v59, 0.0  ;;  %v2650_v32 = vld [vmem:[%s19657_s12 + $0x418] sm:$0xff] }
 0xb18   : > { %v17712_v26 = vpop.f32.mrb[23].mxu1  ;;  %v17714_v58 = vpop.f32.mrb[27].mxu0  ;;  %15545 = vmatprep.subr.bf16.mxu1 %v15544_v57  ;;  %15577 = vmatprep.subr.bf16.mxu0 %v15576_v48  ;;  %v2680_v57 = vld [vmem:[%s19657_s12 + $0x508] sm:$0xff]  ;;  %v2665_v48 = vld [vmem:[%s19657_s12 + $0x490] sm:$0xff] }
 0xb19   : > { %v15618_v14 = vpack.c.bf16 %v2680_v57, %v2679_v54  ;;  %v3241_v28 = vadd.f32 %v17653_v4, %v17740_v51  ;;  %v2652_v54 = vld [vmem:[%s19657_s12 + $0x428] sm:$0xff] }
 0xb1b   : > { %15547 = vmatpush3.bf16.msra.mxu1 %v15546_v10  ;;  %15579 = vmatpush3.bf16.msra.mxu0 %v15578_v11  ;;  %v3093_v10 = vadd.f32 %v17637_v47, %v17603_v45  ;;  %v3170_v11 = vadd.f32 %v17639_v49, %v17612_v5  ;;  %v15588_v45 = vpack.c.bf16 %v2666_v2, %v2665_v48  ;;  %v3486_v5 = vmax.f32 %v3162_v61, 0.0  ;;  %v2684_v2 = vld [vmem:[%s19657_s12 + $0x528] sm:$0xff] }
 0xb1c   : > { %15549 = vmatprep.subr.bf16.mxu1 %v15548_v1  ;;  %15581 = vmatprep.subr.bf16.mxu0 %v15580_v31  ;;  %v15620_v47 = vpack.c.bf16 %v2698_v6, %v2697_v3  ;;  %v3091_v49 = vadd.f32 %v17631_v40, %v2797_v16  ;;  %v3168_v1 = vadd.f32 %v17633_v41, %v2805_v25  ;;  %v2649_v31 = vld [vmem:[%s19657_s12 + $0x410] sm:$0xff]  ;;  %v2667_v40 = vld [vmem:[%s19657_s12 + $0x4a0] sm:$0xff]  ;;  %v2668_v41 = vld [vmem:[%s19657_s12 + $0x4a8] sm:$0xff]  ;;  %v3489_v57 = vmax.f32 %v3241_v28, 0.0 }
 0xb1d   : > { %v3501_v33 = vmax.f32 %v3093_v10, 0.0  ;;  %v3503_v34 = vmax.f32 %v3170_v11, 0.0  ;;  %v2699_v16 = vld [vmem:[%s19657_s12 + $0x5a0] sm:$0xff]  ;;  %v2700_v25 = vld [vmem:[%s19657_s12 + $0x5a8] sm:$0xff]  ;;  %v15590_v36 = vpack.c.bf16 %v2650_v32, %v2649_v31  ;;  %v3491_v48 = vmax.f32 %v3318_v35, 0.0  ;;  %v2669_v3 = vld [vmem:[%s19657_s12 + $0x4b0] sm:$0xff] }
 0xb1e   : > { %v3502_v4 = vmax.f32 %v3168_v1, 0.0  ;;  %v15592_v59 = vpack.c.bf16 %v2668_v41, %v2667_v40  ;;  %v15624_v61 = vpack.c.bf16 %v2700_v25, %v2699_v16  ;;  %v2670_v6 = vld [vmem:[%s19657_s12 + $0x4b8] sm:$0xff]  ;;  %v2701_v10 = vld [vmem:[%s19657_s12 + $0x5b0] sm:$0xff]  ;;  %v2671_v31 = vld [vmem:[%s19657_s12 + $0x4c0] sm:$0xff] }
 0xb1f   : > { %15551 = vmatpush3.bf16.msra.mxu1 %v15550_v0  ;;  %15583 = vmatpush3.bf16.msra.mxu0 %v15582_v46  ;;  %v3500_v0 = vmax.f32 %v3091_v49, 0.0  ;;  %v15622_v46 = vpack.c.bf16 %v2682_v38, %v2681_v18  ;;  %v2702_v11 = vld [vmem:[%s19657_s12 + $0x5b8] sm:$0xff]  ;;  %v2685_v49 = vld [vmem:[%s19657_s12 + $0x530] sm:$0xff]  ;;  %v2672_v32 = vld [vmem:[%s19657_s12 + $0x4c8] sm:$0xff] }
 0xb20   : > { %15585 = vmatprep.subr.bf16.mxu1 %v15584_v52  ;;  %15617 = vmatprep.subr.bf16.mxu0 %v15616_v62  ;;  %v2651_v52 = vld [vmem:[%s19657_s12 + $0x420] sm:$0xff]  ;;  %v2686_v1 = vld [vmem:[%s19657_s12 + $0x538] sm:$0xff]  ;;  %v2656_v38 = vld [vmem:[%s19657_s12 + $0x448] sm:$0xff]  ;;  %v15600_v40 = vpack.c.bf16 %v2672_v32, %v2671_v31 }
 0xb21   : > { %v2683_v62 = vld [vmem:[%s19657_s12 + $0x520] sm:$0xff]  ;;  %v15630_v35 = vpack.c.bf16 %v2686_v1, %v2685_v49  ;;  %v2688_v25 = vld [vmem:[%s19657_s12 + $0x548] sm:$0xff]  ;;  %v2677_v31 = vld [vmem:[%s19657_s12 + $0x4f0] sm:$0xff] }
 0xb22   : > { %3733 = vmatmul.mubr.f32.vlgmr.msra.gmra.mrb[28].mxu1 %v3484_v15  ;;  %3808 = vmatmul.mubr.f32.vlgmr.msra.gmra.mrb[32].mxu0 %v3486_v5  ;;  %v15596_v15 = vpack.c.bf16 %v2670_v6, %v2669_v3  ;;  %v15628_v5 = vpack.c.bf16 %v2702_v11, %v2701_v10  ;;  %v2655_v18 = vld [vmem:[%s19657_s12 + $0x440] sm:$0xff]  ;;  %v2676_v6 = vld [vmem:[%s19657_s12 + $0x4e8] sm:$0xff]  ;;  %v2678_v32 = vld [vmem:[%s19657_s12 + $0x4f8] sm:$0xff] }
 0xb23   : > { %3737 = vmatprep.mubr.f32.mxu1 %v3501_v33  ;;  %3812 = vmatprep.mubr.f32.mxu0 %v3503_v34  ;;  %v2703_v33 = vld [vmem:[%s19657_s12 + $0x5c0] sm:$0xff]  ;;  %v2704_v34 = vld [vmem:[%s19657_s12 + $0x5c8] sm:$0xff] }
 0xb24   : > { %15587 = vmatpush3.bf16.msra.mxu1 %v15586_v13  ;;  %15619 = vmatpush3.bf16.msra.mxu0 %v15618_v14  ;;  %v15594_v13 = vpack.c.bf16 %v2652_v54, %v2651_v52  ;;  %v15626_v14 = vpack.c.bf16 %v2684_v2, %v2683_v62  ;;  %v15632_v41 = vpack.c.bf16 %v2704_v34, %v2703_v33  ;;  %v2687_v16 = vld [vmem:[%s19657_s12 + $0x540] sm:$0xff]  ;;  %v2689_v62 = vld [vmem:[%s19657_s12 + $0x550] sm:$0xff]  ;;  %v2690_v2 = vld [vmem:[%s19657_s12 + $0x558] sm:$0xff] }
 0xb25   : > { %15589 = vmatprep.subr.bf16.mxu1 %v15588_v45  ;;  %15621 = vmatprep.subr.bf16.mxu0 %v15620_v47  ;;  %v2653_v45 = vld [vmem:[%s19657_s12 + $0x430] sm:$0xff]  ;;  %v2654_v47 = vld [vmem:[%s19657_s12 + $0x438] sm:$0xff]  ;;  %v15602_v52 = vpack.c.bf16 %v2656_v38, %v2655_v18  ;;  %v15634_v54 = vpack.c.bf16 %v2688_v25, %v2687_v16  ;;  %v2675_v3 = vld [vmem:[%s19657_s12 + $0x4e0] sm:$0xff]  ;;  %v2821_v16 = vrot.slane %v17722_v37, %v17568_v53 }
 0xb26   : > { %3738 = vmatmul.mubr.f32.gmra.mrb[30].mxu1 %v3500_v0  ;;  %3813 = vmatmul.mubr.f32.gmra.mrb[34].mxu0 %v3502_v4  ;;  %v15598_v28 = vpack.c.bf16 %v2654_v47, %v2653_v45  ;;  %v2673_v0 = vld [vmem:[%s19657_s12 + $0x4d0] sm:$0xff]  ;;  %v2674_v4 = vld [vmem:[%s19657_s12 + $0x4d8] sm:$0xff]  ;;  %v2707_v10 = vld [vmem:[%s19657_s12 + $0x5e0] sm:$0xff]  ;;  %v15612_v25 = vpack.c.bf16 %v2678_v32, %v2677_v31 }
 0xb27   : > { %3882 = vmatprep.mubr.f32.mxu1 %v3489_v57  ;;  %3957 = vmatprep.mubr.f32.mxu0 %v3491_v48  ;;  %v2657_v57 = vld [vmem:[%s19657_s12 + $0x450] sm:$0xff]  ;;  %v2658_v48 = vld [vmem:[%s19657_s12 + $0x458] sm:$0xff]  ;;  %v2708_v11 = vld [vmem:[%s19657_s12 + $0x5e8] sm:$0xff]  ;;  %v3322_v32 = vadd.f32 %v17665_v24, %v2821_v16 }
 0xb28   : > { %15591 = vmatpush3.bf16.msra.mxu1 %v15590_v36  ;;  %15623 = vmatpush3.bf16.msra.mxu0 %v15622_v46  ;;  %v2705_v36 = vld [vmem:[%s19657_s12 + $0x5d0] sm:$0xff]  ;;  %v2706_v46 = vld [vmem:[%s19657_s12 + $0x5d8] sm:$0xff]  ;;  %v2659_v45 = vld [vmem:[%s19657_s12 + $0x460] sm:$0xff] }
 0xb29   : > { %15593 = vmatprep.subr.bf16.mxu1 %v15592_v59  ;;  %15625 = vmatprep.subr.bf16.mxu0 %v15624_v61  ;;  %v15604_v59 = vpack.c.bf16 %v2674_v4, %v2673_v0  ;;  %v15636_v61 = vpack.c.bf16 %v2706_v46, %v2705_v36  ;;  %v2660_v47 = vld [vmem:[%s19657_s12 + $0x468] sm:$0xff]  ;;  %v2691_v49 = vld [vmem:[%s19657_s12 + $0x560] sm:$0xff]  ;;  %v2709_v33 = vld [vmem:[%s19657_s12 + $0x5f0] sm:$0xff] }
 0xb2a   : > { %v2692_v1 = vld [vmem:[%s19657_s12 + $0x568] sm:$0xff]  ;;  %v2710_v34 = vld [vmem:[%s19657_s12 + $0x5f8] sm:$0xff]  ;;  %v2661_v38 = vld [vmem:[%s19657_s12 + $0x470] sm:$0xff] }
 0xb2b   : > { %v15642_v18 = vpack.c.bf16 %v2692_v1, %v2691_v49  ;;  %v15644_v0 = vpack.c.bf16 %v2710_v34, %v2709_v33  ;;  %v2694_v4 = vld [vmem:[%s19657_s12 + $0x578] sm:$0xff]  ;;  %v2727_v36 = vld [vmem:[%s19657_s12 + $0x680] sm:$0xff]  ;;  %v2728_v46 = vld [vmem:[%s19657_s12 + $0x688] sm:$0xff]  ;;  %v17828_v49 = vrot.slane %v17722_v37, %v17590_v27 }
 0xb2c   : > { %15595 = vmatpush3.bf16.msra.mxu1 %v15594_v13  ;;  %15627 = vmatpush3.bf16.msra.mxu0 %v15626_v14  ;;  %v15606_v13 = vpack.c.bf16 %v2658_v48, %v2657_v57  ;;  %v15638_v14 = vpack.c.bf16 %v2690_v2, %v2689_v62  ;;  %v2711_v57 = vld [vmem:[%s19657_s12 + $0x600] sm:$0xff]  ;;  %v2712_v48 = vld [vmem:[%s19657_s12 + $0x608] sm:$0xff]  ;;  %v15648_v62 = vpack.c.bf16 %v2728_v46, %v2727_v36  ;;  %v2713_v33 = vld [vmem:[%s19657_s12 + $0x610] sm:$0xff] }
 0xb2d   : > { %15597 = vmatprep.subr.bf16.mxu1 %v15596_v15  ;;  %15629 = vmatprep.subr.bf16.mxu0 %v15628_v5  ;;  %v15608_v15 = vpack.c.bf16 %v2676_v6, %v2675_v3  ;;  %v15640_v5 = vpack.c.bf16 %v2708_v11, %v2707_v10  ;;  %v2743_v2 = vld [vmem:[%s19657_s12 + $0x700] sm:$0xff]  ;;  %v2744_v3 = vld [vmem:[%s19657_s12 + $0x708] sm:$0xff]  ;;  %v2729_v6 = vld [vmem:[%s19657_s12 + $0x690] sm:$0xff]  ;;  %v3316_v11 = vadd.f32 %v17649_v7, %v2821_v16 }
 0xb2e   : > { %v15650_v7 = vpack.c.bf16 %v2712_v48, %v2711_v57  ;;  %v15682_v1 = vpack.c.bf16 %v2744_v3, %v2743_v2  ;;  %v2714_v34 = vld [vmem:[%s19657_s12 + $0x618] sm:$0xff]  ;;  %v2732_v24 = vld [vmem:[%s19657_s12 + $0x6a8] sm:$0xff]  ;;  %v2715_v36 = vld [vmem:[%s19657_s12 + $0x620] sm:$0xff] }
 0xb2f   : > { %v2764_v16 = vld [vmem:[%s19657_s12 + $0x7a8] sm:$0xff]  ;;  %v2734_v2 = vld [vmem:[%s19657_s12 + $0x6b8] sm:$0xff]  ;;  %v2765_v3 = vld [vmem:[%s19657_s12 + $0x7b0] sm:$0xff] }
 0xb30   : > { %15599 = vmatpush3.bf16.msra.mxu1 %v15598_v28  ;;  %15631 = vmatpush3.bf16.msra.mxu0 %v15630_v35  ;;  %v2813_v28 = vrot.slane %v17722_v37, %v17565_v17  ;;  %v15610_v35 = vpack.c.bf16 %v2660_v47, %v2659_v45  ;;  %v2761_v45 = vld [vmem:[%s19657_s12 + $0x790] sm:$0xff]  ;;  %v2762_v47 = vld [vmem:[%s19657_s12 + $0x798] sm:$0xff]  ;;  %v2716_v46 = vld [vmem:[%s19657_s12 + $0x628] sm:$0xff] }
 0xb31   : > { %15601 = vmatprep.subr.bf16.mxu1 %v15600_v40  ;;  %15633 = vmatprep.subr.bf16.mxu0 %v15632_v41  ;;  %v2662_v40 = vld [vmem:[%s19657_s12 + $0x478] sm:$0xff]  ;;  %v2693_v41 = vld [vmem:[%s19657_s12 + $0x570] sm:$0xff] }
 0xb32   : > { %v3239_v10 = vadd.f32 %v17647_v60, %v2813_v28  ;;  %v17832_v60 = vrot.slane %v17722_v37, %v17599_v43 }
 0xb34   : > { %15603 = vmatpush3.bf16.msra.mxu1 %v15602_v52  ;;  %15635 = vmatpush3.bf16.msra.mxu0 %v15634_v54  ;;  %v2759_v52 = vld [vmem:[%s19657_s12 + $0x780] sm:$0xff]  ;;  %v2760_v54 = vld [vmem:[%s19657_s12 + $0x788] sm:$0xff]  ;;  %v3488_v31 = vmax.f32 %v3239_v10, 0.0  ;;  %v15658_v10 = vpack.c.bf16 %v2716_v46, %v2715_v36 }
 0xb35   : > { %15605 = vmatprep.subr.bf16.mxu1 %v15604_v59  ;;  %15637 = vmatprep.subr.bf16.mxu0 %v15636_v61  ;;  %v15614_v59 = vpack.c.bf16 %v2662_v40, %v2661_v38  ;;  %v15646_v61 = vpack.c.bf16 %v2694_v4, %v2693_v41  ;;  %v3395_v38 = vadd.f32 %v17691_v55, %v17828_v49  ;;  %v2745_v41 = vld [vmem:[%s19657_s12 + $0x710] sm:$0xff]  ;;  %v3506_v55 = vmax.f32 %v3322_v32, 0.0  ;;  %v2720_v32 = vld [vmem:[%s19657_s12 + $0x648] sm:$0xff]  ;;  %v2739_v36 = vld [vmem:[%s19657_s12 + $0x6e0] sm:$0xff] }
 0xb36   : > { %v3472_v40 = vadd.f32 %v17693_v56, %v17832_v60  ;;  %v15654_v56 = vpack.c.bf16 %v2714_v34, %v2713_v33  ;;  %v2740_v46 = vld [vmem:[%s19657_s12 + $0x6e8] sm:$0xff] }
 0xb38   : > { %15607 = vmatpush3.bf16.msra.mxu1 %v15606_v13  ;;  %15639 = vmatpush3.bf16.msra.mxu0 %v15638_v14  ;;  %v15680_v13 = vpack.c.bf16 %v2760_v54, %v2759_v52  ;;  %v2730_v14 = vld [vmem:[%s19657_s12 + $0x698] sm:$0xff]  ;;  %v3493_v52 = vmax.f32 %v3395_v38, 0.0  ;;  %v3495_v54 = vmax.f32 %v3472_v40, 0.0  ;;  %v2737_v38 = vld [vmem:[%s19657_s12 + $0x6d0] sm:$0xff] }
 0xb39   : > { %15609 = vmatprep.subr.bf16.mxu1 %v15608_v15  ;;  %15641 = vmatprep.subr.bf16.mxu0 %v15640_v5  ;;  %v3247_v15 = vadd.f32 %v17669_v29, %v17740_v51  ;;  %v3324_v5 = vadd.f32 %v17671_v30, %v17744_v12  ;;  %v15652_v29 = vpack.c.bf16 %v2730_v14, %v2729_v6  ;;  %v3490_v30 = vmax.f32 %v3316_v11, 0.0  ;;  %v2766_v6 = vld [vmem:[%s19657_s12 + $0x7b8] sm:$0xff] }
 0xb3a   : > { %v15684_v51 = vpack.c.bf16 %v2762_v47, %v2761_v45  ;;  %v3245_v12 = vadd.f32 %v17663_v21, %v2813_v28  ;;  %v2731_v21 = vld [vmem:[%s19657_s12 + $0x6a0] sm:$0xff]  ;;  %v2718_v14 = vld [vmem:[%s19657_s12 + $0x638] sm:$0xff]  ;;  %v15692_v47 = vpack.c.bf16 %v2766_v6, %v2765_v3  ;;  %v2756_v6 = vld [vmem:[%s19657_s12 + $0x768] sm:$0xff] }
 0xb3b   : > { %v2763_v28 = vld [vmem:[%s19657_s12 + $0x7a0] sm:$0xff]  ;;  %v15656_v57 = vpack.c.bf16 %v2732_v24, %v2731_v21  ;;  %v2738_v40 = vld [vmem:[%s19657_s12 + $0x6d8] sm:$0xff] }
 0xb3c   : > { %15611 = vmatpush3.bf16.msra.mxu1 %v15610_v35  ;;  %15643 = vmatpush3.bf16.msra.mxu0 %v15642_v18  ;;  %v3505_v35 = vmax.f32 %v3247_v15, 0.0  ;;  %v3507_v18 = vmax.f32 %v3324_v5, 0.0  ;;  %v15688_v48 = vpack.c.bf16 %v2764_v16, %v2763_v28  ;;  %v2749_v15 = vld [vmem:[%s19657_s12 + $0x730] sm:$0xff]  ;;  %v2750_v5 = vld [vmem:[%s19657_s12 + $0x738] sm:$0xff]  ;;  %v2755_v3 = vld [vmem:[%s19657_s12 + $0x760] sm:$0xff] }
 0xb3d   : > { %15613 = vmatprep.subr.bf16.mxu1 %v15612_v25  ;;  %15645 = vmatprep.subr.bf16.mxu0 %v15644_v0  ;;  %v2746_v25 = vld [vmem:[%s19657_s12 + $0x718] sm:$0xff]  ;;  %v3504_v0 = vmax.f32 %v3245_v12, 0.0  ;;  %v2719_v12 = vld [vmem:[%s19657_s12 + $0x640] sm:$0xff]  ;;  %v2721_v28 = vld [vmem:[%s19657_s12 + $0x650] sm:$0xff] }
 0xb3e   : > { %v15686_v4 = vpack.c.bf16 %v2746_v25, %v2745_v41  ;;  %v2769_v41 = vld [vmem:[%s19657_s12 + $0x7d0] sm:$0xff]  ;;  %v2770_v25 = vld [vmem:[%s19657_s12 + $0x7d8] sm:$0xff]  ;;  %v15666_v21 = vpack.c.bf16 %v2720_v32, %v2719_v12 }
 0xb3f   : > { %v2722_v16 = vld [vmem:[%s19657_s12 + $0x658] sm:$0xff] }
 0xb40   : > { %15615 = vmatpush3.bf16.msra.mxu1 %v15614_v59  ;;  %15647 = vmatpush3.bf16.msra.mxu0 %v15646_v61  ;;  %v2747_v59 = vld [vmem:[%s19657_s12 + $0x720] sm:$0xff]  ;;  %v2748_v61 = vld [vmem:[%s19657_s12 + $0x728] sm:$0xff] }
 0xb41   : > { %15649 = vmatprep.subr.bf16.mxu1 %v15648_v62  ;;  %15681 = vmatprep.subr.bf16.mxu0 %v15680_v13  ;;  %v2733_v62 = vld [vmem:[%s19657_s12 + $0x6b0] sm:$0xff]  ;;  %v15690_v11 = vpack.c.bf16 %v2748_v61, %v2747_v59  ;;  %v2723_v59 = vld [vmem:[%s19657_s12 + $0x660] sm:$0xff]  ;;  %v2724_v61 = vld [vmem:[%s19657_s12 + $0x668] sm:$0xff] }
 0xb42   : > { %v2717_v13 = vld [vmem:[%s19657_s12 + $0x630] sm:$0xff]  ;;  %v15660_v45 = vpack.c.bf16 %v2734_v2, %v2733_v62  ;;  %v15672_v62 = vpack.c.bf16 %v2740_v46, %v2739_v36 }
 0xb43   : > { %3883 = vmatmul.mubr.f32.vlgmr.msra.gmra.mrb[32].mxu1 %v3488_v31  ;;  %3958 = vmatmul.mubr.f32.vlgmr.msra.gmra.mrb[36].mxu0 %v3490_v30  ;;  %v15662_v31 = vpack.c.bf16 %v2718_v14, %v2717_v13  ;;  %v15694_v30 = vpack.c.bf16 %v2750_v5, %v2749_v15  ;;  %v2773_v13 = vld [vmem:[%s19657_s12 + $0x7f0] sm:$0xff]  ;;  %v2774_v14 = vld [vmem:[%s19657_s12 + $0x7f8] sm:$0xff]  ;;  %v15706_v15 = vpack.c.bf16 %v2756_v6, %v2755_v3 }
 0xb44   : > { %3887 = vmatprep.mubr.f32.mxu1 %v3505_v35  ;;  %3962 = vmatprep.mubr.f32.mxu0 %v3507_v18  ;;  %v2751_v35 = vld [vmem:[%s19657_s12 + $0x740] sm:$0xff]  ;;  %v2752_v18 = vld [vmem:[%s19657_s12 + $0x748] sm:$0xff]  ;;  %v2725_v5 = vld [vmem:[%s19657_s12 + $0x670] sm:$0xff] }
 0xb45   : > { %15651 = vmatpush3.bf16.msra.mxu1 %v15650_v7  ;;  %15683 = vmatpush3.bf16.msra.mxu0 %v15682_v1  ;;  %v2735_v7 = vld [vmem:[%s19657_s12 + $0x6c0] sm:$0xff]  ;;  %v2736_v1 = vld [vmem:[%s19657_s12 + $0x6c8] sm:$0xff]  ;;  %v15698_v24 = vpack.c.bf16 %v2752_v18, %v2751_v35  ;;  %v3478_v35 = vadd.f32 %v17714_v58, %v17832_v60  ;;  %v17017_v58 = vmov 0.0|0.0  }
 0xb46   : > { %15653 = vmatprep.subr.bf16.mxu1 %v15652_v29  ;;  %15685 = vmatprep.subr.bf16.mxu0 %v15684_v51  ;;  %v2767_v29 = vld [vmem:[%s19657_s12 + $0x7c0] sm:$0xff]  ;;  %v2768_v51 = vld [vmem:[%s19657_s12 + $0x7c8] sm:$0xff]  ;;  %v15664_v33 = vpack.c.bf16 %v2736_v1, %v2735_v7  ;;  %v2837_v7 = vrot.slane %v17722_v37, %v17689_v50 }
 0xb47   : > { %3888 = vmatmul.mubr.f32.gmra.mrb[34].mxu1 %v3504_v0  ;;  %3963 = vmatmul.mubr.f32.gmra.mrb[38].mxu0 %v3506_v55  ;;  %v15696_v34 = vpack.c.bf16 %v2768_v51, %v2767_v29  ;;  %v15668_v0 = vpack.c.bf16 %v2738_v40, %v2737_v38  ;;  %v15700_v55 = vpack.c.bf16 %v2770_v25, %v2769_v41  ;;  %v2726_v51 = vld [vmem:[%s19657_s12 + $0x678] sm:$0xff] }
 0xb48   : > { %4032 = vmatprep.mubr.f32.mxu1 %v3493_v52  ;;  %4107 = vmatprep.mubr.f32.mxu0 %v3495_v54  ;;  %v2771_v52 = vld [vmem:[%s19657_s12 + $0x7e0] sm:$0xff]  ;;  %v2772_v54 = vld [vmem:[%s19657_s12 + $0x7e8] sm:$0xff]  ;;  %v15708_v29 = vpack.c.bf16 %v2774_v14, %v2773_v13  ;;  %v15678_v12 = vpack.c.bf16 %v2726_v51, %v2725_v5  ;;  %v3476_v41 = vadd.f32 %v17705_v9, %v2837_v7 }
 0xb49   : > { %15655 = vmatpush3.bf16.msra.mxu1 %v15654_v56  ;;  %15687 = vmatpush3.bf16.msra.mxu0 %v15686_v4  ;;  %v2753_v56 = vld [vmem:[%s19657_s12 + $0x750] sm:$0xff]  ;;  %v2754_v4 = vld [vmem:[%s19657_s12 + $0x758] sm:$0xff]  ;;  %v15704_v2 = vpack.c.bf16 %v2772_v54, %v2771_v52 }
 0xb4a   : > { %15657 = vmatprep.subr.bf16.mxu1 %v15656_v57  ;;  %15689 = vmatprep.subr.bf16.mxu0 %v15688_v48  ;;  %v15670_v57 = vpack.c.bf16 %v2722_v16, %v2721_v28  ;;  %v15702_v48 = vpack.c.bf16 %v2754_v4, %v2753_v56 }
 0xb4d   : > { %15659 = vmatpush3.bf16.msra.mxu1 %v15658_v10  ;;  %15691 = vmatpush3.bf16.msra.mxu0 %v15690_v11  ;;  %v2741_v10 = vld [vmem:[%s19657_s12 + $0x6f0] sm:$0xff]  ;;  %v2742_v11 = vld [vmem:[%s19657_s12 + $0x6f8] sm:$0xff] }
 0xb4e   : > { %15661 = vmatprep.subr.bf16.mxu1 %v15660_v45  ;;  %15693 = vmatprep.subr.bf16.mxu0 %v15692_v47  ;;  %v2829_v45 = vrot.slane %v17722_v37, %v17680_v39  ;;  %v15674_v47 = vpack.c.bf16 %v2724_v61, %v2723_v59  ;;  %v15676_v1 = vpack.c.bf16 %v2742_v11, %v2741_v10 }
 0xb4f   : > { %v3401_v37 = vadd.f32 %v17712_v26, %v17828_v49  ;;  %v3510_v26 = vmax.f32 %v3476_v41, 0.0  ;;  %v12901_v49 = vld [vmem:[%s17102_s20] ss:$0 sm:$0xff] }
 0xb50   : > { %v3399_v40 = vadd.f32 %v17703_v8, %v2829_v45 }
 0xb51   : > { %15663 = vmatpush3.bf16.msra.mxu1 %v15662_v31  ;;  %15695 = vmatpush3.bf16.msra.mxu0 %v15694_v30  ;;  %v2757_v31 = vld [vmem:[%s19657_s12 + $0x770] sm:$0xff]  ;;  %v2758_v30 = vld [vmem:[%s19657_s12 + $0x778] sm:$0xff]  ;;  %v3509_v25 = vmax.f32 %v3401_v37, 0.0 }
 0xb52   : > { %15665 = vmatprep.subr.bf16.mxu1 %v15664_v33  ;;  %15697 = vmatprep.subr.bf16.mxu0 %v15696_v34  ;;  %v15710_v32 = vpack.c.bf16 %v2758_v30, %v2757_v31  ;;  %v3393_v33 = vadd.f32 %v17682_v42, %v2829_v45  ;;  %v3470_v34 = vadd.f32 %v17684_v44, %v2837_v7  ;;  %v3511_v42 = vmax.f32 %v3478_v35, 0.0 }
 0xb53   : > { %v3508_v44 = vmax.f32 %v3399_v40, 0.0 }
 0xb54   : > { %v3492_v18 = vmax.f32 %v3393_v33, 0.0  ;;  %v3494_v38 = vmax.f32 %v3470_v34, 0.0 }
 0xb55   : > { %15667 = vmatpush3.bf16.msra.mxu1 %v15666_v21  ;;  %15699 = vmatpush3.bf16.msra.mxu0 %v15698_v24 }
 0xb56   : > { %15669 = vmatprep.subr.bf16.mxu1 %v15668_v0  ;;  %15701 = vmatprep.subr.bf16.mxu0 %v15700_v55 }
 0xb59   : > { %15671 = vmatpush3.bf16.msra.mxu1 %v15670_v57  ;;  %15703 = vmatpush3.bf16.msra.mxu0 %v15702_v48 }
 0xb5a   : > { %15673 = vmatprep.subr.bf16.mxu1 %v15672_v62  ;;  %15705 = vmatprep.subr.bf16.mxu0 %v15704_v2 }
 0xb5d   : > { %15675 = vmatpush3.bf16.msra.mxu1 %v15674_v47  ;;  %15707 = vmatpush3.bf16.msra.mxu0 %v15706_v15 }
 0xb5e   : > { %15677 = vmatprep.subr.bf16.mxu1 %v15676_v1  ;;  %15709 = vmatprep.subr.bf16.mxu0 %v15708_v29 }
 0xb61   : > { %15679 = vmatpush3.bf16.msra.mxu1 %v15678_v12  ;;  %15711 = vmatpush3.bf16.msra.mxu0 %v15710_v32 }
 0xb62   : > { %15712 = vmatprep.subr.bf16.mxu1 %v17017_v58  ;;  %15715 = vmatprep.subr.bf16.mxu0 %v17017_v58 }
 0xb64   : > { %4033 = vmatmul.mubr.f32.vlgmr.msra.gmra.mrb[36].mxu1 %v3492_v18  ;;  %4108 = vmatmul.mubr.f32.vlgmr.msra.gmra.mrb[40].mxu0 %v3494_v38 }
 0xb65   : > { %4037 = vmatprep.mubr.f32.mxu1 %v3509_v25  ;;  %4112 = vmatprep.mubr.f32.mxu0 %v3511_v42 }
 0xb68   : > { %4038 = vmatmul.mubr.f32.gmra.mrb[38].mxu1 %v3508_v44  ;;  %4113 = vmatmul.mubr.f32.gmra.mrb[42].mxu0 %v3510_v26 }
 0xb69   : > { %15090 = vmatprep.mubr.msk.f32.mxu1 %vm17018_vm12, %v17016_v63  ;;  %15101 = vmatprep.mubr.msk.f32.mxu0 %vm17018_vm12, %v17016_v63 }
 0xbd5   : > { %v13780_v8 = vpop.f32.mrb[24].mxu1  ;;  %v13818_v9 = vpop.f32.mrb[28].mxu0 }
 0xbd6   : > { %v13781_v60 = vpop.f32.mrb[25].mxu1  ;;  %v13819_v21 = vpop.f32.mrb[29].mxu0 }
 0xbd7   : > { %v13782_v24 = vadd.f32 %v13781_v60, %v13780_v8  ;;  %v13820_v28 = vadd.f32 %v13819_v21, %v13818_v9 }
 0xbd9   : > { %v3585_v16 = vadd.f32 %v13782_v24, %v12901_v49  ;;  %v13783_v0 = vpop.f32.mrb[26].mxu1  ;;  %v13821_v55 = vpop.f32.mrb[30].mxu0 }
 0xbda   : > { %v13784_v56 = vpop.f32.mrb[27].mxu1  ;;  %v13822_v4 = vpop.f32.mrb[31].mxu0 }
 0xbdb   : > { %v3660_v36 = vadd.f32 %v13820_v28, %v3585_v16  ;;  %v13785_v46 = vadd.f32 %v13784_v56, %v13783_v0  ;;  %v13823_v52 = vadd.f32 %v13822_v4, %v13821_v55 }
 0xbdd   : > { %v3590_v54 = vadd.f32 %v13785_v46, %v12901_v49 }
 0xbdf   : > { %v3665_v57 = vadd.f32 %v13823_v52, %v3590_v54 }
 0xbf5   : > { %v13856_v48 = vpop.f32.mrb[28].mxu1  ;;  %v13894_v59 = vpop.f32.mrb[32].mxu0 }
 0xbf6   : > { %v13857_v61 = vpop.f32.mrb[29].mxu1  ;;  %v13895_v62 = vpop.f32.mrb[33].mxu0 }
 0xbf7   : > { %v13858_v2 = vadd.f32 %v13857_v61, %v13856_v48  ;;  %v13896_v3 = vadd.f32 %v13895_v62, %v13894_v59 }
 0xbf9   : > { %v3735_v6 = vadd.f32 %v13858_v2, %v3660_v36  ;;  %v13859_v10 = vpop.f32.mrb[30].mxu1  ;;  %v13897_v11 = vpop.f32.mrb[34].mxu0 }
 0xbfa   : > { %v13860_v13 = vpop.f32.mrb[31].mxu1  ;;  %v13898_v14 = vpop.f32.mrb[35].mxu0 }
 0xbfb   : > { %v3810_v45 = vadd.f32 %v13896_v3, %v3735_v6  ;;  %v13861_v47 = vadd.f32 %v13860_v13, %v13859_v10  ;;  %v13899_v15 = vadd.f32 %v13898_v14, %v13897_v11  ;;  %v12908_v6 = vld [vmem:[%s17057_s29 + $0x20] sm:$0xff]  ;;  %v12909_v10 = vld [vmem:[%s17057_s29 + $0x28] sm:$0xff]  ;;  %v12910_v11 = vld [vmem:[%s17057_s29 + $0x30] sm:$0xff] }
 0xbfc   : > { %v15716_v13 = vpack.c.bf16 %v12909_v10, %v12908_v6  ;;  %v12911_v14 = vld [vmem:[%s17057_s29 + $0x38] sm:$0xff] }
 0xbfd   : > { %v3740_v5 = vadd.f32 %v13861_v47, %v3665_v57  ;;  %v4120_v57 = vld [vmem:[%s19665_s2] sm:$0xff] }
 0xbfe   : > { %15717 = vmatpush3.bf16.msra.mxu0 %v15716_v13 }
 0xbff   : > { %v3815_v7 = vadd.f32 %v13899_v15, %v3740_v5  ;;  %15718 = vmatprep.subr.bf16.mxu0 %v17017_v58 }
 0xc16   : > { %v13932_v1 = vpop.f32.mrb[32].mxu1  ;;  %v13970_v29 = vpop.f32.mrb[36].mxu0 }
 0xc17   : > { %v13933_v51 = vpop.f32.mrb[33].mxu1  ;;  %v13971_v31 = vpop.f32.mrb[37].mxu0 }
 0xc18   : > { %v13934_v30 = vadd.f32 %v13933_v51, %v13932_v1  ;;  %v13972_v12 = vadd.f32 %v13971_v31, %v13970_v29 }
 0xc1a   : > { %v3885_v32 = vadd.f32 %v13934_v30, %v3810_v45  ;;  %v13935_v33 = vpop.f32.mrb[34].mxu1  ;;  %v13973_v34 = vpop.f32.mrb[38].mxu0  ;;  %v15719_v45 = vpack.c.bf16 %v12911_v14, %v12910_v11  ;;  %v12906_v30 = vld [vmem:[%s17047_s21 + $0x1] ss:$0 sm:$0xff] }
 0xc1b   : > { %v13936_v37 = vpop.f32.mrb[35].mxu1  ;;  %v13974_v35 = vpop.f32.mrb[39].mxu0  ;;  %v12913_v14 = vld [vmem:[%s19658_s8 + $0x20] sm:$0xff] }
 0xc1c   : > { %v3960_v18 = vadd.f32 %v13972_v12, %v3885_v32  ;;  %v13937_v38 = vadd.f32 %v13936_v37, %v13935_v33  ;;  %v13975_v40 = vadd.f32 %v13974_v35, %v13973_v34  ;;  %15720 = vmatpush3.bf16.msra.mxu0 %v15719_v45  ;;  %v12907_v33 = vld [vmem:[%s17052_s25 + $0x1] ss:$0 sm:$0xff] }
 0xc1d   : > { %15114 = vmatprep.subr.mxu0 %v17016_v63  ;;  %v12918_v35 = vld [vmem:[%s19660_s3 + $0x1] ss:$0 sm:$0xff]  ;;  %s19681_s3 = sld [smem:[#allocation21_spill]] }
 0xc1e   : > { %v3890_v41 = vadd.f32 %v13937_v38, %v3815_v7 }
 0xc20   : > { %v3965_v25 = vadd.f32 %v13975_v40, %v3890_v41 }
 0xc37   : > { %v14008_v42 = vpop.f32.mrb[36].mxu1  ;;  %v14046_v44 = vpop.f32.mrb[40].mxu0 }
 0xc38   : > { %v14009_v26 = vpop.f32.mrb[37].mxu1  ;;  %v14047_v8 = vpop.f32.mrb[41].mxu0 }
 0xc39   : > { %v14010_v9 = vadd.f32 %v14009_v26, %v14008_v42  ;;  %v14048_v49 = vadd.f32 %v14047_v8, %v14046_v44  ;;  %v17956_v26 = vld [vmem:[%s17282_s7 + $0x1] ss:$0 sm:$0xff] }
 0xc3b   : > { %v4035_v60 = vadd.f32 %v14010_v9, %v3960_v18  ;;  %v14011_v21 = vpop.f32.mrb[38].mxu1  ;;  %v14049_v24 = vpop.f32.mrb[42].mxu0 }
 0xc3c   : > { %v14012_v28 = vpop.f32.mrb[39].mxu1  ;;  %v14050_v16 = vpop.f32.mrb[43].mxu0 }
 0xc3d   : > { %v4110_v0 = vadd.f32 %v14048_v49, %v4035_v60  ;;  %v14013_v55 = vadd.f32 %v14012_v28, %v14011_v21  ;;  %v14051_v56 = vadd.f32 %v14050_v16, %v14049_v24 }
 0xc3f   : > { %v4040_v4 = vadd.f32 %v14013_v55, %v3965_v25  ;;  %v4118_v46 = vadd.f32 %v4110_v0, %v17356_v23 }
 0xc41   : > { %v4115_v36 = vadd.f32 %v14051_v56, %v4040_v4 }
 0xc43   : > { %v4119_v52 = vadd.f32 %v4115_v36, %v17353_v22 }
 0xc45   : > { %v15713_v54 = vpack.c.bf16 %v4119_v52, %v4118_v46 }
 0xc47   : > { %15714 = vmatpush3.bf16.msra.mxu1 %v15713_v54 }
 0xc48   : > { %15104 = vmatprep.subr.mxu1 %v17016_v63 }
 0xc4a   : > { %15091 = vmatmul.mubr.msk.f32.vlgmr.msra.gmra.mrb[40].mxu1 %vm1335_vm7, %v4120_v57 }
 0xc4b   : > { %15106 = vmatprep.mubr.msk.f32.mxu1 %vm17018_vm12, %v17016_v63 }
 0xd1d   : > { %v17918_v48 = vpop.f32.mrb[40].mxu1 }
 0xd1e   : > { %v4200_v23 = vsel %vm1080_vm0, %v17918_v48, 0.0  ;;  %v15092_v22 = vpop.f32.mrb[41].mxu1 }
 0xd1f   : > { %4201 = vadd.xlane.f32.xlu0 %v4200_v23 }
 0xdac   : > { %v4202_v59 = vpop.xlane.xlu0 %4201 }
 0xdad   : > { %v4203_v61 = vmul.f32 0.03125, %v4202_v59 }
 0xdaf   : > { %v4204_v62 = vsub.f32 %v17918_v48, %v4203_v61  ;;  %v12914_v61 = vld [vmem:[%s19658_s8 + $0x28] sm:$0xff] }
 0xdb1   : > { %v4205_v2 = vmul.f32 %v4204_v62, %v4204_v62  ;;  %v4216_v12 = vmul.f32 %v12906_v30, %v4204_v62 }
 0xdb3   : > { %v4206_v3 = vsel %vm1080_vm0, %v4205_v2, 0.0 }
 0xdb4   : > { %4207 = vadd.xlane.f32.xlu0 %v4206_v3 }
 0xe41   : > { %v4208_v47 = vpop.xlane.xlu0 %4207 }
 0xe42   : > { %v4209_v15 = vmul.f32 0.032258064, %v4208_v47 }
 0xe44   : > { %16882 = vrsqrt.f32 %v4209_v15  ;;  %vm4219_vm13 = vcmp.eq.f32.partialorder %v4209_v15, inf  ;;  %v4222_v1 = vand.u32 2147483648, %v4209_v15  ;;  %vm4221_vm14 = vcmp.eq.f32.partialorder %v4209_v15, 0.0 }
 0xe4e   : > { %v16883_v5 = vpop.eup %16882 }
 0xe4f   : > { %v4218_v7 = vmul.f32 %v16883_v5, %v4209_v15 }
 0xe51   : > { %v4220_v29 = vsel %vm4219_vm13, %v4209_v15, %v4218_v7 }
 0xe52   : > { %v4223_v51 = vsel %vm4221_vm14, %v4222_v1, %v4220_v29 }
 0xe53   : > { %v4224_v31 = vadd.f32 1e-06, %v4223_v51 }
 0xe55   : > { %16884 = vrcp.f32 %v4224_v31 }
 0xe5f   : > { %v16885_v32 = vpop.eup %16884 }
 0xe60   : > { %v4226_v34 = vmul.f32 %v16885_v32, %v4216_v12 }
 0xe62   : > { %v4233_v37 = vadd.f32 %v12907_v33, %v4226_v34 }
 0xe64   : > { %15102 = vmatmul.mubr.msk.f32.vlgmr.msra.gmra.mrb[44].mxu0 %vm1080_vm0, %v4233_v37 }
 0xe65   : > { %15116 = vmatprep.mubr.msk.f32.mxu0 %vm17018_vm12, %v17016_v63 }
 0xf37   : > { %v4323_v18 = vpop.f32.mrb[44].mxu0 }
 0xf38   : > { %v17936_v38 = vadd.f32 %v12918_v35, %v4323_v18  ;;  %v15103_v40 = vpop.f32.mrb[45].mxu0 }
 0xf3a   : > { %4501 = vrot.lane.b32.xlu1 %v17936_v38, %s19620_s22  ;;  %4328 = vrot.lane.b32.xlu0 %v17936_v38, %s19623_s23 }
 0xf3e   : > { %4499 = vrot.lane.b32.xlu1 %v17936_v38, %s19621_s26 }
 0xfac   : > { %v4502_v41 = vpop.permute.xlu1 %4501  ;;  %v4329_v25 = vpop.permute.xlu0 %4328 }
 0xfad   : > { %15105 = vmatpush3.xpose.msk.msra.mxu1 %vm1241_vm5, %v4329_v25  ;;  %15115 = vmatpush3.xpose.msk.msra.mxu0 %vm1241_vm5, %v4502_v41 }
 0xfae   : > { %15109 = vmatprep.subr.mxu1 %v17016_v63  ;;  %15124 = vmatprep.subr.mxu0 %v17016_v63 }
 0xfb0   : > { %v4500_v42 = vpop.permute.xlu1 %4499  ;;  %15107 = vmatmul.mubr.msk.f32.vlgmr.msra.gmra.mrb[42].mxu1 %vm1241_vm5, %v17936_v38 }
 0xfb1   : > { %15117 = vmatmul.mubr.msk.f32.vlgmr.msra.gmra.mrb[46].mxu0 %vm1241_vm5, %v4500_v42  ;;  %15111 = vmatprep.mubr.msk.f32.mxu1 %vm17018_vm12, %v17016_v63 }
 0xfb2   : > { %15126 = vmatprep.mubr.msk.f32.mxu0 %vm17018_vm12, %v17016_v63  ;;  %15125 = vmatpush3.msra.mxu0 %v12914_v61 }
 0xfb3   : > { %15134 = vmatprep.subr.mxu0 %v17016_v63 }
0x1083   : > { %v4400_v44 = vpop.f32.mrb[42].mxu1 }
0x1084   : > { %v4404_v8 = vmul.f32 0.35355338, %v4400_v44  ;;  %v15108_v9 = vpop.f32.mrb[43].mxu1  ;;  %v4573_v49 = vpop.f32.mrb[46].mxu0 }
0x1085   : > { %v4577_v60 = vmul.f32 0.35355338, %v4573_v49  ;;  %v15118_v21 = vpop.f32.mrb[47].mxu0 }
0x1086   : > { %v4411_v24 = vadd.f32 %v17956_v26, %v4404_v8 }
0x1087   : > { %v4578_v28 = vadd.f32 %v17956_v26, %v4577_v60 }
0x1088   : > { %v4412_v16 = vsel %vm1241_vm5, %v4411_v24, -inf }
0x1089   : > { %4413 = vmax.xlane.f32.xlu1 %v4412_v16  ;;  %v4579_v0 = vsel %vm1241_vm5, %v4578_v28, -inf }
0x108a   : > { %4580 = vmax.xlane.f32.xlu0 %v4579_v0 }
0x109a   : > { %4423 = vrot.lane.b32.xlu1 %v17936_v38, %s17010_s10  ;;  %s19666_s10 = smov 48  }
0x109e   : > { %4814 = vrot.lane.b32.xlu1 %v17936_v38, %s19613_s28 }
0x10a2   : > { %4812 = vrot.lane.b32.xlu1 %v17936_v38, %s19618_s1  ;;  %s19674_s1 = sld [smem:[#allocation14_spill]] }
0x1116   : > { %v4414_v55 = vpop.xlane.xlu1 %4413 }
0x1117   : > { %v4415_v56 = vsub.f32 %v4411_v24, %v4414_v55  ;;  %v4581_v4 = vpop.xlane.xlu0 %4580  ;;  %v12915_v24 = vld [vmem:[%s19658_s8 + $0x30] sm:$0xff] }
0x1118   : > { %v4582_v36 = vsub.f32 %v4578_v28, %v4581_v4 }
0x1119   : > { %v4416_v46 = vmul.f32 1.442695, %v4415_v56 }
0x111a   : > { %v4583_v52 = vmul.f32 1.442695, %v4582_v36  ;;  %v4424_v54 = vpop.permute.xlu1 %4423 }
0x111b   : > { %16886 = vpow2.f32 %v4416_v46  ;;  %15110 = vmatpush3.msra.mxu1 %v4424_v54 }
0x111c   : > { %15119 = vmatprep.subr.mxu1 %v17016_v63  ;;  %16888 = vpow2.f32 %v4583_v52 }
0x111e   : > { %v4815_v15 = vpop.permute.xlu1 %4814 }
0x1122   : > { %v4813_v1 = vpop.permute.xlu1 %4812 }
0x1125   : > { %v16887_v57 = vpop.eup %16886 }
0x1126   : > { %v4418_v23 = vsel %vm1241_vm5, %v16887_v57, 0.0  ;;  %v16889_v22 = vpop.eup %16888 }
0x1127   : > { %4419 = vadd.xlane.f32.xlu0 %v4418_v23  ;;  %v4585_v59 = vsel %vm1241_vm5, %v16889_v22, 0.0 }
0x112b   : > { %4586 = vadd.xlane.f32.xlu0 %v4585_v59 }
0x1141   : > { %4590 = vrot.lane.b32.xlu0 %v17936_v38, %s17013_s18  ;;  %s19667_s18 = smov 40  }
0x11b4   : > { %v4420_v62 = vpop.xlane.xlu0 %4419 }
0x11b5   : > { %16890 = vrcp.f32 %v4420_v62 }
0x11b8   : > { %v4587_v2 = vpop.xlane.xlu0 %4586 }
0x11b9   : > { %16892 = vrcp.f32 %v4587_v2 }
0x11bc   : > { %v4591_v10 = vpop.permute.xlu0 %4590 }
0x11bf   : > { %v16891_v3 = vpop.eup %16890 }
0x11c0   : > { %v4422_v6 = vmul.f32 %v16891_v3, %v16887_v57 }
0x11c2   : > { %15112 = vmatmul.mubr.msk.f32.vlgmr.msra.gmra.mrb[44].mxu1 %vm1241_vm5, %v4422_v6 }
0x11c3   : > { %v16893_v11 = vpop.eup %16892  ;;  %15120 = vmatpush3.msra.mxu1 %v4591_v10  ;;  %15121 = vmatprep.mubr.msk.f32.mxu1 %vm17018_vm12, %v17016_v63 }
0x11c4   : > { %v4589_v13 = vmul.f32 %v16893_v11, %v16889_v22  ;;  %15129 = vmatprep.subr.mxu1 %v17016_v63  ;;  %v12937_v11 = vld [vmem:[%s19656_s14 + $0x1] ss:$0 sm:$0xff]  ;;  %s19687_s14 = smov 96  }
0x11c6   : > { %15122 = vmatmul.mubr.msk.f32.vlgmr.msra.gmra.mrb[46].mxu1 %vm1241_vm5, %v4589_v13 }
0x11c7   : > { %15131 = vmatprep.mubr.msk.f32.mxu1 %vm17018_vm12, %v17016_v63  ;;  %15130 = vmatpush3.msra.mxu1 %v12913_v14 }
0x11c8   : > { %15139 = vmatprep.subr.mxu1 %v17016_v63 }
0x1295   : > { %v4495_v45 = vpop.f32.mrb[44].mxu1 }
0x1296   : > { %v15113_v47 = vpop.f32.mrb[45].mxu1  ;;  %15132 = vmatmul.mubr.msk.f32.vlgmr.msra.gmra.mrb[48].mxu1 %vm1241_vm5, %v4495_v45 }
0x1297   : > { %15141 = vmatprep.mubr.msk.f32.mxu1 %vm17018_vm12, %v17016_v63 }
0x1299   : > { %v4662_v5 = vpop.f32.mrb[46].mxu1 }
0x129a   : > { %v15123_v7 = vpop.f32.mrb[47].mxu1  ;;  %15127 = vmatmul.mubr.msk.f32.vlgmr.msra.gmra.mrb[48].mxu0 %vm1241_vm5, %v4662_v5 }
0x129b   : > { %15135 = vmatpush3.xpose.msk.msra.mxu0 %vm1241_vm5, %v4815_v15  ;;  %15136 = vmatprep.mubr.msk.f32.mxu0 %vm17018_vm12, %v17016_v63 }
0x129c   : > { %15144 = vmatprep.subr.mxu0 %v17016_v63 }
0x129e   : > { %15137 = vmatmul.mubr.msk.f32.vlgmr.msra.gmra.mrb[50].mxu0 %vm1241_vm5, %v4813_v1 }
0x129f   : > { %15146 = vmatprep.mubr.msk.f32.mxu0 %vm17018_vm12, %v17016_v63  ;;  %15145 = vmatpush3.msra.mxu0 %v12915_v24 }
0x12a0   : > { %15154 = vmatprep.subr.mxu0 %v17016_v63 }
0x1369   : > { %v4808_v29 = vpop.f32.mrb[48].mxu1 }
0x136a   : > { %v15133_v51 = vpop.f32.mrb[49].mxu1 }
0x136d   : > { %v4735_v31 = vpop.f32.mrb[48].mxu0 }
0x136e   : > { %v4809_v30 = vadd.f32 %v4808_v29, %v4735_v31  ;;  %v15128_v12 = vpop.f32.mrb[49].mxu0 }
0x136f   : > { %v12959_v12 = vld [vmem:[%s17087_s30 + $0x288] sm:$0xff] }
0x1371   : > { %v4886_v32 = vpop.f32.mrb[50].mxu0 }
0x1372   : > { %v4890_v33 = vmul.f32 0.35355338, %v4886_v32  ;;  %v15138_v34 = vpop.f32.mrb[51].mxu0 }
0x1373   : > { %v12942_v34 = vld [vmem:[%s17087_s30 + $0x200] sm:$0xff] }
0x1374   : > { %v4891_v37 = vadd.f32 %v17956_v26, %v4890_v33  ;;  %v12961_v33 = vld [vmem:[%s17087_s30 + $0x298] sm:$0xff] }
0x1376   : > { %v4892_v35 = vsel %vm1241_vm5, %v4891_v37, -inf }
0x1377   : > { %4893 = vmax.xlane.f32.xlu1 %v4892_v35 }
0x1388   : > { %5055 = vrot.lane.b32.xlu1 %v17936_v38, %s19611_s11  ;;  %s19615_s11 = sshll.u32 %s19693_s16, 3 }
0x138c   : > { %5053 = vrot.lane.b32.xlu1 %v17936_v38, %s19616_s0  ;;  %s19673_s0 = sld [smem:[#allocation12_spill]] }
0x1404   : > { %v4894_v18 = vpop.xlane.xlu1 %4893 }
0x1405   : > { %v4895_v40 = vsub.f32 %v4891_v37, %v4894_v18  ;;  %v12958_v37 = vld [vmem:[%s17087_s30 + $0x280] sm:$0xff] }
0x1406   : > { %v15723_v18 = vpack.c.bf16 %v12958_v37, %v12942_v34  ;;  %v12980_v34 = vld [vmem:[%s17087_s30 + $0x330] sm:$0xff] }
0x1407   : > { %v4896_v41 = vmul.f32 1.442695, %v4895_v40  ;;  %v12944_v40 = vld [vmem:[%s17087_s30 + $0x210] sm:$0xff] }
0x1408   : > { %v5056_v49 = vpop.permute.xlu1 %5055  ;;  %v12996_v37 = vld [vmem:[%s17087_s30 + $0x3b0] sm:$0xff] }
0x1409   : > { %16894 = vpow2.f32 %v4896_v41  ;;  %v12960_v41 = vld [vmem:[%s17087_s30 + $0x290] sm:$0xff] }
0x140c   : > { %v5054_v21 = vpop.permute.xlu1 %5053 }
0x1413   : > { %v16895_v25 = vpop.eup %16894 }
0x1414   : > { %v4898_v42 = vsel %vm1241_vm5, %v16895_v25, 0.0 }
0x1415   : > { %4899 = vadd.xlane.f32.xlu0 %v4898_v42  ;;  %v12975_v42 = vld [vmem:[%s17087_s30 + $0x308] sm:$0xff] }
0x142b   : > { %4903 = vrot.lane.b32.xlu0 %v17936_v38, %s19666_s10  ;;  %s19668_s10 = sld [smem:[#allocation3_spill]] }
0x1431   : > { %s1066_s28 = scalar_lea.vmem %s19668_s10, %s19615_s11  ;;  %s19671_s10 = sld [smem:[#allocation11_spill]] }
0x1432   : > { %s19672_s11 = sld [smem:[#allocation13_spill]] }
0x14a2   : > { %v4900_v44 = vpop.xlane.xlu0 %4899 }
0x14a3   : > { %16896 = vrcp.f32 %v4900_v44  ;;  %v12991_v44 = vld [vmem:[%s17087_s30 + $0x388] sm:$0xff] }
0x14a6   : > { %v4904_v8 = vpop.permute.xlu0 %4903 }
0x14a7   : > { %15140 = vmatpush3.msra.mxu1 %v4904_v8  ;;  %v12977_v8 = vld [vmem:[%s17087_s30 + $0x318] sm:$0xff] }
0x14a8   : > { %15149 = vmatprep.subr.mxu1 %v17016_v63 }
0x14ad   : > { %v16897_v9 = vpop.eup %16896 }
0x14ae   : > { %v4902_v60 = vmul.f32 %v16897_v9, %v16895_v25  ;;  %v15731_v25 = vpack.c.bf16 %v12960_v41, %v12944_v40  ;;  %v15725_v9 = vpack.c.bf16 %v12991_v44, %v12975_v42  ;;  %v12953_v40 = vld [vmem:[%s17087_s30 + $0x258] sm:$0xff]  ;;  %v15751_v42 = vpack.c.bf16 %v12996_v37, %v12980_v34  ;;  %v12950_v44 = vld [vmem:[%s17087_s30 + $0x240] sm:$0xff]  ;;  %v13057_v37 = vld [vmem:[%s19657_s12 + $0x988] sm:$0xff] }
0x14af   : > { %v12969_v41 = vld [vmem:[%s17087_s30 + $0x2d8] sm:$0xff]  ;;  %v13056_v34 = vld [vmem:[%s19657_s12 + $0x980] sm:$0xff] }
0x14b0   : > { %15142 = vmatmul.mubr.msk.f32.vlgmr.msra.gmra.mrb[50].mxu1 %vm1241_vm5, %v4902_v60  ;;  %v12974_v60 = vld [vmem:[%s17087_s30 + $0x300] sm:$0xff] }
0x14b1   : > { %15150 = vmatpush3.xpose.msk.msra.mxu1 %vm1241_vm5, %v5056_v49  ;;  %15151 = vmatprep.mubr.msk.f32.mxu1 %vm17018_vm12, %v17016_v63  ;;  %v12993_v49 = vld [vmem:[%s17087_s30 + $0x398] sm:$0xff] }
0x14b2   : > { %15159 = vmatprep.subr.mxu1 %v17016_v63  ;;  %v15733_v24 = vpack.c.bf16 %v12993_v49, %v12977_v8  ;;  %v12966_v8 = vld [vmem:[%s17087_s30 + $0x2c0] sm:$0xff]  ;;  %v15761_v49 = vpack.c.bf16 %v12969_v41, %v12953_v40  ;;  %v13009_v41 = vld [vmem:[%s19657_s12 + $0x808] sm:$0xff] }
0x14b3   : > { %v13008_v40 = vld [vmem:[%s19657_s12 + $0x800] sm:$0xff] }
0x14b4   : > { %15152 = vmatmul.mubr.msk.f32.vlgmr.msra.gmra.mrb[52].mxu1 %vm1241_vm5, %v5054_v21  ;;  %v12990_v21 = vld [vmem:[%s17087_s30 + $0x380] sm:$0xff] }
0x14b5   : > { %15161 = vmatprep.mubr.msk.f32.mxu1 %vm17018_vm12, %v17016_v63 }
0x1583   : > { %v4975_v28 = vpop.f32.mrb[50].mxu1 }
0x1584   : > { %v15143_v16 = vpop.f32.mrb[51].mxu1  ;;  %15147 = vmatmul.mubr.msk.f32.vlgmr.msra.gmra.mrb[52].mxu0 %vm1241_vm5, %v4975_v28  ;;  %v15727_v28 = vpack.c.bf16 %v12990_v21, %v12974_v60  ;;  %v12952_v60 = vld [vmem:[%s17087_s30 + $0x250] sm:$0xff] }
0x1585   : > { %15156 = vmatprep.mubr.msk.f32.mxu0 %vm17018_vm12, %v17016_v63  ;;  %v12976_v16 = vld [vmem:[%s17087_s30 + $0x310] sm:$0xff] }
0x1586   : > { %v12968_v21 = vld [vmem:[%s17087_s30 + $0x2d0] sm:$0xff] }
0x1587   : > { %v5127_v0 = vpop.f32.mrb[52].mxu1 }
0x1588   : > { %v5131_v55 = vmul.f32 0.35355338, %v5127_v0  ;;  %v15153_v56 = vpop.f32.mrb[53].mxu1  ;;  %v12992_v0 = vld [vmem:[%s17087_s30 + $0x390] sm:$0xff] }
0x1589   : > { %v12947_v56 = vld [vmem:[%s17087_s30 + $0x228] sm:$0xff] }
0x158a   : > { %v5132_v4 = vadd.f32 %v17956_v26, %v5131_v55  ;;  %v15735_v55 = vpack.c.bf16 %v12992_v0, %v12976_v16  ;;  %v12985_v16 = vld [vmem:[%s17087_s30 + $0x358] sm:$0xff] }
0x158b   : > { %v13001_v0 = vld [vmem:[%s17087_s30 + $0x3d8] sm:$0xff] }
0x158c   : > { %v5133_v36 = vsel %vm1241_vm5, %v5132_v4, -inf }
0x158d   : > { %5134 = vmax.xlane.f32.xlu0 %v5133_v36  ;;  %v12949_v36 = vld [vmem:[%s17087_s30 + $0x238] sm:$0xff] }
0x15a3   : > { %5144 = vrot.lane.b32.xlu0 %v17936_v38, %s19667_s18  ;;  %v12916_v38 = vld [vmem:[%s19658_s8 + $0x38] sm:$0xff]  ;;  %s19669_s18 = sld [smem:[#allocation15_spill]] }
0x15a4   : > { %15160 = vmatpush3.msra.mxu1 %v12916_v38  ;;  %v12941_v38 = vld [vmem:[%s17082_s24 + $0x1] ss:$0 sm:$0xff]  ;;  %s19684_s8 = sld [smem:[#allocation23_spill]] }
0x161a   : > { %v5135_v46 = vpop.xlane.xlu0 %5134 }
0x161b   : > { %v5136_v52 = vsub.f32 %v5132_v4, %v5135_v46  ;;  %v12963_v4 = vld [vmem:[%s17087_s30 + $0x2a8] sm:$0xff] }
0x161c   : > { %v15737_v46 = vpack.c.bf16 %v12963_v4, %v12947_v56  ;;  %v15763_v56 = vpack.c.bf16 %v12968_v21, %v12952_v60  ;;  %v12982_v4 = vld [vmem:[%s17087_s30 + $0x340] sm:$0xff]  ;;  %v13058_v60 = vld [vmem:[%s19657_s12 + $0x990] sm:$0xff]  ;;  %v13059_v21 = vld [vmem:[%s19657_s12 + $0x998] sm:$0xff] }
0x161d   : > { %v5137_v54 = vmul.f32 1.442695, %v5136_v52  ;;  %v12965_v52 = vld [vmem:[%s17087_s30 + $0x2b8] sm:$0xff] }
0x161e   : > { %v5145_v57 = vpop.permute.xlu0 %5144 }
0x161f   : > { %16898 = vpow2.f32 %v5137_v54  ;;  %15155 = vmatpush3.msra.mxu0 %v5145_v57  ;;  %v15745_v54 = vpack.c.bf16 %v12965_v52, %v12949_v36  ;;  %v12998_v36 = vld [vmem:[%s17087_s30 + $0x3c0] sm:$0xff]  ;;  %v15765_v52 = vpack.c.bf16 %v13001_v0, %v12985_v16  ;;  %v13010_v16 = vld [vmem:[%s19657_s12 + $0x810] sm:$0xff]  ;;  %v13011_v0 = vld [vmem:[%s19657_s12 + $0x818] sm:$0xff] }
0x1629   : > { %v16899_v23 = vpop.eup %16898 }
0x162a   : > { %v5139_v22 = vsel %vm1241_vm5, %v16899_v23, 0.0 }
0x162b   : > { %5140 = vadd.xlane.f32.xlu1 %v5139_v22 }
0x1657   : > { %v5048_v59 = vpop.f32.mrb[52].mxu0 }
0x1658   : > { %v5052_v26 = vadd.f32 %v5048_v59, %v4809_v30  ;;  %v15148_v61 = vpop.f32.mrb[53].mxu0  ;;  %v12943_v30 = vld [vmem:[%s17087_s30 + $0x208] sm:$0xff] }
0x1659   : > { %v15721_v32 = vpack.c.bf16 %v12959_v12, %v12943_v30  ;;  %v12978_v12 = vld [vmem:[%s17087_s30 + $0x320] sm:$0xff] }
0x165b   : > { %15722 = vmatprep.subr.bf16.mxu0 %v15721_v32 }
0x16b8   : > { %v5141_v62 = vpop.xlane.xlu1 %5140 }
0x16b9   : > { %16900 = vrcp.f32 %v5141_v62 }
0x16c3   : > { %v16901_v2 = vpop.eup %16900 }
0x16c4   : > { %v5143_v3 = vmul.f32 %v16901_v2, %v16899_v23 }
0x16c6   : > { %15157 = vmatmul.mubr.msk.f32.vlgmr.msra.gmra.mrb[54].mxu0 %vm1241_vm5, %v5143_v3  ;;  %v12940_v3 = vld [vmem:[%s17077_s19 + $0x1] ss:$0 sm:$0xff] }
0x16c7   : > { %5816 = vmatprep.mubr.f32.mxu0 %v17016_v63  ;;  %15724 = vmatpush1.bf16.msra.mxu0 %v15723_v18  ;;  %v12967_v18 = vld [vmem:[%s17087_s30 + $0x2c8] sm:$0xff] }
0x16c8   : > { %15726 = vmatprep.subr.bf16.mxu0 %v15725_v9 }
0x16cb   : > { %15728 = vmatpush1.bf16.msra.mxu0 %v15727_v28  ;;  %v12999_v28 = vld [vmem:[%s17087_s30 + $0x3c8] sm:$0xff] }
0x16cc   : > { %15738 = vmatprep.subr.bf16.mxu0 %v15737_v46 }
0x1799   : > { %v5216_v6 = vpop.f32.mrb[54].mxu0 }
0x179a   : > { %v15158_v10 = vpop.f32.mrb[55].mxu0  ;;  %15162 = vmatmul.mubr.msk.f32.vlgmr.msra.gmra.mrb[54].mxu1 %vm1241_vm5, %v5216_v6  ;;  %v12946_v6 = vld [vmem:[%s17087_s30 + $0x220] sm:$0xff] }
0x179b   : > { %5887 = vmatprep.mubr.f32.mxu1 %v17016_v63  ;;  %v12962_v10 = vld [vmem:[%s17087_s30 + $0x2a0] sm:$0xff] }
0x186d   : > { %v5289_v13 = vpop.f32.mrb[54].mxu1 }
0x186e   : > { %v5293_v14 = vadd.f32 %v5289_v13, %v5052_v26  ;;  %v15163_v45 = vpop.f32.mrb[55].mxu1  ;;  %v12948_v13 = vld [vmem:[%s17087_s30 + $0x230] sm:$0xff] }
0x186f   : > { %v12979_v45 = vld [vmem:[%s17087_s30 + $0x328] sm:$0xff] }
0x1870   : > { %v5300_v47 = vadd.f32 %v12937_v11, %v5293_v14  ;;  %v12964_v14 = vld [vmem:[%s17087_s30 + $0x2b0] sm:$0xff] }
0x1871   : > { %v15747_v30 = vpack.c.bf16 %v12964_v14, %v12948_v13  ;;  %v12987_v13 = vld [vmem:[%s17087_s30 + $0x368] sm:$0xff] }
0x1872   : > { %v18030_v15 = vadd.f32 %v5300_v47, %v17918_v48  ;;  %v12945_v48 = vld [vmem:[%s17087_s30 + $0x218] sm:$0xff]  ;;  %v13003_v14 = vld [vmem:[%s17087_s30 + $0x3e8] sm:$0xff] }
0x1873   : > { %v15729_v35 = vpack.c.bf16 %v12961_v33, %v12945_v48  ;;  %v12994_v48 = vld [vmem:[%s17087_s30 + $0x3a0] sm:$0xff] }
0x1874   : > { %v5306_v5 = vsel %vm1080_vm0, %v18030_v15, 0.0 }
0x1875   : > { %5307 = vadd.xlane.f32.xlu1 %v5306_v5  ;;  %15730 = vmatprep.subr.bf16.mxu1 %v15729_v35  ;;  %v12995_v5 = vld [vmem:[%s17087_s30 + $0x3a8] sm:$0xff] }
0x1876   : > { %15732 = vmatpush1.bf16.msra.mxu1 %v15731_v25  ;;  %v15741_v32 = vpack.c.bf16 %v12995_v5, %v12979_v45  ;;  %v12951_v35 = vld [vmem:[%s17087_s30 + $0x248] sm:$0xff]  ;;  %v15743_v25 = vpack.c.bf16 %v12994_v48, %v12978_v12  ;;  %v12989_v45 = vld [vmem:[%s17087_s30 + $0x378] sm:$0xff]  ;;  %v12988_v12 = vld [vmem:[%s17087_s30 + $0x370] sm:$0xff] }
0x1877   : > { %15734 = vmatprep.subr.bf16.mxu1 %v15733_v24  ;;  %v15753_v9 = vpack.c.bf16 %v12967_v18, %v12951_v35  ;;  %v12983_v24 = vld [vmem:[%s17087_s30 + $0x348] sm:$0xff]  ;;  %v13004_v48 = vld [vmem:[%s17087_s30 + $0x3f0] sm:$0xff] }
0x1878   : > { %v15757_v46 = vpack.c.bf16 %v12999_v28, %v12983_v24  ;;  %v15783_v18 = vpack.c.bf16 %v13004_v48, %v12988_v12  ;;  %v15787_v24 = vpack.c.bf16 %v13009_v41, %v13008_v40  ;;  %v13065_v12 = vld [vmem:[%s19657_s12 + $0x9c8] sm:$0xff]  ;;  %v13034_v41 = vld [vmem:[%s19657_s12 + $0x8d0] sm:$0xff] }
0x1879   : > { %v13049_v40 = vld [vmem:[%s19657_s12 + $0x948] sm:$0xff] }
0x187a   : > { %15736 = vmatpush1.bf16.msra.mxu1 %v15735_v55  ;;  %v15755_v55 = vpack.c.bf16 %v12966_v8, %v12950_v44  ;;  %v13040_v44 = vld [vmem:[%s19657_s12 + $0x900] sm:$0xff]  ;;  %v13041_v8 = vld [vmem:[%s19657_s12 + $0x908] sm:$0xff] }
0x187b   : > { %15746 = vmatprep.subr.bf16.mxu1 %v15745_v54  ;;  %v12984_v54 = vld [vmem:[%s17087_s30 + $0x350] sm:$0xff]  ;;  %v15819_v28 = vpack.c.bf16 %v13041_v8, %v13040_v44  ;;  %v13067_v44 = vld [vmem:[%s19657_s12 + $0x9d8] sm:$0xff] }
0x1902   : > { %v5308_v7 = vpop.xlane.xlu1 %5307 }
0x1903   : > { %v5309_v1 = vmul.f32 0.03125, %v5308_v7  ;;  %v12981_v7 = vld [vmem:[%s17087_s30 + $0x338] sm:$0xff] }
0x1905   : > { %v5310_v29 = vsub.f32 %v18030_v15, %v5309_v1  ;;  %v12997_v1 = vld [vmem:[%s17087_s30 + $0x3b8] sm:$0xff] }
0x1906   : > { %v15749_v33 = vpack.c.bf16 %v12997_v1, %v12981_v7  ;;  %v12986_v1 = vld [vmem:[%s17087_s30 + $0x360] sm:$0xff] }
0x1907   : > { %v5311_v51 = vmul.f32 %v5310_v29, %v5310_v29  ;;  %v5322_v11 = vmul.f32 %v12940_v3, %v5310_v29  ;;  %v12970_v3 = vld [vmem:[%s17087_s30 + $0x2e0] sm:$0xff] }
0x1909   : > { %v5312_v31 = vsel %vm1080_vm0, %v5311_v51, 0.0 }
0x190a   : > { %5313 = vadd.xlane.f32.xlu1 %v5312_v31  ;;  %v15739_v31 = vpack.c.bf16 %v12962_v10, %v12946_v6  ;;  %v12956_v10 = vld [vmem:[%s17087_s30 + $0x270] sm:$0xff] }
0x1997   : > { %v5314_v57 = vpop.xlane.xlu1 %5313 }
0x1998   : > { %v5315_v23 = vmul.f32 0.032258064, %v5314_v57  ;;  %v13000_v57 = vld [vmem:[%s17087_s30 + $0x3d0] sm:$0xff] }
0x199a   : > { %16902 = vrsqrt.f32 %v5315_v23  ;;  %vm5325_vm15 = vcmp.eq.f32.partialorder %v5315_v23, inf  ;;  %v5328_v26 = vand.u32 2147483648, %v5315_v23  ;;  %vm5327_vm1 = vcmp.eq.f32.partialorder %v5315_v23, 0.0 }
0x19a4   : > { %v16903_v22 = vpop.eup %16902 }
0x19a5   : > { %v5324_v59 = vmul.f32 %v16903_v22, %v5315_v23  ;;  %v12971_v22 = vld [vmem:[%s17087_s30 + $0x2e8] sm:$0xff] }
0x19a7   : > { %v5326_v61 = vsel %vm5325_vm15, %v5315_v23, %v5324_v59  ;;  %v12955_v23 = vld [vmem:[%s17087_s30 + $0x268] sm:$0xff]  ;;  %v12957_v59 = vld [vmem:[%s17087_s30 + $0x278] sm:$0xff] }
0x19a8   : > { %v5329_v62 = vsel %vm5327_vm1, %v5328_v26, %v5326_v61  ;;  %v12973_v26 = vld [vmem:[%s17087_s30 + $0x2f8] sm:$0xff]  ;;  %v15759_v61 = vpack.c.bf16 %v12998_v36, %v12982_v4  ;;  %v13042_v4 = vld [vmem:[%s19657_s12 + $0x910] sm:$0xff] }
0x19a9   : > { %v5330_v2 = vadd.f32 1e-06, %v5329_v62  ;;  %v15767_v62 = vpack.c.bf16 %v13000_v57, %v12984_v54  ;;  %v15777_v6 = vpack.c.bf16 %v12973_v26, %v12957_v59  ;;  %v13043_v36 = vld [vmem:[%s19657_s12 + $0x918] sm:$0xff]  ;;  %v13060_v54 = vld [vmem:[%s19657_s12 + $0x9a0] sm:$0xff]  ;;  %v13061_v57 = vld [vmem:[%s19657_s12 + $0x9a8] sm:$0xff] }
0x19aa   : > { %v13012_v59 = vld [vmem:[%s19657_s12 + $0x820] sm:$0xff]  ;;  %v13013_v26 = vld [vmem:[%s19657_s12 + $0x828] sm:$0xff] }
0x19ab   : > { %16904 = vrcp.f32 %v5330_v2  ;;  %v12954_v2 = vld [vmem:[%s17087_s30 + $0x260] sm:$0xff] }
0x19ac   : > { %v15771_v5 = vpack.c.bf16 %v12970_v3, %v12954_v2  ;;  %v13044_v2 = vld [vmem:[%s19657_s12 + $0x920] sm:$0xff]  ;;  %v13045_v3 = vld [vmem:[%s19657_s12 + $0x928] sm:$0xff] }
0x19b5   : > { %v16905_v47 = vpop.eup %16904 }
0x19b6   : > { %v5332_v51 = vmul.f32 %v16905_v47, %v5322_v11  ;;  %v12972_v11 = vld [vmem:[%s17087_s30 + $0x2f0] sm:$0xff]  ;;  %v13005_v47 = vld [vmem:[%s17087_s30 + $0x3f8] sm:$0xff] }
0x19b7   : > { %v15779_v7 = vpack.c.bf16 %v12972_v11, %v12956_v10  ;;  %v13063_v10 = vld [vmem:[%s19657_s12 + $0x9b8] sm:$0xff]  ;;  %v15795_v11 = vpack.c.bf16 %v13013_v26, %v13012_v59  ;;  %v13053_v59 = vld [vmem:[%s19657_s12 + $0x968] sm:$0xff] }
0x19b8   : > { %v18068_v29 = vadd.f32 %v12941_v38, %v5332_v51  ;;  %v15769_v38 = vpack.c.bf16 %v12971_v22, %v12955_v23  ;;  %v13002_v51 = vld [vmem:[%s17087_s30 + $0x3e0] sm:$0xff]  ;;  %v15791_v23 = vpack.c.bf16 %v13011_v0, %v13010_v16  ;;  %v15823_v22 = vpack.c.bf16 %v13043_v36, %v13042_v4  ;;  %v13051_v16 = vld [vmem:[%s19657_s12 + $0x958] sm:$0xff]  ;;  %v13069_v4 = vld [vmem:[%s19657_s12 + $0x9e8] sm:$0xff] }
0x19b9   : > { %v15775_v35 = vpack.c.bf16 %v13002_v51, %v12986_v1  ;;  %v13047_v1 = vld [vmem:[%s19657_s12 + $0x938] sm:$0xff]  ;;  %v13032_v51 = vld [vmem:[%s19657_s12 + $0x8c0] sm:$0xff] }
0x19ba   : > { %13265 = vmatmul.mubr.msk.f32.vlgmr.msra.gmra.mrb[56].mxu0 %vm1080_vm0, %v18068_v29  ;;  %13266 = vmatmul.mubr.msk.f32.vlgmr.msra.gmra.mrb[56].mxu1 %vm1080_vm0, %v18068_v29  ;;  %v13036_v0 = vld [vmem:[%s19657_s12 + $0x8e0] sm:$0xff] }
0x19bb   : > { %15740 = vmatpush1.bf16.msra.mxu0 %v15739_v31  ;;  %15748 = vmatpush1.bf16.msra.mxu1 %v15747_v30  ;;  %v15773_v31 = vpack.c.bf16 %v13003_v14, %v12987_v13  ;;  %v15781_v30 = vpack.c.bf16 %v13005_v47, %v12989_v45  ;;  %v15827_v13 = vpack.c.bf16 %v13045_v3, %v13044_v2  ;;  %v13014_v14 = vld [vmem:[%s19657_s12 + $0x830] sm:$0xff]  ;;  %v13015_v45 = vld [vmem:[%s19657_s12 + $0x838] sm:$0xff] }
0x19bc   : > { %15742 = vmatprep.subr.bf16.mxu0 %v15741_v32  ;;  %15750 = vmatprep.subr.bf16.mxu1 %v15749_v33  ;;  %v13024_v32 = vld [vmem:[%s19657_s12 + $0x880] sm:$0xff]  ;;  %v13025_v33 = vld [vmem:[%s19657_s12 + $0x888] sm:$0xff]  ;;  %v15799_v48 = vpack.c.bf16 %v13015_v45, %v13014_v14  ;;  %v13039_v2 = vld [vmem:[%s19657_s12 + $0x8f8] sm:$0xff] }
0x19bd   : > { %5958 = vmatprep.mubr.f32.mxu0 %v17016_v63  ;;  %6029 = vmatprep.mubr.f32.mxu1 %v17016_v63  ;;  %v13070_v3 = vld [vmem:[%s19657_s12 + $0x9f0] sm:$0xff]  ;;  %v13055_v45 = vld [vmem:[%s19657_s12 + $0x978] sm:$0xff] }
0x19be   : > { %v13054_v14 = vld [vmem:[%s19657_s12 + $0x970] sm:$0xff] }
0x19bf   : > { %15744 = vmatpush1.bf16.msra.mxu0 %v15743_v25  ;;  %15752 = vmatpush1.bf16.msra.mxu1 %v15751_v42  ;;  %v15785_v25 = vpack.c.bf16 %v13025_v33, %v13024_v32  ;;  %v15817_v42 = vpack.c.bf16 %v13057_v37, %v13056_v34  ;;  %v13016_v33 = vld [vmem:[%s19657_s12 + $0x840] sm:$0xff]  ;;  %v13017_v34 = vld [vmem:[%s19657_s12 + $0x848] sm:$0xff] }
0x19c0   : > { %15754 = vmatprep.subr.bf16.mxu0 %v15753_v9  ;;  %15762 = vmatprep.subr.bf16.mxu1 %v15761_v49  ;;  %v13026_v9 = vld [vmem:[%s19657_s12 + $0x890] sm:$0xff]  ;;  %v13027_v49 = vld [vmem:[%s19657_s12 + $0x898] sm:$0xff]  ;;  %v15803_v8 = vpack.c.bf16 %v13017_v34, %v13016_v33 }
0x19c2   : > { %13267 = vmatmul.mubr.msk.f32.vlgmr.msra.gmra.mrb[58].mxu0 %vm1080_vm0, %v18068_v29  ;;  %13268 = vmatmul.mubr.msk.f32.vlgmr.msra.gmra.mrb[58].mxu1 %vm1080_vm0, %v18068_v29 }
0x19c3   : > { %15756 = vmatpush1.bf16.msra.mxu0 %v15755_v55  ;;  %15764 = vmatpush1.bf16.msra.mxu1 %v15763_v56  ;;  %v15789_v55 = vpack.c.bf16 %v13027_v49, %v13026_v9  ;;  %v15821_v56 = vpack.c.bf16 %v13059_v21, %v13058_v60  ;;  %v13018_v49 = vld [vmem:[%s19657_s12 + $0x850] sm:$0xff]  ;;  %v13019_v60 = vld [vmem:[%s19657_s12 + $0x858] sm:$0xff] }
0x19c4   : > { %15758 = vmatprep.subr.bf16.mxu0 %v15757_v46  ;;  %15766 = vmatprep.subr.bf16.mxu1 %v15765_v52  ;;  %v13028_v46 = vld [vmem:[%s19657_s12 + $0x8a0] sm:$0xff]  ;;  %v13029_v52 = vld [vmem:[%s19657_s12 + $0x8a8] sm:$0xff]  ;;  %v15807_v36 = vpack.c.bf16 %v13019_v60, %v13018_v49  ;;  %v13090_v49 = vld [vmem:[%s19657_s12 + $0xa90] sm:$0xff] }
0x19c5   : > { %6100 = vmatprep.mubr.f32.mxu0 %v17016_v63  ;;  %6171 = vmatprep.mubr.f32.mxu1 %v17016_v63 }
0x19c7   : > { %15760 = vmatpush1.bf16.msra.mxu0 %v15759_v61  ;;  %15768 = vmatpush1.bf16.msra.mxu1 %v15767_v62  ;;  %v15793_v61 = vpack.c.bf16 %v13029_v52, %v13028_v46  ;;  %v15825_v62 = vpack.c.bf16 %v13061_v57, %v13060_v54  ;;  %v13020_v52 = vld [vmem:[%s19657_s12 + $0x860] sm:$0xff] }
0x19c8   : > { %15770 = vmatprep.subr.bf16.mxu0 %v15769_v38  ;;  %15778 = vmatprep.subr.bf16.mxu1 %v15777_v6  ;;  %v13030_v38 = vld [vmem:[%s19657_s12 + $0x8b0] sm:$0xff] }
0x19c9   : > { %v13062_v6 = vld [vmem:[%s19657_s12 + $0x9b0] sm:$0xff] }
0x19ca   : > { %13269 = vmatmul.mubr.msk.f32.vlgmr.msra.gmra.mrb[60].mxu0 %vm1080_vm0, %v18068_v29  ;;  %13270 = vmatmul.mubr.msk.f32.vlgmr.msra.gmra.mrb[60].mxu1 %vm1080_vm0, %v18068_v29 }
0x19cb   : > { %15772 = vmatpush1.bf16.msra.mxu0 %v15771_v5  ;;  %15780 = vmatpush1.bf16.msra.mxu1 %v15779_v7  ;;  %v15829_v5 = vpack.c.bf16 %v13063_v10, %v13062_v6  ;;  %v13046_v7 = vld [vmem:[%s19657_s12 + $0x930] sm:$0xff]  ;;  %v13023_v10 = vld [vmem:[%s19657_s12 + $0x878] sm:$0xff] }
0x19cc   : > { %15774 = vmatprep.subr.bf16.mxu0 %v15773_v31  ;;  %15782 = vmatprep.subr.bf16.mxu1 %v15781_v30  ;;  %v13033_v31 = vld [vmem:[%s19657_s12 + $0x8c8] sm:$0xff]  ;;  %v13064_v30 = vld [vmem:[%s19657_s12 + $0x9c0] sm:$0xff]  ;;  %v15831_v32 = vpack.c.bf16 %v13047_v1, %v13046_v7  ;;  %v13022_v6 = vld [vmem:[%s19657_s12 + $0x870] sm:$0xff] }
0x19cd   : > { %6242 = vmatprep.mubr.f32.mxu0 %v17016_v63  ;;  %6313 = vmatprep.mubr.f32.mxu1 %v17016_v63  ;;  %v15801_v37 = vpack.c.bf16 %v13033_v31, %v13032_v51  ;;  %v13089_v7 = vld [vmem:[%s19657_s12 + $0xa88] sm:$0xff]  ;;  %v13120_v1 = vld [vmem:[%s19657_s12 + $0xb80] sm:$0xff] }
0x19ce   : > { %v13121_v31 = vld [vmem:[%s19657_s12 + $0xb88] sm:$0xff] }
0x19cf   : > { %15776 = vmatpush1.bf16.msra.mxu0 %v15775_v35  ;;  %15784 = vmatpush1.bf16.msra.mxu1 %v15783_v18  ;;  %v15833_v35 = vpack.c.bf16 %v13065_v12, %v13064_v30  ;;  %v13048_v18 = vld [vmem:[%s19657_s12 + $0x940] sm:$0xff]  ;;  %v15881_v30 = vpack.c.bf16 %v13121_v31, %v13120_v1  ;;  %v18195_v12 = vld [vmem:[%s19659_s6 + $0x10] sm:$0xff] }
0x19d0   : > { %15786 = vmatprep.subr.bf16.mxu0 %v15785_v25  ;;  %15818 = vmatprep.subr.bf16.mxu1 %v15817_v42  ;;  %v13035_v25 = vld [vmem:[%s19657_s12 + $0x8d8] sm:$0xff]  ;;  %v13066_v42 = vld [vmem:[%s19657_s12 + $0x9d0] sm:$0xff]  ;;  %v15835_v9 = vpack.c.bf16 %v13049_v40, %v13048_v18  ;;  %v5676_v33 = vrot.slane %v18195_v12, %v17574_v19  ;;  %v5684_v34 = vrot.slane %v18195_v12, %v17577_v20  ;;  %v13072_v18 = vld [vmem:[%s19657_s12 + $0xa00] sm:$0xff] }
0x19d1   : > { %v15805_v21 = vpack.c.bf16 %v13035_v25, %v13034_v41  ;;  %v13073_v40 = vld [vmem:[%s19657_s12 + $0xa08] sm:$0xff]  ;;  %v13108_v1 = vld [vmem:[%s19657_s12 + $0xb20] sm:$0xff]  ;;  %v13094_v31 = vld [vmem:[%s19657_s12 + $0xab0] sm:$0xff] }
0x19d2   : > { %13271 = vmatmul.mubr.msk.f32.vlgmr.msra.gmra.mrb[62].mxu0 %vm1080_vm0, %v18068_v29  ;;  %13272 = vmatmul.mubr.msk.f32.vlgmr.msra.gmra.mrb[62].mxu1 %vm1080_vm0, %v18068_v29  ;;  %v13031_v29 = vld [vmem:[%s19657_s12 + $0x8b8] sm:$0xff] }
0x19d3   : > { %15788 = vmatpush3.bf16.msra.mxu0 %v15787_v24  ;;  %15820 = vmatpush3.bf16.msra.mxu1 %v15819_v28  ;;  %v15797_v47 = vpack.c.bf16 %v13031_v29, %v13030_v38  ;;  %v15837_v24 = vpack.c.bf16 %v13067_v44, %v13066_v42  ;;  %v13050_v28 = vld [vmem:[%s19657_s12 + $0x950] sm:$0xff]  ;;  %v13071_v29 = vld [vmem:[%s19657_s12 + $0x9f8] sm:$0xff] }
0x19d4   : > { %15790 = vmatprep.subr.bf16.mxu0 %v15789_v55  ;;  %15822 = vmatprep.subr.bf16.mxu1 %v15821_v56  ;;  %v13037_v55 = vld [vmem:[%s19657_s12 + $0x8e8] sm:$0xff]  ;;  %v13068_v56 = vld [vmem:[%s19657_s12 + $0x9e0] sm:$0xff]  ;;  %v15839_v46 = vpack.c.bf16 %v13051_v16, %v13050_v28  ;;  %v13122_v28 = vld [vmem:[%s19657_s12 + $0xb90] sm:$0xff] }
0x19d5   : > { %v15809_v54 = vpack.c.bf16 %v13037_v55, %v13036_v0  ;;  %v15841_v57 = vpack.c.bf16 %v13069_v4, %v13068_v56  ;;  %v13123_v16 = vld [vmem:[%s19657_s12 + $0xb98] sm:$0xff]  ;;  %v15851_v56 = vpack.c.bf16 %v13073_v40, %v13072_v18 }
0x19d7   : > { %15792 = vmatpush3.bf16.msra.mxu0 %v15791_v23  ;;  %15824 = vmatpush3.bf16.msra.mxu1 %v15823_v22  ;;  %v13021_v23 = vld [vmem:[%s19657_s12 + $0x868] sm:$0xff]  ;;  %v13052_v22 = vld [vmem:[%s19657_s12 + $0x960] sm:$0xff] }
0x19d8   : > { %15794 = vmatprep.subr.bf16.mxu0 %v15793_v61  ;;  %15826 = vmatprep.subr.bf16.mxu1 %v15825_v62  ;;  %v15811_v26 = vpack.c.bf16 %v13021_v23, %v13020_v52  ;;  %v15843_v61 = vpack.c.bf16 %v13053_v59, %v13052_v22  ;;  %v13038_v62 = vld [vmem:[%s19657_s12 + $0x8f0] sm:$0xff]  ;;  %v15885_v23 = vpack.c.bf16 %v13123_v16, %v13122_v28  ;;  %v13107_v59 = vld [vmem:[%s19657_s12 + $0xb18] sm:$0xff] }
0x19d9   : > { %v15813_v38 = vpack.c.bf16 %v13039_v2, %v13038_v62  ;;  %v13106_v22 = vld [vmem:[%s19657_s12 + $0xb10] sm:$0xff]  ;;  %v5700_v62 = vrot.slane %v18195_v12, %v17599_v43  ;;  %v13093_v2 = vld [vmem:[%s19657_s12 + $0xaa8] sm:$0xff] }
0x19db   : > { %15796 = vmatpush3.bf16.msra.mxu0 %v15795_v11  ;;  %15828 = vmatpush3.bf16.msra.mxu1 %v15827_v13  ;;  %v15845_v11 = vpack.c.bf16 %v13071_v29, %v13070_v3  ;;  %v15815_v13 = vpack.c.bf16 %v13023_v10, %v13022_v6  ;;  %v13124_v3 = vld [vmem:[%s19657_s12 + $0xba0] sm:$0xff] }
0x19dc   : > { %15798 = vmatprep.subr.bf16.mxu0 %v15797_v47  ;;  %15830 = vmatprep.subr.bf16.mxu1 %v15829_v5  ;;  %v15847_v47 = vpack.c.bf16 %v13055_v45, %v13054_v14  ;;  %v13088_v5 = vld [vmem:[%s19657_s12 + $0xa80] sm:$0xff]  ;;  %v13077_v14 = vld [vmem:[%s19657_s12 + $0xa28] sm:$0xff] }
0x19dd   : > { %v15849_v51 = vpack.c.bf16 %v13089_v7, %v13088_v5 }
0x19df   : > { %15800 = vmatpush3.bf16.msra.mxu0 %v15799_v48  ;;  %15832 = vmatpush3.bf16.msra.mxu1 %v15831_v32  ;;  %v5672_v48 = vrot.slane %v18195_v12, %v17565_v17  ;;  %v5680_v32 = vrot.slane %v18195_v12, %v17568_v53 }
0x19e0   : > { %15802 = vmatprep.subr.bf16.mxu0 %v15801_v37  ;;  %15834 = vmatprep.subr.bf16.mxu1 %v15833_v35 }
0x19e3   : > { %15804 = vmatpush3.bf16.msra.mxu0 %v15803_v8  ;;  %15836 = vmatpush3.bf16.msra.mxu1 %v15835_v9  ;;  %v13104_v8 = vld [vmem:[%s19657_s12 + $0xb00] sm:$0xff]  ;;  %v13105_v9 = vld [vmem:[%s19657_s12 + $0xb08] sm:$0xff] }
0x19e4   : > { %15806 = vmatprep.subr.bf16.mxu0 %v15805_v21  ;;  %15838 = vmatprep.subr.bf16.mxu1 %v15837_v24  ;;  %v13091_v24 = vld [vmem:[%s19657_s12 + $0xa98] sm:$0xff]  ;;  %v15883_v4 = vpack.c.bf16 %v13105_v9, %v13104_v8  ;;  %v13110_v8 = vld [vmem:[%s19657_s12 + $0xb30] sm:$0xff] }
0x19e5   : > { %v13111_v9 = vld [vmem:[%s19657_s12 + $0xb38] sm:$0xff] }
0x19e7   : > { %15808 = vmatpush3.bf16.msra.mxu0 %v15807_v36  ;;  %15840 = vmatpush3.bf16.msra.mxu1 %v15839_v46  ;;  %v13074_v36 = vld [vmem:[%s19657_s12 + $0xa10] sm:$0xff]  ;;  %v13075_v46 = vld [vmem:[%s19657_s12 + $0xa18] sm:$0xff] }
0x19e8   : > { %15810 = vmatprep.subr.bf16.mxu0 %v15809_v54  ;;  %15842 = vmatprep.subr.bf16.mxu1 %v15841_v57  ;;  %v15853_v57 = vpack.c.bf16 %v13091_v24, %v13090_v49  ;;  %v15855_v10 = vpack.c.bf16 %v13075_v46, %v13074_v36  ;;  %v13096_v49 = vld [vmem:[%s19657_s12 + $0xac0] sm:$0xff]  ;;  %v13129_v24 = vld [vmem:[%s19657_s12 + $0xbc8] sm:$0xff] }
0x19eb   : > { %15812 = vmatpush3.bf16.msra.mxu0 %v15811_v26  ;;  %15844 = vmatpush3.bf16.msra.mxu1 %v15843_v61  ;;  %v13092_v26 = vld [vmem:[%s19657_s12 + $0xaa0] sm:$0xff]  ;;  %v5692_v61 = vrot.slane %v18195_v12, %v17590_v27 }
0x19ec   : > { %15814 = vmatprep.subr.bf16.mxu0 %v15813_v38  ;;  %15846 = vmatprep.subr.bf16.mxu1 %v15845_v11  ;;  %v13125_v38 = vld [vmem:[%s19657_s12 + $0xba8] sm:$0xff]  ;;  %v15887_v11 = vpack.c.bf16 %v13107_v59, %v13106_v22  ;;  %v15857_v5 = vpack.c.bf16 %v13093_v2, %v13092_v26  ;;  %v13098_v22 = vld [vmem:[%s19657_s12 + $0xad0] sm:$0xff]  ;;  %v13099_v59 = vld [vmem:[%s19657_s12 + $0xad8] sm:$0xff] }
0x19ed   : > { %v15889_v7 = vpack.c.bf16 %v13125_v38, %v13124_v3  ;;  %v13130_v26 = vld [vmem:[%s19657_s12 + $0xbd0] sm:$0xff] }
0x19ee   : > { %v13082_v38 = vld [vmem:[%s19657_s12 + $0xa50] sm:$0xff] }
0x19ef   : > { %15816 = vmatpush3.bf16.msra.mxu0 %v15815_v13  ;;  %15848 = vmatpush3.bf16.msra.mxu1 %v15847_v47  ;;  %v13076_v13 = vld [vmem:[%s19657_s12 + $0xa20] sm:$0xff] }
0x19f0   : > { %15850 = vmatprep.subr.bf16.mxu0 %v15849_v51  ;;  %15882 = vmatprep.subr.bf16.mxu1 %v15881_v30  ;;  %v13109_v51 = vld [vmem:[%s19657_s12 + $0xb28] sm:$0xff]  ;;  %v15859_v18 = vpack.c.bf16 %v13077_v14, %v13076_v13  ;;  %v15869_v13 = vpack.c.bf16 %v13099_v59, %v13098_v22 }
0x19f1   : > { %v15891_v40 = vpack.c.bf16 %v13109_v51, %v13108_v1  ;;  %v13132_v1 = vld [vmem:[%s19657_s12 + $0xbe0] sm:$0xff]  ;;  %v13133_v51 = vld [vmem:[%s19657_s12 + $0xbe8] sm:$0xff] }
0x19f2   : > { %v13153_v22 = vld [vmem:[%s19657_s12 + $0xc88] sm:$0xff] }
0x1a8d   : > { %v5818_v37 = vpop.f32.mrb[56].mxu0  ;;  %v5889_v35 = vpop.f32.mrb[56].mxu1 }
0x1a8e   : > { %v5819_v41 = vadd.f32 %v5818_v37, %v5672_v48  ;;  %v5890_v25 = vadd.f32 %v5889_v35, %v5680_v32  ;;  %v5820_v42 = vpop.f32.mrb[57].mxu0  ;;  %v5891_v44 = vpop.f32.mrb[57].mxu1  ;;  %v13095_v32 = vld [vmem:[%s19657_s12 + $0xab8] sm:$0xff] }
0x1a8f   : > { %v5821_v60 = vadd.f32 %v5820_v42, %v5676_v33  ;;  %v5892_v21 = vadd.f32 %v5891_v44, %v5684_v34  ;;  %v13126_v33 = vld [vmem:[%s19657_s12 + $0xbb0] sm:$0xff]  ;;  %v13127_v34 = vld [vmem:[%s19657_s12 + $0xbb8] sm:$0xff]  ;;  %v15861_v42 = vpack.c.bf16 %v13095_v32, %v13094_v31 }
0x1a90   : > { %v6320_v52 = vmax.f32 %v5819_v41, 0.0  ;;  %v6322_v54 = vmax.f32 %v5890_v25, 0.0  ;;  %v13078_v41 = vld [vmem:[%s19657_s12 + $0xa30] sm:$0xff]  ;;  %v13079_v25 = vld [vmem:[%s19657_s12 + $0xa38] sm:$0xff]  ;;  %v15893_v44 = vpack.c.bf16 %v13127_v34, %v13126_v33  ;;  %v13084_v33 = vld [vmem:[%s19657_s12 + $0xa60] sm:$0xff] }
0x1a91   : > { %v6321_v0 = vmax.f32 %v5821_v60, 0.0  ;;  %v6323_v55 = vmax.f32 %v5892_v21, 0.0  ;;  %v13097_v60 = vld [vmem:[%s19657_s12 + $0xac8] sm:$0xff]  ;;  %v13128_v21 = vld [vmem:[%s19657_s12 + $0xbc0] sm:$0xff] }
0x1a92   : > { %v13085_v34 = vld [vmem:[%s19657_s12 + $0xa68] sm:$0xff] }
0x1a93   : > { %6406 = vmatprep.mubr.f32.mxu0 %v6321_v0  ;;  %6476 = vmatprep.mubr.f32.mxu1 %v6323_v55  ;;  %v15863_v0 = vpack.c.bf16 %v13079_v25, %v13078_v41  ;;  %v15895_v55 = vpack.c.bf16 %v13111_v9, %v13110_v8  ;;  %v15905_v41 = vpack.c.bf16 %v13133_v51, %v13132_v1  ;;  %v13116_v25 = vld [vmem:[%s19657_s12 + $0xb60] sm:$0xff]  ;;  %v13103_v8 = vld [vmem:[%s19657_s12 + $0xaf8] sm:$0xff]  ;;  %v13134_v9 = vld [vmem:[%s19657_s12 + $0xbf0] sm:$0xff] }
0x1a94   : > { %6407 = vmatmul.mubr.f32.vlgmr.msra.gmra.mrb[64].mxu0 %v6320_v52  ;;  %6477 = vmatmul.mubr.f32.vlgmr.msra.gmra.mrb[64].mxu1 %v6322_v54  ;;  %v15865_v52 = vpack.c.bf16 %v13097_v60, %v13096_v49  ;;  %v15897_v54 = vpack.c.bf16 %v13129_v24, %v13128_v21  ;;  %v13135_v49 = vld [vmem:[%s19657_s12 + $0xbf8] sm:$0xff]  ;;  %v5688_v60 = vrot.slane %v18195_v12, %v17680_v39  ;;  %v13154_v1 = vld [vmem:[%s19657_s12 + $0xc90] sm:$0xff] }
0x1a95   : > { %v18225_v29 = vpop.f32.mrb[58].mxu0  ;;  %v18227_v6 = vpop.f32.mrb[58].mxu1  ;;  %15852 = vmatpush3.bf16.msra.mxu0 %v15851_v56  ;;  %15884 = vmatpush3.bf16.msra.mxu1 %v15883_v4  ;;  %v13080_v56 = vld [vmem:[%s19657_s12 + $0xa40] sm:$0xff]  ;;  %v13081_v4 = vld [vmem:[%s19657_s12 + $0xa48] sm:$0xff]  ;;  %v15875_v21 = vpack.c.bf16 %v13085_v34, %v13084_v33  ;;  %v13138_v34 = vld [vmem:[%s19657_s12 + $0xc10] sm:$0xff] }
0x1a96   : > { %v5962_v45 = vpop.f32.mrb[59].mxu0  ;;  %v6033_v47 = vpop.f32.mrb[59].mxu1  ;;  %15854 = vmatprep.subr.bf16.mxu0 %v15853_v57  ;;  %15886 = vmatprep.subr.bf16.mxu1 %v15885_v23  ;;  %v13112_v57 = vld [vmem:[%s19657_s12 + $0xb40] sm:$0xff]  ;;  %v13113_v23 = vld [vmem:[%s19657_s12 + $0xb48] sm:$0xff]  ;;  %v15867_v2 = vpack.c.bf16 %v13081_v4, %v13080_v56  ;;  %v13118_v56 = vld [vmem:[%s19657_s12 + $0xb70] sm:$0xff]  ;;  %v5696_v4 = vrot.slane %v18195_v12, %v17689_v50 }
0x1a97   : > { %v5963_v30 = vadd.f32 %v5962_v45, %v5692_v61  ;;  %v6034_v48 = vadd.f32 %v6033_v47, %v5700_v62  ;;  %v13131_v61 = vld [vmem:[%s19657_s12 + $0xbd8] sm:$0xff]  ;;  %v15899_v3 = vpack.c.bf16 %v13113_v23, %v13112_v57  ;;  %v13114_v45 = vld [vmem:[%s19657_s12 + $0xb50] sm:$0xff]  ;;  %v13152_v23 = vld [vmem:[%s19657_s12 + $0xc80] sm:$0xff] }
0x1a98   : > { %v18262_v62 = vld [vmem:[%s19659_s6 + $0x18] sm:$0xff]  ;;  %v15901_v14 = vpack.c.bf16 %v13131_v61, %v13130_v26  ;;  %v13184_v26 = vld [vmem:[%s19657_s12 + $0xd80] sm:$0xff]  ;;  %v13185_v61 = vld [vmem:[%s19657_s12 + $0xd88] sm:$0xff]  ;;  %s19683_s6 = sld [smem:[#allocation20_spill]] }
0x1a99   : > { %v6325_v37 = vmax.f32 %v5963_v30, 0.0  ;;  %v6327_v35 = vmax.f32 %v6034_v48, 0.0  ;;  %15856 = vmatpush3.bf16.msra.mxu0 %v15855_v10  ;;  %15888 = vmatpush3.bf16.msra.mxu1 %v15887_v11  ;;  %v13083_v10 = vld [vmem:[%s19657_s12 + $0xa58] sm:$0xff]  ;;  %v5728_v11 = vrot.slane %v18262_v62, %v17689_v50  ;;  %v5708_v59 = vrot.slane %v18262_v62, %v17574_v19 }
0x1a9a   : > { %15858 = vmatprep.subr.bf16.mxu0 %v15857_v5  ;;  %15890 = vmatprep.subr.bf16.mxu1 %v15889_v7  ;;  %v13115_v47 = vld [vmem:[%s19657_s12 + $0xb58] sm:$0xff]  ;;  %v13100_v5 = vld [vmem:[%s19657_s12 + $0xae0] sm:$0xff]  ;;  %v13101_v7 = vld [vmem:[%s19657_s12 + $0xae8] sm:$0xff]  ;;  %v15871_v48 = vpack.c.bf16 %v13083_v10, %v13082_v38  ;;  %v15913_v38 = vpack.c.bf16 %v13153_v22, %v13152_v23  ;;  %v5961_v10 = vadd.f32 %v18225_v29, %v5688_v60 }
0x1a9b   : > { %6546 = vmatprep.mubr.f32.mxu0 %v6325_v37  ;;  %6616 = vmatprep.mubr.f32.mxu1 %v6327_v35  ;;  %v15903_v32 = vpack.c.bf16 %v13115_v47, %v13114_v45  ;;  %v13119_v57 = vld [vmem:[%s19657_s12 + $0xb78] sm:$0xff]  ;;  %v13137_v45 = vld [vmem:[%s19657_s12 + $0xc08] sm:$0xff]  ;;  %v13188_v60 = vld [vmem:[%s19657_s12 + $0xda0] sm:$0xff] }
0x1a9c   : > { %v13187_v29 = vld [vmem:[%s19657_s12 + $0xd98] sm:$0xff]  ;;  %v13158_v23 = vld [vmem:[%s19657_s12 + $0xcb0] sm:$0xff] }
0x1a9d   : > { %v18245_v28 = vpop.f32.mrb[60].mxu0  ;;  %v18247_v16 = vpop.f32.mrb[60].mxu1  ;;  %15860 = vmatpush3.bf16.msra.mxu0 %v15859_v18  ;;  %15892 = vmatpush3.bf16.msra.mxu1 %v15891_v40  ;;  %v15873_v40 = vpack.c.bf16 %v13101_v7, %v13100_v5  ;;  %v13168_v5 = vld [vmem:[%s19657_s12 + $0xd00] sm:$0xff]  ;;  %v13169_v7 = vld [vmem:[%s19657_s12 + $0xd08] sm:$0xff]  ;;  %v13159_v22 = vld [vmem:[%s19657_s12 + $0xcb8] sm:$0xff] }
0x1a9e   : > { %v18251_v36 = vpop.f32.mrb[61].mxu0  ;;  %v18253_v46 = vpop.f32.mrb[61].mxu1  ;;  %15862 = vmatprep.subr.bf16.mxu0 %v15861_v42  ;;  %15894 = vmatprep.subr.bf16.mxu1 %v15893_v44  ;;  %v13117_v42 = vld [vmem:[%s19657_s12 + $0xb68] sm:$0xff]  ;;  %v13102_v44 = vld [vmem:[%s19657_s12 + $0xaf0] sm:$0xff] }
0x1a9f   : > { %v15907_v24 = vpack.c.bf16 %v13117_v42, %v13116_v25  ;;  %v6105_v47 = vadd.f32 %v18251_v36, %v5708_v59  ;;  %v15947_v36 = vpack.c.bf16 %v13169_v7, %v13168_v5  ;;  %v13190_v59 = vld [vmem:[%s19657_s12 + $0xdb0] sm:$0xff]  ;;  %v13193_v5 = vld [vmem:[%s19657_s12 + $0xdc8] sm:$0xff] }
0x1aa1   : > { %15864 = vmatpush3.bf16.msra.mxu0 %v15863_v0  ;;  %15896 = vmatpush3.bf16.msra.mxu1 %v15895_v55  ;;  %v13086_v0 = vld [vmem:[%s19657_s12 + $0xa70] sm:$0xff]  ;;  %v13087_v55 = vld [vmem:[%s19657_s12 + $0xa78] sm:$0xff] }
0x1aa2   : > { %15866 = vmatprep.subr.bf16.mxu0 %v15865_v52  ;;  %15898 = vmatprep.subr.bf16.mxu1 %v15897_v54  ;;  %v15877_v52 = vpack.c.bf16 %v13103_v8, %v13102_v44  ;;  %v15909_v54 = vpack.c.bf16 %v13135_v49, %v13134_v9  ;;  %v15879_v12 = vpack.c.bf16 %v13087_v55, %v13086_v0  ;;  %v13171_v44 = vld [vmem:[%s19657_s12 + $0xd18] sm:$0xff]  ;;  %v13156_v8 = vld [vmem:[%s19657_s12 + $0xca0] sm:$0xff]  ;;  %v13157_v9 = vld [vmem:[%s19657_s12 + $0xca8] sm:$0xff] }
0x1aa3   : > { %v15921_v55 = vpack.c.bf16 %v13157_v9, %v13156_v8  ;;  %v13178_v8 = vld [vmem:[%s19657_s12 + $0xd50] sm:$0xff] }
0x1aa5   : > { %v18274_v31 = vpop.f32.mrb[62].mxu0  ;;  %v6315_v30 = vpop.f32.mrb[62].mxu1  ;;  %15868 = vmatpush3.bf16.msra.mxu0 %v15867_v2  ;;  %15900 = vmatpush3.bf16.msra.mxu1 %v15899_v3  ;;  %v5716_v2 = vrot.slane %v18262_v62, %v17577_v20  ;;  %v15911_v3 = vpack.c.bf16 %v13119_v57, %v13118_v56  ;;  %v13140_v56 = vld [vmem:[%s19657_s12 + $0xc20] sm:$0xff]  ;;  %v13173_v57 = vld [vmem:[%s19657_s12 + $0xd28] sm:$0xff] }
0x1aa6   : > { %v18278_v37 = vadd.f32 %v6315_v30, %v5728_v11  ;;  %v18280_v35 = vpop.f32.mrb[63].mxu0  ;;  %v18282_v18 = vpop.f32.mrb[63].mxu1  ;;  %15870 = vmatprep.subr.bf16.mxu0 %v15869_v13  ;;  %15902 = vmatprep.subr.bf16.mxu1 %v15901_v14  ;;  %v6032_v11 = vadd.f32 %v18227_v6, %v5696_v4  ;;  %v15945_v13 = vpack.c.bf16 %v13185_v61, %v13184_v26  ;;  %v13136_v14 = vld [vmem:[%s19657_s12 + $0xc00] sm:$0xff]  ;;  %v13155_v30 = vld [vmem:[%s19657_s12 + $0xc98] sm:$0xff]  ;;  %v13141_v4 = vld [vmem:[%s19657_s12 + $0xc28] sm:$0xff] }
0x1aa7   : > { %v6176_v51 = vadd.f32 %v18253_v46, %v5716_v2  ;;  %v15915_v6 = vpack.c.bf16 %v13137_v45, %v13136_v14  ;;  %v6329_v46 = vmax.f32 %v6105_v47, 0.0  ;;  %v15917_v25 = vpack.c.bf16 %v13155_v30, %v13154_v1  ;;  %v13191_v26 = vld [vmem:[%s19657_s12 + $0xdb8] sm:$0xff]  ;;  %v13160_v14 = vld [vmem:[%s19657_s12 + $0xcc0] sm:$0xff]  ;;  %v13161_v45 = vld [vmem:[%s19657_s12 + $0xcc8] sm:$0xff] }
0x1aa8   : > { %v6326_v33 = vmax.f32 %v6032_v11, 0.0  ;;  %v15923_v61 = vpack.c.bf16 %v13141_v4, %v13140_v56  ;;  %v15957_v11 = vpack.c.bf16 %v13191_v26, %v13190_v59  ;;  %v13192_v47 = vld [vmem:[%s19657_s12 + $0xdc0] sm:$0xff]  ;;  %v13166_v59 = vld [vmem:[%s19657_s12 + $0xcf0] sm:$0xff]  ;;  %v13167_v26 = vld [vmem:[%s19657_s12 + $0xcf8] sm:$0xff] }
0x1aa9   : > { %15872 = vmatpush3.bf16.msra.mxu0 %v15871_v48  ;;  %15904 = vmatpush3.bf16.msra.mxu1 %v15903_v32  ;;  %v13186_v48 = vld [vmem:[%s19657_s12 + $0xd90] sm:$0xff]  ;;  %v6324_v32 = vmax.f32 %v5961_v10, 0.0  ;;  %v6331_v49 = vmax.f32 %v6176_v51, 0.0  ;;  %v15929_v51 = vpack.c.bf16 %v13161_v45, %v13160_v14  ;;  %v13144_v30 = vld [vmem:[%s19657_s12 + $0xc40] sm:$0xff]  ;;  %v5712_v45 = vrot.slane %v18262_v62, %v17568_v53 }
0x1aaa   : > { %15874 = vmatprep.subr.bf16.mxu0 %v15873_v40  ;;  %15906 = vmatprep.subr.bf16.mxu1 %v15905_v41  ;;  %v13139_v40 = vld [vmem:[%s19657_s12 + $0xc18] sm:$0xff]  ;;  %v13170_v41 = vld [vmem:[%s19657_s12 + $0xd10] sm:$0xff]  ;;  %v15949_v42 = vpack.c.bf16 %v13187_v29, %v13186_v48  ;;  %v13145_v48 = vld [vmem:[%s19657_s12 + $0xc48] sm:$0xff] }
0x1aab   : > { %v15951_v0 = vpack.c.bf16 %v13171_v44, %v13170_v41  ;;  %v13174_v10 = vld [vmem:[%s19657_s12 + $0xd30] sm:$0xff]  ;;  %v13176_v29 = vld [vmem:[%s19657_s12 + $0xd40] sm:$0xff]  ;;  %v15931_v41 = vpack.c.bf16 %v13145_v48, %v13144_v30  ;;  %v13147_v44 = vld [vmem:[%s19657_s12 + $0xc58] sm:$0xff] }
0x1aac   : > { %v13182_v14 = vld [vmem:[%s19657_s12 + $0xd70] sm:$0xff]  ;;  %v13248_v30 = vld [vmem:[%s19657_s12 + $0xf80] sm:$0xff]  ;;  %v13249_v48 = vld [vmem:[%s19657_s12 + $0xf88] sm:$0xff] }
0x1aad   : > { %15876 = vmatpush3.bf16.msra.mxu0 %v15875_v21  ;;  %15908 = vmatpush3.bf16.msra.mxu1 %v15907_v24  ;;  %v13189_v21 = vld [vmem:[%s19657_s12 + $0xda8] sm:$0xff]  ;;  %v15919_v24 = vpack.c.bf16 %v13139_v40, %v13138_v34  ;;  %v13194_v34 = vld [vmem:[%s19657_s12 + $0xdd0] sm:$0xff]  ;;  %v13195_v40 = vld [vmem:[%s19657_s12 + $0xdd8] sm:$0xff] }
0x1aae   : > { %15878 = vmatprep.subr.bf16.mxu0 %v15877_v52  ;;  %15910 = vmatprep.subr.bf16.mxu1 %v15909_v54  ;;  %v13172_v52 = vld [vmem:[%s19657_s12 + $0xd20] sm:$0xff]  ;;  %v15953_v54 = vpack.c.bf16 %v13189_v21, %v13188_v60  ;;  %v15965_v9 = vpack.c.bf16 %v13195_v40, %v13194_v34  ;;  %v13165_v21 = vld [vmem:[%s19657_s12 + $0xce8] sm:$0xff] }
0x1aaf   : > { %v15955_v2 = vpack.c.bf16 %v13173_v57, %v13172_v52  ;;  %v13164_v60 = vld [vmem:[%s19657_s12 + $0xce0] sm:$0xff]  ;;  %v13201_v40 = vld [vmem:[%s19657_s12 + $0xe08] sm:$0xff] }
0x1ab0   : > { %v15937_v4 = vpack.c.bf16 %v13165_v21, %v13164_v60  ;;  %v13148_v52 = vld [vmem:[%s19657_s12 + $0xc60] sm:$0xff]  ;;  %v13250_v60 = vld [vmem:[%s19657_s12 + $0xf90] sm:$0xff] }
0x1ab1   : > { %15880 = vmatpush3.bf16.msra.mxu0 %v15879_v12  ;;  %15912 = vmatpush3.bf16.msra.mxu1 %v15911_v3  ;;  %v15925_v12 = vpack.c.bf16 %v13159_v22, %v13158_v23  ;;  %v13142_v3 = vld [vmem:[%s19657_s12 + $0xc30] sm:$0xff]  ;;  %v13180_v57 = vld [vmem:[%s19657_s12 + $0xd60] sm:$0xff]  ;;  %v13181_v22 = vld [vmem:[%s19657_s12 + $0xd68] sm:$0xff] }
0x1ab2   : > { %15914 = vmatprep.subr.bf16.mxu0 %v15913_v38  ;;  %15946 = vmatprep.subr.bf16.mxu1 %v15945_v13  ;;  %v13143_v38 = vld [vmem:[%s19657_s12 + $0xc38] sm:$0xff]  ;;  %v13200_v34 = vld [vmem:[%s19657_s12 + $0xe00] sm:$0xff] }
0x1ab3   : > { %v13175_v13 = vld [vmem:[%s19657_s12 + $0xd38] sm:$0xff]  ;;  %v15927_v7 = vpack.c.bf16 %v13143_v38, %v13142_v3  ;;  %v5704_v3 = vrot.slane %v18262_v62, %v17565_v17  ;;  %v15971_v38 = vpack.c.bf16 %v13181_v22, %v13180_v57  ;;  %v13252_v22 = vld [vmem:[%s19657_s12 + $0xfa0] sm:$0xff] }
0x1ab4   : > { %6547 = vmatmul.mubr.f32.vlgmr.msra.gmra.mrb[66].mxu0 %v6324_v32  ;;  %6617 = vmatmul.mubr.f32.vlgmr.msra.gmra.mrb[66].mxu1 %v6326_v33  ;;  %v15959_v1 = vpack.c.bf16 %v13175_v13, %v13174_v10  ;;  %v13177_v32 = vld [vmem:[%s19657_s12 + $0xd48] sm:$0xff]  ;;  %v13162_v33 = vld [vmem:[%s19657_s12 + $0xcd0] sm:$0xff]  ;;  %v15941_v10 = vpack.c.bf16 %v13167_v26, %v13166_v59  ;;  %v13151_v13 = vld [vmem:[%s19657_s12 + $0xc78] sm:$0xff] }
0x1ab5   : > { %15916 = vmatpush3.bf16.msra.mxu0 %v15915_v6  ;;  %6686 = vmatprep.mubr.f32.mxu0 %v6329_v46  ;;  %v15961_v6 = vpack.c.bf16 %v13193_v5, %v13192_v47  ;;  %v15963_v46 = vpack.c.bf16 %v13177_v32, %v13176_v29  ;;  %v13183_v5 = vld [vmem:[%s19657_s12 + $0xd78] sm:$0xff]  ;;  %v5732_v29 = vrot.slane %v18262_v62, %v17599_v43  ;;  %v13253_v59 = vld [vmem:[%s19657_s12 + $0xfa8] sm:$0xff] }
0x1ab6   : > { %15948 = vmatpush3.bf16.msra.mxu1 %v15947_v36  ;;  %6756 = vmatprep.mubr.f32.mxu1 %v6331_v49  ;;  %v13163_v36 = vld [vmem:[%s19657_s12 + $0xcd8] sm:$0xff]  ;;  %v6103_v32 = vadd.f32 %v18245_v28, %v5704_v3  ;;  %v13218_v28 = vld [vmem:[%s19657_s12 + $0xe90] sm:$0xff]  ;;  %v13204_v3 = vld [vmem:[%s19657_s12 + $0xe20] sm:$0xff] }
0x1ab7   : > { %15918 = vmatprep.subr.bf16.mxu0 %v15917_v25  ;;  %15950 = vmatprep.subr.bf16.mxu1 %v15949_v42  ;;  %v15933_v25 = vpack.c.bf16 %v13163_v36, %v13162_v33  ;;  %v13146_v42 = vld [vmem:[%s19657_s12 + $0xc50] sm:$0xff]  ;;  %v13179_v49 = vld [vmem:[%s19657_s12 + $0xd58] sm:$0xff]  ;;  %v15975_v33 = vpack.c.bf16 %v13183_v5, %v13182_v14 }
0x1ab8   : > { %v15967_v56 = vpack.c.bf16 %v13179_v49, %v13178_v8  ;;  %v13219_v8 = vld [vmem:[%s19657_s12 + $0xe98] sm:$0xff]  ;;  %v15979_v49 = vpack.c.bf16 %v13201_v40, %v13200_v34  ;;  %v6328_v21 = vmax.f32 %v6103_v32, 0.0  ;;  %v13222_v14 = vld [vmem:[%s19657_s12 + $0xeb0] sm:$0xff]  ;;  %v13256_v34 = vld [vmem:[%s19657_s12 + $0xfc0] sm:$0xff] }
0x1ab9   : > { %15920 = vmatpush3.bf16.msra.mxu0 %v15919_v24  ;;  %v13196_v24 = vld [vmem:[%s19657_s12 + $0xde0] sm:$0xff]  ;;  %v13255_v5 = vld [vmem:[%s19657_s12 + $0xfb8] sm:$0xff]  ;;  %v13257_v40 = vld [vmem:[%s19657_s12 + $0xfc8] sm:$0xff] }
0x1aba   : > { %15952 = vmatpush3.bf16.msra.mxu1 %v15951_v0  ;;  %15922 = vmatprep.subr.bf16.mxu0 %v15921_v55  ;;  %v13197_v0 = vld [vmem:[%s19657_s12 + $0xde8] sm:$0xff]  ;;  %v15935_v55 = vpack.c.bf16 %v13147_v44, %v13146_v42  ;;  %v13239_v32 = vld [vmem:[%s19657_s12 + $0xf38] sm:$0xff] }
0x1abb   : > { %15954 = vmatprep.subr.bf16.mxu1 %v15953_v54  ;;  %v13149_v54 = vld [vmem:[%s19657_s12 + $0xc68] sm:$0xff]  ;;  %v15969_v23 = vpack.c.bf16 %v13197_v0, %v13196_v24  ;;  %v13202_v0 = vld [vmem:[%s19657_s12 + $0xe10] sm:$0xff] }
0x1abc   : > { %v13233_v42 = vld [vmem:[%s19657_s12 + $0xf08] sm:$0xff] }
0x1abd   : > { %15924 = vmatpush3.bf16.msra.mxu0 %v15923_v61  ;;  %v13198_v61 = vld [vmem:[%s19657_s12 + $0xdf0] sm:$0xff] }
0x1abe   : > { %15956 = vmatpush3.bf16.msra.mxu1 %v15955_v2  ;;  %15926 = vmatprep.subr.bf16.mxu0 %v15925_v12  ;;  %v13199_v2 = vld [vmem:[%s19657_s12 + $0xdf8] sm:$0xff]  ;;  %v15939_v12 = vpack.c.bf16 %v13149_v54, %v13148_v52  ;;  %v13221_v54 = vld [vmem:[%s19657_s12 + $0xea8] sm:$0xff] }
0x1abf   : > { %15958 = vmatprep.subr.bf16.mxu1 %v15957_v11  ;;  %v13150_v11 = vld [vmem:[%s19657_s12 + $0xc70] sm:$0xff]  ;;  %v15973_v47 = vpack.c.bf16 %v13199_v2, %v13198_v61  ;;  %v13235_v52 = vld [vmem:[%s19657_s12 + $0xf18] sm:$0xff] }
0x1ac1   : > { %15928 = vmatpush3.bf16.msra.mxu0 %v15927_v7  ;;  %v13216_v7 = vld [vmem:[%s19657_s12 + $0xe80] sm:$0xff] }
0x1ac2   : > { %15960 = vmatpush3.bf16.msra.mxu1 %v15959_v1  ;;  %15930 = vmatprep.subr.bf16.mxu0 %v15929_v51  ;;  %v13217_v1 = vld [vmem:[%s19657_s12 + $0xe88] sm:$0xff]  ;;  %v5724_v51 = vrot.slane %v18262_v62, %v17590_v27 }
0x1ac3   : > { %15962 = vmatprep.subr.bf16.mxu1 %v15961_v6  ;;  %v15943_v6 = vpack.c.bf16 %v13151_v13, %v13150_v11  ;;  %v15977_v36 = vpack.c.bf16 %v13217_v1, %v13216_v7  ;;  %v16017_v11 = vpack.c.bf16 %v13253_v59, %v13252_v22  ;;  %v13237_v13 = vld [vmem:[%s19657_s12 + $0xf28] sm:$0xff] }
0x1ac4   : > { %v6247_v44 = vadd.f32 %v18280_v35, %v5724_v51  ;;  %v13234_v35 = vld [vmem:[%s19657_s12 + $0xf10] sm:$0xff]  ;;  %v13261_v22 = vld [vmem:[%s19657_s12 + $0xfe8] sm:$0xff] }
0x1ac5   : > { %15932 = vmatpush3.bf16.msra.mxu0 %v15931_v41  ;;  %v6174_v41 = vadd.f32 %v18247_v16, %v5712_v45  ;;  %v13251_v16 = vld [vmem:[%s19657_s12 + $0xf98] sm:$0xff]  ;;  %v16015_v2 = vpack.c.bf16 %v13235_v52, %v13234_v35  ;;  %v13210_v35 = vld [vmem:[%s19657_s12 + $0xe50] sm:$0xff] }
0x1ac6   : > { %15964 = vmatpush3.bf16.msra.mxu1 %v15963_v46  ;;  %15934 = vmatprep.subr.bf16.mxu0 %v15933_v25  ;;  %v16009_v46 = vpack.c.bf16 %v13249_v48, %v13248_v30  ;;  %v13232_v25 = vld [vmem:[%s19657_s12 + $0xf00] sm:$0xff]  ;;  %v6333_v57 = vmax.f32 %v6247_v44, 0.0  ;;  %v13223_v45 = vld [vmem:[%s19657_s12 + $0xeb8] sm:$0xff]  ;;  %v13206_v30 = vld [vmem:[%s19657_s12 + $0xe30] sm:$0xff] }
0x1ac7   : > { %15966 = vmatprep.subr.bf16.mxu1 %v15965_v9  ;;  %v6318_v9 = vadd.f32 %v18282_v18, %v5732_v29  ;;  %v16011_v24 = vpack.c.bf16 %v13233_v42, %v13232_v25  ;;  %v13220_v18 = vld [vmem:[%s19657_s12 + $0xea0] sm:$0xff]  ;;  %v15989_v51 = vpack.c.bf16 %v13223_v45, %v13222_v14  ;;  %v13207_v48 = vld [vmem:[%s19657_s12 + $0xe38] sm:$0xff]  ;;  %v13238_v29 = vld [vmem:[%s19657_s12 + $0xf30] sm:$0xff] }
0x1ac8   : > { %v13208_v42 = vld [vmem:[%s19657_s12 + $0xe40] sm:$0xff]  ;;  %v13209_v44 = vld [vmem:[%s19657_s12 + $0xe48] sm:$0xff]  ;;  %v13262_v14 = vld [vmem:[%s19657_s12 + $0xff0] sm:$0xff] }
0x1ac9   : > { %15936 = vmatpush3.bf16.msra.mxu0 %v15935_v55  ;;  %v13203_v55 = vld [vmem:[%s19657_s12 + $0xe18] sm:$0xff]  ;;  %v6335_v26 = vmax.f32 %v6318_v9, 0.0  ;;  %v13241_v9 = vld [vmem:[%s19657_s12 + $0xf48] sm:$0xff] }
0x1aca   : > { %15968 = vmatpush3.bf16.msra.mxu1 %v15967_v56  ;;  %15938 = vmatprep.subr.bf16.mxu0 %v15937_v4  ;;  %v6330_v56 = vmax.f32 %v6174_v41, 0.0  ;;  %v15981_v4 = vpack.c.bf16 %v13219_v8, %v13218_v28  ;;  %v15983_v61 = vpack.c.bf16 %v13203_v55, %v13202_v0  ;;  %v15991_v41 = vpack.c.bf16 %v13207_v48, %v13206_v30  ;;  %v13240_v28 = vld [vmem:[%s19657_s12 + $0xf40] sm:$0xff]  ;;  %v13263_v45 = vld [vmem:[%s19657_s12 + $0xff8] sm:$0xff] }
0x1acb   : > { %15970 = vmatprep.subr.bf16.mxu1 %v15969_v23  ;;  %v16013_v23 = vpack.c.bf16 %v13251_v16, %v13250_v60  ;;  %v16025_v8 = vpack.c.bf16 %v13257_v40, %v13256_v34  ;;  %v13227_v60 = vld [vmem:[%s19657_s12 + $0xed8] sm:$0xff]  ;;  %v13258_v16 = vld [vmem:[%s19657_s12 + $0xfd0] sm:$0xff]  ;;  %v16027_v0 = vpack.c.bf16 %v13241_v9, %v13240_v28  ;;  %v16037_v48 = vpack.c.bf16 %v13263_v45, %v13262_v14 }
0x1acc   : > { %v13215_v30 = vld [vmem:[%s19657_s12 + $0xe78] sm:$0xff]  ;;  %v6334_v34 = vmax.f32 %v18278_v37, 0.0 }
0x1acd   : > { %15940 = vmatpush3.bf16.msra.mxu0 %v15939_v12  ;;  %v15985_v12 = vpack.c.bf16 %v13221_v54, %v13220_v18  ;;  %v13243_v18 = vld [vmem:[%s19657_s12 + $0xf58] sm:$0xff]  ;;  %v13228_v54 = vld [vmem:[%s19657_s12 + $0xee0] sm:$0xff] }
0x1ace   : > { %15972 = vmatpush3.bf16.msra.mxu1 %v15971_v38  ;;  %15942 = vmatprep.subr.bf16.mxu0 %v15941_v10  ;;  %v13205_v38 = vld [vmem:[%s19657_s12 + $0xe28] sm:$0xff]  ;;  %v13236_v10 = vld [vmem:[%s19657_s12 + $0xf20] sm:$0xff] }
0x1acf   : > { %15974 = vmatprep.subr.bf16.mxu1 %v15973_v47  ;;  %v13254_v47 = vld [vmem:[%s19657_s12 + $0xfb0] sm:$0xff]  ;;  %v15987_v7 = vpack.c.bf16 %v13205_v38, %v13204_v3  ;;  %v16019_v1 = vpack.c.bf16 %v13237_v13, %v13236_v10  ;;  %v13244_v3 = vld [vmem:[%s19657_s12 + $0xf60] sm:$0xff]  ;;  %v13245_v10 = vld [vmem:[%s19657_s12 + $0xf68] sm:$0xff] }
0x1ad0   : > { %v13231_v13 = vld [vmem:[%s19657_s12 + $0xef8] sm:$0xff] }
0x1ad1   : > { %15944 = vmatpush3.bf16.msra.mxu0 %v15943_v6  ;;  %v16021_v6 = vpack.c.bf16 %v13255_v5, %v13254_v47  ;;  %v5720_v5 = vrot.slane %v18262_v62, %v17680_v39 }
0x1ad2   : > { %15976 = vmatpush3.bf16.msra.mxu1 %v15975_v33  ;;  %15978 = vmatprep.subr.bf16.mxu0 %v15977_v36  ;;  %v13224_v33 = vld [vmem:[%s19657_s12 + $0xec0] sm:$0xff]  ;;  %v13225_v36 = vld [vmem:[%s19657_s12 + $0xec8] sm:$0xff] }
0x1ad3   : > { %16010 = vmatprep.subr.bf16.mxu1 %v16009_v46  ;;  %v16023_v46 = vpack.c.bf16 %v13239_v32, %v13238_v29  ;;  %v15993_v25 = vpack.c.bf16 %v13225_v36, %v13224_v33  ;;  %v13246_v29 = vld [vmem:[%s19657_s12 + $0xf70] sm:$0xff]  ;;  %v6245_v33 = vadd.f32 %v18274_v31, %v5720_v5  ;;  %v7055_v5 = vld [vmem:[%s19669_s18 + $0x8] sm:$0xff] }
0x1ad4   : > { %6687 = vmatmul.mubr.f32.vlgmr.msra.gmra.mrb[68].mxu0 %v6328_v21  ;;  %v13259_v21 = vld [vmem:[%s19657_s12 + $0xfd8] sm:$0xff] }
0x1ad5   : > { %6757 = vmatmul.mubr.f32.vlgmr.msra.gmra.mrb[68].mxu1 %v6330_v56  ;;  %15980 = vmatpush3.bf16.msra.mxu0 %v15979_v49  ;;  %v13226_v49 = vld [vmem:[%s19657_s12 + $0xed0] sm:$0xff]  ;;  %v13211_v56 = vld [vmem:[%s19657_s12 + $0xe58] sm:$0xff]  ;;  %v16029_v52 = vpack.c.bf16 %v13259_v21, %v13258_v16  ;;  %v6332_v62 = vmax.f32 %v6245_v33, 0.0 }
0x1ad6   : > { %6826 = vmatprep.mubr.f32.mxu0 %v6333_v57  ;;  %16012 = vmatpush3.bf16.msra.mxu1 %v16011_v24  ;;  %v15995_v24 = vpack.c.bf16 %v13209_v44, %v13208_v42  ;;  %v15997_v55 = vpack.c.bf16 %v13227_v60, %v13226_v49  ;;  %v13229_v57 = vld [vmem:[%s19657_s12 + $0xee8] sm:$0xff]  ;;  %v15999_v59 = vpack.c.bf16 %v13211_v56, %v13210_v35 }
0x1ad7   : > { %6896 = vmatprep.mubr.f32.mxu1 %v6335_v26  ;;  %15982 = vmatprep.subr.bf16.mxu0 %v15981_v4  ;;  %v13242_v4 = vld [vmem:[%s19657_s12 + $0xf50] sm:$0xff] }
0x1ad8   : > { %16014 = vmatprep.subr.bf16.mxu1 %v16013_v23  ;;  %v13260_v23 = vld [vmem:[%s19657_s12 + $0xfe0] sm:$0xff]  ;;  %v16031_v26 = vpack.c.bf16 %v13243_v18, %v13242_v4 }
0x1ad9   : > { %15984 = vmatpush3.bf16.msra.mxu0 %v15983_v61  ;;  %v16001_v61 = vpack.c.bf16 %v13229_v57, %v13228_v54  ;;  %v16033_v38 = vpack.c.bf16 %v13261_v22, %v13260_v23 }
0x1ada   : > { %16016 = vmatpush3.bf16.msra.mxu1 %v16015_v2  ;;  %15986 = vmatprep.subr.bf16.mxu0 %v15985_v12  ;;  %v13212_v2 = vld [vmem:[%s19657_s12 + $0xe60] sm:$0xff]  ;;  %v13213_v12 = vld [vmem:[%s19657_s12 + $0xe68] sm:$0xff] }
0x1adb   : > { %16018 = vmatprep.subr.bf16.mxu1 %v16017_v11  ;;  %v13230_v11 = vld [vmem:[%s19657_s12 + $0xef0] sm:$0xff]  ;;  %v16003_v47 = vpack.c.bf16 %v13213_v12, %v13212_v2 }
0x1add   : > { %15988 = vmatpush3.bf16.msra.mxu0 %v15987_v7  ;;  %v16035_v7 = vpack.c.bf16 %v13245_v10, %v13244_v3  ;;  %v13274_v10 = vld [vmem:[%s19665_s2 + $0x8] sm:$0xff]  ;;  %s19680_s2 = sld [smem:[#allocation18_spill]] }
0x1ade   : > { %16020 = vmatpush3.bf16.msra.mxu1 %v16019_v1  ;;  %15990 = vmatprep.subr.bf16.mxu0 %v15989_v51  ;;  %v16005_v1 = vpack.c.bf16 %v13231_v13, %v13230_v11  ;;  %v13214_v51 = vld [vmem:[%s19657_s12 + $0xe70] sm:$0xff]  ;;  %v18467_v13 = vld [vmem:[%s1066_s28] sm:$0xff]  ;;  %s19670_s28 = sld [smem:[#allocation16_spill]] }
0x1adf   : > { %16022 = vmatprep.subr.bf16.mxu1 %v16021_v6  ;;  %v13247_v6 = vld [vmem:[%s19657_s12 + $0xf78] sm:$0xff]  ;;  %v16007_v32 = vpack.c.bf16 %v13215_v30, %v13214_v51  ;;  %v7020_v45 = vsel %vm1080_vm0, %v18467_v13, 0.0  ;;  %v7056_v51 = vld [vmem:[%s19669_s18 + $0x10] sm:$0xff]  ;;  %s19685_s12 = sld [smem:[#allocation22_spill]] }
0x1ae0   : > { %v16039_v36 = vpack.c.bf16 %v13247_v6, %v13246_v29  ;;  %v7057_v30 = vld [vmem:[%s19669_s18 + $0x18] sm:$0xff] }
0x1ae1   : > { %15992 = vmatpush3.bf16.msra.mxu0 %v15991_v41  ;;  %v13273_v41 = vld [vmem:[%s17102_s20 + $0x1] ss:$0 sm:$0xff]  ;;  %v16045_v29 = vpack.c.bf16 %v7057_v30, %v7056_v51 }
0x1ae2   : > { %16024 = vmatpush3.bf16.msra.mxu1 %v16023_v46  ;;  %15994 = vmatprep.subr.bf16.mxu0 %v15993_v25 }
0x1ae3   : > { %16026 = vmatprep.subr.bf16.mxu1 %v16025_v8 }
0x1ae5   : > { %15996 = vmatpush3.bf16.msra.mxu0 %v15995_v24 }
0x1ae6   : > { %16028 = vmatpush3.bf16.msra.mxu1 %v16027_v0  ;;  %15998 = vmatprep.subr.bf16.mxu0 %v15997_v55 }
0x1ae7   : > { %16030 = vmatprep.subr.bf16.mxu1 %v16029_v52 }
0x1ae9   : > { %16000 = vmatpush3.bf16.msra.mxu0 %v15999_v59 }
0x1aea   : > { %16032 = vmatpush3.bf16.msra.mxu1 %v16031_v26  ;;  %16002 = vmatprep.subr.bf16.mxu0 %v16001_v61 }
0x1aeb   : > { %16034 = vmatprep.subr.bf16.mxu1 %v16033_v38 }
0x1aed   : > { %16004 = vmatpush3.bf16.msra.mxu0 %v16003_v47  ;;  %v7054_v47 = vld [vmem:[%s19669_s18] sm:$0xff] }
0x1aee   : > { %16036 = vmatpush3.bf16.msra.mxu1 %v16035_v7  ;;  %16006 = vmatprep.subr.bf16.mxu0 %v16005_v1  ;;  %v16814_v7 = vpack.i.bf16 %v7055_v5, %v7054_v47  ;;  %v16042_v1 = vpack.c.bf16 %v7055_v5, %v7054_v47 }
0x1aef   : > { %16038 = vmatprep.subr.bf16.mxu1 %v16037_v48  ;;  %v16819_v48 = vpack.i.bf16 %v7057_v30, %v7056_v51 }
0x1af1   : > { %16008 = vmatpush3.bf16.msra.mxu0 %v16007_v32 }
0x1af2   : > { %16040 = vmatpush3.bf16.msra.mxu1 %v16039_v36  ;;  %15164 = vmatprep.subr.mxu0 %v17016_v63 }
0x1af3   : > { %16041 = vmatprep.subr.bf16.mxu1 %v17017_v58 }
0x1af4   : > { %6827 = vmatmul.mubr.f32.vlgmr.msra.gmra.mrb[70].mxu0 %v6332_v62 }
0x1af5   : > { %6897 = vmatmul.mubr.f32.vlgmr.msra.gmra.mrb[70].mxu1 %v6334_v34  ;;  %15166 = vmatprep.mubr.msk.f32.mxu0 %vm17018_vm12, %v17016_v63 }
0x1af6   : > { %15177 = vmatprep.mubr.msk.f32.mxu1 %vm17018_vm12, %v17016_v63  ;;  %16043 = vmatpush3.bf16.msra.mxu1 %v16042_v1 }
0x1af7   : > { %16044 = vmatprep.subr.bf16.mxu1 %v17017_v58 }
0x1afa   : > { %16046 = vmatpush3.bf16.msra.mxu1 %v16045_v29 }
0x1afb   : > { %15191 = vmatprep.subr.mxu1 %v17016_v63 }
0x1b67   : > { %v14116_v31 = vpop.f32.mrb[64].mxu0  ;;  %v14151_v40 = vpop.f32.mrb[64].mxu1 }
0x1b68   : > { %v14117_v46 = vpop.f32.mrb[65].mxu0  ;;  %v14152_v25 = vpop.f32.mrb[65].mxu1 }
0x1b69   : > { %v14118_v42 = vadd.f32 %v14117_v46, %v14116_v31  ;;  %v14153_v44 = vadd.f32 %v14152_v25, %v14151_v40  ;;  %v13281_v25 = vld [vmem:[%s19670_s28] ss:$0 sm:$0xff] }
0x1b6b   : > { %v6409_v28 = vadd.f32 %v14118_v42, %v13273_v41 }
0x1b6d   : > { %v6479_v8 = vadd.f32 %v14153_v44, %v6409_v28 }
0x1b87   : > { %v14186_v37 = vpop.f32.mrb[66].mxu0  ;;  %v14221_v9 = vpop.f32.mrb[66].mxu1 }
0x1b88   : > { %v14187_v49 = vpop.f32.mrb[67].mxu0  ;;  %v14222_v60 = vpop.f32.mrb[67].mxu1 }
0x1b89   : > { %v14188_v16 = vadd.f32 %v14187_v49, %v14186_v37  ;;  %v14223_v21 = vadd.f32 %v14222_v60, %v14221_v9 }
0x1b8b   : > { %v6549_v24 = vadd.f32 %v14188_v16, %v6479_v8 }
0x1b8d   : > { %v6619_v0 = vadd.f32 %v14223_v21, %v6549_v24 }
0x1ba7   : > { %v14256_v55 = vpop.f32.mrb[68].mxu0 }
0x1ba8   : > { %v14291_v35 = vpop.f32.mrb[68].mxu1  ;;  %v14257_v56 = vpop.f32.mrb[69].mxu0 }
0x1ba9   : > { %v14258_v4 = vadd.f32 %v14257_v56, %v14256_v55  ;;  %v14292_v52 = vpop.f32.mrb[69].mxu1 }
0x1baa   : > { %v14293_v18 = vadd.f32 %v14292_v52, %v14291_v35 }
0x1bab   : > { %v6689_v54 = vadd.f32 %v14258_v4, %v6619_v0 }
0x1bad   : > { %v6759_v57 = vadd.f32 %v14293_v18, %v6689_v54 }
0x1bc7   : > { %v14326_v23 = vpop.f32.mrb[70].mxu0 }
0x1bc8   : > { %v14361_v22 = vpop.f32.mrb[70].mxu1  ;;  %v14327_v59 = vpop.f32.mrb[71].mxu0 }
0x1bc9   : > { %v14328_v26 = vadd.f32 %v14327_v59, %v14326_v23  ;;  %v14362_v61 = vpop.f32.mrb[71].mxu1 }
0x1bca   : > { %v14363_v2 = vadd.f32 %v14362_v61, %v14361_v22  ;;  %v13276_v61 = vld [vmem:[%s19671_s10] ss:$0 sm:$0xff]  ;;  %s19676_s10 = sld [smem:[#allocation17_spill]] }
0x1bcb   : > { %v6829_v12 = vadd.f32 %v14328_v26, %v6759_v57 }
0x1bcd   : > { %v6899_v3 = vadd.f32 %v14363_v2, %v6829_v12 }
0x1bcf   : > { %v6902_v38 = vadd.f32 %v6899_v3, %v18030_v15  ;;  %v13279_v3 = vld [vmem:[%s19672_s11] ss:$0 sm:$0xff] }
0x1bd1   : > { %15165 = vmatpush3.msra.mxu0 %v6902_v38  ;;  %v13277_v38 = vld [vmem:[%s19673_s0] ss:$0 sm:$0xff]  ;;  %s19675_s0 = smov 112  }
0x1bd2   : > { %15167 = vmatmul.mubr.msk.f32.vlgmr.msra.gmra.mrb[72].mxu0 %vm1241_vm5, %v13274_v10  ;;  %16047 = vmatprep.subr.bf16.mxu0 %v17017_v58 }
0x1bd3   : > { %15188 = vmatprep.mubr.msk.f32.mxu0 %vm17018_vm12, %v17016_v63 }
0x1ca5   : > { %v6974_v11 = vpop.f32.mrb[72].mxu0 }
0x1ca6   : > { %v6981_v15 = vsel %vm6980_vm2, %v6974_v11, 0.0  ;;  %v15168_v14 = vpop.f32.mrb[73].mxu0 }
0x1ca7   : > { %6982 = vadd.xlane.f32.xlu1 %v6981_v15 }
0x1cab   : > { %7021 = vadd.xlane.f32.xlu1 %v7020_v45  ;;  %v13280_v45 = vld [vmem:[%s19674_s1] ss:$0 sm:$0xff] }
0x1d34   : > { %v6983_v6 = vpop.xlane.xlu1 %6982 }
0x1d35   : > { %v6984_v32 = vmul.f32 0.03125, %v6983_v6 }
0x1d37   : > { %v6985_v33 = vsub.f32 %v6974_v11, %v6984_v32 }
0x1d38   : > { %v7022_v36 = vpop.xlane.xlu1 %7021 }
0x1d39   : > { %v7023_v62 = vmul.f32 0.03125, %v7022_v36  ;;  %v6986_v34 = vmul.f32 %v6985_v33, %v6985_v33  ;;  %v6997_v2 = vmul.f32 %v13276_v61, %v6985_v33  ;;  %v18521_v36 = vld [vmem:[%s17282_s7 + $0x2] ss:$0 sm:$0xff] }
0x1d3b   : > { %v7024_v31 = vsub.f32 %v18467_v13, %v7023_v62  ;;  %v6987_v40 = vsel %vm6980_vm2, %v6986_v34, 0.0 }
0x1d3c   : > { %6988 = vadd.xlane.f32.xlu0 %v6987_v40 }
0x1d3d   : > { %v7025_v41 = vmul.f32 %v7024_v31, %v7024_v31  ;;  %v7036_v11 = vmul.f32 %v13279_v3, %v7024_v31 }
0x1d3f   : > { %v7026_v46 = vsel %vm1080_vm0, %v7025_v41, 0.0 }
0x1d40   : > { %7027 = vadd.xlane.f32.xlu1 %v7026_v46 }
0x1d51   : > { %16815 = vrot.lane.b32.xlu1 %v16814_v7, %s19623_s23 }
0x1d55   : > { %16820 = vrot.lane.b32.xlu1 %v16819_v48, %s19623_s23 }
0x1d59   : > { %7159 = vrot.lane.b32.xlu1 %v13281_v25, %s19623_s23 }
0x1dc9   : > { %v6989_v42 = vpop.xlane.xlu0 %6988 }
0x1dca   : > { %v6990_v44 = vmul.f32 0.032258064, %v6989_v42 }
0x1dcc   : > { %16906 = vrsqrt.f32 %v6990_v44  ;;  %vm7000_vm3 = vcmp.eq.f32.partialorder %v6990_v44, inf  ;;  %v7003_v35 = vand.u32 2147483648, %v6990_v44  ;;  %vm7002_vm4 = vcmp.eq.f32.partialorder %v6990_v44, 0.0 }
0x1dcd   : > { %v7028_v28 = vpop.xlane.xlu1 %7027 }
0x1dce   : > { %v7029_v8 = vmul.f32 0.032258064, %v7028_v28 }
0x1dd0   : > { %16908 = vrsqrt.f32 %v7029_v8  ;;  %vm7039_vm6 = vcmp.eq.f32.partialorder %v7029_v8, inf  ;;  %v7042_v23 = vand.u32 2147483648, %v7029_v8  ;;  %vm7041_vm7 = vcmp.eq.f32.partialorder %v7029_v8, 0.0 }
0x1dd1   : > { %v16816_v37 = vpop.permute.xlu1 %16815 }
0x1dd2   : > { %v16818_v9 = vunpack.i.h.bf16 %v16816_v37  ;;  %v16817_v49 = vunpack.i.l.bf16 %v16816_v37 }
0x1dd4   : > { %v16048_v60 = vpack.c.bf16 %v16818_v9, %v16817_v49 }
0x1dd5   : > { %v16821_v16 = vpop.permute.xlu1 %16820 }
0x1dd6   : > { %v16907_v21 = vpop.eup %16906  ;;  %v16823_v24 = vunpack.i.h.bf16 %v16821_v16  ;;  %v16822_v0 = vunpack.i.l.bf16 %v16821_v16  ;;  %16049 = vmatpush3.bf16.msra.mxu0 %v16048_v60 }
0x1dd7   : > { %v6999_v55 = vmul.f32 %v16907_v21, %v6990_v44  ;;  %16050 = vmatprep.subr.bf16.mxu0 %v17017_v58 }
0x1dd8   : > { %v16051_v56 = vpack.c.bf16 %v16823_v24, %v16822_v0 }
0x1dd9   : > { %v7001_v4 = vsel %vm7000_vm3, %v6990_v44, %v6999_v55  ;;  %v7160_v7 = vpop.permute.xlu1 %7159 }
0x1dda   : > { %v16909_v52 = vpop.eup %16908  ;;  %v7004_v18 = vsel %vm7002_vm4, %v7003_v35, %v7001_v4  ;;  %16052 = vmatpush3.bf16.msra.mxu0 %v16051_v56 }
0x1ddb   : > { %v7005_v54 = vadd.f32 1e-06, %v7004_v18  ;;  %v7038_v57 = vmul.f32 %v16909_v52, %v7029_v8  ;;  %15196 = vmatprep.subr.mxu0 %v17016_v63 }
0x1ddd   : > { %16910 = vrcp.f32 %v7005_v54  ;;  %v7040_v22 = vsel %vm7039_vm6, %v7029_v8, %v7038_v57 }
0x1dde   : > { %v7043_v59 = vsel %vm7041_vm7, %v7042_v23, %v7040_v22  ;;  %v7059_v22 = vld [vmem:[%s19676_s10] sm:$0xff] }
0x1ddf   : > { %v7044_v26 = vadd.f32 1e-06, %v7043_v59  ;;  %v7060_v59 = vld [vmem:[%s19676_s10 + $0x8] sm:$0xff] }
0x1de1   : > { %16912 = vrcp.f32 %v7044_v26 }
0x1de7   : > { %v16911_v12 = vpop.eup %16910 }
0x1de8   : > { %v7007_v10 = vmul.f32 %v16911_v12, %v6997_v2 }
0x1dea   : > { %v18490_v15 = vadd.f32 %v13277_v38, %v7007_v10 }
0x1deb   : > { %v16913_v14 = vpop.eup %16912 }
0x1dec   : > { %15189 = vmatmul.mubr.msk.f32.vlgmr.msra.gmra.mrb[74].mxu0 %vm1080_vm0, %v18490_v15  ;;  %v7046_v47 = vmul.f32 %v16913_v14, %v7036_v11 }
0x1ded   : > { %15198 = vmatprep.mubr.msk.f32.mxu0 %vm17018_vm12, %v17016_v63 }
0x1dee   : > { %v7053_v5 = vadd.f32 %v13280_v45, %v7046_v47 }
0x1df0   : > { %15178 = vmatmul.mubr.msk.f32.vlgmr.msra.gmra.mrb[72].mxu1 %vm1080_vm0, %v7053_v5 }
0x1df1   : > { %15193 = vmatprep.mubr.msk.f32.mxu1 %vm17018_vm12, %v17016_v63 }
0x1ebf   : > { %v7231_v1 = vpop.f32.mrb[74].mxu0 }
0x1ec0   : > { %v18500_v51 = vadd.f32 %v7231_v1, %v7160_v7  ;;  %v15190_v30 = vpop.f32.mrb[75].mxu0 }
0x1ec2   : > { %7411 = vrot.lane.b32.xlu0 %v18500_v51, %s19621_s26  ;;  %15192 = vmatpush3.xpose.msk.msra.mxu1 %vm1241_vm5, %v18500_v51 }
0x1ec3   : > { %v7139_v48 = vpop.f32.mrb[72].mxu1  ;;  %15201 = vmatprep.subr.mxu1 %v17016_v63 }
0x1ec4   : > { %v18507_v29 = vadd.f32 %v13281_v25, %v7139_v48  ;;  %v15179_v6 = vpop.f32.mrb[73].mxu1 }
0x1ec6   : > { %7409 = vrot.lane.b32.xlu1 %v18507_v29, %s19621_s26  ;;  %15194 = vmatmul.mubr.msk.f32.vlgmr.msra.gmra.mrb[74].mxu1 %vm1241_vm5, %v18507_v29  ;;  %s19678_s26 = smov 80  }
0x1ec7   : > { %15203 = vmatprep.mubr.msk.f32.mxu1 %vm17018_vm12, %v17016_v63 }
0x1f34   : > { %v7412_v32 = vpop.permute.xlu0 %7411 }
0x1f35   : > { %15202 = vmatpush3.xpose.msk.msra.mxu1 %vm1241_vm5, %v7412_v32 }
0x1f36   : > { %15211 = vmatprep.subr.mxu1 %v17016_v63 }
0x1f38   : > { %v7410_v33 = vpop.permute.xlu1 %7409 }
0x1f39   : > { %15204 = vmatmul.mubr.msk.f32.vlgmr.msra.gmra.mrb[76].mxu1 %vm1241_vm5, %v7410_v33 }
0x1f3a   : > { %15213 = vmatprep.mubr.msk.f32.mxu1 %vm17018_vm12, %v17016_v63  ;;  %15212 = vmatpush3.msra.mxu1 %v7060_v59 }
0x1f3b   : > { %15221 = vmatprep.subr.mxu1 %v17016_v63 }
0x1f99   : > { %v7307_v62 = vpop.f32.mrb[74].mxu1 }
0x1f9a   : > { %v7311_v34 = vmul.f32 0.35355338, %v7307_v62  ;;  %v15195_v31 = vpop.f32.mrb[75].mxu1 }
0x1f9c   : > { %v7318_v40 = vadd.f32 %v18521_v36, %v7311_v34 }
0x1f9e   : > { %v7320_v41 = vsel %vm7319_vm8, %v7318_v40, -inf }
0x1f9f   : > { %7321 = vmax.xlane.f32.xlu1 %v7320_v41 }
0x200c   : > { %v7483_v46 = vpop.f32.mrb[76].mxu1 }
0x200d   : > { %v7487_v25 = vmul.f32 0.35355338, %v7483_v46  ;;  %v15205_v42 = vpop.f32.mrb[77].mxu1 }
0x200e   : > { %v7061_v42 = vld [vmem:[%s19676_s10 + $0x10] sm:$0xff] }
0x200f   : > { %v7488_v44 = vadd.f32 %v18521_v36, %v7487_v25 }
0x2011   : > { %v7489_v28 = vsel %vm7319_vm8, %v7488_v44, -inf }
0x2012   : > { %7490 = vmax.xlane.f32.xlu0 %v7489_v28 }
0x2028   : > { %7500 = vrot.lane.b32.xlu0 %v18500_v51, %s19620_s22  ;;  %s19677_s22 = smov 104  }
0x202c   : > { %v7322_v8 = vpop.xlane.xlu1 %7321 }
0x202d   : > { %v7323_v37 = vsub.f32 %v7318_v40, %v7322_v8 }
0x202f   : > { %v7324_v9 = vmul.f32 1.442695, %v7323_v37 }
0x2031   : > { %16914 = vpow2.f32 %v7324_v9 }
0x203b   : > { %v16915_v49 = vpop.eup %16914 }
0x203c   : > { %v7326_v60 = vsel %vm7319_vm8, %v16915_v49, 0.0 }
0x203d   : > { %7327 = vadd.xlane.f32.xlu1 %v7326_v60 }
0x209f   : > { %v7491_v16 = vpop.xlane.xlu0 %7490 }
0x20a0   : > { %v7492_v21 = vsub.f32 %v7488_v44, %v7491_v16 }
0x20a2   : > { %v7493_v24 = vmul.f32 1.442695, %v7492_v21 }
0x20a3   : > { %v7501_v54 = vpop.permute.xlu0 %7500 }
0x20a4   : > { %16916 = vpow2.f32 %v7493_v24 }
0x20ae   : > { %v16917_v0 = vpop.eup %16916 }
0x20af   : > { %v7495_v55 = vsel %vm7319_vm8, %v16917_v0, 0.0 }
0x20b0   : > { %7496 = vadd.xlane.f32.xlu1 %v7495_v55 }
0x20c1   : > { %7331 = vrot.lane.b32.xlu1 %v18500_v51, %s19623_s23  ;;  %s19679_s23 = smov 72  }
0x20c5   : > { %7725 = vrot.lane.b32.xlu1 %v18500_v51, %s19675_s0 }
0x20c9   : > { %7723 = vrot.lane.b32.xlu1 %v18507_v29, %s19675_s0 }
0x20ca   : > { %v7328_v35 = vpop.xlane.xlu1 %7327 }
0x20cb   : > { %16918 = vrcp.f32 %v7328_v35 }
0x20d5   : > { %v16919_v4 = vpop.eup %16918 }
0x20d6   : > { %v7330_v52 = vmul.f32 %v16919_v4, %v16915_v49 }
0x213d   : > { %v7497_v56 = vpop.xlane.xlu1 %7496 }
0x213e   : > { %16920 = vrcp.f32 %v7497_v56 }
0x2141   : > { %v7332_v18 = vpop.permute.xlu1 %7331 }
0x2142   : > { %15197 = vmatpush3.msk.msra.mxu0 %vm7336_vm9, %v7332_v18 }
0x2143   : > { %15199 = vmatmul.mubr.msk.f32.vlgmr.msra.gmra.mrb[76].mxu0 %vm7319_vm8, %v7330_v52  ;;  %15206 = vmatprep.subr.mxu0 %v17016_v63 }
0x2144   : > { %15207 = vmatpush3.msk.msra.mxu0 %vm7336_vm9, %v7501_v54  ;;  %15208 = vmatprep.mubr.msk.f32.mxu0 %vm17018_vm12, %v17016_v63  ;;  %v7062_v54 = vld [vmem:[%s19676_s10 + $0x18] sm:$0xff] }
0x2145   : > { %15216 = vmatprep.subr.mxu0 %v17016_v63  ;;  %v7726_v2 = vpop.permute.xlu1 %7725 }
0x2148   : > { %v16921_v57 = vpop.eup %16920 }
0x2149   : > { %v7499_v23 = vmul.f32 %v16921_v57, %v16917_v0  ;;  %v7724_v38 = vpop.permute.xlu1 %7723 }
0x214b   : > { %15209 = vmatmul.mubr.msk.f32.vlgmr.msra.gmra.mrb[78].mxu0 %vm7319_vm8, %v7499_v23 }
0x214c   : > { %15218 = vmatprep.mubr.msk.f32.mxu0 %vm17018_vm12, %v17016_v63  ;;  %15217 = vmatpush3.msra.mxu0 %v7059_v22  ;;  %v13305_v22 = vld [vmem:[%s19680_s2] ss:$0 sm:$0xff] }
0x214d   : > { %15226 = vmatprep.subr.mxu0 %v17016_v63 }
0x2216   : > { %v7405_v26 = vpop.f32.mrb[76].mxu0 }
0x2217   : > { %v15200_v61 = vpop.f32.mrb[77].mxu0  ;;  %15219 = vmatmul.mubr.msk.f32.vlgmr.msra.gmra.mrb[80].mxu0 %vm1241_vm5, %v7405_v26 }
0x2218   : > { %15228 = vmatprep.mubr.msk.f32.mxu0 %vm17018_vm12, %v17016_v63 }
0x221e   : > { %v7573_v12 = vpop.f32.mrb[78].mxu0 }
0x221f   : > { %v15210_v3 = vpop.f32.mrb[79].mxu0  ;;  %15214 = vmatmul.mubr.msk.f32.vlgmr.msra.gmra.mrb[78].mxu1 %vm1241_vm5, %v7573_v12 }
0x2220   : > { %15222 = vmatpush3.xpose.msk.msra.mxu1 %vm1241_vm5, %v7726_v2  ;;  %15223 = vmatprep.mubr.msk.f32.mxu1 %vm17018_vm12, %v17016_v63 }
0x2221   : > { %15231 = vmatprep.subr.mxu1 %v17016_v63 }
0x2223   : > { %15224 = vmatmul.mubr.msk.f32.vlgmr.msra.gmra.mrb[80].mxu1 %vm1241_vm5, %v7724_v38 }
0x2224   : > { %15233 = vmatprep.mubr.msk.f32.mxu1 %vm17018_vm12, %v17016_v63  ;;  %15232 = vmatpush3.msra.mxu1 %v7061_v42  ;;  %v8299_v42 = vld [vmem:[%s19681_s3 + $0x180] sm:$0xff] }
0x2225   : > { %15241 = vmatprep.subr.mxu1 %v17016_v63 }
0x22ea   : > { %v7719_v10 = vpop.f32.mrb[80].mxu0 }
0x22eb   : > { %v15220_v11 = vpop.f32.mrb[81].mxu0 }
0x22f2   : > { %v7646_v14 = vpop.f32.mrb[78].mxu1 }
0x22f3   : > { %v7720_v45 = vadd.f32 %v7719_v10, %v7646_v14  ;;  %v15215_v47 = vpop.f32.mrb[79].mxu1 }
0x22f4   : > { %v8252_v47 = vld [vmem:[%s19681_s3 + $0x8] sm:$0xff] }
0x22f6   : > { %v7797_v5 = vpop.f32.mrb[80].mxu1 }
0x22f7   : > { %v7801_v7 = vmul.f32 0.35355338, %v7797_v5  ;;  %v15225_v1 = vpop.f32.mrb[81].mxu1  ;;  %v8268_v5 = vld [vmem:[%s19681_s3 + $0x88] sm:$0xff] }
0x22f8   : > { %v8270_v1 = vld [vmem:[%s19681_s3 + $0x98] sm:$0xff] }
0x22f9   : > { %v7802_v30 = vadd.f32 %v18521_v36, %v7801_v7  ;;  %v16053_v7 = vpack.c.bf16 %v8268_v5, %v8252_v47 }
0x22fb   : > { %v7803_v48 = vsel %vm7319_vm8, %v7802_v30, -inf }
0x22fc   : > { %7804 = vmax.xlane.f32.xlu1 %v7803_v48  ;;  %v8267_v48 = vld [vmem:[%s19681_s3 + $0x80] sm:$0xff] }
0x230d   : > { %7967 = vrot.lane.b32.xlu1 %v18500_v51, %s19677_s22 }
0x2311   : > { %7965 = vrot.lane.b32.xlu1 %v18507_v29, %s19677_s22 }
0x2389   : > { %v7805_v6 = vpop.xlane.xlu1 %7804 }
0x238a   : > { %v7806_v32 = vsub.f32 %v7802_v30, %v7805_v6  ;;  %v8251_v30 = vld [vmem:[%s19681_s3] sm:$0xff] }
0x238c   : > { %v7807_v33 = vmul.f32 1.442695, %v7806_v32  ;;  %v16055_v32 = vpack.c.bf16 %v8267_v48, %v8251_v30  ;;  %v8289_v48 = vld [vmem:[%s19681_s3 + $0x130] sm:$0xff] }
0x238d   : > { %v7968_v41 = vpop.permute.xlu1 %7967 }
0x238e   : > { %16922 = vpow2.f32 %v7807_v33  ;;  %v8253_v33 = vld [vmem:[%s19681_s3 + $0x10] sm:$0xff] }
0x2391   : > { %v7966_v25 = vpop.permute.xlu1 %7965 }
0x2398   : > { %v16923_v62 = vpop.eup %16922 }
0x2399   : > { %v7809_v34 = vsel %vm7319_vm8, %v16923_v62, 0.0 }
0x239a   : > { %7810 = vadd.xlane.f32.xlu0 %v7809_v34 }
0x23b0   : > { %7814 = vrot.lane.b32.xlu0 %v18500_v51, %s19678_s26 }
0x2427   : > { %v7811_v31 = vpop.xlane.xlu0 %7810 }
0x2428   : > { %16924 = vrcp.f32 %v7811_v31  ;;  %v8284_v31 = vld [vmem:[%s19681_s3 + $0x108] sm:$0xff] }
0x242b   : > { %v7815_v40 = vpop.permute.xlu0 %7814 }
0x242c   : > { %15227 = vmatpush3.msk.msra.mxu0 %vm7336_vm9, %v7815_v40  ;;  %v8300_v40 = vld [vmem:[%s19681_s3 + $0x188] sm:$0xff] }
0x242d   : > { %15236 = vmatprep.subr.mxu0 %v17016_v63 }
0x2432   : > { %v16925_v29 = vpop.eup %16924 }
0x2433   : > { %v7813_v46 = vmul.f32 %v16925_v29, %v16923_v62  ;;  %v8269_v62 = vld [vmem:[%s19681_s3 + $0x90] sm:$0xff]  ;;  %v8286_v29 = vld [vmem:[%s19681_s3 + $0x118] sm:$0xff] }
0x2434   : > { %v16063_v34 = vpack.c.bf16 %v8269_v62, %v8253_v33  ;;  %v8276_v33 = vld [vmem:[%s19681_s3 + $0xc8] sm:$0xff]  ;;  %v8262_v62 = vld [vmem:[%s19681_s3 + $0x58] sm:$0xff] }
0x2435   : > { %15229 = vmatmul.mubr.msk.f32.vlgmr.msra.gmra.mrb[82].mxu0 %vm7319_vm8, %v7813_v46  ;;  %v8302_v46 = vld [vmem:[%s19681_s3 + $0x198] sm:$0xff] }
0x2436   : > { %15237 = vmatpush3.xpose.msk.msra.mxu0 %vm1241_vm5, %v7968_v41  ;;  %15238 = vmatprep.mubr.msk.f32.mxu0 %vm17018_vm12, %v17016_v63  ;;  %v16057_v41 = vpack.c.bf16 %v8300_v40, %v8284_v31 }
0x2437   : > { %15246 = vmatprep.subr.mxu0 %v17016_v63 }
0x2439   : > { %15239 = vmatmul.mubr.msk.f32.vlgmr.msra.gmra.mrb[84].mxu0 %vm1241_vm5, %v7966_v25  ;;  %v8283_v25 = vld [vmem:[%s19681_s3 + $0x100] sm:$0xff] }
0x243a   : > { %15248 = vmatprep.mubr.msk.f32.mxu0 %vm17018_vm12, %v17016_v63  ;;  %15247 = vmatpush3.msra.mxu0 %v7062_v54  ;;  %v13306_v54 = vld [vmem:[%s19682_s5] ss:$0 sm:$0xff] }
0x2508   : > { %v7887_v44 = vpop.f32.mrb[82].mxu0 }
0x2509   : > { %v15230_v28 = vpop.f32.mrb[83].mxu0  ;;  %15234 = vmatmul.mubr.msk.f32.vlgmr.msra.gmra.mrb[82].mxu1 %vm1241_vm5, %v7887_v44  ;;  %v16065_v44 = vpack.c.bf16 %v8302_v46, %v8286_v29  ;;  %v8259_v29 = vld [vmem:[%s19681_s3 + $0x40] sm:$0xff] }
0x250a   : > { %15243 = vmatprep.mubr.msk.f32.mxu1 %vm17018_vm12, %v17016_v63  ;;  %v16059_v28 = vpack.c.bf16 %v8299_v42, %v8283_v25  ;;  %v8261_v42 = vld [vmem:[%s19681_s3 + $0x50] sm:$0xff] }
0x250c   : > { %v8039_v8 = vpop.f32.mrb[84].mxu0 }
0x250d   : > { %v8043_v37 = vmul.f32 0.35355338, %v8039_v8  ;;  %v15240_v9 = vpop.f32.mrb[85].mxu0  ;;  %v8285_v8 = vld [vmem:[%s19681_s3 + $0x110] sm:$0xff] }
0x250e   : > { %v8256_v9 = vld [vmem:[%s19681_s3 + $0x28] sm:$0xff] }
0x250f   : > { %v8044_v49 = vadd.f32 %v18521_v36, %v8043_v37  ;;  %v8301_v37 = vld [vmem:[%s19681_s3 + $0x190] sm:$0xff] }
0x2511   : > { %v8045_v60 = vsel %vm7319_vm8, %v8044_v49, -inf }
0x2512   : > { %8046 = vmax.xlane.f32.xlu0 %v8045_v60  ;;  %v8272_v60 = vld [vmem:[%s19681_s3 + $0xa8] sm:$0xff] }
0x2528   : > { %8056 = vrot.lane.b32.xlu0 %v18500_v51, %s19679_s23 }
0x259f   : > { %v8047_v16 = vpop.xlane.xlu0 %8046 }
0x25a0   : > { %v8048_v21 = vsub.f32 %v8044_v49, %v8047_v16  ;;  %v16067_v49 = vpack.c.bf16 %v8301_v37, %v8285_v8  ;;  %v8258_v16 = vld [vmem:[%s19681_s3 + $0x38] sm:$0xff]  ;;  %v8308_v8 = vld [vmem:[%s19681_s3 + $0x1c8] sm:$0xff] }
0x25a1   : > { %v8294_v37 = vld [vmem:[%s19681_s3 + $0x158] sm:$0xff] }
0x25a2   : > { %v8049_v24 = vmul.f32 1.442695, %v8048_v21  ;;  %v8274_v21 = vld [vmem:[%s19681_s3 + $0xb8] sm:$0xff] }
0x25a3   : > { %v8057_v0 = vpop.permute.xlu0 %8056 }
0x25a4   : > { %16926 = vpow2.f32 %v8049_v24  ;;  %15242 = vmatpush3.msk.msra.mxu1 %vm7336_vm9, %v8057_v0  ;;  %v16069_v24 = vpack.c.bf16 %v8272_v60, %v8256_v9  ;;  %v16077_v0 = vpack.c.bf16 %v8274_v21, %v8258_v16  ;;  %v8310_v9 = vld [vmem:[%s19681_s3 + $0x1d8] sm:$0xff]  ;;  %v8291_v16 = vld [vmem:[%s19681_s3 + $0x140] sm:$0xff] }
0x25a5   : > { %16054 = vmatprep.subr.bf16.mxu1 %v16053_v7  ;;  %v8303_v7 = vld [vmem:[%s19681_s3 + $0x1a0] sm:$0xff] }
0x25a6   : > { %v8307_v21 = vld [vmem:[%s19681_s3 + $0x1c0] sm:$0xff] }
0x25ae   : > { %v16927_v55 = vpop.eup %16926 }
0x25af   : > { %v8051_v35 = vsel %vm7319_vm8, %v16927_v55, 0.0 }
0x25b0   : > { %8052 = vadd.xlane.f32.xlu1 %v8051_v35 }
0x25dc   : > { %v7960_v36 = vpop.f32.mrb[82].mxu1 }
0x25dd   : > { %v7964_v56 = vadd.f32 %v7960_v36, %v7720_v45  ;;  %v15235_v4 = vpop.f32.mrb[83].mxu1 }
0x263d   : > { %v8053_v52 = vpop.xlane.xlu1 %8052 }
0x263e   : > { %16928 = vrcp.f32 %v8053_v52 }
0x2648   : > { %v16929_v18 = vpop.eup %16928 }
0x2649   : > { %v8055_v51 = vmul.f32 %v16929_v18, %v16927_v55 }
0x264b   : > { %15244 = vmatmul.mubr.msk.f32.vlgmr.msra.gmra.mrb[84].mxu1 %vm7319_vm8, %v8055_v51 }
0x264c   : > { %8723 = vmatprep.mubr.f32.mxu1 %v17016_v63  ;;  %16056 = vmatpush1.bf16.msra.mxu1 %v16055_v32  ;;  %v8260_v32 = vld [vmem:[%s19681_s3 + $0x48] sm:$0xff] }
0x264d   : > { %16058 = vmatprep.subr.bf16.mxu1 %v16057_v41  ;;  %v8275_v41 = vld [vmem:[%s19681_s3 + $0xc0] sm:$0xff]  ;;  %v16085_v46 = vpack.c.bf16 %v8276_v33, %v8260_v32  ;;  %v8366_v32 = vld [vmem:[%s19684_s8 + $0x188] sm:$0xff] }
0x2650   : > { %16060 = vmatpush1.bf16.msra.mxu1 %v16059_v28  ;;  %v8292_v28 = vld [vmem:[%s19681_s3 + $0x148] sm:$0xff] }
0x2651   : > { %16070 = vmatprep.subr.bf16.mxu1 %v16069_v24  ;;  %v16089_v24 = vpack.c.bf16 %v8308_v8, %v8292_v28  ;;  %v8368_v28 = vld [vmem:[%s19684_s8 + $0x198] sm:$0xff] }
0x271e   : > { %v8129_v57 = vpop.f32.mrb[84].mxu1 }
0x271f   : > { %v15245_v23 = vpop.f32.mrb[85].mxu1  ;;  %15249 = vmatmul.mubr.msk.f32.vlgmr.msra.gmra.mrb[86].mxu0 %vm1241_vm5, %v8129_v57  ;;  %v13307_v57 = vld [vmem:[%s19683_s6] ss:$0 sm:$0xff] }
0x2720   : > { %8794 = vmatprep.mubr.f32.mxu0 %v17016_v63  ;;  %v8255_v23 = vld [vmem:[%s19681_s3 + $0x20] sm:$0xff] }
0x27f2   : > { %v8202_v59 = vpop.f32.mrb[86].mxu0 }
0x27f3   : > { %v8206_v26 = vadd.f32 %v8202_v59, %v7964_v56  ;;  %v15250_v61 = vpop.f32.mrb[87].mxu0 }
0x27f4   : > { %v8273_v61 = vld [vmem:[%s19681_s3 + $0xb0] sm:$0xff] }
0x27f5   : > { %v8213_v2 = vadd.f32 %v13305_v22, %v8206_v26  ;;  %v8271_v22 = vld [vmem:[%s19681_s3 + $0xa0] sm:$0xff]  ;;  %v8257_v26 = vld [vmem:[%s19681_s3 + $0x30] sm:$0xff] }
0x27f6   : > { %v16071_v47 = vpack.c.bf16 %v8271_v22, %v8255_v23  ;;  %v16079_v5 = vpack.c.bf16 %v8273_v61, %v8257_v26  ;;  %v8281_v26 = vld [vmem:[%s19681_s3 + $0xf0] sm:$0xff]  ;;  %v8296_v61 = vld [vmem:[%s19681_s3 + $0x168] sm:$0xff] }
0x27f7   : > { %v18599_v12 = vadd.f32 %v8213_v2, %v18467_v13  ;;  %v8254_v13 = vld [vmem:[%s19681_s3 + $0x18] sm:$0xff]  ;;  %v8288_v2 = vld [vmem:[%s19681_s3 + $0x128] sm:$0xff] }
0x27f8   : > { %v16061_v6 = vpack.c.bf16 %v8270_v1, %v8254_v13  ;;  %v8287_v13 = vld [vmem:[%s19681_s3 + $0x120] sm:$0xff] }
0x27f9   : > { %v8217_v3 = vsel %vm1080_vm0, %v18599_v12, 0.0  ;;  %v16075_v31 = vpack.c.bf16 %v8303_v7, %v8287_v13  ;;  %v8297_v7 = vld [vmem:[%s19681_s3 + $0x170] sm:$0xff] }
0x27fa   : > { %8218 = vadd.xlane.f32.xlu1 %v8217_v3  ;;  %16062 = vmatprep.subr.bf16.mxu0 %v16061_v6  ;;  %v8305_v6 = vld [vmem:[%s19681_s3 + $0x1b0] sm:$0xff] }
0x27fb   : > { %16064 = vmatpush1.bf16.msra.mxu0 %v16063_v34  ;;  %v8278_v34 = vld [vmem:[%s19681_s3 + $0xd8] sm:$0xff]  ;;  %v16083_v40 = vpack.c.bf16 %v8305_v6, %v8289_v48  ;;  %v8334_v48 = vld [vmem:[%s19684_s8 + $0x88] sm:$0xff]  ;;  %v8365_v6 = vld [vmem:[%s19684_s8 + $0x180] sm:$0xff] }
0x27fc   : > { %16066 = vmatprep.subr.bf16.mxu0 %v16065_v44  ;;  %v16093_v25 = vpack.c.bf16 %v8278_v34, %v8262_v62  ;;  %v8277_v44 = vld [vmem:[%s19681_s3 + $0xd0] sm:$0xff]  ;;  %v8317_v34 = vld [vmem:[%s19684_s8] sm:$0xff] }
0x27fd   : > { %v16095_v60 = vpack.c.bf16 %v8277_v44, %v8261_v42  ;;  %v8336_v42 = vld [vmem:[%s19684_s8 + $0x98] sm:$0xff]  ;;  %v8367_v44 = vld [vmem:[%s19684_s8 + $0x190] sm:$0xff] }
0x27ff   : > { %16068 = vmatpush1.bf16.msra.mxu0 %v16067_v49  ;;  %v16087_v49 = vpack.c.bf16 %v8275_v41, %v8259_v29  ;;  %v16149_v29 = vpack.c.bf16 %v8366_v32, %v8365_v6  ;;  %v8349_v41 = vld [vmem:[%s19684_s8 + $0x100] sm:$0xff]  ;;  %v8326_v32 = vld [vmem:[%s19684_s8 + $0x48] sm:$0xff] }
0x2800   : > { %16078 = vmatprep.subr.bf16.mxu0 %v16077_v0  ;;  %v16097_v0 = vpack.c.bf16 %v8310_v9, %v8294_v37  ;;  %v8319_v9 = vld [vmem:[%s19684_s8 + $0x10] sm:$0xff]  ;;  %v8325_v6 = vld [vmem:[%s19684_s8 + $0x40] sm:$0xff] }
0x2887   : > { %v8219_v38 = vpop.xlane.xlu1 %8218 }
0x2888   : > { %v8220_v10 = vmul.f32 0.03125, %v8219_v38  ;;  %v8304_v38 = vld [vmem:[%s19681_s3 + $0x1a8] sm:$0xff] }
0x2889   : > { %v16073_v1 = vpack.c.bf16 %v8304_v38, %v8288_v2  ;;  %v8312_v2 = vld [vmem:[%s19681_s3 + $0x1e8] sm:$0xff]  ;;  %v8314_v38 = vld [vmem:[%s19681_s3 + $0x1f8] sm:$0xff] }
0x288a   : > { %v8221_v11 = vsub.f32 %v18599_v12, %v8220_v10  ;;  %v8290_v10 = vld [vmem:[%s19681_s3 + $0x138] sm:$0xff] }
0x288c   : > { %v8222_v14 = vmul.f32 %v8221_v11, %v8221_v11  ;;  %v8233_v59 = vmul.f32 %v13306_v54, %v8221_v11  ;;  %v8263_v54 = vld [vmem:[%s19681_s3 + $0x60] sm:$0xff] }
0x288e   : > { %v8223_v45 = vsel %vm1080_vm0, %v8222_v14, 0.0  ;;  %v8306_v14 = vld [vmem:[%s19681_s3 + $0x1b8] sm:$0xff] }
0x288f   : > { %8224 = vadd.xlane.f32.xlu1 %v8223_v45  ;;  %v16081_v30 = vpack.c.bf16 %v8306_v14, %v8290_v10 }
0x291c   : > { %v8225_v55 = vpop.xlane.xlu1 %8224 }
0x291d   : > { %v8226_v35 = vmul.f32 0.032258064, %v8225_v55  ;;  %v8293_v55 = vld [vmem:[%s19681_s3 + $0x150] sm:$0xff] }
0x291f   : > { %16930 = vrsqrt.f32 %v8226_v35  ;;  %vm8236_vm10 = vcmp.eq.f32.partialorder %v8226_v35, inf  ;;  %v8239_v4 = vand.u32 2147483648, %v8226_v35  ;;  %vm8238_vm11 = vcmp.eq.f32.partialorder %v8226_v35, 0.0 }
0x2929   : > { %v16931_v36 = vpop.eup %16930 }
0x292a   : > { %v8235_v56 = vmul.f32 %v16931_v36, %v8226_v35  ;;  %v8264_v36 = vld [vmem:[%s19681_s3 + $0x68] sm:$0xff] }
0x292c   : > { %v8237_v52 = vsel %vm8236_vm10, %v8226_v35, %v8235_v56  ;;  %v8309_v35 = vld [vmem:[%s19681_s3 + $0x1d0] sm:$0xff]  ;;  %v8280_v56 = vld [vmem:[%s19681_s3 + $0xe8] sm:$0xff] }
0x292d   : > { %v8240_v18 = vsel %vm8238_vm11, %v8239_v4, %v8237_v52  ;;  %v8266_v4 = vld [vmem:[%s19681_s3 + $0x78] sm:$0xff]  ;;  %v16101_v23 = vpack.c.bf16 %v8280_v56, %v8264_v36  ;;  %v8370_v36 = vld [vmem:[%s19684_s8 + $0x1a8] sm:$0xff] }
0x292e   : > { %v8241_v51 = vadd.f32 1e-06, %v8240_v18  ;;  %v8282_v52 = vld [vmem:[%s19681_s3 + $0xf8] sm:$0xff]  ;;  %v16091_v18 = vpack.c.bf16 %v8307_v21, %v8291_v16  ;;  %v16153_v16 = vpack.c.bf16 %v8368_v28, %v8367_v44  ;;  %v8351_v21 = vld [vmem:[%s19684_s8 + $0x110] sm:$0xff] }
0x292f   : > { %v16109_v22 = vpack.c.bf16 %v8282_v52, %v8266_v4  ;;  %v8321_v52 = vld [vmem:[%s19684_s8 + $0x20] sm:$0xff]  ;;  %v8327_v44 = vld [vmem:[%s19684_s8 + $0x50] sm:$0xff]  ;;  %v8328_v28 = vld [vmem:[%s19684_s8 + $0x58] sm:$0xff] }
0x2930   : > { %16932 = vrcp.f32 %v8241_v51  ;;  %v16099_v51 = vpack.c.bf16 %v8309_v35, %v8293_v55  ;;  %v8338_v55 = vld [vmem:[%s19684_s8 + $0xa8] sm:$0xff]  ;;  %v8369_v35 = vld [vmem:[%s19684_s8 + $0x1a0] sm:$0xff] }
0x293a   : > { %v16933_v3 = vpop.eup %16932 }
0x293b   : > { %v8243_v45 = vmul.f32 %v16933_v3, %v8233_v59  ;;  %v8265_v59 = vld [vmem:[%s19681_s3 + $0x70] sm:$0xff]  ;;  %v8298_v3 = vld [vmem:[%s19681_s3 + $0x178] sm:$0xff] }
0x293c   : > { %v16111_v14 = vpack.c.bf16 %v8281_v26, %v8265_v59  ;;  %v16113_v13 = vpack.c.bf16 %v8314_v38, %v8298_v3  ;;  %v8371_v59 = vld [vmem:[%s19684_s8 + $0x1b0] sm:$0xff]  ;;  %v8372_v26 = vld [vmem:[%s19684_s8 + $0x1b8] sm:$0xff] }
0x293d   : > { %v18637_v11 = vadd.f32 %v13307_v57, %v8243_v45  ;;  %v8279_v57 = vld [vmem:[%s19681_s3 + $0xe0] sm:$0xff]  ;;  %v8323_v3 = vld [vmem:[%s19684_s8 + $0x30] sm:$0xff]  ;;  %v8324_v38 = vld [vmem:[%s19684_s8 + $0x38] sm:$0xff] }
0x293e   : > { %v16103_v10 = vpack.c.bf16 %v8279_v57, %v8263_v54  ;;  %v8295_v45 = vld [vmem:[%s19681_s3 + $0x160] sm:$0xff]  ;;  %v16157_v54 = vpack.c.bf16 %v8370_v36, %v8369_v35 }
0x293f   : > { %13308 = vmatmul.mubr.msk.f32.vlgmr.msra.gmra.mrb[86].mxu1 %vm1080_vm0, %v18637_v11  ;;  %13309 = vmatmul.mubr.msk.f32.vlgmr.msra.gmra.mrb[88].mxu0 %vm1080_vm0, %v18637_v11  ;;  %v8353_v57 = vld [vmem:[%s19684_s8 + $0x120] sm:$0xff] }
0x2940   : > { %16072 = vmatpush1.bf16.msra.mxu1 %v16071_v47  ;;  %16080 = vmatpush1.bf16.msra.mxu0 %v16079_v5  ;;  %v8311_v47 = vld [vmem:[%s19681_s3 + $0x1e0] sm:$0xff]  ;;  %v16105_v5 = vpack.c.bf16 %v8312_v2, %v8296_v61 }
0x2941   : > { %16074 = vmatprep.subr.bf16.mxu1 %v16073_v1  ;;  %16082 = vmatprep.subr.bf16.mxu0 %v16081_v30  ;;  %v8313_v1 = vld [vmem:[%s19681_s3 + $0x1f0] sm:$0xff]  ;;  %v8333_v30 = vld [vmem:[%s19684_s8 + $0x80] sm:$0xff]  ;;  %v16107_v33 = vpack.c.bf16 %v8311_v47, %v8295_v45  ;;  %v8356_v47 = vld [vmem:[%s19684_s8 + $0x138] sm:$0xff] }
0x2942   : > { %8865 = vmatprep.mubr.f32.mxu1 %v17016_v63  ;;  %8936 = vmatprep.mubr.f32.mxu0 %v17016_v63  ;;  %v16115_v62 = vpack.c.bf16 %v8313_v1, %v8297_v7  ;;  %v8355_v45 = vld [vmem:[%s19684_s8 + $0x130] sm:$0xff]  ;;  %v8373_v7 = vld [vmem:[%s19684_s8 + $0x1c0] sm:$0xff]  ;;  %v8374_v1 = vld [vmem:[%s19684_s8 + $0x1c8] sm:$0xff] }
0x2943   : > { %v8329_v35 = vld [vmem:[%s19684_s8 + $0x60] sm:$0xff] }
0x2944   : > { %16076 = vmatpush1.bf16.msra.mxu1 %v16075_v31  ;;  %16084 = vmatpush1.bf16.msra.mxu0 %v16083_v40  ;;  %v8318_v31 = vld [vmem:[%s19684_s8 + $0x8] sm:$0xff]  ;;  %v16117_v40 = vpack.c.bf16 %v8334_v48, %v8333_v30  ;;  %v16131_v30 = vpack.c.bf16 %v8324_v38, %v8323_v3  ;;  %v16163_v48 = vpack.c.bf16 %v8356_v47, %v8355_v45  ;;  %v8363_v38 = vld [vmem:[%s19684_s8 + $0x170] sm:$0xff]  ;;  %v8397_v45 = vld [vmem:[%s19684_s8 + $0x280] sm:$0xff] }
0x2945   : > { %16086 = vmatprep.subr.bf16.mxu1 %v16085_v46  ;;  %16094 = vmatprep.subr.bf16.mxu0 %v16093_v25  ;;  %v8350_v46 = vld [vmem:[%s19684_s8 + $0x108] sm:$0xff]  ;;  %v8335_v25 = vld [vmem:[%s19684_s8 + $0x90] sm:$0xff]  ;;  %v16119_v8 = vpack.c.bf16 %v8318_v31, %v8317_v34  ;;  %v8357_v34 = vld [vmem:[%s19684_s8 + $0x140] sm:$0xff] }
0x2946   : > { %v16151_v37 = vpack.c.bf16 %v8350_v46, %v8349_v41  ;;  %v8358_v31 = vld [vmem:[%s19684_s8 + $0x148] sm:$0xff]  ;;  %v8375_v41 = vld [vmem:[%s19684_s8 + $0x1d0] sm:$0xff]  ;;  %v8376_v46 = vld [vmem:[%s19684_s8 + $0x1d8] sm:$0xff] }
0x2947   : > { %13310 = vmatmul.mubr.msk.f32.vlgmr.msra.gmra.mrb[88].mxu1 %vm1080_vm0, %v18637_v11  ;;  %13311 = vmatmul.mubr.msk.f32.vlgmr.msra.gmra.mrb[90].mxu0 %vm1080_vm0, %v18637_v11  ;;  %v8398_v47 = vld [vmem:[%s19684_s8 + $0x288] sm:$0xff] }
0x2948   : > { %16088 = vmatpush1.bf16.msra.mxu1 %v16087_v49  ;;  %16096 = vmatpush1.bf16.msra.mxu0 %v16095_v60  ;;  %v8320_v49 = vld [vmem:[%s19684_s8 + $0x18] sm:$0xff]  ;;  %v16121_v60 = vpack.c.bf16 %v8336_v42, %v8335_v25  ;;  %v16135_v25 = vpack.c.bf16 %v8326_v32, %v8325_v6  ;;  %v16167_v42 = vpack.c.bf16 %v8358_v31, %v8357_v34  ;;  %v8381_v31 = vld [vmem:[%s19684_s8 + $0x200] sm:$0xff] }
0x2949   : > { %16090 = vmatprep.subr.bf16.mxu1 %v16089_v24  ;;  %16098 = vmatprep.subr.bf16.mxu0 %v16097_v0  ;;  %v8352_v24 = vld [vmem:[%s19684_s8 + $0x118] sm:$0xff]  ;;  %v8337_v0 = vld [vmem:[%s19684_s8 + $0xa0] sm:$0xff]  ;;  %v16123_v56 = vpack.c.bf16 %v8320_v49, %v8319_v9  ;;  %v8359_v9 = vld [vmem:[%s19684_s8 + $0x150] sm:$0xff] }
0x294a   : > { %9007 = vmatprep.mubr.f32.mxu1 %v17016_v63  ;;  %9078 = vmatprep.mubr.f32.mxu0 %v17016_v63  ;;  %v16155_v4 = vpack.c.bf16 %v8352_v24, %v8351_v21  ;;  %v8360_v49 = vld [vmem:[%s19684_s8 + $0x158] sm:$0xff]  ;;  %v8377_v21 = vld [vmem:[%s19684_s8 + $0x1e0] sm:$0xff]  ;;  %v8378_v24 = vld [vmem:[%s19684_s8 + $0x1e8] sm:$0xff] }
0x294c   : > { %16092 = vmatpush1.bf16.msra.mxu1 %v16091_v18  ;;  %16100 = vmatpush1.bf16.msra.mxu0 %v16099_v51  ;;  %v8322_v18 = vld [vmem:[%s19684_s8 + $0x28] sm:$0xff]  ;;  %v16125_v51 = vpack.c.bf16 %v8338_v55, %v8337_v0  ;;  %v16139_v0 = vpack.c.bf16 %v8328_v28, %v8327_v44  ;;  %v16171_v55 = vpack.c.bf16 %v8360_v49, %v8359_v9  ;;  %v8399_v28 = vld [vmem:[%s19684_s8 + $0x290] sm:$0xff]  ;;  %v8400_v9 = vld [vmem:[%s19684_s8 + $0x298] sm:$0xff] }
0x294d   : > { %16102 = vmatprep.subr.bf16.mxu1 %v16101_v23  ;;  %16110 = vmatprep.subr.bf16.mxu0 %v16109_v22  ;;  %v8354_v23 = vld [vmem:[%s19684_s8 + $0x128] sm:$0xff]  ;;  %v8339_v22 = vld [vmem:[%s19684_s8 + $0xb0] sm:$0xff]  ;;  %v16127_v61 = vpack.c.bf16 %v8322_v18, %v8321_v52  ;;  %v8361_v52 = vld [vmem:[%s19684_s8 + $0x160] sm:$0xff] }
0x294e   : > { %v16159_v2 = vpack.c.bf16 %v8354_v23, %v8353_v57  ;;  %v8362_v18 = vld [vmem:[%s19684_s8 + $0x168] sm:$0xff]  ;;  %v8347_v57 = vld [vmem:[%s19684_s8 + $0xf0] sm:$0xff]  ;;  %v8348_v23 = vld [vmem:[%s19684_s8 + $0xf8] sm:$0xff] }
0x294f   : > { %13312 = vmatmul.mubr.msk.f32.vlgmr.msra.gmra.mrb[90].mxu1 %vm1080_vm0, %v18637_v11  ;;  %13313 = vmatmul.mubr.msk.f32.vlgmr.msra.gmra.mrb[92].mxu0 %vm1080_vm0, %v18637_v11  ;;  %v8414_v44 = vld [vmem:[%s19684_s8 + $0x308] sm:$0xff]  ;;  %v8431_v49 = vld [vmem:[%s19684_s8 + $0x390] sm:$0xff] }
0x2950   : > { %16104 = vmatpush1.bf16.msra.mxu1 %v16103_v10  ;;  %16112 = vmatpush1.bf16.msra.mxu0 %v16111_v14  ;;  %v16161_v14 = vpack.c.bf16 %v8372_v26, %v8371_v59  ;;  %v8380_v59 = vld [vmem:[%s19684_s8 + $0x1f8] sm:$0xff]  ;;  %v8331_v26 = vld [vmem:[%s19684_s8 + $0x70] sm:$0xff] }
0x2951   : > { %16106 = vmatprep.subr.bf16.mxu1 %v16105_v5  ;;  %16114 = vmatprep.subr.bf16.mxu0 %v16113_v13  ;;  %v8341_v5 = vld [vmem:[%s19684_s8 + $0xc0] sm:$0xff]  ;;  %v8342_v13 = vld [vmem:[%s19684_s8 + $0xc8] sm:$0xff] }
0x2952   : > { %9149 = vmatprep.mubr.f32.mxu1 %v17016_v63  ;;  %9220 = vmatprep.mubr.f32.mxu0 %v17016_v63 }
0x2954   : > { %16108 = vmatpush1.bf16.msra.mxu1 %v16107_v33  ;;  %16116 = vmatpush1.bf16.msra.mxu0 %v16115_v62  ;;  %v16133_v33 = vpack.c.bf16 %v8342_v13, %v8341_v5  ;;  %v16165_v62 = vpack.c.bf16 %v8374_v1, %v8373_v7  ;;  %v8429_v5 = vld [vmem:[%s19684_s8 + $0x380] sm:$0xff]  ;;  %v16181_v13 = vpack.c.bf16 %v8398_v47, %v8397_v45  ;;  %v8430_v7 = vld [vmem:[%s19684_s8 + $0x388] sm:$0xff] }
0x2955   : > { %16118 = vmatprep.subr.bf16.mxu1 %v16117_v40  ;;  %16150 = vmatprep.subr.bf16.mxu0 %v16149_v29  ;;  %v8343_v40 = vld [vmem:[%s19684_s8 + $0xd0] sm:$0xff]  ;;  %v8344_v29 = vld [vmem:[%s19684_s8 + $0xd8] sm:$0xff]  ;;  %v16213_v1 = vpack.c.bf16 %v8430_v7, %v8429_v5  ;;  %v8418_v7 = vld [vmem:[%s19684_s8 + $0x328] sm:$0xff] }
0x2957   : > { %13314 = vmatmul.mubr.msk.f32.vlgmr.msra.gmra.mrb[92].mxu1 %vm1080_vm0, %v18637_v11  ;;  %13315 = vmatmul.mubr.msk.f32.vlgmr.msra.gmra.mrb[94].mxu0 %vm1080_vm0, %v18637_v11  ;;  %v8340_v11 = vld [vmem:[%s19684_s8 + $0xb8] sm:$0xff] }
0x2958   : > { %16120 = vmatpush3.bf16.msra.mxu1 %v16119_v8  ;;  %16152 = vmatpush3.bf16.msra.mxu0 %v16151_v37  ;;  %v16129_v10 = vpack.c.bf16 %v8340_v11, %v8339_v22  ;;  %v16137_v8 = vpack.c.bf16 %v8344_v29, %v8343_v40  ;;  %v16169_v37 = vpack.c.bf16 %v8376_v46, %v8375_v41  ;;  %v8379_v22 = vld [vmem:[%s19684_s8 + $0x1f0] sm:$0xff]  ;;  %v8382_v40 = vld [vmem:[%s19684_s8 + $0x208] sm:$0xff] }
0x2959   : > { %16122 = vmatprep.subr.bf16.mxu1 %v16121_v60  ;;  %16154 = vmatprep.subr.bf16.mxu0 %v16153_v16  ;;  %v8345_v60 = vld [vmem:[%s19684_s8 + $0xe0] sm:$0xff]  ;;  %v8346_v16 = vld [vmem:[%s19684_s8 + $0xe8] sm:$0xff]  ;;  %v16145_v11 = vpack.c.bf16 %v8348_v23, %v8347_v57 }
0x295a   : > { %v16141_v36 = vpack.c.bf16 %v8346_v16, %v8345_v60  ;;  %v8432_v60 = vld [vmem:[%s19684_s8 + $0x398] sm:$0xff] }
0x295c   : > { %16124 = vmatpush3.bf16.msra.mxu1 %v16123_v56  ;;  %16156 = vmatpush3.bf16.msra.mxu0 %v16155_v4  ;;  %v16173_v56 = vpack.c.bf16 %v8378_v24, %v8377_v21  ;;  %v8330_v4 = vld [vmem:[%s19684_s8 + $0x68] sm:$0xff]  ;;  %v16183_v24 = vpack.c.bf16 %v8382_v40, %v8381_v31 }
0x295d   : > { %16126 = vmatprep.subr.bf16.mxu1 %v16125_v51  ;;  %16158 = vmatprep.subr.bf16.mxu0 %v16157_v54  ;;  %v16143_v51 = vpack.c.bf16 %v8330_v4, %v8329_v35  ;;  %v16175_v54 = vpack.c.bf16 %v8362_v18, %v8361_v52  ;;  %v8384_v35 = vld [vmem:[%s19684_s8 + $0x218] sm:$0xff]  ;;  %v16185_v4 = vpack.c.bf16 %v8400_v9, %v8399_v28  ;;  %v8415_v18 = vld [vmem:[%s19684_s8 + $0x310] sm:$0xff]  ;;  %v8437_v9 = vld [vmem:[%s19684_s8 + $0x3c0] sm:$0xff] }
0x295e   : > { %v16217_v52 = vpack.c.bf16 %v8432_v60, %v8431_v49  ;;  %v8420_v28 = vld [vmem:[%s19684_s8 + $0x338] sm:$0xff]  ;;  %v8438_v49 = vld [vmem:[%s19684_s8 + $0x3c8] sm:$0xff] }
0x2960   : > { %16128 = vmatpush3.bf16.msra.mxu1 %v16127_v61  ;;  %16160 = vmatpush3.bf16.msra.mxu0 %v16159_v2  ;;  %v8332_v61 = vld [vmem:[%s19684_s8 + $0x78] sm:$0xff]  ;;  %v16177_v2 = vpack.c.bf16 %v8380_v59, %v8379_v22  ;;  %v8402_v22 = vld [vmem:[%s19684_s8 + $0x2a8] sm:$0xff] }
0x2961   : > { %16130 = vmatprep.subr.bf16.mxu1 %v16129_v10  ;;  %16162 = vmatprep.subr.bf16.mxu0 %v16161_v14  ;;  %v16147_v3 = vpack.c.bf16 %v8332_v61, %v8331_v26  ;;  %v8364_v10 = vld [vmem:[%s19684_s8 + $0x178] sm:$0xff]  ;;  %v8434_v59 = vld [vmem:[%s19684_s8 + $0x3a8] sm:$0xff] }
0x2962   : > { %v16179_v14 = vpack.c.bf16 %v8364_v10, %v8363_v38  ;;  %v8385_v38 = vld [vmem:[%s19684_s8 + $0x220] sm:$0xff]  ;;  %v8386_v10 = vld [vmem:[%s19684_s8 + $0x228] sm:$0xff] }
0x2963   : > { %v16191_v40 = vpack.c.bf16 %v8386_v10, %v8385_v38 }
0x2964   : > { %16132 = vmatpush3.bf16.msra.mxu1 %v16131_v30  ;;  %16164 = vmatpush3.bf16.msra.mxu0 %v16163_v48  ;;  %v18764_v30 = vld [vmem:[%s19685_s12] sm:$0xff] }
0x2965   : > { %16134 = vmatprep.subr.bf16.mxu1 %v16133_v33  ;;  %16166 = vmatprep.subr.bf16.mxu0 %v16165_v62  ;;  %v8579_v48 = vrot.slane %v18764_v30, %v17565_v17  ;;  %v8587_v6 = vrot.slane %v18764_v30, %v17568_v53  ;;  %v8583_v32 = vrot.slane %v18764_v30, %v17574_v19 }
0x2966   : > { %v8591_v33 = vrot.slane %v18764_v30, %v17577_v20  ;;  %v8599_v57 = vrot.slane %v18764_v30, %v17590_v27  ;;  %v8607_v23 = vrot.slane %v18764_v30, %v17599_v43 }
0x2968   : > { %16136 = vmatpush3.bf16.msra.mxu1 %v16135_v25  ;;  %16168 = vmatpush3.bf16.msra.mxu0 %v16167_v42  ;;  %v8413_v42 = vld [vmem:[%s19684_s8 + $0x300] sm:$0xff] }
0x2969   : > { %16138 = vmatprep.subr.bf16.mxu1 %v16137_v8  ;;  %16170 = vmatprep.subr.bf16.mxu0 %v16169_v37 }
0x296c   : > { %16140 = vmatpush3.bf16.msra.mxu1 %v16139_v0  ;;  %16172 = vmatpush3.bf16.msra.mxu0 %v16171_v55  ;;  %v16215_v0 = vpack.c.bf16 %v8414_v44, %v8413_v42  ;;  %v8383_v55 = vld [vmem:[%s19684_s8 + $0x210] sm:$0xff] }
0x296d   : > { %16142 = vmatprep.subr.bf16.mxu1 %v16141_v36  ;;  %16174 = vmatprep.subr.bf16.mxu0 %v16173_v56  ;;  %v8419_v44 = vld [vmem:[%s19684_s8 + $0x330] sm:$0xff] }
0x2970   : > { %16144 = vmatpush3.bf16.msra.mxu1 %v16143_v51  ;;  %16176 = vmatpush3.bf16.msra.mxu0 %v16175_v54  ;;  %v8416_v51 = vld [vmem:[%s19684_s8 + $0x318] sm:$0xff]  ;;  %v8401_v54 = vld [vmem:[%s19684_s8 + $0x2a0] sm:$0xff] }
0x2971   : > { %16146 = vmatprep.subr.bf16.mxu1 %v16145_v11  ;;  %16178 = vmatprep.subr.bf16.mxu0 %v16177_v2  ;;  %v8433_v11 = vld [vmem:[%s19684_s8 + $0x3a0] sm:$0xff]  ;;  %v16187_v2 = vpack.c.bf16 %v8384_v35, %v8383_v55  ;;  %v16189_v47 = vpack.c.bf16 %v8402_v22, %v8401_v54  ;;  %v8390_v55 = vld [vmem:[%s19684_s8 + $0x248] sm:$0xff]  ;;  %v8408_v54 = vld [vmem:[%s19684_s8 + $0x2d8] sm:$0xff] }
0x2972   : > { %v16221_v5 = vpack.c.bf16 %v8434_v59, %v8433_v11  ;;  %v18831_v22 = vld [vmem:[%s19685_s12 + $0x8] sm:$0xff] }
0x2973   : > { %v8635_v38 = vrot.slane %v18831_v22, %v17689_v50 }
0x2974   : > { %16148 = vmatpush3.bf16.msra.mxu1 %v16147_v3  ;;  %16180 = vmatpush3.bf16.msra.mxu0 %v16179_v14  ;;  %v16219_v3 = vpack.c.bf16 %v8416_v51, %v8415_v18  ;;  %v8422_v18 = vld [vmem:[%s19684_s8 + $0x348] sm:$0xff]  ;;  %v8407_v51 = vld [vmem:[%s19684_s8 + $0x2d0] sm:$0xff] }
0x2975   : > { %16182 = vmatprep.subr.bf16.mxu1 %v16181_v13  ;;  %16214 = vmatprep.subr.bf16.mxu0 %v16213_v1  ;;  %v8417_v13 = vld [vmem:[%s19684_s8 + $0x320] sm:$0xff]  ;;  %v8403_v1 = vld [vmem:[%s19684_s8 + $0x2b0] sm:$0xff]  ;;  %v16201_v10 = vpack.c.bf16 %v8408_v54, %v8407_v51  ;;  %v8462_v54 = vld [vmem:[%s19684_s8 + $0x488] sm:$0xff] }
0x2976   : > { %v8461_v51 = vld [vmem:[%s19684_s8 + $0x480] sm:$0xff] }
0x2a12   : > { %v8725_v62 = vpop.f32.mrb[86].mxu1  ;;  %v8796_v34 = vpop.f32.mrb[88].mxu0 }
0x2a13   : > { %v8726_v29 = vadd.f32 %v8725_v62, %v8579_v48  ;;  %v8797_v41 = vadd.f32 %v8796_v34, %v8587_v6  ;;  %v8727_v46 = vpop.f32.mrb[87].mxu1  ;;  %v8798_v25 = vpop.f32.mrb[89].mxu0  ;;  %v8436_v62 = vld [vmem:[%s19684_s8 + $0x3b8] sm:$0xff] }
0x2a14   : > { %v8728_v8 = vadd.f32 %v8727_v46, %v8583_v32  ;;  %v8799_v37 = vadd.f32 %v8798_v25, %v8591_v33  ;;  %v8404_v32 = vld [vmem:[%s19684_s8 + $0x2b8] sm:$0xff]  ;;  %v8435_v33 = vld [vmem:[%s19684_s8 + $0x3b0] sm:$0xff] }
0x2a15   : > { %v9227_v36 = vmax.f32 %v8726_v29, 0.0  ;;  %v9229_v56 = vmax.f32 %v8797_v41, 0.0  ;;  %v16223_v29 = vpack.c.bf16 %v8418_v7, %v8417_v13  ;;  %v8387_v41 = vld [vmem:[%s19684_s8 + $0x230] sm:$0xff]  ;;  %v8388_v46 = vld [vmem:[%s19684_s8 + $0x238] sm:$0xff]  ;;  %v16193_v25 = vpack.c.bf16 %v8404_v32, %v8403_v1  ;;  %v8410_v13 = vld [vmem:[%s19684_s8 + $0x2e8] sm:$0xff] }
0x2a16   : > { %v9228_v16 = vmax.f32 %v8728_v8, 0.0  ;;  %v9230_v21 = vmax.f32 %v8799_v37, 0.0  ;;  %v16225_v42 = vpack.c.bf16 %v8436_v62, %v8435_v33  ;;  %v8405_v8 = vld [vmem:[%s19684_s8 + $0x2c0] sm:$0xff]  ;;  %v8406_v37 = vld [vmem:[%s19684_s8 + $0x2c8] sm:$0xff] }
0x2a17   : > { %v8441_v7 = vld [vmem:[%s19684_s8 + $0x3e0] sm:$0xff]  ;;  %v8442_v1 = vld [vmem:[%s19684_s8 + $0x3e8] sm:$0xff] }
0x2a18   : > { %9313 = vmatprep.mubr.f32.mxu1 %v9228_v16  ;;  %9383 = vmatprep.mubr.f32.mxu0 %v9230_v21  ;;  %v16195_v21 = vpack.c.bf16 %v8388_v46, %v8387_v41  ;;  %v8393_v62 = vld [vmem:[%s19684_s8 + $0x260] sm:$0xff]  ;;  %v16237_v46 = vpack.c.bf16 %v8442_v1, %v8441_v7  ;;  %v8478_v7 = vld [vmem:[%s19684_s8 + $0x508] sm:$0xff]  ;;  %v8463_v1 = vld [vmem:[%s19684_s8 + $0x490] sm:$0xff] }
0x2a19   : > { %9314 = vmatmul.mubr.f32.vlgmr.msra.gmra.mrb[94].mxu1 %v9227_v36  ;;  %9384 = vmatmul.mubr.f32.vlgmr.msra.gmra.mrb[96].mxu0 %v9229_v56  ;;  %v16197_v56 = vpack.c.bf16 %v8406_v37, %v8405_v8  ;;  %v8443_v8 = vld [vmem:[%s19684_s8 + $0x3f0] sm:$0xff]  ;;  %v8444_v37 = vld [vmem:[%s19684_s8 + $0x3f8] sm:$0xff] }
0x2a1a   : > { %v18794_v26 = vpop.f32.mrb[88].mxu1  ;;  %v18796_v61 = vpop.f32.mrb[90].mxu0  ;;  %16184 = vmatpush3.bf16.msra.mxu1 %v16183_v24  ;;  %16216 = vmatpush3.bf16.msra.mxu0 %v16215_v0  ;;  %v16227_v24 = vpack.c.bf16 %v8420_v28, %v8419_v44  ;;  %v8389_v0 = vld [vmem:[%s19684_s8 + $0x240] sm:$0xff]  ;;  %v8411_v44 = vld [vmem:[%s19684_s8 + $0x2f0] sm:$0xff]  ;;  %v8412_v28 = vld [vmem:[%s19684_s8 + $0x2f8] sm:$0xff] }
0x2a1b   : > { %v8869_v14 = vpop.f32.mrb[89].mxu1  ;;  %v8940_v45 = vpop.f32.mrb[91].mxu0  ;;  %16186 = vmatprep.subr.bf16.mxu1 %v16185_v4  ;;  %16218 = vmatprep.subr.bf16.mxu0 %v16217_v52  ;;  %v16229_v4 = vpack.c.bf16 %v8438_v49, %v8437_v9  ;;  %v8421_v52 = vld [vmem:[%s19684_s8 + $0x340] sm:$0xff]  ;;  %v16199_v11 = vpack.c.bf16 %v8390_v55, %v8389_v0  ;;  %v8595_v9 = vrot.slane %v18764_v30, %v17680_v39  ;;  %v8396_v0 = vld [vmem:[%s19684_s8 + $0x278] sm:$0xff]  ;;  %v8427_v55 = vld [vmem:[%s19684_s8 + $0x370] sm:$0xff] }
0x2a1c   : > { %v8870_v48 = vadd.f32 %v8869_v14, %v8599_v57  ;;  %v8941_v6 = vadd.f32 %v8940_v45, %v8607_v23  ;;  %v8439_v57 = vld [vmem:[%s19684_s8 + $0x3d0] sm:$0xff]  ;;  %v8440_v23 = vld [vmem:[%s19684_s8 + $0x3d8] sm:$0xff]  ;;  %v16231_v59 = vpack.c.bf16 %v8422_v18, %v8421_v52  ;;  %v16241_v52 = vpack.c.bf16 %v8444_v37, %v8443_v8  ;;  %v8465_v8 = vld [vmem:[%s19684_s8 + $0x4a0] sm:$0xff] }
0x2a1d   : > { %v16233_v14 = vpack.c.bf16 %v8440_v23, %v8439_v57  ;;  %v8423_v45 = vld [vmem:[%s19684_s8 + $0x350] sm:$0xff]  ;;  %v8428_v18 = vld [vmem:[%s19684_s8 + $0x378] sm:$0xff]  ;;  %v8615_v57 = vrot.slane %v18831_v22, %v17574_v19  ;;  %v8493_v23 = vld [vmem:[%s19684_s8 + $0x580] sm:$0xff] }
0x2a1e   : > { %v9232_v34 = vmax.f32 %v8870_v48, 0.0  ;;  %v9234_v31 = vmax.f32 %v8941_v6, 0.0  ;;  %16188 = vmatpush3.bf16.msra.mxu1 %v16187_v2  ;;  %16220 = vmatpush3.bf16.msra.mxu0 %v16219_v3  ;;  %v8391_v2 = vld [vmem:[%s19684_s8 + $0x250] sm:$0xff]  ;;  %v8392_v3 = vld [vmem:[%s19684_s8 + $0x258] sm:$0xff]  ;;  %v8466_v37 = vld [vmem:[%s19684_s8 + $0x4a8] sm:$0xff] }
0x2a1f   : > { %16190 = vmatprep.subr.bf16.mxu1 %v16189_v47  ;;  %16222 = vmatprep.subr.bf16.mxu0 %v16221_v5  ;;  %v8424_v47 = vld [vmem:[%s19684_s8 + $0x358] sm:$0xff]  ;;  %v8409_v5 = vld [vmem:[%s19684_s8 + $0x2e0] sm:$0xff]  ;;  %v16203_v32 = vpack.c.bf16 %v8392_v3, %v8391_v2  ;;  %v16243_v2 = vpack.c.bf16 %v8428_v18, %v8427_v55  ;;  %v16245_v3 = vpack.c.bf16 %v8462_v54, %v8461_v51  ;;  %v8482_v51 = vld [vmem:[%s19684_s8 + $0x528] sm:$0xff] }
0x2a20   : > { %9453 = vmatprep.mubr.f32.mxu1 %v9232_v34  ;;  %9523 = vmatprep.mubr.f32.mxu0 %v9234_v31  ;;  %v16235_v33 = vpack.c.bf16 %v8424_v47, %v8423_v45  ;;  %v8394_v34 = vld [vmem:[%s19684_s8 + $0x268] sm:$0xff]  ;;  %v16205_v41 = vpack.c.bf16 %v8410_v13, %v8409_v5  ;;  %v8445_v45 = vld [vmem:[%s19684_s8 + $0x400] sm:$0xff]  ;;  %v16253_v55 = vpack.c.bf16 %v8466_v37, %v8465_v8  ;;  %v8467_v54 = vld [vmem:[%s19684_s8 + $0x4b0] sm:$0xff] }
0x2a21   : > { %v16207_v49 = vpack.c.bf16 %v8394_v34, %v8393_v62  ;;  %v8446_v47 = vld [vmem:[%s19684_s8 + $0x408] sm:$0xff]  ;;  %v8477_v13 = vld [vmem:[%s19684_s8 + $0x500] sm:$0xff]  ;;  %v8456_v8 = vld [vmem:[%s19684_s8 + $0x458] sm:$0xff] }
0x2a22   : > { %v18814_v60 = vpop.f32.mrb[90].mxu1  ;;  %v18816_v16 = vpop.f32.mrb[92].mxu0  ;;  %16192 = vmatpush3.bf16.msra.mxu1 %v16191_v40  ;;  %16224 = vmatpush3.bf16.msra.mxu0 %v16223_v29  ;;  %v8487_v37 = vld [vmem:[%s19684_s8 + $0x550] sm:$0xff] }
0x2a23   : > { %v18820_v35 = vpop.f32.mrb[91].mxu1  ;;  %v18822_v36 = vpop.f32.mrb[93].mxu0  ;;  %16194 = vmatprep.subr.bf16.mxu1 %v16193_v25  ;;  %16226 = vmatprep.subr.bf16.mxu0 %v16225_v42  ;;  %v8425_v25 = vld [vmem:[%s19684_s8 + $0x360] sm:$0xff]  ;;  %v8426_v42 = vld [vmem:[%s19684_s8 + $0x368] sm:$0xff] }
0x2a24   : > { %v9012_v5 = vadd.f32 %v18820_v35, %v8615_v57  ;;  %v16279_v35 = vpack.c.bf16 %v8478_v7, %v8477_v13  ;;  %v8468_v57 = vld [vmem:[%s19684_s8 + $0x4b8] sm:$0xff]  ;;  %v8501_v13 = vld [vmem:[%s19684_s8 + $0x5c0] sm:$0xff]  ;;  %v8502_v7 = vld [vmem:[%s19684_s8 + $0x5c8] sm:$0xff] }
0x2a26   : > { %16196 = vmatpush3.bf16.msra.mxu1 %v16195_v21  ;;  %16228 = vmatpush3.bf16.msra.mxu0 %v16227_v24  ;;  %v16239_v21 = vpack.c.bf16 %v8426_v42, %v8425_v25  ;;  %v8395_v24 = vld [vmem:[%s19684_s8 + $0x270] sm:$0xff] }
0x2a27   : > { %16198 = vmatprep.subr.bf16.mxu1 %v16197_v56  ;;  %16230 = vmatprep.subr.bf16.mxu0 %v16229_v4  ;;  %v8603_v56 = vrot.slane %v18764_v30, %v17689_v50  ;;  %v16209_v4 = vpack.c.bf16 %v8412_v28, %v8411_v44  ;;  %v16211_v30 = vpack.c.bf16 %v8396_v0, %v8395_v24  ;;  %v8479_v25 = vld [vmem:[%s19684_s8 + $0x510] sm:$0xff]  ;;  %v8480_v28 = vld [vmem:[%s19684_s8 + $0x518] sm:$0xff] }
0x2a28   : > { %v16283_v0 = vpack.c.bf16 %v8480_v28, %v8479_v25  ;;  %v8504_v25 = vld [vmem:[%s19684_s8 + $0x5d8] sm:$0xff]  ;;  %v8455_v28 = vld [vmem:[%s19684_s8 + $0x450] sm:$0xff] }
0x2a2a   : > { %v18843_v48 = vpop.f32.mrb[92].mxu1  ;;  %v9222_v6 = vpop.f32.mrb[94].mxu0  ;;  %16200 = vmatpush3.bf16.msra.mxu1 %v16199_v11  ;;  %16232 = vmatpush3.bf16.msra.mxu0 %v16231_v59  ;;  %v8494_v11 = vld [vmem:[%s19684_s8 + $0x588] sm:$0xff]  ;;  %v8623_v59 = vrot.slane %v18831_v22, %v17577_v20 }
0x2a2b   : > { %v18847_v31 = vadd.f32 %v9222_v6, %v8635_v38  ;;  %v18849_v40 = vpop.f32.mrb[93].mxu1  ;;  %v18851_v29 = vpop.f32.mrb[95].mxu0  ;;  %16202 = vmatprep.subr.bf16.mxu1 %v16201_v10  ;;  %16234 = vmatprep.subr.bf16.mxu0 %v16233_v14  ;;  %v8868_v38 = vadd.f32 %v18794_v26, %v8595_v9  ;;  %v8939_v10 = vadd.f32 %v18796_v61, %v8603_v56  ;;  %v8496_v26 = vld [vmem:[%s19684_s8 + $0x598] sm:$0xff]  ;;  %v8449_v56 = vld [vmem:[%s19684_s8 + $0x420] sm:$0xff] }
0x2a2c   : > { %v16277_v14 = vpack.c.bf16 %v8494_v11, %v8493_v23  ;;  %v9083_v6 = vadd.f32 %v18822_v36, %v8623_v59  ;;  %v16247_v61 = vpack.c.bf16 %v8446_v47, %v8445_v45  ;;  %v9236_v36 = vmax.f32 %v9012_v5, 0.0  ;;  %v8499_v23 = vld [vmem:[%s19684_s8 + $0x5b0] sm:$0xff]  ;;  %v8500_v11 = vld [vmem:[%s19684_s8 + $0x5b8] sm:$0xff]  ;;  %v8469_v47 = vld [vmem:[%s19684_s8 + $0x4c0] sm:$0xff] }
0x2a2d   : > { %v9231_v62 = vmax.f32 %v8868_v38, 0.0  ;;  %v9233_v34 = vmax.f32 %v8939_v10, 0.0  ;;  %v8452_v38 = vld [vmem:[%s19684_s8 + $0x438] sm:$0xff]  ;;  %v8483_v10 = vld [vmem:[%s19684_s8 + $0x530] sm:$0xff]  ;;  %v8470_v5 = vld [vmem:[%s19684_s8 + $0x4c8] sm:$0xff] }
0x2a2e   : > { %16204 = vmatpush3.bf16.msra.mxu1 %v16203_v32  ;;  %16236 = vmatpush3.bf16.msra.mxu0 %v16235_v33  ;;  %v8464_v32 = vld [vmem:[%s19684_s8 + $0x498] sm:$0xff]  ;;  %v8495_v33 = vld [vmem:[%s19684_s8 + $0x590] sm:$0xff]  ;;  %v9238_v9 = vmax.f32 %v9083_v6, 0.0 }
0x2a2f   : > { %16206 = vmatprep.subr.bf16.mxu1 %v16205_v41  ;;  %16238 = vmatprep.subr.bf16.mxu0 %v16237_v46  ;;  %v8447_v41 = vld [vmem:[%s19684_s8 + $0x410] sm:$0xff]  ;;  %v8448_v46 = vld [vmem:[%s19684_s8 + $0x418] sm:$0xff]  ;;  %v16249_v42 = vpack.c.bf16 %v8464_v32, %v8463_v1  ;;  %v16281_v44 = vpack.c.bf16 %v8496_v26, %v8495_v33  ;;  %v16261_v32 = vpack.c.bf16 %v8470_v5, %v8469_v47  ;;  %v8453_v33 = vld [vmem:[%s19684_s8 + $0x440] sm:$0xff] }
0x2a30   : > { %v16251_v24 = vpack.c.bf16 %v8448_v46, %v8447_v41  ;;  %v8484_v45 = vld [vmem:[%s19684_s8 + $0x538] sm:$0xff]  ;;  %v8454_v26 = vld [vmem:[%s19684_s8 + $0x448] sm:$0xff]  ;;  %v8503_v46 = vld [vmem:[%s19684_s8 + $0x5d0] sm:$0xff] }
0x2a31   : > { %v16291_v6 = vpack.c.bf16 %v8484_v45, %v8483_v10  ;;  %v8472_v41 = vld [vmem:[%s19684_s8 + $0x4d8] sm:$0xff]  ;;  %v8459_v45 = vld [vmem:[%s19684_s8 + $0x470] sm:$0xff] }
0x2a32   : > { %16208 = vmatpush3.bf16.msra.mxu1 %v16207_v49  ;;  %16240 = vmatpush3.bf16.msra.mxu0 %v16239_v21  ;;  %v8497_v49 = vld [vmem:[%s19684_s8 + $0x5a0] sm:$0xff]  ;;  %v8498_v21 = vld [vmem:[%s19684_s8 + $0x5a8] sm:$0xff]  ;;  %v8460_v47 = vld [vmem:[%s19684_s8 + $0x478] sm:$0xff] }
0x2a33   : > { %16210 = vmatprep.subr.bf16.mxu1 %v16209_v4  ;;  %16242 = vmatprep.subr.bf16.mxu0 %v16241_v52  ;;  %v8450_v4 = vld [vmem:[%s19684_s8 + $0x428] sm:$0xff]  ;;  %v8481_v52 = vld [vmem:[%s19684_s8 + $0x520] sm:$0xff]  ;;  %v16285_v18 = vpack.c.bf16 %v8498_v21, %v8497_v49  ;;  %v8488_v49 = vld [vmem:[%s19684_s8 + $0x558] sm:$0xff] }
0x2a34   : > { %v16255_v59 = vpack.c.bf16 %v8450_v4, %v8449_v56  ;;  %v8473_v21 = vld [vmem:[%s19684_s8 + $0x4e0] sm:$0xff]  ;;  %v16267_v56 = vpack.c.bf16 %v8456_v8, %v8455_v28  ;;  %v16299_v4 = vpack.c.bf16 %v8488_v49, %v8487_v37  ;;  %v8491_v5 = vld [vmem:[%s19684_s8 + $0x570] sm:$0xff]  ;;  %v8542_v8 = vld [vmem:[%s19684_s8 + $0x708] sm:$0xff] }
0x2a35   : > { %v8541_v28 = vld [vmem:[%s19684_s8 + $0x700] sm:$0xff] }
0x2a36   : > { %16212 = vmatpush3.bf16.msra.mxu1 %v16211_v30  ;;  %16244 = vmatpush3.bf16.msra.mxu0 %v16243_v2  ;;  %v16287_v30 = vpack.c.bf16 %v8482_v51, %v8481_v52  ;;  %v16257_v2 = vpack.c.bf16 %v8468_v57, %v8467_v54  ;;  %v8458_v51 = vld [vmem:[%s19684_s8 + $0x468] sm:$0xff]  ;;  %v8489_v54 = vld [vmem:[%s19684_s8 + $0x560] sm:$0xff] }
0x2a37   : > { %16246 = vmatprep.subr.bf16.mxu1 %v16245_v3  ;;  %16278 = vmatprep.subr.bf16.mxu0 %v16277_v14  ;;  %v8451_v3 = vld [vmem:[%s19684_s8 + $0x430] sm:$0xff]  ;;  %v16289_v14 = vpack.c.bf16 %v8500_v11, %v8499_v23  ;;  %v8490_v23 = vld [vmem:[%s19684_s8 + $0x568] sm:$0xff] }
0x2a38   : > { %v16259_v1 = vpack.c.bf16 %v8452_v38, %v8451_v3  ;;  %v8475_v11 = vld [vmem:[%s19684_s8 + $0x4f0] sm:$0xff]  ;;  %v8611_v38 = vrot.slane %v18831_v22, %v17565_v17  ;;  %v16303_v10 = vpack.c.bf16 %v8490_v23, %v8489_v54  ;;  %v8530_v54 = vld [vmem:[%s19684_s8 + $0x6a8] sm:$0xff] }
0x2a39   : > { %9454 = vmatmul.mubr.f32.vlgmr.msra.gmra.mrb[96].mxu1 %v9231_v62  ;;  %9524 = vmatmul.mubr.f32.vlgmr.msra.gmra.mrb[98].mxu0 %v9233_v34  ;;  %v16293_v62 = vpack.c.bf16 %v8502_v7, %v8501_v13  ;;  %v8486_v34 = vld [vmem:[%s19684_s8 + $0x548] sm:$0xff]  ;;  %v8619_v13 = vrot.slane %v18831_v22, %v17568_v53 }
0x2a3a   : > { %16248 = vmatpush3.bf16.msra.mxu1 %v16247_v61  ;;  %9593 = vmatprep.mubr.f32.mxu1 %v9236_v36  ;;  %v8485_v61 = vld [vmem:[%s19684_s8 + $0x540] sm:$0xff]  ;;  %v16263_v36 = vpack.c.bf16 %v8454_v26, %v8453_v33  ;;  %v8631_v33 = vrot.slane %v18831_v22, %v17590_v27 }
0x2a3b   : > { %16280 = vmatpush3.bf16.msra.mxu0 %v16279_v35  ;;  %9663 = vmatprep.mubr.f32.mxu0 %v9238_v9  ;;  %v8471_v35 = vld [vmem:[%s19684_s8 + $0x4d0] sm:$0xff]  ;;  %v16297_v9 = vpack.c.bf16 %v8504_v25, %v8503_v46  ;;  %v8557_v26 = vld [vmem:[%s19684_s8 + $0x780] sm:$0xff] }
0x2a3c   : > { %16250 = vmatprep.subr.bf16.mxu1 %v16249_v42  ;;  %16282 = vmatprep.subr.bf16.mxu0 %v16281_v44  ;;  %v16295_v42 = vpack.c.bf16 %v8486_v34, %v8485_v61  ;;  %v16265_v44 = vpack.c.bf16 %v8472_v41, %v8471_v35  ;;  %v8558_v61 = vld [vmem:[%s19684_s8 + $0x788] sm:$0xff]  ;;  %v16275_v34 = vpack.c.bf16 %v8460_v47, %v8459_v45  ;;  %v8509_v25 = vld [vmem:[%s19684_s8 + $0x600] sm:$0xff] }
0x2a3d   : > { %v9010_v35 = vadd.f32 %v18814_v60, %v8611_v38  ;;  %v9154_v37 = vadd.f32 %v18849_v40, %v8631_v33  ;;  %v8527_v60 = vld [vmem:[%s19684_s8 + $0x690] sm:$0xff]  ;;  %v8545_v45 = vld [vmem:[%s19684_s8 + $0x720] sm:$0xff] }
0x2a3e   : > { %16252 = vmatpush3.bf16.msra.mxu1 %v16251_v24  ;;  %v8474_v24 = vld [vmem:[%s19684_s8 + $0x4e8] sm:$0xff]  ;;  %v8543_v40 = vld [vmem:[%s19684_s8 + $0x710] sm:$0xff] }
0x2a3f   : > { %16284 = vmatpush3.bf16.msra.mxu0 %v16283_v0  ;;  %16254 = vmatprep.subr.bf16.mxu1 %v16253_v55  ;;  %v8505_v0 = vld [vmem:[%s19684_s8 + $0x5e0] sm:$0xff]  ;;  %v8506_v55 = vld [vmem:[%s19684_s8 + $0x5e8] sm:$0xff]  ;;  %v16269_v52 = vpack.c.bf16 %v8474_v24, %v8473_v21  ;;  %v8559_v24 = vld [vmem:[%s19684_s8 + $0x790] sm:$0xff] }
0x2a40   : > { %16286 = vmatprep.subr.bf16.mxu0 %v16285_v18  ;;  %v8457_v18 = vld [vmem:[%s19684_s8 + $0x460] sm:$0xff]  ;;  %v16301_v57 = vpack.c.bf16 %v8506_v55, %v8505_v0  ;;  %v9235_v0 = vmax.f32 %v9010_v35, 0.0  ;;  %v16343_v55 = vpack.c.bf16 %v8542_v8, %v8541_v28 }
0x2a41   : > { %v16271_v3 = vpack.c.bf16 %v8458_v51, %v8457_v18  ;;  %v8544_v51 = vld [vmem:[%s19684_s8 + $0x718] sm:$0xff] }
0x2a42   : > { %16256 = vmatpush3.bf16.msra.mxu1 %v16255_v59  ;;  %v8476_v59 = vld [vmem:[%s19684_s8 + $0x4f8] sm:$0xff] }
0x2a43   : > { %16288 = vmatpush3.bf16.msra.mxu0 %v16287_v30  ;;  %16258 = vmatprep.subr.bf16.mxu1 %v16257_v2  ;;  %v8507_v30 = vld [vmem:[%s19684_s8 + $0x5f0] sm:$0xff]  ;;  %v8508_v2 = vld [vmem:[%s19684_s8 + $0x5f8] sm:$0xff] }
0x2a44   : > { %16290 = vmatprep.subr.bf16.mxu0 %v16289_v14  ;;  %v16273_v14 = vpack.c.bf16 %v8476_v59, %v8475_v11  ;;  %v16305_v7 = vpack.c.bf16 %v8508_v2, %v8507_v30  ;;  %v8561_v11 = vld [vmem:[%s19684_s8 + $0x7a0] sm:$0xff]  ;;  %v8562_v59 = vld [vmem:[%s19684_s8 + $0x7a8] sm:$0xff] }
0x2a45   : > { %v16349_v47 = vpack.c.bf16 %v8562_v59, %v8561_v11  ;;  %v8569_v11 = vld [vmem:[%s19684_s8 + $0x7e0] sm:$0xff]  ;;  %v8570_v59 = vld [vmem:[%s19684_s8 + $0x7e8] sm:$0xff] }
0x2a46   : > { %16260 = vmatpush3.bf16.msra.mxu1 %v16259_v1  ;;  %v8492_v1 = vld [vmem:[%s19684_s8 + $0x578] sm:$0xff] }
0x2a47   : > { %16292 = vmatpush3.bf16.msra.mxu0 %v16291_v6  ;;  %16262 = vmatprep.subr.bf16.mxu1 %v16261_v32  ;;  %v8525_v6 = vld [vmem:[%s19684_s8 + $0x680] sm:$0xff]  ;;  %v8526_v32 = vld [vmem:[%s19684_s8 + $0x688] sm:$0xff]  ;;  %v16307_v41 = vpack.c.bf16 %v8492_v1, %v8491_v5  ;;  %v8563_v1 = vld [vmem:[%s19684_s8 + $0x7b0] sm:$0xff] }
0x2a48   : > { %16294 = vmatprep.subr.bf16.mxu0 %v16293_v62  ;;  %v8639_v62 = vrot.slane %v18831_v22, %v17599_v43  ;;  %v16309_v46 = vpack.c.bf16 %v8526_v32, %v8525_v6  ;;  %v8546_v5 = vld [vmem:[%s19684_s8 + $0x728] sm:$0xff]  ;;  %v8564_v6 = vld [vmem:[%s19684_s8 + $0x7b8] sm:$0xff] }
0x2a49   : > { %v16351_v33 = vpack.c.bf16 %v8546_v5, %v8545_v45  ;;  %v16353_v35 = vpack.c.bf16 %v8564_v6, %v8563_v1  ;;  %v16365_v45 = vpack.c.bf16 %v8570_v59, %v8569_v11  ;;  %v8539_v5 = vld [vmem:[%s19684_s8 + $0x6f0] sm:$0xff]  ;;  %v8572_v1 = vld [vmem:[%s19684_s8 + $0x7f8] sm:$0xff] }
0x2a4a   : > { %16264 = vmatpush3.bf16.msra.mxu1 %v16263_v36  ;;  %v8510_v36 = vld [vmem:[%s19684_s8 + $0x608] sm:$0xff]  ;;  %v9225_v49 = vadd.f32 %v18851_v29, %v8639_v62  ;;  %v8529_v29 = vld [vmem:[%s19684_s8 + $0x6a0] sm:$0xff]  ;;  %v8516_v62 = vld [vmem:[%s19684_s8 + $0x638] sm:$0xff] }
0x2a4b   : > { %16296 = vmatpush3.bf16.msra.mxu0 %v16295_v42  ;;  %16266 = vmatprep.subr.bf16.mxu1 %v16265_v44  ;;  %v9081_v42 = vadd.f32 %v18816_v16, %v8619_v13  ;;  %v16341_v44 = vpack.c.bf16 %v8558_v61, %v8557_v26  ;;  %v16311_v21 = vpack.c.bf16 %v8510_v36, %v8509_v25  ;;  %v8560_v16 = vld [vmem:[%s19684_s8 + $0x798] sm:$0xff]  ;;  %v8531_v13 = vld [vmem:[%s19684_s8 + $0x6b0] sm:$0xff]  ;;  %v8534_v25 = vld [vmem:[%s19684_s8 + $0x6c8] sm:$0xff] }
0x2a4c   : > { %16298 = vmatprep.subr.bf16.mxu0 %v16297_v9  ;;  %v8528_v9 = vld [vmem:[%s19684_s8 + $0x698] sm:$0xff]  ;;  %v16345_v23 = vpack.c.bf16 %v8560_v16, %v8559_v24  ;;  %v9242_v30 = vmax.f32 %v9225_v49, 0.0  ;;  %v16317_v38 = vpack.c.bf16 %v8530_v54, %v8529_v29  ;;  %v8515_v61 = vld [vmem:[%s19684_s8 + $0x630] sm:$0xff]  ;;  %v8565_v36 = vld [vmem:[%s19684_s8 + $0x7c0] sm:$0xff] }
0x2a4d   : > { %v16313_v18 = vpack.c.bf16 %v8528_v9, %v8527_v60  ;;  %v8518_v60 = vld [vmem:[%s19684_s8 + $0x648] sm:$0xff]  ;;  %v8549_v9 = vld [vmem:[%s19684_s8 + $0x740] sm:$0xff]  ;;  %v8535_v24 = vld [vmem:[%s19684_s8 + $0x6d0] sm:$0xff] }
0x2a4e   : > { %16268 = vmatpush3.bf16.msra.mxu1 %v16267_v56  ;;  %v8511_v56 = vld [vmem:[%s19684_s8 + $0x610] sm:$0xff]  ;;  %v8536_v16 = vld [vmem:[%s19684_s8 + $0x6d8] sm:$0xff] }
0x2a4f   : > { %16300 = vmatpush3.bf16.msra.mxu0 %v16299_v4  ;;  %16270 = vmatprep.subr.bf16.mxu1 %v16269_v52  ;;  %v8512_v4 = vld [vmem:[%s19684_s8 + $0x618] sm:$0xff]  ;;  %v9237_v52 = vmax.f32 %v9081_v42, 0.0  ;;  %v8566_v42 = vld [vmem:[%s19684_s8 + $0x7c8] sm:$0xff] }
0x2a50   : > { %16302 = vmatprep.subr.bf16.mxu0 %v16301_v57  ;;  %v9240_v57 = vmax.f32 %v9154_v37, 0.0  ;;  %v16315_v2 = vpack.c.bf16 %v8512_v4, %v8511_v56  ;;  %v8517_v37 = vld [vmem:[%s19684_s8 + $0x640] sm:$0xff]  ;;  %v16357_v49 = vpack.c.bf16 %v8566_v42, %v8565_v36  ;;  %v8552_v54 = vld [vmem:[%s19684_s8 + $0x758] sm:$0xff]  ;;  %v9241_v42 = vmax.f32 %v18847_v31, 0.0 }
0x2a51   : > { %v16327_v56 = vpack.c.bf16 %v8518_v60, %v8517_v37 }
0x2a52   : > { %16272 = vmatpush3.bf16.msra.mxu1 %v16271_v3  ;;  %v16347_v3 = vpack.c.bf16 %v8544_v51, %v8543_v40  ;;  %v16329_v40 = vpack.c.bf16 %v8536_v16, %v8535_v24  ;;  %v8551_v51 = vld [vmem:[%s19684_s8 + $0x750] sm:$0xff] }
0x2a53   : > { %16304 = vmatpush3.bf16.msra.mxu0 %v16303_v10  ;;  %16274 = vmatprep.subr.bf16.mxu1 %v16273_v14  ;;  %v8513_v10 = vld [vmem:[%s19684_s8 + $0x620] sm:$0xff]  ;;  %v8514_v14 = vld [vmem:[%s19684_s8 + $0x628] sm:$0xff] }
0x2a54   : > { %16306 = vmatprep.subr.bf16.mxu0 %v16305_v7  ;;  %v8532_v7 = vld [vmem:[%s19684_s8 + $0x6b8] sm:$0xff]  ;;  %v16319_v32 = vpack.c.bf16 %v8514_v14, %v8513_v10  ;;  %v8522_v10 = vld [vmem:[%s19684_s8 + $0x668] sm:$0xff]  ;;  %v8553_v14 = vld [vmem:[%s19684_s8 + $0x760] sm:$0xff] }
0x2a55   : > { %v16321_v26 = vpack.c.bf16 %v8532_v7, %v8531_v13  ;;  %v8540_v13 = vld [vmem:[%s19684_s8 + $0x6f8] sm:$0xff]  ;;  %v8571_v7 = vld [vmem:[%s19684_s8 + $0x7f0] sm:$0xff] }
0x2a56   : > { %16276 = vmatpush3.bf16.msra.mxu1 %v16275_v34  ;;  %v8547_v34 = vld [vmem:[%s19684_s8 + $0x730] sm:$0xff] }
0x2a57   : > { %16308 = vmatpush3.bf16.msra.mxu0 %v16307_v41  ;;  %16310 = vmatprep.subr.bf16.mxu1 %v16309_v46  ;;  %v8548_v41 = vld [vmem:[%s19684_s8 + $0x738] sm:$0xff]  ;;  %v8533_v46 = vld [vmem:[%s19684_s8 + $0x6c0] sm:$0xff] }
0x2a58   : > { %16342 = vmatprep.subr.bf16.mxu0 %v16341_v44  ;;  %v16323_v44 = vpack.c.bf16 %v8516_v62, %v8515_v61  ;;  %v16355_v28 = vpack.c.bf16 %v8548_v41, %v8547_v34  ;;  %v16325_v8 = vpack.c.bf16 %v8534_v25, %v8533_v46  ;;  %v8523_v61 = vld [vmem:[%s19684_s8 + $0x670] sm:$0xff]  ;;  %v8524_v62 = vld [vmem:[%s19684_s8 + $0x678] sm:$0xff]  ;;  %v16369_v34 = vpack.c.bf16 %v8572_v1, %v8571_v7  ;;  %v13322_v7 = vld [vmem:[%s19669_s18 + $0x28] sm:$0xff] }
0x2a59   : > { %9594 = vmatmul.mubr.f32.vlgmr.msra.gmra.mrb[98].mxu1 %v9235_v0  ;;  %v8567_v0 = vld [vmem:[%s19684_s8 + $0x7d0] sm:$0xff]  ;;  %v8556_v41 = vld [vmem:[%s19684_s8 + $0x778] sm:$0xff]  ;;  %v16339_v46 = vpack.c.bf16 %v8524_v62, %v8523_v61 }
0x2a5a   : > { %9664 = vmatmul.mubr.f32.vlgmr.msra.gmra.mrb[100].mxu0 %v9237_v52  ;;  %16312 = vmatpush3.bf16.msra.mxu1 %v16311_v21  ;;  %v8550_v21 = vld [vmem:[%s19684_s8 + $0x748] sm:$0xff]  ;;  %v8519_v52 = vld [vmem:[%s19684_s8 + $0x650] sm:$0xff] }
0x2a5b   : > { %9733 = vmatprep.mubr.f32.mxu1 %v9240_v57  ;;  %16344 = vmatpush3.bf16.msra.mxu0 %v16343_v55  ;;  %v8568_v55 = vld [vmem:[%s19684_s8 + $0x7d8] sm:$0xff]  ;;  %v16359_v4 = vpack.c.bf16 %v8550_v21, %v8549_v9  ;;  %v8537_v57 = vld [vmem:[%s19684_s8 + $0x6e0] sm:$0xff] }
0x2a5c   : > { %9803 = vmatprep.mubr.f32.mxu0 %v9242_v30  ;;  %16314 = vmatprep.subr.bf16.mxu1 %v16313_v18  ;;  %v8520_v18 = vld [vmem:[%s19684_s8 + $0x658] sm:$0xff]  ;;  %v16361_v29 = vpack.c.bf16 %v8568_v55, %v8567_v0 }
0x2a5d   : > { %16346 = vmatprep.subr.bf16.mxu0 %v16345_v23  ;;  %v8538_v23 = vld [vmem:[%s19684_s8 + $0x6e8] sm:$0xff]  ;;  %v16331_v30 = vpack.c.bf16 %v8520_v18, %v8519_v52 }
0x2a5e   : > { %16316 = vmatpush3.bf16.msra.mxu1 %v16315_v2  ;;  %v16363_v2 = vpack.c.bf16 %v8552_v54, %v8551_v51 }
0x2a5f   : > { %16348 = vmatpush3.bf16.msra.mxu0 %v16347_v3  ;;  %16318 = vmatprep.subr.bf16.mxu1 %v16317_v38  ;;  %v16333_v3 = vpack.c.bf16 %v8538_v23, %v8537_v57  ;;  %v8521_v38 = vld [vmem:[%s19684_s8 + $0x660] sm:$0xff] }
0x2a60   : > { %16350 = vmatprep.subr.bf16.mxu0 %v16349_v47  ;;  %v8554_v47 = vld [vmem:[%s19684_s8 + $0x768] sm:$0xff]  ;;  %v16335_v6 = vpack.c.bf16 %v8522_v10, %v8521_v38 }
0x2a62   : > { %16320 = vmatpush3.bf16.msra.mxu1 %v16319_v32  ;;  %v8627_v32 = vrot.slane %v18831_v22, %v17680_v39 }
0x2a63   : > { %16352 = vmatpush3.bf16.msra.mxu0 %v16351_v33  ;;  %16322 = vmatprep.subr.bf16.mxu1 %v16321_v26  ;;  %v16367_v33 = vpack.c.bf16 %v8554_v47, %v8553_v14  ;;  %v16337_v26 = vpack.c.bf16 %v8540_v13, %v8539_v5  ;;  %v13321_v13 = vld [vmem:[%s19669_s18 + $0x20] sm:$0xff] }
0x2a64   : > { %16354 = vmatprep.subr.bf16.mxu0 %v16353_v35  ;;  %v8555_v35 = vld [vmem:[%s19684_s8 + $0x770] sm:$0xff]  ;;  %v9152_v25 = vadd.f32 %v18843_v48, %v8627_v32  ;;  %v16824_v1 = vpack.i.bf16 %v13322_v7, %v13321_v13 }
0x2a65   : > { %v16371_v36 = vpack.c.bf16 %v8556_v41, %v8555_v35 }
0x2a66   : > { %16324 = vmatpush3.bf16.msra.mxu1 %v16323_v44  ;;  %v9239_v22 = vmax.f32 %v9152_v25, 0.0  ;;  %16825 = vrot.lane.b32.xlu0 %v16824_v1, %s19687_s14  ;;  %v13324_v25 = vld [vmem:[%s19669_s18 + $0x38] sm:$0xff] }
0x2a67   : > { %16356 = vmatpush3.bf16.msra.mxu0 %v16355_v28  ;;  %16326 = vmatprep.subr.bf16.mxu1 %v16325_v8  ;;  %v13316_v28 = vld [vmem:[%s19686_s13] ss:$0 sm:$0xff] }
0x2a68   : > { %16358 = vmatprep.subr.bf16.mxu0 %v16357_v49 }
0x2a6a   : > { %16328 = vmatpush3.bf16.msra.mxu1 %v16327_v56 }
0x2a6b   : > { %16360 = vmatpush3.bf16.msra.mxu0 %v16359_v4  ;;  %16330 = vmatprep.subr.bf16.mxu1 %v16329_v40 }
0x2a6c   : > { %16362 = vmatprep.subr.bf16.mxu0 %v16361_v29 }
0x2a6e   : > { %16332 = vmatpush3.bf16.msra.mxu1 %v16331_v30 }
0x2a6f   : > { %16364 = vmatpush3.bf16.msra.mxu0 %v16363_v2  ;;  %16334 = vmatprep.subr.bf16.mxu1 %v16333_v3 }
0x2a70   : > { %16366 = vmatprep.subr.bf16.mxu0 %v16365_v45 }
0x2a72   : > { %16336 = vmatpush3.bf16.msra.mxu1 %v16335_v6  ;;  %v16374_v6 = vpack.c.bf16 %v13322_v7, %v13321_v13 }
0x2a73   : > { %16368 = vmatpush3.bf16.msra.mxu0 %v16367_v33  ;;  %16338 = vmatprep.subr.bf16.mxu1 %v16337_v26 }
0x2a74   : > { %16370 = vmatprep.subr.bf16.mxu0 %v16369_v34 }
0x2a76   : > { %16340 = vmatpush3.bf16.msra.mxu1 %v16339_v46  ;;  %v13323_v46 = vld [vmem:[%s19669_s18 + $0x30] sm:$0xff]  ;;  %s19688_s18 = smov 120  }
0x2a77   : > { %16372 = vmatpush3.bf16.msra.mxu0 %v16371_v36  ;;  %16373 = vmatprep.subr.bf16.mxu1 %v17017_v58  ;;  %v16829_v36 = vpack.i.bf16 %v13324_v25, %v13323_v46 }
0x2a78   : > { %16379 = vmatprep.subr.bf16.mxu0 %v17017_v58 }
0x2a79   : > { %9734 = vmatmul.mubr.f32.vlgmr.msra.gmra.mrb[100].mxu1 %v9239_v22  ;;  %v16377_v22 = vpack.c.bf16 %v13324_v25, %v13323_v46 }
0x2a7a   : > { %9804 = vmatmul.mubr.f32.vlgmr.msra.gmra.mrb[102].mxu0 %v9241_v42  ;;  %15259 = vmatprep.mubr.msk.f32.mxu1 %vm17018_vm12, %v17016_v63  ;;  %v13331_v42 = vld [vmem:[%s19670_s28 + $0x1] ss:$0 sm:$0xff] }
0x2a7b   : > { %15270 = vmatprep.mubr.msk.f32.mxu0 %vm17018_vm12, %v17016_v63  ;;  %16375 = vmatpush3.bf16.msra.mxu1 %v16374_v6 }
0x2a7c   : > { %16376 = vmatprep.subr.bf16.mxu1 %v17017_v58  ;;  %9957 = vrot.lane.b32.xlu0 %v13331_v42, %s19687_s14 }
0x2a7f   : > { %16378 = vmatpush3.bf16.msra.mxu1 %v16377_v22 }
0x2a80   : > { %15273 = vmatprep.subr.mxu1 %v17016_v63 }
0x2ad8   : > { %v16826_v32 = vpop.permute.xlu0 %16825 }
0x2ad9   : > { %v16828_v33 = vunpack.i.h.bf16 %v16826_v32  ;;  %v16827_v26 = vunpack.i.l.bf16 %v16826_v32 }
0x2adb   : > { %v16380_v61 = vpack.c.bf16 %v16828_v33, %v16827_v26 }
0x2add   : > { %16381 = vmatpush3.bf16.msra.mxu0 %v16380_v61 }
0x2ade   : > { %16382 = vmatprep.subr.bf16.mxu0 %v17017_v58 }
0x2aec   : > { %v14432_v48 = vpop.f32.mrb[94].mxu1  ;;  %v14467_v44 = vpop.f32.mrb[96].mxu0 }
0x2aed   : > { %v14433_v8 = vpop.f32.mrb[95].mxu1  ;;  %v14468_v37 = vpop.f32.mrb[97].mxu0 }
0x2aee   : > { %v14434_v60 = vadd.f32 %v14433_v8, %v14432_v48  ;;  %v14469_v9 = vadd.f32 %v14468_v37, %v14467_v44 }
0x2af0   : > { %v9316_v49 = vadd.f32 %v14434_v60, %v13316_v28 }
0x2af2   : > { %v9386_v21 = vadd.f32 %v14469_v9, %v9316_v49 }
0x2b0c   : > { %v14502_v31 = vpop.f32.mrb[96].mxu1  ;;  %v14537_v24 = vpop.f32.mrb[98].mxu0 }
0x2b0d   : > { %v14503_v16 = vpop.f32.mrb[97].mxu1  ;;  %v14538_v0 = vpop.f32.mrb[99].mxu0 }
0x2b0e   : > { %v14504_v55 = vadd.f32 %v14503_v16, %v14502_v31  ;;  %v14539_v56 = vadd.f32 %v14538_v0, %v14537_v24  ;;  %v13319_v0 = vld [vmem:[%s19672_s11 + $0x1] ss:$0 sm:$0xff] }
0x2b10   : > { %v9456_v4 = vadd.f32 %v14504_v55, %v9386_v21 }
0x2b12   : > { %v9526_v40 = vadd.f32 %v14539_v56, %v9456_v4  ;;  %v13320_v4 = vld [vmem:[%s19674_s1 + $0x1] ss:$0 sm:$0xff] }
0x2b2c   : > { %v14572_v52 = vpop.f32.mrb[98].mxu1 }
0x2b2d   : > { %v14607_v18 = vpop.f32.mrb[100].mxu0  ;;  %v14573_v51 = vpop.f32.mrb[99].mxu1 }
0x2b2e   : > { %v14574_v29 = vadd.f32 %v14573_v51, %v14572_v52  ;;  %v14608_v54 = vpop.f32.mrb[101].mxu0 }
0x2b2f   : > { %v14609_v57 = vadd.f32 %v14608_v54, %v14607_v18 }
0x2b30   : > { %v9596_v23 = vadd.f32 %v14574_v29, %v9526_v40 }
0x2b32   : > { %v9666_v11 = vadd.f32 %v14609_v57, %v9596_v23 }
0x2b4c   : > { %v14642_v59 = vpop.f32.mrb[100].mxu1 }
0x2b4d   : > { %v14677_v30 = vpop.f32.mrb[102].mxu0  ;;  %v14643_v2 = vpop.f32.mrb[101].mxu1 }
0x2b4e   : > { %v14644_v3 = vadd.f32 %v14643_v2, %v14642_v59  ;;  %v14678_v38 = vpop.f32.mrb[103].mxu0 }
0x2b4f   : > { %v14679_v10 = vadd.f32 %v14678_v38, %v14677_v30  ;;  %v19075_v38 = vld [vmem:[%s17282_s7 + $0x2] ss:$0 sm:$0xff] }
0x2b50   : > { %v9736_v14 = vadd.f32 %v14644_v3, %v9666_v11 }
0x2b52   : > { %v9806_v45 = vadd.f32 %v14679_v10, %v9736_v14 }
0x2b54   : > { %v19027_v47 = vadd.f32 %v9806_v45, %v18599_v12 }
0x2b56   : > { %v9814_v5 = vsel %vm1080_vm0, %v19027_v47, 0.0 }
0x2b57   : > { %9815 = vadd.xlane.f32.xlu1 %v9814_v5 }
0x2be4   : > { %v9816_v12 = vpop.xlane.xlu1 %9815 }
0x2be5   : > { %v9817_v62 = vmul.f32 0.03125, %v9816_v12 }
0x2be7   : > { %v9818_v34 = vsub.f32 %v19027_v47, %v9817_v62 }
0x2be9   : > { %v9819_v35 = vmul.f32 %v9818_v34, %v9818_v34  ;;  %v9830_v55 = vmul.f32 %v13319_v0, %v9818_v34 }
0x2beb   : > { %v9820_v41 = vsel %vm1080_vm0, %v9819_v35, 0.0 }
0x2bec   : > { %9821 = vadd.xlane.f32.xlu1 %v9820_v41 }
0x2bfd   : > { %16830 = vrot.lane.b32.xlu1 %v16829_v36, %s19687_s14 }
0x2c79   : > { %v9822_v48 = vpop.xlane.xlu1 %9821 }
0x2c7a   : > { %v9823_v44 = vmul.f32 0.032258064, %v9822_v48 }
0x2c7c   : > { %16934 = vrsqrt.f32 %v9823_v44  ;;  %vm9833_vm13 = vcmp.eq.f32.partialorder %v9823_v44, inf  ;;  %v9836_v21 = vand.u32 2147483648, %v9823_v44  ;;  %vm9835_vm14 = vcmp.eq.f32.partialorder %v9823_v44, 0.0 }
0x2c7d   : > { %v16831_v28 = vpop.permute.xlu1 %16830 }
0x2c7e   : > { %v16833_v8 = vunpack.i.h.bf16 %v16831_v28  ;;  %v16832_v37 = vunpack.i.l.bf16 %v16831_v28 }
0x2c80   : > { %v16383_v60 = vpack.c.bf16 %v16833_v8, %v16832_v37  ;;  %v13326_v37 = vld [vmem:[%s19676_s10 + $0x20] sm:$0xff] }
0x2c82   : > { %16384 = vmatpush3.bf16.msra.mxu0 %v16383_v60 }
0x2c83   : > { %15278 = vmatprep.subr.mxu0 %v17016_v63 }
0x2c85   : > { %15271 = vmatmul.mubr.msk.f32.vlgmr.msra.gmra.mrb[104].mxu0 %vm1080_vm0, %v18490_v15  ;;  %v9958_v15 = vpop.permute.xlu0 %9957 }
0x2c86   : > { %v16935_v9 = vpop.eup %16934  ;;  %15280 = vmatprep.mubr.msk.f32.mxu0 %vm17018_vm12, %v17016_v63 }
0x2c87   : > { %v9832_v49 = vmul.f32 %v16935_v9, %v9823_v44 }
0x2c89   : > { %v9834_v31 = vsel %vm9833_vm13, %v9823_v44, %v9832_v49 }
0x2c8a   : > { %v9837_v24 = vsel %vm9835_vm14, %v9836_v21, %v9834_v31 }
0x2c8b   : > { %v9838_v16 = vadd.f32 1e-06, %v9837_v24 }
0x2c8d   : > { %16936 = vrcp.f32 %v9838_v16 }
0x2c97   : > { %v16937_v56 = vpop.eup %16936 }
0x2c98   : > { %v9840_v40 = vmul.f32 %v16937_v56, %v9830_v55 }
0x2c9a   : > { %v9847_v52 = vadd.f32 %v13320_v4, %v9840_v40 }
0x2c9c   : > { %15260 = vmatmul.mubr.msk.f32.vlgmr.msra.gmra.mrb[102].mxu1 %vm1080_vm0, %v9847_v52 }
0x2c9d   : > { %15275 = vmatprep.mubr.msk.f32.mxu1 %vm17018_vm12, %v17016_v63 }
0x2d58   : > { %v10026_v18 = vpop.f32.mrb[104].mxu0 }
0x2d59   : > { %v19054_v51 = vadd.f32 %v10026_v18, %v9958_v15  ;;  %v15272_v29 = vpop.f32.mrb[105].mxu0 }
0x2d5b   : > { %10198 = vrot.lane.b32.xlu0 %v19054_v51, %s19688_s18  ;;  %15274 = vmatpush3.xpose.msk.msra.mxu1 %vm1241_vm5, %v19054_v51 }
0x2d5c   : > { %15283 = vmatprep.subr.mxu1 %v17016_v63 }
0x2d6f   : > { %v9937_v54 = vpop.f32.mrb[102].mxu1 }
0x2d70   : > { %v19061_v57 = vadd.f32 %v13331_v42, %v9937_v54  ;;  %v15261_v23 = vpop.f32.mrb[103].mxu1  ;;  %v13327_v42 = vld [vmem:[%s19676_s10 + $0x28] sm:$0xff] }
0x2d72   : > { %10196 = vrot.lane.b32.xlu0 %v19061_v57, %s19688_s18  ;;  %15276 = vmatmul.mubr.msk.f32.vlgmr.msra.gmra.mrb[104].mxu1 %vm1241_vm5, %v19061_v57 }
0x2d73   : > { %15285 = vmatprep.mubr.msk.f32.mxu1 %vm17018_vm12, %v17016_v63 }
0x2dcd   : > { %v10199_v11 = vpop.permute.xlu0 %10198 }
0x2dce   : > { %15284 = vmatpush3.xpose.msk.msra.mxu1 %vm1241_vm5, %v10199_v11 }
0x2dcf   : > { %15293 = vmatprep.subr.mxu1 %v17016_v63 }
0x2de4   : > { %v10197_v59 = vpop.permute.xlu0 %10196 }
0x2de5   : > { %15286 = vmatmul.mubr.msk.f32.vlgmr.msra.gmra.mrb[106].mxu1 %vm1241_vm5, %v10197_v59 }
0x2de6   : > { %15295 = vmatprep.mubr.msk.f32.mxu1 %vm17018_vm12, %v17016_v63  ;;  %15294 = vmatpush3.msra.mxu1 %v13327_v42 }
0x2de7   : > { %15303 = vmatprep.subr.mxu1 %v17016_v63 }
0x2e45   : > { %v10102_v30 = vpop.f32.mrb[104].mxu1 }
0x2e46   : > { %v10106_v2 = vmul.f32 0.35355338, %v10102_v30  ;;  %v15277_v3 = vpop.f32.mrb[105].mxu1 }
0x2e48   : > { %v10107_v10 = vadd.f32 %v19075_v38, %v10106_v2 }
0x2e4a   : > { %v10108_v14 = vsel %vm7319_vm8, %v10107_v10, -inf }
0x2e4b   : > { %10109 = vmax.xlane.f32.xlu0 %v10108_v14 }
0x2eb8   : > { %v10270_v45 = vpop.f32.mrb[106].mxu1 }
0x2eb9   : > { %v10274_v5 = vmul.f32 0.35355338, %v10270_v45  ;;  %v15287_v13 = vpop.f32.mrb[107].mxu1 }
0x2ebb   : > { %v10275_v7 = vadd.f32 %v19075_v38, %v10274_v5  ;;  %v13328_v5 = vld [vmem:[%s19676_s10 + $0x30] sm:$0xff] }
0x2ebd   : > { %v10276_v1 = vsel %vm7319_vm8, %v10275_v7, -inf }
0x2ebe   : > { %10277 = vmax.xlane.f32.xlu1 %v10276_v1 }
0x2ecf   : > { %10119 = vrot.lane.b32.xlu1 %v19054_v51, %s19687_s14  ;;  %s19689_s14 = smov 88  }
0x2ed3   : > { %10512 = vrot.lane.b32.xlu1 %v19054_v51, %s19675_s0 }
0x2ed7   : > { %10510 = vrot.lane.b32.xlu1 %v19061_v57, %s19675_s0 }
0x2ed8   : > { %v10110_v6 = vpop.xlane.xlu0 %10109 }
0x2ed9   : > { %v10111_v32 = vsub.f32 %v10107_v10, %v10110_v6 }
0x2edb   : > { %v10112_v33 = vmul.f32 1.442695, %v10111_v32 }
0x2edd   : > { %16938 = vpow2.f32 %v10112_v33 }
0x2ee7   : > { %v16939_v26 = vpop.eup %16938 }
0x2ee8   : > { %v10114_v12 = vsel %vm7319_vm8, %v16939_v26, 0.0 }
0x2ee9   : > { %10115 = vadd.xlane.f32.xlu0 %v10114_v12 }
0x2f4b   : > { %v10278_v61 = vpop.xlane.xlu1 %10277 }
0x2f4c   : > { %v10279_v62 = vsub.f32 %v10275_v7, %v10278_v61 }
0x2f4e   : > { %v10280_v34 = vmul.f32 1.442695, %v10279_v62 }
0x2f4f   : > { %v10120_v35 = vpop.permute.xlu1 %10119 }
0x2f50   : > { %16940 = vpow2.f32 %v10280_v34  ;;  %15279 = vmatpush3.msk.msra.mxu0 %vm7336_vm9, %v10120_v35 }
0x2f51   : > { %15288 = vmatprep.subr.mxu0 %v17016_v63 }
0x2f53   : > { %v10513_v49 = vpop.permute.xlu1 %10512 }
0x2f57   : > { %v10511_v24 = vpop.permute.xlu1 %10510 }
0x2f5a   : > { %v16941_v41 = vpop.eup %16940 }
0x2f5b   : > { %v10282_v46 = vsel %vm7319_vm8, %v16941_v41, 0.0 }
0x2f5c   : > { %10283 = vadd.xlane.f32.xlu0 %v10282_v46 }
0x2f72   : > { %10287 = vrot.lane.b32.xlu0 %v19054_v51, %s19689_s14 }
0x2f76   : > { %v10116_v25 = vpop.xlane.xlu0 %10115 }
0x2f77   : > { %16942 = vrcp.f32 %v10116_v25 }
0x2f81   : > { %v16943_v36 = vpop.eup %16942 }
0x2f82   : > { %v10118_v22 = vmul.f32 %v16943_v36, %v16939_v26 }
0x2f84   : > { %15281 = vmatmul.mubr.msk.f32.vlgmr.msra.gmra.mrb[106].mxu0 %vm7319_vm8, %v10118_v22 }
0x2f85   : > { %15290 = vmatprep.mubr.msk.f32.mxu0 %vm17018_vm12, %v17016_v63 }
0x2fe9   : > { %v10284_v48 = vpop.xlane.xlu0 %10283 }
0x2fea   : > { %16944 = vrcp.f32 %v10284_v48  ;;  %v13329_v48 = vld [vmem:[%s19676_s10 + $0x38] sm:$0xff] }
0x2fed   : > { %v10288_v44 = vpop.permute.xlu0 %10287 }
0x2fee   : > { %15289 = vmatpush3.msk.msra.mxu0 %vm7336_vm9, %v10288_v44 }
0x2fef   : > { %15298 = vmatprep.subr.mxu0 %v17016_v63 }
0x2ff4   : > { %v16945_v28 = vpop.eup %16944 }
0x2ff5   : > { %v10286_v8 = vmul.f32 %v16945_v28, %v16941_v41 }
0x2ff7   : > { %15291 = vmatmul.mubr.msk.f32.vlgmr.msra.gmra.mrb[108].mxu0 %vm7319_vm8, %v10286_v8 }
0x2ff8   : > { %15299 = vmatpush3.msra.mxu0 %v13326_v37  ;;  %15300 = vmatprep.mubr.msk.f32.mxu0 %vm17018_vm12, %v17016_v63 }
0x2ff9   : > { %15308 = vmatprep.subr.mxu0 %v17016_v63 }
0x3057   : > { %v10192_v60 = vpop.f32.mrb[106].mxu0 }
0x3058   : > { %v15282_v9 = vpop.f32.mrb[107].mxu0  ;;  %15301 = vmatmul.mubr.msk.f32.vlgmr.msra.gmra.mrb[110].mxu0 %vm1241_vm5, %v10192_v60 }
0x3059   : > { %15310 = vmatprep.mubr.msk.f32.mxu0 %vm17018_vm12, %v17016_v63 }
0x30ca   : > { %v10360_v21 = vpop.f32.mrb[108].mxu0 }
0x30cb   : > { %v15292_v31 = vpop.f32.mrb[109].mxu0  ;;  %15296 = vmatmul.mubr.msk.f32.vlgmr.msra.gmra.mrb[108].mxu1 %vm1241_vm5, %v10360_v21 }
0x30cc   : > { %15304 = vmatpush3.xpose.msk.msra.mxu1 %vm1241_vm5, %v10513_v49  ;;  %15305 = vmatprep.mubr.msk.f32.mxu1 %vm17018_vm12, %v17016_v63 }
0x30cd   : > { %15313 = vmatprep.subr.mxu1 %v17016_v63 }
0x30cf   : > { %15306 = vmatmul.mubr.msk.f32.vlgmr.msra.gmra.mrb[110].mxu1 %vm1241_vm5, %v10511_v24 }
0x30d0   : > { %15315 = vmatprep.mubr.msk.f32.mxu1 %vm17018_vm12, %v17016_v63  ;;  %15314 = vmatpush3.msra.mxu1 %v13328_v5 }
0x30d1   : > { %15323 = vmatprep.subr.mxu1 %v17016_v63 }
0x312b   : > { %v10506_v16 = vpop.f32.mrb[110].mxu0 }
0x312c   : > { %v15302_v0 = vpop.f32.mrb[111].mxu0 }
0x319e   : > { %v10433_v55 = vpop.f32.mrb[108].mxu1 }
0x319f   : > { %v10507_v56 = vadd.f32 %v10506_v16, %v10433_v55  ;;  %v15297_v4 = vpop.f32.mrb[109].mxu1 }
0x31a0   : > { %v13376_v4 = vld [vmem:[%s19681_s3 + $0x288] sm:$0xff] }
0x31a2   : > { %v10584_v40 = vpop.f32.mrb[110].mxu1 }
0x31a3   : > { %v10588_v52 = vmul.f32 0.35355338, %v10584_v40  ;;  %v15307_v15 = vpop.f32.mrb[111].mxu1 }
0x31a4   : > { %v13359_v15 = vld [vmem:[%s19681_s3 + $0x200] sm:$0xff] }
0x31a5   : > { %v10589_v18 = vadd.f32 %v19075_v38, %v10588_v52  ;;  %v13378_v52 = vld [vmem:[%s19681_s3 + $0x298] sm:$0xff] }
0x31a7   : > { %v10590_v29 = vsel %vm7319_vm8, %v10589_v18, -inf }
0x31a8   : > { %10591 = vmax.xlane.f32.xlu0 %v10590_v29 }
0x31be   : > { %10601 = vrot.lane.b32.xlu0 %v19054_v51, %s19678_s26 }
0x31c2   : > { %10752 = vrot.lane.b32.xlu0 %v19061_v57, %s19677_s22 }
0x3235   : > { %v10592_v54 = vpop.xlane.xlu0 %10591 }
0x3236   : > { %v10593_v23 = vsub.f32 %v10589_v18, %v10592_v54  ;;  %v13375_v18 = vld [vmem:[%s19681_s3 + $0x280] sm:$0xff] }
0x3237   : > { %v16387_v54 = vpack.c.bf16 %v13375_v18, %v13359_v15  ;;  %v13397_v15 = vld [vmem:[%s19681_s3 + $0x330] sm:$0xff] }
0x3238   : > { %v10594_v11 = vmul.f32 1.442695, %v10593_v23  ;;  %v13361_v23 = vld [vmem:[%s19681_s3 + $0x210] sm:$0xff] }
0x3239   : > { %v10602_v59 = vpop.permute.xlu0 %10601  ;;  %v13413_v18 = vld [vmem:[%s19681_s3 + $0x3b0] sm:$0xff] }
0x323a   : > { %16946 = vpow2.f32 %v10594_v11  ;;  %15309 = vmatpush3.msk.msra.mxu0 %vm7336_vm9, %v10602_v59  ;;  %v13377_v11 = vld [vmem:[%s19681_s3 + $0x290] sm:$0xff] }
0x323b   : > { %15318 = vmatprep.subr.mxu0 %v17016_v63  ;;  %v16395_v59 = vpack.c.bf16 %v13377_v11, %v13361_v23  ;;  %v13370_v23 = vld [vmem:[%s19681_s3 + $0x258] sm:$0xff] }
0x323c   : > { %v13386_v11 = vld [vmem:[%s19681_s3 + $0x2d8] sm:$0xff] }
0x323d   : > { %v10753_v45 = vpop.permute.xlu0 %10752 }
0x3244   : > { %v16947_v30 = vpop.eup %16946 }
0x3245   : > { %v10596_v2 = vsel %vm7319_vm8, %v16947_v30, 0.0 }
0x3246   : > { %10597 = vadd.xlane.f32.xlu1 %v10596_v2  ;;  %v13408_v2 = vld [vmem:[%s19681_s3 + $0x388] sm:$0xff] }
0x3257   : > { %10754 = vrot.lane.b32.xlu1 %v19054_v51, %s19677_s22  ;;  %s19690_s22 = sld [smem:[#allocation25_spill]] }
0x32d3   : > { %v10598_v3 = vpop.xlane.xlu1 %10597 }
0x32d4   : > { %16948 = vrcp.f32 %v10598_v3  ;;  %v13394_v3 = vld [vmem:[%s19681_s3 + $0x318] sm:$0xff] }
0x32d7   : > { %v10755_v14 = vpop.permute.xlu1 %10754 }
0x32de   : > { %v16949_v57 = vpop.eup %16948 }
0x32df   : > { %v10600_v10 = vmul.f32 %v16949_v57, %v16947_v30  ;;  %v13392_v30 = vld [vmem:[%s19681_s3 + $0x308] sm:$0xff] }
0x32e0   : > { %v16389_v57 = vpack.c.bf16 %v13408_v2, %v13392_v30  ;;  %v16415_v30 = vpack.c.bf16 %v13413_v18, %v13397_v15  ;;  %v13367_v2 = vld [vmem:[%s19681_s3 + $0x240] sm:$0xff]  ;;  %v13474_v18 = vld [vmem:[%s19684_s8 + $0x988] sm:$0xff] }
0x32e1   : > { %15311 = vmatmul.mubr.msk.f32.vlgmr.msra.gmra.mrb[112].mxu0 %vm7319_vm8, %v10600_v10  ;;  %v13410_v10 = vld [vmem:[%s19681_s3 + $0x398] sm:$0xff]  ;;  %v13473_v15 = vld [vmem:[%s19684_s8 + $0x980] sm:$0xff] }
0x32e2   : > { %15319 = vmatpush3.xpose.msk.msra.mxu0 %vm1241_vm5, %v10755_v14  ;;  %15320 = vmatprep.mubr.msk.f32.mxu0 %vm17018_vm12, %v17016_v63  ;;  %v13391_v14 = vld [vmem:[%s19681_s3 + $0x300] sm:$0xff]  ;;  %v16397_v5 = vpack.c.bf16 %v13410_v10, %v13394_v3  ;;  %v16425_v10 = vpack.c.bf16 %v13386_v11, %v13370_v23  ;;  %v13426_v11 = vld [vmem:[%s19684_s8 + $0x808] sm:$0xff] }
0x32e3   : > { %15328 = vmatprep.subr.mxu0 %v17016_v63  ;;  %v13383_v3 = vld [vmem:[%s19681_s3 + $0x2c0] sm:$0xff] }
0x32e4   : > { %v13425_v23 = vld [vmem:[%s19684_s8 + $0x800] sm:$0xff] }
0x32e5   : > { %15321 = vmatmul.mubr.msk.f32.vlgmr.msra.gmra.mrb[114].mxu0 %vm1241_vm5, %v10753_v45  ;;  %v13407_v45 = vld [vmem:[%s19681_s3 + $0x380] sm:$0xff] }
0x32e6   : > { %15330 = vmatprep.mubr.msk.f32.mxu0 %vm17018_vm12, %v17016_v63  ;;  %15329 = vmatpush3.msra.mxu0 %v13329_v48  ;;  %v13358_v48 = vld [vmem:[%s19683_s6 + $0x1] ss:$0 sm:$0xff] }
0x33b4   : > { %v10674_v13 = vpop.f32.mrb[112].mxu0 }
0x33b5   : > { %v15312_v7 = vpop.f32.mrb[113].mxu0  ;;  %15316 = vmatmul.mubr.msk.f32.vlgmr.msra.gmra.mrb[112].mxu1 %vm1241_vm5, %v10674_v13  ;;  %v16391_v13 = vpack.c.bf16 %v13407_v45, %v13391_v14  ;;  %v13369_v14 = vld [vmem:[%s19681_s3 + $0x250] sm:$0xff] }
0x33b6   : > { %15325 = vmatprep.mubr.msk.f32.mxu1 %vm17018_vm12, %v17016_v63  ;;  %v13393_v7 = vld [vmem:[%s19681_s3 + $0x310] sm:$0xff] }
0x33b7   : > { %v13385_v45 = vld [vmem:[%s19681_s3 + $0x2d0] sm:$0xff] }
0x33b8   : > { %v10826_v1 = vpop.f32.mrb[114].mxu0 }
0x33b9   : > { %v10830_v6 = vmul.f32 0.35355338, %v10826_v1  ;;  %v15322_v32 = vpop.f32.mrb[115].mxu0  ;;  %v13409_v1 = vld [vmem:[%s19681_s3 + $0x390] sm:$0xff] }
0x33ba   : > { %v16399_v32 = vpack.c.bf16 %v13409_v1, %v13393_v7  ;;  %v13402_v7 = vld [vmem:[%s19681_s3 + $0x358] sm:$0xff] }
0x33bb   : > { %v10831_v33 = vadd.f32 %v19075_v38, %v10830_v6  ;;  %v13364_v6 = vld [vmem:[%s19681_s3 + $0x228] sm:$0xff]  ;;  %v13418_v1 = vld [vmem:[%s19681_s3 + $0x3d8] sm:$0xff] }
0x33bd   : > { %v10832_v26 = vsel %vm7319_vm8, %v10831_v33, -inf }
0x33be   : > { %10833 = vmax.xlane.f32.xlu1 %v10832_v26  ;;  %v13366_v26 = vld [vmem:[%s19681_s3 + $0x238] sm:$0xff] }
0x344b   : > { %v10834_v12 = vpop.xlane.xlu1 %10833 }
0x344c   : > { %v10835_v61 = vsub.f32 %v10831_v33, %v10834_v12  ;;  %v13380_v33 = vld [vmem:[%s19681_s3 + $0x2a8] sm:$0xff]  ;;  %v13382_v12 = vld [vmem:[%s19681_s3 + $0x2b8] sm:$0xff] }
0x344e   : > { %v10836_v62 = vmul.f32 1.442695, %v10835_v61  ;;  %v16401_v61 = vpack.c.bf16 %v13380_v33, %v13364_v6  ;;  %v16419_v6 = vpack.c.bf16 %v13383_v3, %v13367_v2  ;;  %v13399_v33 = vld [vmem:[%s19681_s3 + $0x340] sm:$0xff]  ;;  %v13458_v3 = vld [vmem:[%s19684_s8 + $0x908] sm:$0xff] }
0x344f   : > { %v13457_v2 = vld [vmem:[%s19684_s8 + $0x900] sm:$0xff] }
0x3450   : > { %16950 = vpow2.f32 %v10836_v62  ;;  %v16409_v62 = vpack.c.bf16 %v13382_v12, %v13366_v26  ;;  %v13415_v26 = vld [vmem:[%s19681_s3 + $0x3c0] sm:$0xff] }
0x345a   : > { %v16951_v34 = vpop.eup %16950 }
0x345b   : > { %v10838_v35 = vsel %vm7319_vm8, %v16951_v34, 0.0 }
0x345c   : > { %10839 = vadd.xlane.f32.xlu0 %v10838_v35 }
0x3472   : > { %10843 = vrot.lane.b32.xlu0 %v19054_v51, %s19679_s23  ;;  %v13354_v51 = vld [vmem:[%s19680_s2 + $0x1] ss:$0 sm:$0xff]  ;;  %s19691_s23 = sshll.u32 %s19693_s16, 3 }
0x3473   : > { %s1074_s26 = scalar_lea.vmem %s17197_s9, %s19691_s23 }
0x3488   : > { %v10747_v41 = vpop.f32.mrb[112].mxu1 }
0x3489   : > { %v10751_v46 = vadd.f32 %v10747_v41, %v10507_v56  ;;  %v15317_v25 = vpop.f32.mrb[113].mxu1  ;;  %v13360_v56 = vld [vmem:[%s19681_s3 + $0x208] sm:$0xff] }
0x348a   : > { %v16385_v40 = vpack.c.bf16 %v13376_v4, %v13360_v56  ;;  %v13395_v4 = vld [vmem:[%s19681_s3 + $0x320] sm:$0xff] }
0x34e9   : > { %v10840_v38 = vpop.xlane.xlu0 %10839 }
0x34ea   : > { %16952 = vrcp.f32 %v10840_v38 }
0x34ed   : > { %v10844_v36 = vpop.permute.xlu0 %10843 }
0x34ee   : > { %15324 = vmatpush3.msk.msra.mxu1 %vm7336_vm9, %v10844_v36 }
0x34ef   : > { %16386 = vmatprep.subr.bf16.mxu1 %v16385_v40 }
0x34f4   : > { %v16953_v22 = vpop.eup %16952 }
0x34f5   : > { %v10842_v42 = vmul.f32 %v16953_v22, %v16951_v34 }
0x34f7   : > { %15326 = vmatmul.mubr.msk.f32.vlgmr.msra.gmra.mrb[114].mxu1 %vm7319_vm8, %v10842_v42  ;;  %v13357_v42 = vld [vmem:[%s19682_s5 + $0x1] ss:$0 sm:$0xff] }
0x34f8   : > { %11516 = vmatprep.mubr.f32.mxu1 %v17016_v63  ;;  %16388 = vmatpush1.bf16.msra.mxu1 %v16387_v54  ;;  %v13384_v54 = vld [vmem:[%s19681_s3 + $0x2c8] sm:$0xff] }
0x34f9   : > { %16390 = vmatprep.subr.bf16.mxu1 %v16389_v57 }
0x34fc   : > { %16392 = vmatpush1.bf16.msra.mxu1 %v16391_v13  ;;  %v13416_v13 = vld [vmem:[%s19681_s3 + $0x3c8] sm:$0xff] }
0x34fd   : > { %16402 = vmatprep.subr.bf16.mxu1 %v16401_v61  ;;  %v16429_v61 = vpack.c.bf16 %v13418_v1, %v13402_v7  ;;  %v13427_v7 = vld [vmem:[%s19684_s8 + $0x810] sm:$0xff]  ;;  %v13428_v1 = vld [vmem:[%s19684_s8 + $0x818] sm:$0xff] }
0x35ca   : > { %v10916_v44 = vpop.f32.mrb[114].mxu1 }
0x35cb   : > { %v15327_v28 = vpop.f32.mrb[115].mxu1  ;;  %15331 = vmatmul.mubr.msk.f32.vlgmr.msra.gmra.mrb[116].mxu0 %vm1241_vm5, %v10916_v44  ;;  %v13363_v44 = vld [vmem:[%s19681_s3 + $0x220] sm:$0xff] }
0x35cc   : > { %11587 = vmatprep.mubr.f32.mxu0 %v17016_v63  ;;  %v13379_v28 = vld [vmem:[%s19681_s3 + $0x2a0] sm:$0xff] }
0x369e   : > { %v10989_v8 = vpop.f32.mrb[116].mxu0 }
0x369f   : > { %v10993_v37 = vadd.f32 %v10989_v8, %v10751_v46  ;;  %v15332_v60 = vpop.f32.mrb[117].mxu0  ;;  %v13365_v8 = vld [vmem:[%s19681_s3 + $0x230] sm:$0xff] }
0x36a0   : > { %v13396_v60 = vld [vmem:[%s19681_s3 + $0x328] sm:$0xff] }
0x36a1   : > { %v11000_v9 = vadd.f32 %v13354_v51, %v10993_v37  ;;  %v13381_v37 = vld [vmem:[%s19681_s3 + $0x2b0] sm:$0xff] }
0x36a2   : > { %v16411_v56 = vpack.c.bf16 %v13381_v37, %v13365_v8  ;;  %v13404_v8 = vld [vmem:[%s19681_s3 + $0x368] sm:$0xff] }
0x36a3   : > { %v19153_v49 = vadd.f32 %v11000_v9, %v19027_v47  ;;  %v13362_v47 = vld [vmem:[%s19681_s3 + $0x218] sm:$0xff]  ;;  %v13420_v37 = vld [vmem:[%s19681_s3 + $0x3e8] sm:$0xff] }
0x36a4   : > { %v16393_v29 = vpack.c.bf16 %v13378_v52, %v13362_v47  ;;  %v13411_v47 = vld [vmem:[%s19681_s3 + $0x3a0] sm:$0xff] }
0x36a5   : > { %v11006_v21 = vsel %vm1080_vm0, %v19153_v49, 0.0 }
0x36a6   : > { %11007 = vadd.xlane.f32.xlu1 %v11006_v21  ;;  %16394 = vmatprep.subr.bf16.mxu0 %v16393_v29  ;;  %v13412_v21 = vld [vmem:[%s19681_s3 + $0x3a8] sm:$0xff] }
0x36a7   : > { %16396 = vmatpush1.bf16.msra.mxu0 %v16395_v59  ;;  %v16405_v40 = vpack.c.bf16 %v13412_v21, %v13396_v60  ;;  %v13368_v29 = vld [vmem:[%s19681_s3 + $0x248] sm:$0xff]  ;;  %v16407_v59 = vpack.c.bf16 %v13411_v47, %v13395_v4  ;;  %v13406_v60 = vld [vmem:[%s19681_s3 + $0x378] sm:$0xff]  ;;  %v13405_v4 = vld [vmem:[%s19681_s3 + $0x370] sm:$0xff] }
0x36a8   : > { %16398 = vmatprep.subr.bf16.mxu0 %v16397_v5  ;;  %v16417_v57 = vpack.c.bf16 %v13384_v54, %v13368_v29  ;;  %v13400_v5 = vld [vmem:[%s19681_s3 + $0x348] sm:$0xff]  ;;  %v13421_v47 = vld [vmem:[%s19681_s3 + $0x3f0] sm:$0xff] }
0x36a9   : > { %v16421_v12 = vpack.c.bf16 %v13416_v13, %v13400_v5  ;;  %v16447_v54 = vpack.c.bf16 %v13421_v47, %v13405_v4  ;;  %v16451_v5 = vpack.c.bf16 %v13426_v11, %v13425_v23  ;;  %v16483_v13 = vpack.c.bf16 %v13458_v3, %v13457_v2  ;;  %v13482_v4 = vld [vmem:[%s19684_s8 + $0x9c8] sm:$0xff]  ;;  %v13451_v11 = vld [vmem:[%s19684_s8 + $0x8d0] sm:$0xff]  ;;  %v13484_v2 = vld [vmem:[%s19684_s8 + $0x9d8] sm:$0xff] }
0x36aa   : > { %v13466_v23 = vld [vmem:[%s19684_s8 + $0x948] sm:$0xff] }
0x36ab   : > { %16400 = vmatpush1.bf16.msra.mxu0 %v16399_v32  ;;  %v16427_v32 = vpack.c.bf16 %v13385_v45, %v13369_v14  ;;  %v13475_v14 = vld [vmem:[%s19684_s8 + $0x990] sm:$0xff]  ;;  %v13476_v45 = vld [vmem:[%s19684_s8 + $0x998] sm:$0xff] }
0x36ac   : > { %16410 = vmatprep.subr.bf16.mxu0 %v16409_v62  ;;  %v13401_v62 = vld [vmem:[%s19681_s3 + $0x350] sm:$0xff] }
0x3733   : > { %v11008_v31 = vpop.xlane.xlu1 %11007 }
0x3734   : > { %v11009_v24 = vmul.f32 0.03125, %v11008_v31  ;;  %v13398_v31 = vld [vmem:[%s19681_s3 + $0x338] sm:$0xff] }
0x3736   : > { %v11010_v16 = vsub.f32 %v19153_v49, %v11009_v24  ;;  %v13414_v24 = vld [vmem:[%s19681_s3 + $0x3b8] sm:$0xff] }
0x3737   : > { %v16413_v52 = vpack.c.bf16 %v13414_v24, %v13398_v31  ;;  %v13403_v24 = vld [vmem:[%s19681_s3 + $0x360] sm:$0xff] }
0x3738   : > { %v11011_v0 = vmul.f32 %v11010_v16, %v11010_v16  ;;  %v11022_v51 = vmul.f32 %v13357_v42, %v11010_v16  ;;  %v13387_v42 = vld [vmem:[%s19681_s3 + $0x2e0] sm:$0xff] }
0x373a   : > { %v11012_v55 = vsel %vm1080_vm0, %v11011_v0, 0.0 }
0x373b   : > { %11013 = vadd.xlane.f32.xlu1 %v11012_v55  ;;  %v16403_v55 = vpack.c.bf16 %v13379_v28, %v13363_v44  ;;  %v13373_v28 = vld [vmem:[%s19681_s3 + $0x270] sm:$0xff] }
0x37c8   : > { %v11014_v34 = vpop.xlane.xlu1 %11013 }
0x37c9   : > { %v11015_v35 = vmul.f32 0.032258064, %v11014_v34  ;;  %v13417_v34 = vld [vmem:[%s19681_s3 + $0x3d0] sm:$0xff] }
0x37cb   : > { %16954 = vrsqrt.f32 %v11015_v35  ;;  %vm11025_vm5 = vcmp.eq.f32.partialorder %v11015_v35, inf  ;;  %v11028_v25 = vand.u32 2147483648, %v11015_v35  ;;  %vm11027_vm15 = vcmp.eq.f32.partialorder %v11015_v35, 0.0 }
0x37d5   : > { %v16955_v41 = vpop.eup %16954 }
0x37d6   : > { %v11024_v46 = vmul.f32 %v16955_v41, %v11015_v35  ;;  %v13388_v41 = vld [vmem:[%s19681_s3 + $0x2e8] sm:$0xff] }
0x37d8   : > { %v11026_v38 = vsel %vm11025_vm5, %v11015_v35, %v11024_v46  ;;  %v13372_v35 = vld [vmem:[%s19681_s3 + $0x268] sm:$0xff]  ;;  %v13374_v46 = vld [vmem:[%s19681_s3 + $0x278] sm:$0xff] }
0x37d9   : > { %v11029_v36 = vsel %vm11027_vm15, %v11028_v25, %v11026_v38  ;;  %v13390_v25 = vld [vmem:[%s19681_s3 + $0x2f8] sm:$0xff]  ;;  %v16423_v38 = vpack.c.bf16 %v13415_v26, %v13399_v33  ;;  %v13459_v33 = vld [vmem:[%s19684_s8 + $0x910] sm:$0xff] }
0x37da   : > { %v11030_v22 = vadd.f32 1e-06, %v11029_v36  ;;  %v16431_v36 = vpack.c.bf16 %v13417_v34, %v13401_v62  ;;  %v16441_v44 = vpack.c.bf16 %v13390_v25, %v13374_v46  ;;  %v13460_v26 = vld [vmem:[%s19684_s8 + $0x918] sm:$0xff]  ;;  %v13477_v62 = vld [vmem:[%s19684_s8 + $0x9a0] sm:$0xff]  ;;  %v13478_v34 = vld [vmem:[%s19684_s8 + $0x9a8] sm:$0xff] }
0x37db   : > { %v13429_v46 = vld [vmem:[%s19684_s8 + $0x820] sm:$0xff]  ;;  %v13430_v25 = vld [vmem:[%s19684_s8 + $0x828] sm:$0xff] }
0x37dc   : > { %16956 = vrcp.f32 %v11030_v22  ;;  %v13371_v22 = vld [vmem:[%s19681_s3 + $0x260] sm:$0xff] }
0x37dd   : > { %v16435_v21 = vpack.c.bf16 %v13387_v42, %v13371_v22  ;;  %v13461_v22 = vld [vmem:[%s19684_s8 + $0x920] sm:$0xff]  ;;  %v13462_v42 = vld [vmem:[%s19684_s8 + $0x928] sm:$0xff] }
0x37e6   : > { %v16957_v9 = vpop.eup %16956 }
0x37e7   : > { %v11032_v0 = vmul.f32 %v16957_v9, %v11022_v51  ;;  %v13389_v51 = vld [vmem:[%s19681_s3 + $0x2f0] sm:$0xff]  ;;  %v13422_v9 = vld [vmem:[%s19681_s3 + $0x3f8] sm:$0xff] }
0x37e8   : > { %v16443_v31 = vpack.c.bf16 %v13389_v51, %v13373_v28  ;;  %v13480_v28 = vld [vmem:[%s19684_s8 + $0x9b8] sm:$0xff]  ;;  %v16459_v51 = vpack.c.bf16 %v13430_v25, %v13429_v46  ;;  %v13470_v46 = vld [vmem:[%s19684_s8 + $0x968] sm:$0xff] }
0x37e9   : > { %v19191_v16 = vadd.f32 %v13358_v48, %v11032_v0  ;;  %v16433_v48 = vpack.c.bf16 %v13388_v41, %v13372_v35  ;;  %v13419_v0 = vld [vmem:[%s19681_s3 + $0x3e0] sm:$0xff]  ;;  %v16455_v35 = vpack.c.bf16 %v13428_v1, %v13427_v7  ;;  %v16487_v41 = vpack.c.bf16 %v13460_v26, %v13459_v33  ;;  %v13468_v7 = vld [vmem:[%s19684_s8 + $0x958] sm:$0xff]  ;;  %v13486_v33 = vld [vmem:[%s19684_s8 + $0x9e8] sm:$0xff] }
0x37ea   : > { %v16439_v29 = vpack.c.bf16 %v13419_v0, %v13403_v24  ;;  %v13464_v24 = vld [vmem:[%s19684_s8 + $0x938] sm:$0xff]  ;;  %v13449_v0 = vld [vmem:[%s19684_s8 + $0x8c0] sm:$0xff] }
0x37eb   : > { %13682 = vmatmul.mubr.msk.f32.vlgmr.msra.gmra.mrb[116].mxu1 %vm1080_vm0, %v19191_v16  ;;  %13683 = vmatmul.mubr.msk.f32.vlgmr.msra.gmra.mrb[118].mxu0 %vm1080_vm0, %v19191_v16  ;;  %v13453_v1 = vld [vmem:[%s19684_s8 + $0x8e0] sm:$0xff] }
0x37ec   : > { %16404 = vmatpush1.bf16.msra.mxu1 %v16403_v55  ;;  %16412 = vmatpush1.bf16.msra.mxu0 %v16411_v56  ;;  %v16437_v55 = vpack.c.bf16 %v13420_v37, %v13404_v8  ;;  %v16445_v56 = vpack.c.bf16 %v13422_v9, %v13406_v60  ;;  %v16491_v8 = vpack.c.bf16 %v13462_v42, %v13461_v22  ;;  %v13431_v37 = vld [vmem:[%s19684_s8 + $0x830] sm:$0xff]  ;;  %v13432_v60 = vld [vmem:[%s19684_s8 + $0x838] sm:$0xff] }
0x37ed   : > { %16406 = vmatprep.subr.bf16.mxu1 %v16405_v40  ;;  %16414 = vmatprep.subr.bf16.mxu0 %v16413_v52  ;;  %v13441_v40 = vld [vmem:[%s19684_s8 + $0x880] sm:$0xff]  ;;  %v13442_v52 = vld [vmem:[%s19684_s8 + $0x888] sm:$0xff]  ;;  %v16463_v47 = vpack.c.bf16 %v13432_v60, %v13431_v37  ;;  %v13456_v22 = vld [vmem:[%s19684_s8 + $0x8f8] sm:$0xff] }
0x37ee   : > { %11658 = vmatprep.mubr.f32.mxu1 %v17016_v63  ;;  %11729 = vmatprep.mubr.f32.mxu0 %v17016_v63  ;;  %v13487_v42 = vld [vmem:[%s19684_s8 + $0x9f0] sm:$0xff]  ;;  %v13472_v60 = vld [vmem:[%s19684_s8 + $0x978] sm:$0xff] }
0x37ef   : > { %v13471_v37 = vld [vmem:[%s19684_s8 + $0x970] sm:$0xff] }
0x37f0   : > { %16408 = vmatpush1.bf16.msra.mxu1 %v16407_v59  ;;  %16416 = vmatpush1.bf16.msra.mxu0 %v16415_v30  ;;  %v16449_v59 = vpack.c.bf16 %v13442_v52, %v13441_v40  ;;  %v16481_v30 = vpack.c.bf16 %v13474_v18, %v13473_v15  ;;  %v13433_v52 = vld [vmem:[%s19684_s8 + $0x840] sm:$0xff]  ;;  %v13434_v15 = vld [vmem:[%s19684_s8 + $0x848] sm:$0xff] }
0x37f1   : > { %16418 = vmatprep.subr.bf16.mxu1 %v16417_v57  ;;  %16426 = vmatprep.subr.bf16.mxu0 %v16425_v10  ;;  %v13443_v57 = vld [vmem:[%s19684_s8 + $0x890] sm:$0xff]  ;;  %v13444_v10 = vld [vmem:[%s19684_s8 + $0x898] sm:$0xff]  ;;  %v16467_v3 = vpack.c.bf16 %v13434_v15, %v13433_v52 }
0x37f3   : > { %13684 = vmatmul.mubr.msk.f32.vlgmr.msra.gmra.mrb[118].mxu1 %vm1080_vm0, %v19191_v16  ;;  %13685 = vmatmul.mubr.msk.f32.vlgmr.msra.gmra.mrb[120].mxu0 %vm1080_vm0, %v19191_v16 }
0x37f4   : > { %16420 = vmatpush1.bf16.msra.mxu1 %v16419_v6  ;;  %16428 = vmatpush1.bf16.msra.mxu0 %v16427_v32  ;;  %v16453_v6 = vpack.c.bf16 %v13444_v10, %v13443_v57  ;;  %v16485_v32 = vpack.c.bf16 %v13476_v45, %v13475_v14  ;;  %v13435_v10 = vld [vmem:[%s19684_s8 + $0x850] sm:$0xff]  ;;  %v13436_v14 = vld [vmem:[%s19684_s8 + $0x858] sm:$0xff] }
0x37f5   : > { %16422 = vmatprep.subr.bf16.mxu1 %v16421_v12  ;;  %16430 = vmatprep.subr.bf16.mxu0 %v16429_v61  ;;  %v13445_v12 = vld [vmem:[%s19684_s8 + $0x8a0] sm:$0xff]  ;;  %v13446_v61 = vld [vmem:[%s19684_s8 + $0x8a8] sm:$0xff]  ;;  %v16471_v26 = vpack.c.bf16 %v13436_v14, %v13435_v10  ;;  %v13507_v10 = vld [vmem:[%s19684_s8 + $0xa90] sm:$0xff] }
0x37f6   : > { %11800 = vmatprep.mubr.f32.mxu1 %v17016_v63  ;;  %11871 = vmatprep.mubr.f32.mxu0 %v17016_v63 }
0x37f8   : > { %16424 = vmatpush1.bf16.msra.mxu1 %v16423_v38  ;;  %16432 = vmatpush1.bf16.msra.mxu0 %v16431_v36  ;;  %v16457_v38 = vpack.c.bf16 %v13446_v61, %v13445_v12  ;;  %v16489_v36 = vpack.c.bf16 %v13478_v34, %v13477_v62  ;;  %v13437_v61 = vld [vmem:[%s19684_s8 + $0x860] sm:$0xff] }
0x37f9   : > { %16434 = vmatprep.subr.bf16.mxu1 %v16433_v48  ;;  %16442 = vmatprep.subr.bf16.mxu0 %v16441_v44  ;;  %v13447_v48 = vld [vmem:[%s19684_s8 + $0x8b0] sm:$0xff] }
0x37fa   : > { %v13479_v44 = vld [vmem:[%s19684_s8 + $0x9b0] sm:$0xff] }
0x37fb   : > { %13686 = vmatmul.mubr.msk.f32.vlgmr.msra.gmra.mrb[120].mxu1 %vm1080_vm0, %v19191_v16  ;;  %13687 = vmatmul.mubr.msk.f32.vlgmr.msra.gmra.mrb[122].mxu0 %vm1080_vm0, %v19191_v16 }
0x37fc   : > { %16436 = vmatpush1.bf16.msra.mxu1 %v16435_v21  ;;  %16444 = vmatpush1.bf16.msra.mxu0 %v16443_v31  ;;  %v16493_v21 = vpack.c.bf16 %v13480_v28, %v13479_v44  ;;  %v13463_v31 = vld [vmem:[%s19684_s8 + $0x930] sm:$0xff]  ;;  %v13440_v28 = vld [vmem:[%s19684_s8 + $0x878] sm:$0xff] }
0x37fd   : > { %16438 = vmatprep.subr.bf16.mxu1 %v16437_v55  ;;  %16446 = vmatprep.subr.bf16.mxu0 %v16445_v56  ;;  %v13450_v55 = vld [vmem:[%s19684_s8 + $0x8c8] sm:$0xff]  ;;  %v13481_v56 = vld [vmem:[%s19684_s8 + $0x9c0] sm:$0xff]  ;;  %v16495_v40 = vpack.c.bf16 %v13464_v24, %v13463_v31  ;;  %v13439_v44 = vld [vmem:[%s19684_s8 + $0x870] sm:$0xff] }
0x37fe   : > { %11942 = vmatprep.mubr.f32.mxu1 %v17016_v63  ;;  %12013 = vmatprep.mubr.f32.mxu0 %v17016_v63  ;;  %v16465_v18 = vpack.c.bf16 %v13450_v55, %v13449_v0  ;;  %v13506_v31 = vld [vmem:[%s19684_s8 + $0xa88] sm:$0xff]  ;;  %v13537_v24 = vld [vmem:[%s19684_s8 + $0xb80] sm:$0xff] }
0x37ff   : > { %v13538_v55 = vld [vmem:[%s19684_s8 + $0xb88] sm:$0xff] }
0x3800   : > { %16440 = vmatpush1.bf16.msra.mxu1 %v16439_v29  ;;  %16448 = vmatpush1.bf16.msra.mxu0 %v16447_v54  ;;  %v16497_v29 = vpack.c.bf16 %v13482_v4, %v13481_v56  ;;  %v13465_v54 = vld [vmem:[%s19684_s8 + $0x940] sm:$0xff]  ;;  %v16545_v56 = vpack.c.bf16 %v13538_v55, %v13537_v24  ;;  %v19318_v4 = vld [vmem:[%s19685_s12 + $0x10] sm:$0xff] }
0x3801   : > { %16450 = vmatprep.subr.bf16.mxu1 %v16449_v59  ;;  %16482 = vmatprep.subr.bf16.mxu0 %v16481_v30  ;;  %v13452_v59 = vld [vmem:[%s19684_s8 + $0x8d8] sm:$0xff]  ;;  %v13483_v30 = vld [vmem:[%s19684_s8 + $0x9d0] sm:$0xff]  ;;  %v16499_v57 = vpack.c.bf16 %v13466_v23, %v13465_v54  ;;  %v11376_v52 = vrot.slane %v19318_v4, %v17574_v19  ;;  %v11384_v15 = vrot.slane %v19318_v4, %v17577_v20  ;;  %v13489_v54 = vld [vmem:[%s19684_s8 + $0xa00] sm:$0xff] }
0x3802   : > { %v16469_v45 = vpack.c.bf16 %v13452_v59, %v13451_v11  ;;  %v13490_v23 = vld [vmem:[%s19684_s8 + $0xa08] sm:$0xff]  ;;  %v13525_v24 = vld [vmem:[%s19684_s8 + $0xb20] sm:$0xff]  ;;  %v13511_v55 = vld [vmem:[%s19684_s8 + $0xab0] sm:$0xff] }
0x3803   : > { %13688 = vmatmul.mubr.msk.f32.vlgmr.msra.gmra.mrb[122].mxu1 %vm1080_vm0, %v19191_v16  ;;  %13689 = vmatmul.mubr.msk.f32.vlgmr.msra.gmra.mrb[124].mxu0 %vm1080_vm0, %v19191_v16  ;;  %v13448_v16 = vld [vmem:[%s19684_s8 + $0x8b8] sm:$0xff] }
0x3804   : > { %16452 = vmatpush3.bf16.msra.mxu1 %v16451_v5  ;;  %16484 = vmatpush3.bf16.msra.mxu0 %v16483_v13  ;;  %v16461_v9 = vpack.c.bf16 %v13448_v16, %v13447_v48  ;;  %v16501_v5 = vpack.c.bf16 %v13484_v2, %v13483_v30  ;;  %v13467_v13 = vld [vmem:[%s19684_s8 + $0x950] sm:$0xff]  ;;  %v13488_v16 = vld [vmem:[%s19684_s8 + $0x9f8] sm:$0xff] }
0x3805   : > { %16454 = vmatprep.subr.bf16.mxu1 %v16453_v6  ;;  %16486 = vmatprep.subr.bf16.mxu0 %v16485_v32  ;;  %v13454_v6 = vld [vmem:[%s19684_s8 + $0x8e8] sm:$0xff]  ;;  %v13485_v32 = vld [vmem:[%s19684_s8 + $0x9e0] sm:$0xff]  ;;  %v16503_v12 = vpack.c.bf16 %v13468_v7, %v13467_v13  ;;  %v13539_v13 = vld [vmem:[%s19684_s8 + $0xb90] sm:$0xff] }
0x3806   : > { %v16473_v62 = vpack.c.bf16 %v13454_v6, %v13453_v1  ;;  %v16505_v34 = vpack.c.bf16 %v13486_v33, %v13485_v32  ;;  %v13540_v7 = vld [vmem:[%s19684_s8 + $0xb98] sm:$0xff]  ;;  %v16515_v32 = vpack.c.bf16 %v13490_v23, %v13489_v54 }
0x3808   : > { %16456 = vmatpush3.bf16.msra.mxu1 %v16455_v35  ;;  %16488 = vmatpush3.bf16.msra.mxu0 %v16487_v41  ;;  %v13438_v35 = vld [vmem:[%s19684_s8 + $0x868] sm:$0xff]  ;;  %v13469_v41 = vld [vmem:[%s19684_s8 + $0x960] sm:$0xff] }
0x3809   : > { %16458 = vmatprep.subr.bf16.mxu1 %v16457_v38  ;;  %16490 = vmatprep.subr.bf16.mxu0 %v16489_v36  ;;  %v16475_v25 = vpack.c.bf16 %v13438_v35, %v13437_v61  ;;  %v16507_v38 = vpack.c.bf16 %v13470_v46, %v13469_v41  ;;  %v13455_v36 = vld [vmem:[%s19684_s8 + $0x8f0] sm:$0xff]  ;;  %v16549_v35 = vpack.c.bf16 %v13540_v7, %v13539_v13  ;;  %v13524_v46 = vld [vmem:[%s19684_s8 + $0xb18] sm:$0xff] }
0x380a   : > { %v16477_v48 = vpack.c.bf16 %v13456_v22, %v13455_v36  ;;  %v13523_v41 = vld [vmem:[%s19684_s8 + $0xb10] sm:$0xff]  ;;  %v11400_v36 = vrot.slane %v19318_v4, %v17599_v43  ;;  %v13510_v22 = vld [vmem:[%s19684_s8 + $0xaa8] sm:$0xff] }
0x380c   : > { %16460 = vmatpush3.bf16.msra.mxu1 %v16459_v51  ;;  %16492 = vmatpush3.bf16.msra.mxu0 %v16491_v8  ;;  %v16509_v51 = vpack.c.bf16 %v13488_v16, %v13487_v42  ;;  %v16479_v8 = vpack.c.bf16 %v13440_v28, %v13439_v44  ;;  %v13541_v42 = vld [vmem:[%s19684_s8 + $0xba0] sm:$0xff] }
0x380d   : > { %16462 = vmatprep.subr.bf16.mxu1 %v16461_v9  ;;  %16494 = vmatprep.subr.bf16.mxu0 %v16493_v21  ;;  %v16511_v9 = vpack.c.bf16 %v13472_v60, %v13471_v37  ;;  %v13505_v21 = vld [vmem:[%s19684_s8 + $0xa80] sm:$0xff]  ;;  %v13494_v37 = vld [vmem:[%s19684_s8 + $0xa28] sm:$0xff] }
0x380e   : > { %v16513_v0 = vpack.c.bf16 %v13506_v31, %v13505_v21 }
0x3810   : > { %16464 = vmatpush3.bf16.msra.mxu1 %v16463_v47  ;;  %16496 = vmatpush3.bf16.msra.mxu0 %v16495_v40  ;;  %v11372_v47 = vrot.slane %v19318_v4, %v17565_v17  ;;  %v11380_v40 = vrot.slane %v19318_v4, %v17568_v53 }
0x3811   : > { %16466 = vmatprep.subr.bf16.mxu1 %v16465_v18  ;;  %16498 = vmatprep.subr.bf16.mxu0 %v16497_v29 }
0x3814   : > { %16468 = vmatpush3.bf16.msra.mxu1 %v16467_v3  ;;  %16500 = vmatpush3.bf16.msra.mxu0 %v16499_v57  ;;  %v13521_v3 = vld [vmem:[%s19684_s8 + $0xb00] sm:$0xff]  ;;  %v13522_v57 = vld [vmem:[%s19684_s8 + $0xb08] sm:$0xff] }
0x3815   : > { %16470 = vmatprep.subr.bf16.mxu1 %v16469_v45  ;;  %16502 = vmatprep.subr.bf16.mxu0 %v16501_v5  ;;  %v13508_v5 = vld [vmem:[%s19684_s8 + $0xa98] sm:$0xff]  ;;  %v16547_v33 = vpack.c.bf16 %v13522_v57, %v13521_v3  ;;  %v13527_v3 = vld [vmem:[%s19684_s8 + $0xb30] sm:$0xff] }
0x3816   : > { %v13528_v57 = vld [vmem:[%s19684_s8 + $0xb38] sm:$0xff] }
0x3818   : > { %16472 = vmatpush3.bf16.msra.mxu1 %v16471_v26  ;;  %16504 = vmatpush3.bf16.msra.mxu0 %v16503_v12  ;;  %v13491_v26 = vld [vmem:[%s19684_s8 + $0xa10] sm:$0xff]  ;;  %v13492_v12 = vld [vmem:[%s19684_s8 + $0xa18] sm:$0xff] }
0x3819   : > { %16474 = vmatprep.subr.bf16.mxu1 %v16473_v62  ;;  %16506 = vmatprep.subr.bf16.mxu0 %v16505_v34  ;;  %v16517_v34 = vpack.c.bf16 %v13508_v5, %v13507_v10  ;;  %v16519_v28 = vpack.c.bf16 %v13492_v12, %v13491_v26  ;;  %v13513_v10 = vld [vmem:[%s19684_s8 + $0xac0] sm:$0xff]  ;;  %v13546_v5 = vld [vmem:[%s19684_s8 + $0xbc8] sm:$0xff] }
0x381c   : > { %16476 = vmatpush3.bf16.msra.mxu1 %v16475_v25  ;;  %16508 = vmatpush3.bf16.msra.mxu0 %v16507_v38  ;;  %v13509_v25 = vld [vmem:[%s19684_s8 + $0xaa0] sm:$0xff]  ;;  %v11392_v38 = vrot.slane %v19318_v4, %v17590_v27 }
0x381d   : > { %16478 = vmatprep.subr.bf16.mxu1 %v16477_v48  ;;  %16510 = vmatprep.subr.bf16.mxu0 %v16509_v51  ;;  %v13542_v48 = vld [vmem:[%s19684_s8 + $0xba8] sm:$0xff]  ;;  %v16551_v51 = vpack.c.bf16 %v13524_v46, %v13523_v41  ;;  %v16521_v21 = vpack.c.bf16 %v13510_v22, %v13509_v25  ;;  %v13515_v41 = vld [vmem:[%s19684_s8 + $0xad0] sm:$0xff]  ;;  %v13516_v46 = vld [vmem:[%s19684_s8 + $0xad8] sm:$0xff] }
0x381e   : > { %v16553_v31 = vpack.c.bf16 %v13542_v48, %v13541_v42  ;;  %v13547_v25 = vld [vmem:[%s19684_s8 + $0xbd0] sm:$0xff] }
0x381f   : > { %v13499_v48 = vld [vmem:[%s19684_s8 + $0xa50] sm:$0xff] }
0x3820   : > { %16480 = vmatpush3.bf16.msra.mxu1 %v16479_v8  ;;  %16512 = vmatpush3.bf16.msra.mxu0 %v16511_v9  ;;  %v13493_v8 = vld [vmem:[%s19684_s8 + $0xa20] sm:$0xff] }
0x3821   : > { %16514 = vmatprep.subr.bf16.mxu1 %v16513_v0  ;;  %16546 = vmatprep.subr.bf16.mxu0 %v16545_v56  ;;  %v13526_v0 = vld [vmem:[%s19684_s8 + $0xb28] sm:$0xff]  ;;  %v16523_v54 = vpack.c.bf16 %v13494_v37, %v13493_v8  ;;  %v16533_v8 = vpack.c.bf16 %v13516_v46, %v13515_v41 }
0x3822   : > { %v16555_v23 = vpack.c.bf16 %v13526_v0, %v13525_v24  ;;  %v13549_v24 = vld [vmem:[%s19684_s8 + $0xbe0] sm:$0xff]  ;;  %v13550_v0 = vld [vmem:[%s19684_s8 + $0xbe8] sm:$0xff] }
0x3823   : > { %v13570_v41 = vld [vmem:[%s19684_s8 + $0xc88] sm:$0xff] }
0x38be   : > { %v11518_v18 = vpop.f32.mrb[116].mxu1  ;;  %v11589_v29 = vpop.f32.mrb[118].mxu0 }
0x38bf   : > { %v11519_v11 = vadd.f32 %v11518_v18, %v11372_v47  ;;  %v11590_v59 = vadd.f32 %v11589_v29, %v11380_v40  ;;  %v11520_v30 = vpop.f32.mrb[117].mxu1  ;;  %v11591_v2 = vpop.f32.mrb[119].mxu0  ;;  %v13512_v40 = vld [vmem:[%s19684_s8 + $0xab8] sm:$0xff] }
0x38c0   : > { %v11521_v14 = vadd.f32 %v11520_v30, %v11376_v52  ;;  %v11592_v45 = vadd.f32 %v11591_v2, %v11384_v15  ;;  %v13543_v52 = vld [vmem:[%s19684_s8 + $0xbb0] sm:$0xff]  ;;  %v13544_v15 = vld [vmem:[%s19684_s8 + $0xbb8] sm:$0xff]  ;;  %v16525_v30 = vpack.c.bf16 %v13512_v40, %v13511_v55 }
0x38c1   : > { %v12020_v61 = vmax.f32 %v11519_v11, 0.0  ;;  %v12022_v62 = vmax.f32 %v11590_v59, 0.0  ;;  %v13495_v11 = vld [vmem:[%s19684_s8 + $0xa30] sm:$0xff]  ;;  %v13496_v59 = vld [vmem:[%s19684_s8 + $0xa38] sm:$0xff]  ;;  %v16557_v2 = vpack.c.bf16 %v13544_v15, %v13543_v52  ;;  %v13501_v52 = vld [vmem:[%s19684_s8 + $0xa60] sm:$0xff] }
0x38c2   : > { %v12021_v1 = vmax.f32 %v11521_v14, 0.0  ;;  %v12023_v6 = vmax.f32 %v11592_v45, 0.0  ;;  %v13514_v14 = vld [vmem:[%s19684_s8 + $0xac8] sm:$0xff]  ;;  %v13545_v45 = vld [vmem:[%s19684_s8 + $0xbc0] sm:$0xff] }
0x38c3   : > { %v13502_v15 = vld [vmem:[%s19684_s8 + $0xa68] sm:$0xff] }
0x38c4   : > { %12106 = vmatprep.mubr.f32.mxu1 %v12021_v1  ;;  %12176 = vmatprep.mubr.f32.mxu0 %v12023_v6  ;;  %v16527_v1 = vpack.c.bf16 %v13496_v59, %v13495_v11  ;;  %v16559_v6 = vpack.c.bf16 %v13528_v57, %v13527_v3  ;;  %v16569_v11 = vpack.c.bf16 %v13550_v0, %v13549_v24  ;;  %v13533_v59 = vld [vmem:[%s19684_s8 + $0xb60] sm:$0xff]  ;;  %v13520_v3 = vld [vmem:[%s19684_s8 + $0xaf8] sm:$0xff]  ;;  %v13551_v57 = vld [vmem:[%s19684_s8 + $0xbf0] sm:$0xff] }
0x38c5   : > { %12107 = vmatmul.mubr.f32.vlgmr.msra.gmra.mrb[124].mxu1 %v12020_v61  ;;  %12177 = vmatmul.mubr.f32.vlgmr.msra.gmra.mrb[126].mxu0 %v12022_v62  ;;  %v16529_v61 = vpack.c.bf16 %v13514_v14, %v13513_v10  ;;  %v16561_v62 = vpack.c.bf16 %v13546_v5, %v13545_v45  ;;  %v13552_v10 = vld [vmem:[%s19684_s8 + $0xbf8] sm:$0xff]  ;;  %v11388_v14 = vrot.slane %v19318_v4, %v17680_v39  ;;  %v13603_v24 = vld [vmem:[%s19684_s8 + $0xd90] sm:$0xff] }
0x38c6   : > { %v19348_v16 = vpop.f32.mrb[118].mxu1  ;;  %v19350_v44 = vpop.f32.mrb[120].mxu0  ;;  %16516 = vmatpush3.bf16.msra.mxu1 %v16515_v32  ;;  %16548 = vmatpush3.bf16.msra.mxu0 %v16547_v33  ;;  %v13497_v32 = vld [vmem:[%s19684_s8 + $0xa40] sm:$0xff]  ;;  %v13498_v33 = vld [vmem:[%s19684_s8 + $0xa48] sm:$0xff]  ;;  %v16539_v45 = vpack.c.bf16 %v13502_v15, %v13501_v52  ;;  %v13587_v52 = vld [vmem:[%s19684_s8 + $0xd10] sm:$0xff] }
0x38c7   : > { %v11662_v60 = vpop.f32.mrb[119].mxu1  ;;  %v11733_v9 = vpop.f32.mrb[121].mxu0  ;;  %16518 = vmatprep.subr.bf16.mxu1 %v16517_v34  ;;  %16550 = vmatprep.subr.bf16.mxu0 %v16549_v35  ;;  %v13529_v34 = vld [vmem:[%s19684_s8 + $0xb40] sm:$0xff]  ;;  %v13530_v35 = vld [vmem:[%s19684_s8 + $0xb48] sm:$0xff]  ;;  %v16531_v22 = vpack.c.bf16 %v13498_v33, %v13497_v32  ;;  %v13535_v32 = vld [vmem:[%s19684_s8 + $0xb70] sm:$0xff]  ;;  %v11396_v33 = vrot.slane %v19318_v4, %v17689_v50 }
0x38c8   : > { %v11663_v56 = vadd.f32 %v11662_v60, %v11392_v38  ;;  %v11734_v47 = vadd.f32 %v11733_v9, %v11400_v36  ;;  %v13548_v38 = vld [vmem:[%s19684_s8 + $0xbd8] sm:$0xff]  ;;  %v16563_v42 = vpack.c.bf16 %v13530_v35, %v13529_v34  ;;  %v13531_v60 = vld [vmem:[%s19684_s8 + $0xb50] sm:$0xff]  ;;  %v13569_v35 = vld [vmem:[%s19684_s8 + $0xc80] sm:$0xff] }
0x38c9   : > { %v19385_v36 = vld [vmem:[%s19685_s12 + $0x18] sm:$0xff]  ;;  %v16565_v37 = vpack.c.bf16 %v13548_v38, %v13547_v25  ;;  %v13601_v25 = vld [vmem:[%s19684_s8 + $0xd80] sm:$0xff]  ;;  %v13602_v38 = vld [vmem:[%s19684_s8 + $0xd88] sm:$0xff] }
0x38ca   : > { %v12025_v18 = vmax.f32 %v11663_v56, 0.0  ;;  %v12027_v29 = vmax.f32 %v11734_v47, 0.0  ;;  %16520 = vmatpush3.bf16.msra.mxu1 %v16519_v28  ;;  %16552 = vmatpush3.bf16.msra.mxu0 %v16551_v51  ;;  %v13500_v28 = vld [vmem:[%s19684_s8 + $0xa58] sm:$0xff]  ;;  %v11428_v51 = vrot.slane %v19385_v36, %v17689_v50  ;;  %v11408_v46 = vrot.slane %v19385_v36, %v17574_v19 }
0x38cb   : > { %16522 = vmatprep.subr.bf16.mxu1 %v16521_v21  ;;  %16554 = vmatprep.subr.bf16.mxu0 %v16553_v31  ;;  %v13532_v9 = vld [vmem:[%s19684_s8 + $0xb58] sm:$0xff]  ;;  %v13517_v21 = vld [vmem:[%s19684_s8 + $0xae0] sm:$0xff]  ;;  %v13518_v31 = vld [vmem:[%s19684_s8 + $0xae8] sm:$0xff]  ;;  %v16535_v47 = vpack.c.bf16 %v13500_v28, %v13499_v48  ;;  %v11661_v48 = vadd.f32 %v19348_v16, %v11388_v14  ;;  %v11732_v19 = vadd.f32 %v19350_v44, %v11396_v33 }
0x38cc   : > { %12246 = vmatprep.mubr.f32.mxu1 %v12025_v18  ;;  %12316 = vmatprep.mubr.f32.mxu0 %v12027_v29  ;;  %v16567_v40 = vpack.c.bf16 %v13532_v9, %v13531_v60  ;;  %v13536_v34 = vld [vmem:[%s19684_s8 + $0xb78] sm:$0xff]  ;;  %v16609_v28 = vpack.c.bf16 %v13602_v38, %v13601_v25  ;;  %v13586_v60 = vld [vmem:[%s19684_s8 + $0xd08] sm:$0xff]  ;;  %v13571_v9 = vld [vmem:[%s19684_s8 + $0xc90] sm:$0xff] }
0x38cd   : > { %v16575_v4 = vpack.c.bf16 %v13536_v34, %v13535_v32  ;;  %v13604_v16 = vld [vmem:[%s19684_s8 + $0xd98] sm:$0xff]  ;;  %v12024_v0 = vmax.f32 %v11661_v48, 0.0  ;;  %v13590_v33 = vld [vmem:[%s19684_s8 + $0xd28] sm:$0xff]  ;;  %v13607_v34 = vld [vmem:[%s19684_s8 + $0xdb0] sm:$0xff] }
0x38ce   : > { %v19368_v13 = vpop.f32.mrb[120].mxu1  ;;  %v19370_v7 = vpop.f32.mrb[122].mxu0  ;;  %16524 = vmatpush3.bf16.msra.mxu1 %v16523_v54  ;;  %16556 = vmatpush3.bf16.msra.mxu0 %v16555_v23  ;;  %v16537_v23 = vpack.c.bf16 %v13518_v31, %v13517_v21  ;;  %v13572_v31 = vld [vmem:[%s19684_s8 + $0xc98] sm:$0xff]  ;;  %v13559_v38 = vld [vmem:[%s19684_s8 + $0xc30] sm:$0xff]  ;;  %v13577_v48 = vld [vmem:[%s19684_s8 + $0xcc0] sm:$0xff] }
0x38cf   : > { %v19374_v26 = vpop.f32.mrb[121].mxu1  ;;  %v19376_v12 = vpop.f32.mrb[123].mxu0  ;;  %16526 = vmatprep.subr.bf16.mxu1 %v16525_v30  ;;  %16558 = vmatprep.subr.bf16.mxu0 %v16557_v2  ;;  %v13534_v30 = vld [vmem:[%s19684_s8 + $0xb68] sm:$0xff]  ;;  %v13519_v2 = vld [vmem:[%s19684_s8 + $0xaf0] sm:$0xff]  ;;  %v16581_v15 = vpack.c.bf16 %v13572_v31, %v13571_v9 }
0x38d0   : > { %v16571_v5 = vpack.c.bf16 %v13534_v30, %v13533_v59  ;;  %v13573_v59 = vld [vmem:[%s19684_s8 + $0xca0] sm:$0xff]  ;;  %v13574_v30 = vld [vmem:[%s19684_s8 + $0xca8] sm:$0xff] }
0x38d1   : > { %v13562_v9 = vld [vmem:[%s19684_s8 + $0xc48] sm:$0xff] }
0x38d2   : > { %16528 = vmatpush3.bf16.msra.mxu1 %v16527_v1  ;;  %16560 = vmatpush3.bf16.msra.mxu0 %v16559_v6  ;;  %v13503_v1 = vld [vmem:[%s19684_s8 + $0xa70] sm:$0xff]  ;;  %v13504_v6 = vld [vmem:[%s19684_s8 + $0xa78] sm:$0xff] }
0x38d3   : > { %16530 = vmatprep.subr.bf16.mxu1 %v16529_v61  ;;  %16562 = vmatprep.subr.bf16.mxu0 %v16561_v62  ;;  %v16541_v61 = vpack.c.bf16 %v13520_v3, %v13519_v2  ;;  %v16573_v62 = vpack.c.bf16 %v13552_v10, %v13551_v57  ;;  %v16543_v50 = vpack.c.bf16 %v13504_v6, %v13503_v1  ;;  %v13605_v3 = vld [vmem:[%s19684_s8 + $0xda0] sm:$0xff]  ;;  %v13606_v57 = vld [vmem:[%s19684_s8 + $0xda8] sm:$0xff] }
0x38d4   : > { %v13558_v1 = vld [vmem:[%s19684_s8 + $0xc28] sm:$0xff]  ;;  %v13589_v6 = vld [vmem:[%s19684_s8 + $0xd20] sm:$0xff]  ;;  %v16617_v32 = vpack.c.bf16 %v13606_v57, %v13605_v3 }
0x38d5   : > { %v13614_v3 = vld [vmem:[%s19684_s8 + $0xde8] sm:$0xff] }
0x38d6   : > { %v19397_v55 = vpop.f32.mrb[122].mxu1  ;;  %v12015_v56 = vpop.f32.mrb[124].mxu0  ;;  %16532 = vmatpush3.bf16.msra.mxu1 %v16531_v22  ;;  %16564 = vmatpush3.bf16.msra.mxu0 %v16563_v42  ;;  %v11416_v22 = vrot.slane %v19385_v36, %v17577_v20  ;;  %v16577_v42 = vpack.c.bf16 %v13570_v41, %v13569_v35  ;;  %v11805_v20 = vadd.f32 %v19374_v26, %v11408_v46  ;;  %v13608_v35 = vld [vmem:[%s19684_s8 + $0xdb8] sm:$0xff] }
0x38d7   : > { %v19401_v18 = vadd.f32 %v12015_v56, %v11428_v51  ;;  %v19403_v29 = vpop.f32.mrb[123].mxu1  ;;  %v19405_v54 = vpop.f32.mrb[125].mxu0  ;;  %16534 = vmatprep.subr.bf16.mxu1 %v16533_v8  ;;  %16566 = vmatprep.subr.bf16.mxu0 %v16565_v37  ;;  %v13553_v51 = vld [vmem:[%s19684_s8 + $0xc00] sm:$0xff]  ;;  %v13554_v8 = vld [vmem:[%s19684_s8 + $0xc08] sm:$0xff]  ;;  %v12026_v56 = vmax.f32 %v11732_v19, 0.0  ;;  %v16619_v46 = vpack.c.bf16 %v13590_v33, %v13589_v6  ;;  %v13583_v33 = vld [vmem:[%s19684_s8 + $0xcf0] sm:$0xff] }
0x38d8   : > { %v13585_v37 = vld [vmem:[%s19684_s8 + $0xd00] sm:$0xff]  ;;  %v11876_v21 = vadd.f32 %v19376_v12, %v11416_v22  ;;  %v16579_v44 = vpack.c.bf16 %v13554_v8, %v13553_v51  ;;  %v12029_v12 = vmax.f32 %v11805_v20, 0.0  ;;  %v13560_v22 = vld [vmem:[%s19684_s8 + $0xc38] sm:$0xff]  ;;  %v13578_v19 = vld [vmem:[%s19684_s8 + $0xcc8] sm:$0xff] }
0x38d9   : > { %v16611_v26 = vpack.c.bf16 %v13586_v60, %v13585_v37  ;;  %v13610_v51 = vld [vmem:[%s19684_s8 + $0xdc8] sm:$0xff]  ;;  %v16591_v8 = vpack.c.bf16 %v13560_v22, %v13559_v38  ;;  %v16593_v37 = vpack.c.bf16 %v13578_v19, %v13577_v48  ;;  %v13561_v60 = vld [vmem:[%s19684_s8 + $0xc40] sm:$0xff]  ;;  %v13567_v38 = vld [vmem:[%s19684_s8 + $0xc70] sm:$0xff] }
0x38da   : > { %16536 = vmatpush3.bf16.msra.mxu1 %v16535_v47  ;;  %16568 = vmatpush3.bf16.msra.mxu0 %v16567_v40  ;;  %v13555_v47 = vld [vmem:[%s19684_s8 + $0xc10] sm:$0xff]  ;;  %v13556_v40 = vld [vmem:[%s19684_s8 + $0xc18] sm:$0xff]  ;;  %v12031_v2 = vmax.f32 %v11876_v21, 0.0  ;;  %v13593_v21 = vld [vmem:[%s19684_s8 + $0xd40] sm:$0xff] }
0x38db   : > { %16538 = vmatprep.subr.bf16.mxu1 %v16537_v23  ;;  %16570 = vmatprep.subr.bf16.mxu0 %v16569_v11  ;;  %v16613_v23 = vpack.c.bf16 %v13604_v16, %v13603_v24  ;;  %v13588_v11 = vld [vmem:[%s19684_s8 + $0xd18] sm:$0xff]  ;;  %v16583_v10 = vpack.c.bf16 %v13556_v40, %v13555_v47  ;;  %v13594_v24 = vld [vmem:[%s19684_s8 + $0xd48] sm:$0xff]  ;;  %v13579_v16 = vld [vmem:[%s19684_s8 + $0xcd0] sm:$0xff] }
0x38dc   : > { %v16615_v14 = vpack.c.bf16 %v13588_v11, %v13587_v52  ;;  %v16627_v47 = vpack.c.bf16 %v13594_v24, %v13593_v21  ;;  %v13563_v52 = vld [vmem:[%s19684_s8 + $0xc50] sm:$0xff]  ;;  %v13596_v11 = vld [vmem:[%s19684_s8 + $0xd58] sm:$0xff]  ;;  %v13633_v19 = vld [vmem:[%s19684_s8 + $0xe80] sm:$0xff] }
0x38dd   : > { %v13568_v22 = vld [vmem:[%s19684_s8 + $0xc78] sm:$0xff]  ;;  %v13618_v21 = vld [vmem:[%s19684_s8 + $0xe08] sm:$0xff] }
0x38de   : > { %16540 = vmatpush3.bf16.msra.mxu1 %v16539_v45  ;;  %16572 = vmatpush3.bf16.msra.mxu0 %v16571_v5  ;;  %v16585_v45 = vpack.c.bf16 %v13574_v30, %v13573_v59  ;;  %v13557_v5 = vld [vmem:[%s19684_s8 + $0xc20] sm:$0xff]  ;;  %v13582_v30 = vld [vmem:[%s19684_s8 + $0xce8] sm:$0xff]  ;;  %v13600_v48 = vld [vmem:[%s19684_s8 + $0xd78] sm:$0xff] }
0x38df   : > { %16542 = vmatprep.subr.bf16.mxu1 %v16541_v61  ;;  %16574 = vmatprep.subr.bf16.mxu0 %v16573_v62  ;;  %v13575_v61 = vld [vmem:[%s19684_s8 + $0xcb0] sm:$0xff]  ;;  %v13576_v62 = vld [vmem:[%s19684_s8 + $0xcb8] sm:$0xff]  ;;  %v16587_v41 = vpack.c.bf16 %v13558_v1, %v13557_v5  ;;  %v13581_v59 = vld [vmem:[%s19684_s8 + $0xce0] sm:$0xff] }
0x38e0   : > { %v16589_v25 = vpack.c.bf16 %v13576_v62, %v13575_v61  ;;  %v13566_v5 = vld [vmem:[%s19684_s8 + $0xc68] sm:$0xff]  ;;  %v13597_v1 = vld [vmem:[%s19684_s8 + $0xd60] sm:$0xff]  ;;  %v13584_v61 = vld [vmem:[%s19684_s8 + $0xcf8] sm:$0xff] }
0x38e1   : > { %v13615_v62 = vld [vmem:[%s19684_s8 + $0xdf0] sm:$0xff] }
0x38e2   : > { %16544 = vmatpush3.bf16.msra.mxu1 %v16543_v50  ;;  %16576 = vmatpush3.bf16.msra.mxu0 %v16575_v4  ;;  %v13591_v50 = vld [vmem:[%s19684_s8 + $0xd30] sm:$0xff]  ;;  %v16621_v4 = vpack.c.bf16 %v13608_v35, %v13607_v34  ;;  %v13616_v34 = vld [vmem:[%s19684_s8 + $0xdf8] sm:$0xff] }
0x38e3   : > { %16578 = vmatprep.subr.bf16.mxu1 %v16577_v42  ;;  %16610 = vmatprep.subr.bf16.mxu0 %v16609_v28  ;;  %v13592_v42 = vld [vmem:[%s19684_s8 + $0xd38] sm:$0xff]  ;;  %v13609_v28 = vld [vmem:[%s19684_s8 + $0xdc0] sm:$0xff] }
0x38e4   : > { %v16623_v20 = vpack.c.bf16 %v13592_v42, %v13591_v50  ;;  %v16625_v31 = vpack.c.bf16 %v13610_v51, %v13609_v28  ;;  %v13599_v50 = vld [vmem:[%s19684_s8 + $0xd70] sm:$0xff]  ;;  %v16637_v42 = vpack.c.bf16 %v13616_v34, %v13615_v62  ;;  %v13634_v28 = vld [vmem:[%s19684_s8 + $0xe88] sm:$0xff]  ;;  %v13665_v51 = vld [vmem:[%s19684_s8 + $0xf80] sm:$0xff] }
0x38e5   : > { %12247 = vmatmul.mubr.f32.vlgmr.msra.gmra.mrb[126].mxu1 %v12024_v0  ;;  %12317 = vmatmul.mubr.f32.vlgmr.msra.gmra.mrb[128].mxu0 %v12026_v56  ;;  %v13611_v0 = vld [vmem:[%s19684_s8 + $0xdd0] sm:$0xff]  ;;  %v13612_v56 = vld [vmem:[%s19684_s8 + $0xdd8] sm:$0xff]  ;;  %v13654_v62 = vld [vmem:[%s19684_s8 + $0xf28] sm:$0xff] }
0x38e6   : > { %16580 = vmatpush3.bf16.msra.mxu1 %v16579_v44  ;;  %12386 = vmatprep.mubr.f32.mxu1 %v12029_v12  ;;  %v13580_v44 = vld [vmem:[%s19684_s8 + $0xcd8] sm:$0xff]  ;;  %v13639_v34 = vld [vmem:[%s19684_s8 + $0xeb0] sm:$0xff] }
0x38e7   : > { %16612 = vmatpush3.bf16.msra.mxu0 %v16611_v26  ;;  %12456 = vmatprep.mubr.f32.mxu0 %v12031_v2  ;;  %v16595_v26 = vpack.c.bf16 %v13562_v9, %v13561_v60  ;;  %v16597_v40 = vpack.c.bf16 %v13580_v44, %v13579_v16  ;;  %v13564_v12 = vld [vmem:[%s19684_s8 + $0xc58] sm:$0xff]  ;;  %v13613_v2 = vld [vmem:[%s19684_s8 + $0xde0] sm:$0xff]  ;;  %v16639_v60 = vpack.c.bf16 %v13600_v48, %v13599_v50  ;;  %v13650_v16 = vld [vmem:[%s19684_s8 + $0xf08] sm:$0xff] }
0x38e8   : > { %16582 = vmatprep.subr.bf16.mxu1 %v16581_v15  ;;  %16614 = vmatprep.subr.bf16.mxu0 %v16613_v23  ;;  %v13595_v15 = vld [vmem:[%s19684_s8 + $0xd50] sm:$0xff]  ;;  %v16629_v23 = vpack.c.bf16 %v13612_v56, %v13611_v0  ;;  %v16599_v57 = vpack.c.bf16 %v13564_v12, %v13563_v52  ;;  %v16633_v6 = vpack.c.bf16 %v13614_v3, %v13613_v2  ;;  %v13636_v0 = vld [vmem:[%s19684_s8 + $0xe98] sm:$0xff] }
0x38e9   : > { %v16641_v9 = vpack.c.bf16 %v13634_v28, %v13633_v19  ;;  %v13619_v12 = vld [vmem:[%s19684_s8 + $0xe10] sm:$0xff]  ;;  %v13656_v19 = vld [vmem:[%s19684_s8 + $0xf38] sm:$0xff]  ;;  %v13641_v28 = vld [vmem:[%s19684_s8 + $0xec0] sm:$0xff] }
0x38ea   : > { %16584 = vmatpush3.bf16.msra.mxu1 %v16583_v10  ;;  %v16631_v10 = vpack.c.bf16 %v13596_v11, %v13595_v15  ;;  %v13620_v15 = vld [vmem:[%s19684_s8 + $0xe18] sm:$0xff]  ;;  %v13623_v50 = vld [vmem:[%s19684_s8 + $0xe30] sm:$0xff] }
0x38eb   : > { %16616 = vmatpush3.bf16.msra.mxu0 %v16615_v14  ;;  %16586 = vmatprep.subr.bf16.mxu1 %v16585_v45  ;;  %v16601_v14 = vpack.c.bf16 %v13582_v30, %v13581_v59  ;;  %v13565_v45 = vld [vmem:[%s19684_s8 + $0xc60] sm:$0xff]  ;;  %v13652_v59 = vld [vmem:[%s19684_s8 + $0xf18] sm:$0xff]  ;;  %v13638_v30 = vld [vmem:[%s19684_s8 + $0xea8] sm:$0xff] }
0x38ec   : > { %16618 = vmatprep.subr.bf16.mxu0 %v16617_v32  ;;  %v13598_v32 = vld [vmem:[%s19684_s8 + $0xd68] sm:$0xff]  ;;  %v16603_v35 = vpack.c.bf16 %v13566_v5, %v13565_v45  ;;  %v16647_v45 = vpack.c.bf16 %v13620_v15, %v13619_v12  ;;  %v13645_v12 = vld [vmem:[%s19684_s8 + $0xee0] sm:$0xff] }
0x38ed   : > { %v13646_v15 = vld [vmem:[%s19684_s8 + $0xee8] sm:$0xff] }
0x38ee   : > { %16588 = vmatpush3.bf16.msra.mxu1 %v16587_v41  ;;  %v11404_v41 = vrot.slane %v19385_v36, %v17565_v17  ;;  %v11424_v17 = vrot.slane %v19385_v36, %v17590_v27  ;;  %v13617_v27 = vld [vmem:[%s19684_s8 + $0xe00] sm:$0xff] }
0x38ef   : > { %16620 = vmatpush3.bf16.msra.mxu0 %v16619_v46  ;;  %16590 = vmatprep.subr.bf16.mxu1 %v16589_v25  ;;  %v16635_v46 = vpack.c.bf16 %v13598_v32, %v13597_v1  ;;  %v16605_v25 = vpack.c.bf16 %v13584_v61, %v13583_v33  ;;  %v13622_v32 = vld [vmem:[%s19684_s8 + $0xe28] sm:$0xff]  ;;  %v13653_v33 = vld [vmem:[%s19684_s8 + $0xf20] sm:$0xff] }
0x38f0   : > { %16622 = vmatprep.subr.bf16.mxu0 %v16621_v4  ;;  %v11412_v4 = vrot.slane %v19385_v36, %v17568_v53  ;;  %v16607_v53 = vpack.c.bf16 %v13568_v22, %v13567_v38  ;;  %v11947_v44 = vadd.f32 %v19403_v29, %v11424_v17  ;;  %v13651_v29 = vld [vmem:[%s19684_s8 + $0xf10] sm:$0xff]  ;;  %v16683_v38 = vpack.c.bf16 %v13654_v62, %v13653_v33  ;;  %v13642_v17 = vld [vmem:[%s19684_s8 + $0xec8] sm:$0xff] }
0x38f1   : > { %v16679_v5 = vpack.c.bf16 %v13652_v59, %v13651_v29  ;;  %v13677_v29 = vld [vmem:[%s19684_s8 + $0xfe0] sm:$0xff]  ;;  %v13631_v62 = vld [vmem:[%s19684_s8 + $0xe70] sm:$0xff] }
0x38f2   : > { %16592 = vmatpush3.bf16.msra.mxu1 %v16591_v8  ;;  %v13666_v8 = vld [vmem:[%s19684_s8 + $0xf88] sm:$0xff]  ;;  %v12033_v2 = vmax.f32 %v11947_v44, 0.0  ;;  %v13676_v44 = vld [vmem:[%s19684_s8 + $0xfd8] sm:$0xff] }
0x38f3   : > { %16624 = vmatpush3.bf16.msra.mxu0 %v16623_v20  ;;  %16594 = vmatprep.subr.bf16.mxu1 %v16593_v37  ;;  %v11432_v20 = vrot.slane %v19385_v36, %v17599_v43  ;;  %v11803_v37 = vadd.f32 %v19368_v13, %v11404_v41  ;;  %v16673_v24 = vpack.c.bf16 %v13666_v8, %v13665_v51  ;;  %v13649_v43 = vld [vmem:[%s19684_s8 + $0xf00] sm:$0xff]  ;;  %v13635_v13 = vld [vmem:[%s19684_s8 + $0xe90] sm:$0xff]  ;;  %v13674_v8 = vld [vmem:[%s19684_s8 + $0xfc8] sm:$0xff] }
0x38f4   : > { %16626 = vmatprep.subr.bf16.mxu0 %v16625_v31  ;;  %v11874_v31 = vadd.f32 %v19370_v7, %v11412_v4  ;;  %v13668_v7 = vld [vmem:[%s19684_s8 + $0xf98] sm:$0xff]  ;;  %v16675_v52 = vpack.c.bf16 %v13650_v16, %v13649_v43  ;;  %v16645_v11 = vpack.c.bf16 %v13636_v0, %v13635_v13  ;;  %v13671_v41 = vld [vmem:[%s19684_s8 + $0xfb0] sm:$0xff]  ;;  %v13673_v51 = vld [vmem:[%s19684_s8 + $0xfc0] sm:$0xff] }
0x38f5   : > { %v12018_v56 = vadd.f32 %v19405_v54, %v11432_v20  ;;  %v13637_v54 = vld [vmem:[%s19684_s8 + $0xea0] sm:$0xff]  ;;  %v13624_v4 = vld [vmem:[%s19684_s8 + $0xe38] sm:$0xff]  ;;  %v13675_v16 = vld [vmem:[%s19684_s8 + $0xfd0] sm:$0xff] }
0x38f6   : > { %16596 = vmatpush3.bf16.msra.mxu1 %v16595_v26  ;;  %v16643_v26 = vpack.c.bf16 %v13618_v21, %v13617_v27  ;;  %v16649_v1 = vpack.c.bf16 %v13638_v30, %v13637_v54  ;;  %v16655_v20 = vpack.c.bf16 %v13624_v4, %v13623_v50  ;;  %v13657_v27 = vld [vmem:[%s19684_s8 + $0xf40] sm:$0xff]  ;;  %v16689_v21 = vpack.c.bf16 %v13674_v8, %v13673_v51  ;;  %v13644_v43 = vld [vmem:[%s19684_s8 + $0xed8] sm:$0xff] }
0x38f7   : > { %16628 = vmatpush3.bf16.msra.mxu0 %v16627_v47  ;;  %16598 = vmatprep.subr.bf16.mxu1 %v16597_v40  ;;  %v13667_v47 = vld [vmem:[%s19684_s8 + $0xf90] sm:$0xff]  ;;  %v12028_v40 = vmax.f32 %v11803_v37, 0.0  ;;  %v16657_v37 = vpack.c.bf16 %v13642_v17, %v13641_v28  ;;  %v16665_v54 = vpack.c.bf16 %v13646_v15, %v13645_v12  ;;  %v13629_v30 = vld [vmem:[%s19684_s8 + $0xe60] sm:$0xff] }
0x38f8   : > { %16630 = vmatprep.subr.bf16.mxu0 %v16629_v23  ;;  %v12030_v23 = vmax.f32 %v11874_v31, 0.0  ;;  %v16677_v3 = vpack.c.bf16 %v13668_v7, %v13667_v47  ;;  %v13658_v31 = vld [vmem:[%s19684_s8 + $0xf48] sm:$0xff]  ;;  %v13628_v47 = vld [vmem:[%s19684_s8 + $0xe58] sm:$0xff]  ;;  %v13659_v7 = vld [vmem:[%s19684_s8 + $0xf50] sm:$0xff] }
0x38f9   : > { %v16691_v0 = vpack.c.bf16 %v13658_v31, %v13657_v27 }
0x38fa   : > { %16600 = vmatpush3.bf16.msra.mxu1 %v16599_v57  ;;  %v13669_v57 = vld [vmem:[%s19684_s8 + $0xfa0] sm:$0xff] }
0x38fb   : > { %16632 = vmatpush3.bf16.msra.mxu0 %v16631_v10  ;;  %16602 = vmatprep.subr.bf16.mxu1 %v16601_v14  ;;  %v13670_v10 = vld [vmem:[%s19684_s8 + $0xfa8] sm:$0xff]  ;;  %v12035_v14 = vmax.f32 %v12018_v56, 0.0 }
0x38fc   : > { %16634 = vmatprep.subr.bf16.mxu0 %v16633_v6  ;;  %v13621_v6 = vld [vmem:[%s19684_s8 + $0xe20] sm:$0xff]  ;;  %v16681_v61 = vpack.c.bf16 %v13670_v10, %v13669_v57  ;;  %v13662_v10 = vld [vmem:[%s19684_s8 + $0xf68] sm:$0xff] }
0x38fe   : > { %16604 = vmatpush3.bf16.msra.mxu1 %v16603_v35  ;;  %v13640_v35 = vld [vmem:[%s19684_s8 + $0xeb8] sm:$0xff] }
0x38ff   : > { %16636 = vmatpush3.bf16.msra.mxu0 %v16635_v46  ;;  %16606 = vmatprep.subr.bf16.mxu1 %v16605_v25  ;;  %v13672_v46 = vld [vmem:[%s19684_s8 + $0xfb8] sm:$0xff]  ;;  %v16651_v25 = vpack.c.bf16 %v13622_v32, %v13621_v6  ;;  %v16653_v22 = vpack.c.bf16 %v13640_v35, %v13639_v34  ;;  %v11420_v32 = vrot.slane %v19385_v36, %v17680_v39  ;;  %v12034_v36 = vmax.f32 %v19401_v18, 0.0 }
0x3900   : > { %16638 = vmatprep.subr.bf16.mxu0 %v16637_v42  ;;  %v13655_v42 = vld [vmem:[%s19684_s8 + $0xf30] sm:$0xff]  ;;  %v16685_v48 = vpack.c.bf16 %v13672_v46, %v13671_v41  ;;  %v13632_v34 = vld [vmem:[%s19684_s8 + $0xe78] sm:$0xff] }
0x3901   : > { %v13663_v41 = vld [vmem:[%s19684_s8 + $0xf70] sm:$0xff]  ;;  %v13664_v46 = vld [vmem:[%s19684_s8 + $0xf78] sm:$0xff] }
0x3902   : > { %16608 = vmatpush3.bf16.msra.mxu1 %v16607_v53  ;;  %v16687_v53 = vpack.c.bf16 %v13656_v19, %v13655_v42  ;;  %v13690_v42 = vld [vmem:[%s19686_s13 + $0x1] ss:$0 sm:$0xff] }
0x3903   : > { %16640 = vmatpush3.bf16.msra.mxu0 %v16639_v60  ;;  %16642 = vmatprep.subr.bf16.mxu1 %v16641_v9  ;;  %v13625_v60 = vld [vmem:[%s19684_s8 + $0xe40] sm:$0xff]  ;;  %v13626_v9 = vld [vmem:[%s19684_s8 + $0xe48] sm:$0xff] }
0x3904   : > { %16674 = vmatprep.subr.bf16.mxu0 %v16673_v24  ;;  %v13643_v24 = vld [vmem:[%s19684_s8 + $0xed0] sm:$0xff]  ;;  %v16659_v13 = vpack.c.bf16 %v13626_v9, %v13625_v60 }
0x3905   : > { %12387 = vmatmul.mubr.f32.vlgmr.msra.gmra.mrb[128].mxu1 %v12028_v40  ;;  %v16661_v56 = vpack.c.bf16 %v13644_v43, %v13643_v24  ;;  %v16693_v40 = vpack.c.bf16 %v13676_v44, %v13675_v16 }
0x3906   : > { %12457 = vmatmul.mubr.f32.vlgmr.msra.gmra.mrb[130].mxu0 %v12030_v23  ;;  %16644 = vmatpush3.bf16.msra.mxu1 %v16643_v26  ;;  %v13627_v26 = vld [vmem:[%s19684_s8 + $0xe50] sm:$0xff]  ;;  %v13678_v23 = vld [vmem:[%s19684_s8 + $0xfe8] sm:$0xff] }
0x3907   : > { %12526 = vmatprep.mubr.f32.mxu1 %v12033_v2  ;;  %16676 = vmatpush3.bf16.msra.mxu0 %v16675_v52  ;;  %v13660_v52 = vld [vmem:[%s19684_s8 + $0xf58] sm:$0xff]  ;;  %v13630_v2 = vld [vmem:[%s19684_s8 + $0xe68] sm:$0xff]  ;;  %v16697_v57 = vpack.c.bf16 %v13678_v23, %v13677_v29 }
0x3908   : > { %12596 = vmatprep.mubr.f32.mxu0 %v12035_v14  ;;  %16646 = vmatprep.subr.bf16.mxu1 %v16645_v11  ;;  %v16663_v11 = vpack.c.bf16 %v13628_v47, %v13627_v26  ;;  %v16695_v59 = vpack.c.bf16 %v13660_v52, %v13659_v7  ;;  %v13647_v14 = vld [vmem:[%s19684_s8 + $0xef0] sm:$0xff]  ;;  %v16667_v6 = vpack.c.bf16 %v13630_v2, %v13629_v30  ;;  %v12639_v2 = vld [vmem:[%s17187_s27] sm:$0xff] }
0x3909   : > { %16678 = vmatprep.subr.bf16.mxu0 %v16677_v3  ;;  %v13661_v3 = vld [vmem:[%s19684_s8 + $0xf60] sm:$0xff] }
0x390a   : > { %16648 = vmatpush3.bf16.msra.mxu1 %v16647_v45  ;;  %v13648_v45 = vld [vmem:[%s19684_s8 + $0xef8] sm:$0xff]  ;;  %v16699_v33 = vpack.c.bf16 %v13662_v10, %v13661_v3  ;;  %v12640_v3 = vld [vmem:[%s17187_s27 + $0x8] sm:$0xff] }
0x390b   : > { %16680 = vmatpush3.bf16.msra.mxu0 %v16679_v5  ;;  %16650 = vmatprep.subr.bf16.mxu1 %v16649_v1  ;;  %v13679_v5 = vld [vmem:[%s19684_s8 + $0xff0] sm:$0xff]  ;;  %v13680_v1 = vld [vmem:[%s19684_s8 + $0xff8] sm:$0xff]  ;;  %v16706_v10 = vpack.c.bf16 %v12640_v3, %v12639_v2 }
0x390c   : > { %16682 = vmatprep.subr.bf16.mxu0 %v16681_v61  ;;  %v16669_v61 = vpack.c.bf16 %v13648_v45, %v13647_v14  ;;  %v16701_v35 = vpack.c.bf16 %v13680_v1, %v13679_v5  ;;  %v12642_v14 = vld [vmem:[%s17187_s27 + $0x18] sm:$0xff] }
0x390e   : > { %16652 = vmatpush3.bf16.msra.mxu1 %v16651_v25  ;;  %v16671_v25 = vpack.c.bf16 %v13632_v34, %v13631_v62  ;;  %v13691_v34 = vld [vmem:[%s19690_s22] ss:$0 sm:$0xff] }
0x390f   : > { %16684 = vmatpush3.bf16.msra.mxu0 %v16683_v38  ;;  %16654 = vmatprep.subr.bf16.mxu1 %v16653_v22  ;;  %v11945_v38 = vadd.f32 %v19397_v55, %v11420_v32  ;;  %v16703_v22 = vpack.c.bf16 %v13664_v46, %v13663_v41  ;;  %v13692_v41 = vld [vmem:[%s17182_s17] ss:$0 sm:$0xff] }
0x3910   : > { %16686 = vmatprep.subr.bf16.mxu0 %v16685_v48 }
0x3911   : > { %v12032_v39 = vmax.f32 %v11945_v38, 0.0  ;;  %v13693_v38 = vld [vmem:[%s17192_s4] ss:$0 sm:$0xff] }
0x3912   : > { %16656 = vmatpush3.bf16.msra.mxu1 %v16655_v20 }
0x3913   : > { %16688 = vmatpush3.bf16.msra.mxu0 %v16687_v53  ;;  %16658 = vmatprep.subr.bf16.mxu1 %v16657_v37 }
0x3914   : > { %16690 = vmatprep.subr.bf16.mxu0 %v16689_v21 }
0x3916   : > { %16660 = vmatpush3.bf16.msra.mxu1 %v16659_v13 }
0x3917   : > { %16692 = vmatpush3.bf16.msra.mxu0 %v16691_v0  ;;  %16662 = vmatprep.subr.bf16.mxu1 %v16661_v56 }
0x3918   : > { %16694 = vmatprep.subr.bf16.mxu0 %v16693_v40 }
0x391a   : > { %16664 = vmatpush3.bf16.msra.mxu1 %v16663_v11 }
0x391b   : > { %16696 = vmatpush3.bf16.msra.mxu0 %v16695_v59  ;;  %16666 = vmatprep.subr.bf16.mxu1 %v16665_v54 }
0x391c   : > { %16698 = vmatprep.subr.bf16.mxu0 %v16697_v57  ;;  %v12641_v57 = vld [vmem:[%s17187_s27 + $0x10] sm:$0xff] }
0x391d   : > { %v16709_v45 = vpack.c.bf16 %v12642_v14, %v12641_v57 }
0x391e   : > { %16668 = vmatpush3.bf16.msra.mxu1 %v16667_v6 }
0x391f   : > { %16700 = vmatpush3.bf16.msra.mxu0 %v16699_v33  ;;  %16670 = vmatprep.subr.bf16.mxu1 %v16669_v61 }
0x3920   : > { %16702 = vmatprep.subr.bf16.mxu0 %v16701_v35 }
0x3922   : > { %16672 = vmatpush3.bf16.msra.mxu1 %v16671_v25 }
0x3923   : > { %16704 = vmatpush3.bf16.msra.mxu0 %v16703_v22  ;;  %16705 = vmatprep.subr.bf16.mxu1 %v17017_v58 }
0x3925   : > { %12527 = vmatmul.mubr.f32.vlgmr.msra.gmra.mrb[130].mxu1 %v12032_v39 }
0x3926   : > { %12597 = vmatmul.mubr.f32.vlgmr.msra.gmra.mrb[132].mxu0 %v12034_v36  ;;  %15341 = vmatprep.mubr.msk.f32.mxu1 %vm17018_vm12, %v17016_v63 }
0x3927   : > { %16707 = vmatpush3.bf16.msra.mxu1 %v16706_v10 }
0x3928   : > { %16708 = vmatprep.subr.bf16.mxu1 %v17017_v58 }
0x392b   : > { %16710 = vmatpush3.bf16.msra.mxu1 %v16709_v45 }
0x3998   : > { %v14746_v50 = vpop.f32.mrb[124].mxu1  ;;  %v14781_v4 = vpop.f32.mrb[126].mxu0 }
0x3999   : > { %v14747_v55 = vpop.f32.mrb[125].mxu1  ;;  %v14782_v48 = vpop.f32.mrb[127].mxu0 }
0x399a   : > { %v14748_v19 = vadd.f32 %v14747_v55, %v14746_v50  ;;  %v14783_v28 = vadd.f32 %v14782_v48, %v14781_v4 }
0x399c   : > { %v12109_v17 = vadd.f32 %v14748_v19, %v13690_v42 }
0x399e   : > { %v12179_v51 = vadd.f32 %v14783_v28, %v12109_v17 }
0x39b8   : > { %v14816_v8 = vpop.f32.mrb[126].mxu1  ;;  %v14851_v20 = vpop.f32.mrb[128].mxu0 }
0x39b9   : > { %v14817_v53 = vpop.f32.mrb[127].mxu1  ;;  %v14852_v37 = vpop.f32.mrb[129].mxu0 }
0x39ba   : > { %v14818_v60 = vadd.f32 %v14817_v53, %v14816_v8  ;;  %v14853_v18 = vadd.f32 %v14852_v37, %v14851_v20 }
0x39bc   : > { %v12249_v9 = vadd.f32 %v14818_v60, %v12179_v51 }
0x39be   : > { %v12319_v27 = vadd.f32 %v14853_v18, %v12249_v9 }
0x39d8   : > { %v14886_v21 = vpop.f32.mrb[128].mxu1 }
0x39d9   : > { %v14921_v31 = vpop.f32.mrb[130].mxu0  ;;  %v14887_v63 = vpop.f32.mrb[129].mxu1 }
0x39da   : > { %v14888_v24 = vadd.f32 %v14887_v63, %v14886_v21  ;;  %v14922_v43 = vpop.f32.mrb[131].mxu0 }
0x39db   : > { %v14923_v16 = vadd.f32 %v14922_v43, %v14921_v31 }
0x39dc   : > { %v12389_v44 = vadd.f32 %v14888_v24, %v12319_v27 }
0x39de   : > { %v12459_v13 = vadd.f32 %v14923_v16, %v12389_v44 }
0x39f8   : > { %v14956_v0 = vpop.f32.mrb[130].mxu1 }
0x39f9   : > { %v14991_v56 = vpop.f32.mrb[132].mxu0  ;;  %v14957_v26 = vpop.f32.mrb[131].mxu1 }
0x39fa   : > { %v14958_v47 = vadd.f32 %v14957_v26, %v14956_v0  ;;  %v14992_v7 = vpop.f32.mrb[133].mxu0 }
0x39fb   : > { %v14993_v40 = vadd.f32 %v14992_v7, %v14991_v56 }
0x39fc   : > { %v12529_v52 = vadd.f32 %v14958_v47, %v12459_v13 }
0x39fe   : > { %v12599_v12 = vadd.f32 %v14993_v40, %v12529_v52 }
0x3a00   : > { %v12602_v15 = vadd.f32 %v12599_v12, %v19153_v49 }
0x3a02   : > { %v12605_v29 = vsel %vm1080_vm0, %v12602_v15, 0.0 }
0x3a03   : > { %12606 = vadd.xlane.f32.xlu1 %v12605_v29 }
0x3a90   : > { %v12607_v23 = vpop.xlane.xlu1 %12606 }
0x3a91   : > { %v12608_v11 = vmul.f32 0.03125, %v12607_v23 }
0x3a93   : > { %v12609_v59 = vsub.f32 %v12602_v15, %v12608_v11 }
0x3a95   : > { %v12610_v54 = vmul.f32 %v12609_v59, %v12609_v59  ;;  %v12621_v35 = vmul.f32 %v13691_v34, %v12609_v59 }
0x3a97   : > { %v12611_v30 = vsel %vm1080_vm0, %v12610_v54, 0.0 }
0x3a98   : > { %12612 = vadd.xlane.f32.xlu1 %v12611_v30 }
0x3b25   : > { %v12613_v49 = vpop.xlane.xlu1 %12612 }
0x3b26   : > { %v12614_v5 = vmul.f32 0.032258064, %v12613_v49 }
0x3b28   : > { %16958 = vrsqrt.f32 %v12614_v5  ;;  %vm12624_vm12 = vcmp.eq.f32.partialorder %v12614_v5, inf  ;;  %v12627_v32 = vand.u32 2147483648, %v12614_v5  ;;  %vm12626_vm1 = vcmp.eq.f32.partialorder %v12614_v5, 0.0 }
0x3b32   : > { %v16959_v1 = vpop.eup %16958 }
0x3b33   : > { %v12623_v6 = vmul.f32 %v16959_v1, %v12614_v5 }
0x3b35   : > { %v12625_v33 = vsel %vm12624_vm12, %v12614_v5, %v12623_v6 }
0x3b36   : > { %v12628_v61 = vsel %vm12626_vm1, %v12627_v32, %v12625_v33 }
0x3b37   : > { %v12629_v62 = vadd.f32 1e-06, %v12628_v61 }
0x3b39   : > { %16960 = vrcp.f32 %v12629_v62 }
0x3b43   : > { %v16961_v58 = vpop.eup %16960 }
0x3b44   : > { %v12631_v46 = vmul.f32 %v16961_v58, %v12621_v35 }
0x3b46   : > { %v12638_v25 = vadd.f32 %v13692_v41, %v12631_v46 }
0x3b48   : > { %15342 = vmatmul.mubr.msk.f32.vlgmr.msra.gmra.mrb[132].mxu1 %vm1080_vm0, %v12638_v25 }
0x3c1b   : > { %v12719_v22 = vpop.f32.mrb[132].mxu1 }
0x3c1c   : > { %v12720_v39 = vadd.f32 %v13693_v38, %v12719_v22  ;;  %v15343_v36 = vpop.f32.mrb[133].mxu1 }
0x3c1e   : > { %12723 = vst [vmem:[%s1074_s26] sm:$0xff] %v12720_v39 }
0x3c1f PF: > { %s79_s15 = sadd.s32 1, %s16969_s15  }
0x3c20   : > { %p76_p4 = scmp.ge.s32.totalorder %s79_s15, 4  }
0x3c22   :  { %78 = sbr.rel (!%p76_p4) target bundleno = 63 (0x3f), region = 253 }

</bundles_post_ra>
